<compile_context>
chip_gen: v7x
topology: tpu7x:2x2x1
jax: 0.10.0
libtpu: 0.0.40
codegen_flags: <defaults>
</compile_context>

<pallas_src>
import functools

import jax
import jax.numpy as jnp
from jax.experimental import pallas as pl
from jax.experimental.pallas import tpu as pltpu

NUM_GROUPS = 8
GN_EPS = 1e-5

# tap t = 3*dy + dx  <->  spatial offset (oy, ox) = (dy-1, dx-1), matching HWIO weight order.
TAPS = tuple((dy - 1, dx - 1) for dy in range(3) for dx in range(3))


# ----------------------------- in-kernel helpers -----------------------------

def _roll_lanes(a, k):
    """result[..., l] = a[..., l + k]  (wrap-around; callers mask invalid lanes)."""
    if k == 0:
        return a
    return pltpu.roll(a, (-k) % a.shape[-1], axis=a.ndim - 1)


def _conv3x3_stacked(x, w_stacked, b_col, masks, w):
    """3x3 SAME conv in [Cin, B*HW] layout as one stacked-K MXU matmul.

    x: [Cin, L], w_stacked: [Cout, 9*Cin], b_col: [Cout, 1], masks: [9, L] border masks."""
    parts = []
    for t, (oy, ox) in enumerate(TAPS):
        xt = _roll_lanes(x, oy * w + ox)
        if not (oy == 0 and ox == 0):          # center tap mask is all ones -> skip the multiply
            xt = xt * masks[t:t + 1, :]
        parts.append(xt)
    xs = jnp.concatenate(parts, axis=0)        # [9*Cin, L]
    return jnp.dot(w_stacked, xs, preferred_element_type=jnp.float32) + b_col


def _group_norm_relu(y, group_mix, seg, segT, gamma_col, beta_col):
    """One-pass GroupNorm (+ReLU) with per-batch stats; batch is folded into the lane axis.

    y: [C, L], group_mix: [C, C] = same-group / (HW*cg), seg: [L, B], segT: [B, L]."""
    s1 = jnp.dot(y, seg, preferred_element_type=jnp.float32)              # [C, B] per-batch sums
    s2 = jnp.dot(y * y, seg, preferred_element_type=jnp.float32)          # [C, B]
    mu = jnp.dot(group_mix, s1, preferred_element_type=jnp.float32)       # [C, B] group means
    ex2 = jnp.dot(group_mix, s2, preferred_element_type=jnp.float32)
    var = ex2 - mu * mu
    scale = gamma_col * jax.lax.rsqrt(var + GN_EPS)                       # [C, B]
    shift = beta_col - mu * scale                                         # [C, B]
    scale_l = jnp.dot(scale, segT, preferred_element_type=jnp.float32)    # broadcast to lanes
    shift_l = jnp.dot(shift, segT, preferred_element_type=jnp.float32)
    return jnp.maximum(y * scale_l + shift_l, 0.0)


# -------------------------------- kernel body ---------------------------------

def mask_head_kernel(x_ref, attn_ref, mem_ref,
                     w1_ref, w2_ref, w3_ref, wa_ref,
                     wout9_ref, wmask_ref,
                     masks_ref, gmix_ref, seg_ref, segT_ref, pp_ref,
                     out_ref, *, w, batch):
    masks = masks_ref[...]                     # [9, L]   precomputed border masks (tiled per image)
    gmix = gmix_ref[...]                       # [HID, HID]  same-group / (HW*cg)
    seg = seg_ref[...]                         # [L, B]   lane -> batch membership
    segT = segT_ref[...]                       # [B, L]
    pp = pp_ref[...]                           # [HID, 11] packed per-channel params

    b1, g1, gb1 = pp[:, 0:1], pp[:, 1:2], pp[:, 2:3]
    b2, g2, gb2 = pp[:, 3:4], pp[:, 4:5], pp[:, 5:6]
    b3, g3, gb3 = pp[:, 6:7], pp[:, 7:8], pp[:, 8:9]
    ba = pp[:, 9:10]
    bout = pp[0:1, 10:11]

    x = x_ref[...]                             # [C, L]

    # --- conv trunk: 3x (stacked-K 3x3 conv -> one-pass GroupNorm -> ReLU)
    y = _conv3x3_stacked(x, w1_ref[...], b1, masks, w)
    y = _group_norm_relu(y, gmix, seg, segT, g1, gb1)
    y = _conv3x3_stacked(y, w2_ref[...], b2, masks, w)
    y = _group_norm_relu(y, gmix, seg, segT, g2, gb2)
    y = _conv3x3_stacked(y, w3_ref[...], b3, masks, w)
    y = _group_norm_relu(y, gmix, seg, segT, g3, gb3)

    # 1x1 adapter + residual add.
    feat = y + jnp.dot(wa_ref[...], x, preferred_element_type=jnp.float32) + ba      # [D, L]

    # --- mask head: all Q queries at once; D contracted out of the per-query work.
    attn = attn_ref[...]                                                             # [Q, L]
    g_taps = jnp.dot(wout9_ref[...], feat, preferred_element_type=jnp.float32)       # [9, L]

    q, l = attn.shape
    acc = jnp.zeros((q, l), jnp.float32)
    for t, (oy, ox) in enumerate(TAPS):
        k = oy * w + ox
        u_t = _roll_lanes(g_taps[t:t + 1, :], k)                  # query-independent [1, L]
        if not (oy == 0 and ox == 0):
            u_t = u_t * masks[t:t + 1, :]
        acc = acc + _roll_lanes(attn, k) * u_t                    # one roll + one mul-add per tap

    # Memory term: sum_t mask_t * (wout_t . mem)  ==  mem @ (wout9^T @ masks_single)
    mem_parts = [jnp.dot(mem_ref[b], wmask_ref[...], preferred_element_type=jnp.float32)
                 for b in range(batch)]                           # B x [Q, HW]
    out_ref[...] = acc + jnp.concatenate(mem_parts, axis=1) + bout


# ---------------------------------- wrapper -----------------------------------

def _tap_masks_single(h, w):
    """[9, HW] per-tap validity masks over flattened output positions (center row is all ones)."""
    flat = jnp.arange(h * w, dtype=jnp.int32)
    yy = flat // w
    xx = flat - yy * w
    rows = []
    for oy, ox in TAPS:
        valid = ((yy + oy >= 0) & (yy + oy < h) & (xx + ox >= 0) & (xx + ox < w))
        rows.append(valid.astype(jnp.float32))
    return jnp.stack(rows, axis=0)


@jax.jit
def mask_head_forward(x_nchw, memory, attention_map, params):
    B, C, H, W = x_nchw.shape
    Q, D = memory.shape[1], memory.shape[2]
    HID = params["w1"].shape[-1]
    HW = H * W
    L = B * HW
    f32 = jnp.float32
    hp = jax.lax.Precision.HIGHEST

    # Batch folded into the 128-lane axis: [C, B*HW] / [Q, B*HW].
    x_flat = jnp.transpose(x_nchw.reshape(B, C, HW), (1, 0, 2)).reshape(C, L)
    attn_flat = jnp.transpose(attention_map, (1, 0, 2)).reshape(Q, L)

    # Stacked-K conv weights: [Cout, 9*Cin], tap-major then Cin (matches the in-kernel concat).
    def stack_w(wgt):                          # wgt: [3, 3, Cin, Cout] (HWIO)
        return jnp.transpose(wgt, (3, 0, 1, 2)).reshape(wgt.shape[-1], -1)

    w1s = stack_w(params["w1"])                # [HID, 9*C]
    w2s = stack_w(params["w2"])                # [HID, 9*HID]
    w3s = stack_w(params["w3"])                # [HID, 9*HID]
    wa = jnp.transpose(params["wa1"])          # [D, C]
    wout9 = params["wout4"][:, :, :, 0].reshape(9, D)             # [9, D]

    # Hoisted constants (computed once here, not per kernel step).
    masks_single = _tap_masks_single(H, W)                        # [9, HW]
    masks9 = jnp.tile(masks_single, (1, B))                       # [9, L]
    wmask = jnp.dot(jnp.transpose(wout9), masks_single, precision=hp)   # [D, HW]
    cg = HID // NUM_GROUPS
    gidx = jnp.arange(HID) // cg
    gmix = (gidx[:, None] == gidx[None, :]).astype(f32) / float(HW * cg)   # [HID, HID]
    bidx = jnp.arange(L) // HW
    seg = (bidx[:, None] == jnp.arange(B)[None, :]).astype(f32)   # [L, B]
    segT = jnp.transpose(seg)                                     # [B, L]

    # Pack the 10 per-channel vectors + scalar out-bias into one operand.
    col = lambda v: v.reshape(HID, 1).astype(f32)
    pp = jnp.concatenate(
        [col(params["b1"]), col(params["g1"]), col(params["gb1"]),
         col(params["b2"]), col(params["g2"]), col(params["gb2"]),
         col(params["b3"]), col(params["g3"]), col(params["gb3"]),
         col(params["ba1"]),
         jnp.broadcast_to(params["bout"].reshape(1, 1), (HID, 1)).astype(f32)],
        axis=1)                                                   # [HID, 11]

    # Single invocation: no grid, every operand is a whole-array VMEM block (no pipeline
    # bookkeeping / double-buffering for constant operands).
    out = pl.pallas_call(
        functools.partial(mask_head_kernel, w=W, batch=B),
        out_shape=jax.ShapeDtypeStruct((Q, L), jnp.float32),
    )(x_flat, attn_flat, memory,
      w1s, w2s, w3s, wa, wout9, wmask,
      masks9, gmix, seg, segT, pp)

    return jnp.transpose(out.reshape(Q, B, H, W), (1, 0, 2, 3))


# ------------------------- pure-JAX reference (check) -------------------------

def reference_forward(x_nchw, memory, attn_flat, p):
    hp = jax.lax.Precision.HIGHEST
    x = jnp.transpose(x_nchw, (0, 2, 3, 1))

    def conv(inp, wgt, b):
        return jax.lax.conv_general_dilated(
            inp, wgt, (1, 1), "SAME",
            dimension_numbers=("NHWC", "HWIO", "NHWC"), precision=hp) + b

    def gn(y, gamma, beta):
        B_, H_, W_, Ch = y.shape
        cg = Ch // NUM_GROUPS
        yr = y.reshape(B_, H_, W_, NUM_GROUPS, cg)
        mu = yr.mean(axis=(1, 2, 4), keepdims=True)
        var = ((yr - mu) ** 2).mean(axis=(1, 2, 4), keepdims=True)
        yn = ((yr - mu) / jnp.sqrt(var + GN_EPS)).reshape(B_, H_, W_, Ch)
        return yn * gamma + beta

    out = jax.nn.relu(gn(conv(x, p["w1"], p["b1"]), p["g1"], p["gb1"]))
    out = jax.nn.relu(gn(conv(out, p["w2"], p["b2"]), p["g2"], p["gb2"]))
    out = jax.nn.relu(gn(conv(out, p["w3"], p["b3"]), p["g3"], p["gb3"]))
    out = out + (jnp.einsum("bhwc,cd->bhwd", x, p["wa1"], precision=hp) + p["ba1"])

    B_, Q_, D_ = memory.shape
    H_, W_ = x.shape[1:3]
    attn = attn_flat.reshape(B_, Q_, H_, W_)
    fused = out[:, None] * attn[..., None] + memory[:, :, None, None, :]
    fused = fused.reshape(B_ * Q_, H_, W_, D_)
    res = jax.lax.conv_general_dilated(
        fused, p["wout4"], (1, 1), "SAME",
        dimension_numbers=("NHWC", "HWIO", "NHWC"), precision=hp) + p["bout"]
    return res.reshape(B_, Q_, H_, W_)


# ----------------------------------- main -------------------------------------

if __name__ == "__main__":
    B, C, H, W = 2, 8, 16, 16       # batch, context_dim, spatial
    HID = DIM = 32                  # hidden_dim == dim (required by the residual add)
    Q = 8                           # num_queries

    key = jax.random.PRNGKey(0)
    kit = iter(jax.random.split(key, 20))
    nk = lambda: next(kit)

    def kaiming_uniform(k, shape, fan_in):   # kaiming_uniform_ with a=1 -> bound = sqrt(3/fan_in)
        bound = (3.0 / fan_in) ** 0.5
        return jax.random.uniform(k, shape, jnp.float32, -bound, bound)

    params = {
        "w1": kaiming_uniform(nk(), (3, 3, C, HID), 9 * C),
        "b1": 0.1 * jax.random.normal(nk(), (1, HID), jnp.float32),
        "g1": 1.0 + 0.1 * jax.random.normal(nk(), (1, HID), jnp.float32),
        "gb1": 0.1 * jax.random.normal(nk(), (1, HID), jnp.float32),
        "w2": kaiming_uniform(nk(), (3, 3, HID, HID), 9 * HID),
        "b2": 0.1 * jax.random.normal(nk(), (1, HID), jnp.float32),
        "g2": 1.0 + 0.1 * jax.random.normal(nk(), (1, HID), jnp.float32),
        "gb2": 0.1 * jax.random.normal(nk(), (1, HID), jnp.float32),
        "w3": kaiming_uniform(nk(), (3, 3, HID, HID), 9 * HID),
        "b3": 0.1 * jax.random.normal(nk(), (1, HID), jnp.float32),
        "g3": 1.0 + 0.1 * jax.random.normal(nk(), (1, HID), jnp.float32),
        "gb3": 0.1 * jax.random.normal(nk(), (1, HID), jnp.float32),
        "wa1": kaiming_uniform(nk(), (C, DIM), C),               # adapter1 (1x1 conv)
        "ba1": 0.1 * jax.random.normal(nk(), (1, DIM), jnp.float32),
        "wout4": kaiming_uniform(nk(), (3, 3, DIM, 1), 9 * DIM),
        "bout": 0.1 * jax.random.normal(nk(), (1, 1), jnp.float32),
    }

    x = jax.random.normal(nk(), (B, C, H, W), jnp.float32)       # NCHW like PyTorch
    memory = jax.random.normal(nk(), (B, Q, DIM), jnp.float32)
    attention_map = jax.nn.softmax(
        jax.random.normal(nk(), (B, Q, H * W), jnp.float32), axis=-1)

    out = mask_head_forward(x, memory, attention_map, params)
    out = jax.block_until_ready(out)

    assert out.shape == (B, Q, H, W)
    assert bool(jnp.all(jnp.isfinite(out)))
    ref = reference_forward(x, memory, attention_map, params)
    max_err = float(jnp.max(jnp.abs(out - ref)))
    assert max_err < 3e-2, f"mismatch vs reference: {max_err}"

    print("KERNEL_OK")
</pallas_src>

<mosaic_0001>
module attributes {stable_mosaic.version = 11 : i64} {
  func.func @mask_head_kernel(%arg0: memref<8x512xf32, #tpu.memory_space<vmem>>, %arg1: memref<8x512xf32, #tpu.memory_space<vmem>>, %arg2: memref<2x8x32xf32, #tpu.memory_space<vmem>>, %arg3: memref<32x72xf32, #tpu.memory_space<vmem>>, %arg4: memref<32x288xf32, #tpu.memory_space<vmem>>, %arg5: memref<32x288xf32, #tpu.memory_space<vmem>>, %arg6: memref<32x8xf32, #tpu.memory_space<vmem>>, %arg7: memref<9x32xf32, #tpu.memory_space<vmem>>, %arg8: memref<32x256xf32, #tpu.memory_space<vmem>>, %arg9: memref<9x512xf32, #tpu.memory_space<vmem>>, %arg10: memref<32x32xf32, #tpu.memory_space<vmem>>, %arg11: memref<512x2xf32, #tpu.memory_space<vmem>>, %arg12: memref<2x512xf32, #tpu.memory_space<vmem>>, %arg13: memref<32x11xf32, #tpu.memory_space<vmem>>, %arg14: memref<8x512xf32, #tpu.memory_space<vmem>>) attributes {dimension_semantics = [], scalar_prefetch = 0 : i64, scratch_operands = 0 : i64, tpu.core_type = #tpu.core_type<tc>} {
    %c0 = arith.constant 0 : index
    %c0_0 = arith.constant 0 : index
    %0 = vector.load %arg9[%c0, %c0_0] : memref<9x512xf32, #tpu.memory_space<vmem>>, vector<9x512xf32>
    %c0_1 = arith.constant 0 : index
    %c0_2 = arith.constant 0 : index
    %1 = vector.load %arg10[%c0_1, %c0_2] : memref<32x32xf32, #tpu.memory_space<vmem>>, vector<32x32xf32>
    %c0_3 = arith.constant 0 : index
    %c0_4 = arith.constant 0 : index
    %2 = vector.load %arg11[%c0_3, %c0_4] : memref<512x2xf32, #tpu.memory_space<vmem>>, vector<512x2xf32>
    %c0_5 = arith.constant 0 : index
    %c0_6 = arith.constant 0 : index
    %3 = vector.load %arg12[%c0_5, %c0_6] : memref<2x512xf32, #tpu.memory_space<vmem>>, vector<2x512xf32>
    %c0_7 = arith.constant 0 : index
    %c0_8 = arith.constant 0 : index
    %4 = vector.load %arg13[%c0_7, %c0_8] : memref<32x11xf32, #tpu.memory_space<vmem>>, vector<32x11xf32>
    %5 = vector.extract_strided_slice %4 {offsets = [0, 0], sizes = [32, 1], strides = [1, 1]} : vector<32x11xf32> to vector<32x1xf32>
    %6 = vector.extract_strided_slice %4 {offsets = [0, 1], sizes = [32, 1], strides = [1, 1]} : vector<32x11xf32> to vector<32x1xf32>
    %7 = vector.extract_strided_slice %4 {offsets = [0, 2], sizes = [32, 1], strides = [1, 1]} : vector<32x11xf32> to vector<32x1xf32>
    %8 = vector.extract_strided_slice %4 {offsets = [0, 3], sizes = [32, 1], strides = [1, 1]} : vector<32x11xf32> to vector<32x1xf32>
    %9 = vector.extract_strided_slice %4 {offsets = [0, 4], sizes = [32, 1], strides = [1, 1]} : vector<32x11xf32> to vector<32x1xf32>
    %10 = vector.extract_strided_slice %4 {offsets = [0, 5], sizes = [32, 1], strides = [1, 1]} : vector<32x11xf32> to vector<32x1xf32>
    %11 = vector.extract_strided_slice %4 {offsets = [0, 6], sizes = [32, 1], strides = [1, 1]} : vector<32x11xf32> to vector<32x1xf32>
    %12 = vector.extract_strided_slice %4 {offsets = [0, 7], sizes = [32, 1], strides = [1, 1]} : vector<32x11xf32> to vector<32x1xf32>
    %13 = vector.extract_strided_slice %4 {offsets = [0, 8], sizes = [32, 1], strides = [1, 1]} : vector<32x11xf32> to vector<32x1xf32>
    %14 = vector.extract_strided_slice %4 {offsets = [0, 9], sizes = [32, 1], strides = [1, 1]} : vector<32x11xf32> to vector<32x1xf32>
    %15 = vector.extract_strided_slice %4 {offsets = [0, 10], sizes = [1, 1], strides = [1, 1]} : vector<32x11xf32> to vector<1x1xf32>
    %c0_9 = arith.constant 0 : index
    %c0_10 = arith.constant 0 : index
    %16 = vector.load %arg0[%c0_9, %c0_10] : memref<8x512xf32, #tpu.memory_space<vmem>>, vector<8x512xf32>
    %c0_11 = arith.constant 0 : index
    %c0_12 = arith.constant 0 : index
    %17 = vector.load %arg3[%c0_11, %c0_12] : memref<32x72xf32, #tpu.memory_space<vmem>>, vector<32x72xf32>
    %c17_i32 = arith.constant 17 : i32
    %18 = tpu.dynamic_rotate %16 by %c17_i32 dim 1 : vector<8x512xf32>, i32 -> vector<8x512xf32>
    %19 = vector.extract_strided_slice %0 {offsets = [0, 0], sizes = [1, 512], strides = [1, 1]} : vector<9x512xf32> to vector<1x512xf32>
    %20 = vector.broadcast %19 : vector<1x512xf32> to vector<8x512xf32>
    %21 = arith.mulf %18, %20 : vector<8x512xf32>
    %c16_i32 = arith.constant 16 : i32
    %22 = tpu.dynamic_rotate %16 by %c16_i32 dim 1 : vector<8x512xf32>, i32 -> vector<8x512xf32>
    %23 = vector.extract_strided_slice %0 {offsets = [1, 0], sizes = [1, 512], strides = [1, 1]} : vector<9x512xf32> to vector<1x512xf32>
    %24 = vector.broadcast %23 : vector<1x512xf32> to vector<8x512xf32>
    %25 = arith.mulf %22, %24 : vector<8x512xf32>
    %c15_i32 = arith.constant 15 : i32
    %26 = tpu.dynamic_rotate %16 by %c15_i32 dim 1 : vector<8x512xf32>, i32 -> vector<8x512xf32>
    %27 = vector.extract_strided_slice %0 {offsets = [2, 0], sizes = [1, 512], strides = [1, 1]} : vector<9x512xf32> to vector<1x512xf32>
    %28 = vector.broadcast %27 : vector<1x512xf32> to vector<8x512xf32>
    %29 = arith.mulf %26, %28 : vector<8x512xf32>
    %c1_i32 = arith.constant 1 : i32
    %30 = tpu.dynamic_rotate %16 by %c1_i32 dim 1 : vector<8x512xf32>, i32 -> vector<8x512xf32>
    %31 = vector.extract_strided_slice %0 {offsets = [3, 0], sizes = [1, 512], strides = [1, 1]} : vector<9x512xf32> to vector<1x512xf32>
    %32 = vector.broadcast %31 : vector<1x512xf32> to vector<8x512xf32>
    %33 = arith.mulf %30, %32 : vector<8x512xf32>
    %c511_i32 = arith.constant 511 : i32
    %34 = tpu.dynamic_rotate %16 by %c511_i32 dim 1 : vector<8x512xf32>, i32 -> vector<8x512xf32>
    %35 = vector.extract_strided_slice %0 {offsets = [5, 0], sizes = [1, 512], strides = [1, 1]} : vector<9x512xf32> to vector<1x512xf32>
    %36 = vector.broadcast %35 : vector<1x512xf32> to vector<8x512xf32>
    %37 = arith.mulf %34, %36 : vector<8x512xf32>
    %c497_i32 = arith.constant 497 : i32
    %38 = tpu.dynamic_rotate %16 by %c497_i32 dim 1 : vector<8x512xf32>, i32 -> vector<8x512xf32>
    %39 = vector.extract_strided_slice %0 {offsets = [6, 0], sizes = [1, 512], strides = [1, 1]} : vector<9x512xf32> to vector<1x512xf32>
    %40 = vector.broadcast %39 : vector<1x512xf32> to vector<8x512xf32>
    %41 = arith.mulf %38, %40 : vector<8x512xf32>
    %c496_i32 = arith.constant 496 : i32
    %42 = tpu.dynamic_rotate %16 by %c496_i32 dim 1 : vector<8x512xf32>, i32 -> vector<8x512xf32>
    %43 = vector.extract_strided_slice %0 {offsets = [7, 0], sizes = [1, 512], strides = [1, 1]} : vector<9x512xf32> to vector<1x512xf32>
    %44 = vector.broadcast %43 : vector<1x512xf32> to vector<8x512xf32>
    %45 = arith.mulf %42, %44 : vector<8x512xf32>
    %c495_i32 = arith.constant 495 : i32
    %46 = tpu.dynamic_rotate %16 by %c495_i32 dim 1 : vector<8x512xf32>, i32 -> vector<8x512xf32>
    %47 = vector.extract_strided_slice %0 {offsets = [8, 0], sizes = [1, 512], strides = [1, 1]} : vector<9x512xf32> to vector<1x512xf32>
    %48 = vector.broadcast %47 : vector<1x512xf32> to vector<8x512xf32>
    %49 = arith.mulf %46, %48 : vector<8x512xf32>
    %50 = tpu.concatenate %21, %25, %29, %33, %16, %37, %41, %45, %49 in 0 : vector<8x512xf32>, vector<8x512xf32>, vector<8x512xf32>, vector<8x512xf32>, vector<8x512xf32>, vector<8x512xf32>, vector<8x512xf32>, vector<8x512xf32>, vector<8x512xf32> -> vector<72x512xf32>
    %cst = arith.constant dense<0.000000e+00> : vector<32x512xf32>
    %51 = tpu.matmul %17, %50, %cst {dimension_numbers = #tpu.dot_dimension_numbers<[1], [0], [0], [1], [0, 0, 1, 1], [], []>} : vector<32x72xf32>, vector<72x512xf32>, vector<32x512xf32> -> vector<32x512xf32>
    %52 = vector.broadcast %5 : vector<32x1xf32> to vector<32x512xf32>
    %53 = arith.addf %51, %52 : vector<32x512xf32>
    %cst_13 = arith.constant dense<0.000000e+00> : vector<32x2xf32>
    %54 = tpu.matmul %53, %2, %cst_13 {dimension_numbers = #tpu.dot_dimension_numbers<[1], [0], [0], [1], [0, 0, 1, 1], [], []>} : vector<32x512xf32>, vector<512x2xf32>, vector<32x2xf32> -> vector<32x2xf32>
    %55 = arith.mulf %53, %53 : vector<32x512xf32>
    %cst_14 = arith.constant dense<0.000000e+00> : vector<32x2xf32>
    %56 = tpu.matmul %55, %2, %cst_14 {dimension_numbers = #tpu.dot_dimension_numbers<[1], [0], [0], [1], [0, 0, 1, 1], [], []>} : vector<32x512xf32>, vector<512x2xf32>, vector<32x2xf32> -> vector<32x2xf32>
    %cst_15 = arith.constant dense<0.000000e+00> : vector<32x2xf32>
    %57 = tpu.matmul %1, %54, %cst_15 {dimension_numbers = #tpu.dot_dimension_numbers<[1], [0], [0], [1], [0, 0, 1, 1], [], []>} : vector<32x32xf32>, vector<32x2xf32>, vector<32x2xf32> -> vector<32x2xf32>
    %cst_16 = arith.constant dense<0.000000e+00> : vector<32x2xf32>
    %58 = tpu.matmul %1, %56, %cst_16 {dimension_numbers = #tpu.dot_dimension_numbers<[1], [0], [0], [1], [0, 0, 1, 1], [], []>} : vector<32x32xf32>, vector<32x2xf32>, vector<32x2xf32> -> vector<32x2xf32>
    %59 = arith.mulf %57, %57 : vector<32x2xf32>
    %60 = arith.subf %58, %59 : vector<32x2xf32>
    %cst_17 = arith.constant 9.99999974E-6 : f32
    %61 = vector.broadcast %cst_17 : f32 to vector<32x2xf32>
    %62 = arith.addf %60, %61 : vector<32x2xf32>
    %63 = math.rsqrt %62 : vector<32x2xf32>
    %64 = vector.broadcast %6 : vector<32x1xf32> to vector<32x2xf32>
    %65 = arith.mulf %64, %63 : vector<32x2xf32>
    %66 = arith.mulf %57, %65 : vector<32x2xf32>
    %67 = vector.broadcast %7 : vector<32x1xf32> to vector<32x2xf32>
    %68 = arith.subf %67, %66 : vector<32x2xf32>
    %cst_18 = arith.constant dense<0.000000e+00> : vector<32x512xf32>
    %69 = tpu.matmul %65, %3, %cst_18 {dimension_numbers = #tpu.dot_dimension_numbers<[1], [0], [0], [1], [0, 0, 1, 1], [], []>} : vector<32x2xf32>, vector<2x512xf32>, vector<32x512xf32> -> vector<32x512xf32>
    %cst_19 = arith.constant dense<0.000000e+00> : vector<32x512xf32>
    %70 = tpu.matmul %68, %3, %cst_19 {dimension_numbers = #tpu.dot_dimension_numbers<[1], [0], [0], [1], [0, 0, 1, 1], [], []>} : vector<32x2xf32>, vector<2x512xf32>, vector<32x512xf32> -> vector<32x512xf32>
    %71 = arith.mulf %53, %69 : vector<32x512xf32>
    %72 = arith.addf %71, %70 : vector<32x512xf32>
    %cst_20 = arith.constant 0.000000e+00 : f32
    %73 = vector.broadcast %cst_20 : f32 to vector<32x512xf32>
    %74 = arith.maximumf %72, %73 : vector<32x512xf32>
    %c0_21 = arith.constant 0 : index
    %c0_22 = arith.constant 0 : index
    %75 = vector.load %arg4[%c0_21, %c0_22] : memref<32x288xf32, #tpu.memory_space<vmem>>, vector<32x288xf32>
    %c17_i32_23 = arith.constant 17 : i32
    %76 = tpu.dynamic_rotate %74 by %c17_i32_23 dim 1 : vector<32x512xf32>, i32 -> vector<32x512xf32>
    %77 = vector.extract_strided_slice %0 {offsets = [0, 0], sizes = [1, 512], strides = [1, 1]} : vector<9x512xf32> to vector<1x512xf32>
    %78 = vector.broadcast %77 : vector<1x512xf32> to vector<32x512xf32>
    %79 = arith.mulf %76, %78 : vector<32x512xf32>
    %c16_i32_24 = arith.constant 16 : i32
    %80 = tpu.dynamic_rotate %74 by %c16_i32_24 dim 1 : vector<32x512xf32>, i32 -> vector<32x512xf32>
    %81 = vector.extract_strided_slice %0 {offsets = [1, 0], sizes = [1, 512], strides = [1, 1]} : vector<9x512xf32> to vector<1x512xf32>
    %82 = vector.broadcast %81 : vector<1x512xf32> to vector<32x512xf32>
    %83 = arith.mulf %80, %82 : vector<32x512xf32>
    %c15_i32_25 = arith.constant 15 : i32
    %84 = tpu.dynamic_rotate %74 by %c15_i32_25 dim 1 : vector<32x512xf32>, i32 -> vector<32x512xf32>
    %85 = vector.extract_strided_slice %0 {offsets = [2, 0], sizes = [1, 512], strides = [1, 1]} : vector<9x512xf32> to vector<1x512xf32>
    %86 = vector.broadcast %85 : vector<1x512xf32> to vector<32x512xf32>
    %87 = arith.mulf %84, %86 : vector<32x512xf32>
    %c1_i32_26 = arith.constant 1 : i32
    %88 = tpu.dynamic_rotate %74 by %c1_i32_26 dim 1 : vector<32x512xf32>, i32 -> vector<32x512xf32>
    %89 = vector.extract_strided_slice %0 {offsets = [3, 0], sizes = [1, 512], strides = [1, 1]} : vector<9x512xf32> to vector<1x512xf32>
    %90 = vector.broadcast %89 : vector<1x512xf32> to vector<32x512xf32>
    %91 = arith.mulf %88, %90 : vector<32x512xf32>
    %c511_i32_27 = arith.constant 511 : i32
    %92 = tpu.dynamic_rotate %74 by %c511_i32_27 dim 1 : vector<32x512xf32>, i32 -> vector<32x512xf32>
    %93 = vector.extract_strided_slice %0 {offsets = [5, 0], sizes = [1, 512], strides = [1, 1]} : vector<9x512xf32> to vector<1x512xf32>
    %94 = vector.broadcast %93 : vector<1x512xf32> to vector<32x512xf32>
    %95 = arith.mulf %92, %94 : vector<32x512xf32>
    %c497_i32_28 = arith.constant 497 : i32
    %96 = tpu.dynamic_rotate %74 by %c497_i32_28 dim 1 : vector<32x512xf32>, i32 -> vector<32x512xf32>
    %97 = vector.extract_strided_slice %0 {offsets = [6, 0], sizes = [1, 512], strides = [1, 1]} : vector<9x512xf32> to vector<1x512xf32>
    %98 = vector.broadcast %97 : vector<1x512xf32> to vector<32x512xf32>
    %99 = arith.mulf %96, %98 : vector<32x512xf32>
    %c496_i32_29 = arith.constant 496 : i32
    %100 = tpu.dynamic_rotate %74 by %c496_i32_29 dim 1 : vector<32x512xf32>, i32 -> vector<32x512xf32>
    %101 = vector.extract_strided_slice %0 {offsets = [7, 0], sizes = [1, 512], strides = [1, 1]} : vector<9x512xf32> to vector<1x512xf32>
    %102 = vector.broadcast %101 : vector<1x512xf32> to vector<32x512xf32>
    %103 = arith.mulf %100, %102 : vector<32x512xf32>
    %c495_i32_30 = arith.constant 495 : i32
    %104 = tpu.dynamic_rotate %74 by %c495_i32_30 dim 1 : vector<32x512xf32>, i32 -> vector<32x512xf32>
    %105 = vector.extract_strided_slice %0 {offsets = [8, 0], sizes = [1, 512], strides = [1, 1]} : vector<9x512xf32> to vector<1x512xf32>
    %106 = vector.broadcast %105 : vector<1x512xf32> to vector<32x512xf32>
    %107 = arith.mulf %104, %106 : vector<32x512xf32>
    %108 = tpu.concatenate %79, %83, %87, %91, %74, %95, %99, %103, %107 in 0 : vector<32x512xf32>, vector<32x512xf32>, vector<32x512xf32>, vector<32x512xf32>, vector<32x512xf32>, vector<32x512xf32>, vector<32x512xf32>, vector<32x512xf32>, vector<32x512xf32> -> vector<288x512xf32>
    %cst_31 = arith.constant dense<0.000000e+00> : vector<32x512xf32>
    %109 = tpu.matmul %75, %108, %cst_31 {dimension_numbers = #tpu.dot_dimension_numbers<[1], [0], [0], [1], [0, 0, 1, 1], [], []>} : vector<32x288xf32>, vector<288x512xf32>, vector<32x512xf32> -> vector<32x512xf32>
    %110 = vector.broadcast %8 : vector<32x1xf32> to vector<32x512xf32>
    %111 = arith.addf %109, %110 : vector<32x512xf32>
    %cst_32 = arith.constant dense<0.000000e+00> : vector<32x2xf32>
    %112 = tpu.matmul %111, %2, %cst_32 {dimension_numbers = #tpu.dot_dimension_numbers<[1], [0], [0], [1], [0, 0, 1, 1], [], []>} : vector<32x512xf32>, vector<512x2xf32>, vector<32x2xf32> -> vector<32x2xf32>
    %113 = arith.mulf %111, %111 : vector<32x512xf32>
    %cst_33 = arith.constant dense<0.000000e+00> : vector<32x2xf32>
    %114 = tpu.matmul %113, %2, %cst_33 {dimension_numbers = #tpu.dot_dimension_numbers<[1], [0], [0], [1], [0, 0, 1, 1], [], []>} : vector<32x512xf32>, vector<512x2xf32>, vector<32x2xf32> -> vector<32x2xf32>
    %cst_34 = arith.constant dense<0.000000e+00> : vector<32x2xf32>
    %115 = tpu.matmul %1, %112, %cst_34 {dimension_numbers = #tpu.dot_dimension_numbers<[1], [0], [0], [1], [0, 0, 1, 1], [], []>} : vector<32x32xf32>, vector<32x2xf32>, vector<32x2xf32> -> vector<32x2xf32>
    %cst_35 = arith.constant dense<0.000000e+00> : vector<32x2xf32>
    %116 = tpu.matmul %1, %114, %cst_35 {dimension_numbers = #tpu.dot_dimension_numbers<[1], [0], [0], [1], [0, 0, 1, 1], [], []>} : vector<32x32xf32>, vector<32x2xf32>, vector<32x2xf32> -> vector<32x2xf32>
    %117 = arith.mulf %115, %115 : vector<32x2xf32>
    %118 = arith.subf %116, %117 : vector<32x2xf32>
    %cst_36 = arith.constant 9.99999974E-6 : f32
    %119 = vector.broadcast %cst_36 : f32 to vector<32x2xf32>
    %120 = arith.addf %118, %119 : vector<32x2xf32>
    %121 = math.rsqrt %120 : vector<32x2xf32>
    %122 = vector.broadcast %9 : vector<32x1xf32> to vector<32x2xf32>
    %123 = arith.mulf %122, %121 : vector<32x2xf32>
    %124 = arith.mulf %115, %123 : vector<32x2xf32>
    %125 = vector.broadcast %10 : vector<32x1xf32> to vector<32x2xf32>
    %126 = arith.subf %125, %124 : vector<32x2xf32>
    %cst_37 = arith.constant dense<0.000000e+00> : vector<32x512xf32>
    %127 = tpu.matmul %123, %3, %cst_37 {dimension_numbers = #tpu.dot_dimension_numbers<[1], [0], [0], [1], [0, 0, 1, 1], [], []>} : vector<32x2xf32>, vector<2x512xf32>, vector<32x512xf32> -> vector<32x512xf32>
    %cst_38 = arith.constant dense<0.000000e+00> : vector<32x512xf32>
    %128 = tpu.matmul %126, %3, %cst_38 {dimension_numbers = #tpu.dot_dimension_numbers<[1], [0], [0], [1], [0, 0, 1, 1], [], []>} : vector<32x2xf32>, vector<2x512xf32>, vector<32x512xf32> -> vector<32x512xf32>
    %129 = arith.mulf %111, %127 : vector<32x512xf32>
    %130 = arith.addf %129, %128 : vector<32x512xf32>
    %cst_39 = arith.constant 0.000000e+00 : f32
    %131 = vector.broadcast %cst_39 : f32 to vector<32x512xf32>
    %132 = arith.maximumf %130, %131 : vector<32x512xf32>
    %c0_40 = arith.constant 0 : index
    %c0_41 = arith.constant 0 : index
    %133 = vector.load %arg5[%c0_40, %c0_41] : memref<32x288xf32, #tpu.memory_space<vmem>>, vector<32x288xf32>
    %c17_i32_42 = arith.constant 17 : i32
    %134 = tpu.dynamic_rotate %132 by %c17_i32_42 dim 1 : vector<32x512xf32>, i32 -> vector<32x512xf32>
    %135 = vector.extract_strided_slice %0 {offsets = [0, 0], sizes = [1, 512], strides = [1, 1]} : vector<9x512xf32> to vector<1x512xf32>
    %136 = vector.broadcast %135 : vector<1x512xf32> to vector<32x512xf32>
    %137 = arith.mulf %134, %136 : vector<32x512xf32>
    %c16_i32_43 = arith.constant 16 : i32
    %138 = tpu.dynamic_rotate %132 by %c16_i32_43 dim 1 : vector<32x512xf32>, i32 -> vector<32x512xf32>
    %139 = vector.extract_strided_slice %0 {offsets = [1, 0], sizes = [1, 512], strides = [1, 1]} : vector<9x512xf32> to vector<1x512xf32>
    %140 = vector.broadcast %139 : vector<1x512xf32> to vector<32x512xf32>
    %141 = arith.mulf %138, %140 : vector<32x512xf32>
    %c15_i32_44 = arith.constant 15 : i32
    %142 = tpu.dynamic_rotate %132 by %c15_i32_44 dim 1 : vector<32x512xf32>, i32 -> vector<32x512xf32>
    %143 = vector.extract_strided_slice %0 {offsets = [2, 0], sizes = [1, 512], strides = [1, 1]} : vector<9x512xf32> to vector<1x512xf32>
    %144 = vector.broadcast %143 : vector<1x512xf32> to vector<32x512xf32>
    %145 = arith.mulf %142, %144 : vector<32x512xf32>
    %c1_i32_45 = arith.constant 1 : i32
    %146 = tpu.dynamic_rotate %132 by %c1_i32_45 dim 1 : vector<32x512xf32>, i32 -> vector<32x512xf32>
    %147 = vector.extract_strided_slice %0 {offsets = [3, 0], sizes = [1, 512], strides = [1, 1]} : vector<9x512xf32> to vector<1x512xf32>
    %148 = vector.broadcast %147 : vector<1x512xf32> to vector<32x512xf32>
    %149 = arith.mulf %146, %148 : vector<32x512xf32>
    %c511_i32_46 = arith.constant 511 : i32
    %150 = tpu.dynamic_rotate %132 by %c511_i32_46 dim 1 : vector<32x512xf32>, i32 -> vector<32x512xf32>
    %151 = vector.extract_strided_slice %0 {offsets = [5, 0], sizes = [1, 512], strides = [1, 1]} : vector<9x512xf32> to vector<1x512xf32>
    %152 = vector.broadcast %151 : vector<1x512xf32> to vector<32x512xf32>
    %153 = arith.mulf %150, %152 : vector<32x512xf32>
    %c497_i32_47 = arith.constant 497 : i32
    %154 = tpu.dynamic_rotate %132 by %c497_i32_47 dim 1 : vector<32x512xf32>, i32 -> vector<32x512xf32>
    %155 = vector.extract_strided_slice %0 {offsets = [6, 0], sizes = [1, 512], strides = [1, 1]} : vector<9x512xf32> to vector<1x512xf32>
    %156 = vector.broadcast %155 : vector<1x512xf32> to vector<32x512xf32>
    %157 = arith.mulf %154, %156 : vector<32x512xf32>
    %c496_i32_48 = arith.constant 496 : i32
    %158 = tpu.dynamic_rotate %132 by %c496_i32_48 dim 1 : vector<32x512xf32>, i32 -> vector<32x512xf32>
    %159 = vector.extract_strided_slice %0 {offsets = [7, 0], sizes = [1, 512], strides = [1, 1]} : vector<9x512xf32> to vector<1x512xf32>
    %160 = vector.broadcast %159 : vector<1x512xf32> to vector<32x512xf32>
    %161 = arith.mulf %158, %160 : vector<32x512xf32>
    %c495_i32_49 = arith.constant 495 : i32
    %162 = tpu.dynamic_rotate %132 by %c495_i32_49 dim 1 : vector<32x512xf32>, i32 -> vector<32x512xf32>
    %163 = vector.extract_strided_slice %0 {offsets = [8, 0], sizes = [1, 512], strides = [1, 1]} : vector<9x512xf32> to vector<1x512xf32>
    %164 = vector.broadcast %163 : vector<1x512xf32> to vector<32x512xf32>
    %165 = arith.mulf %162, %164 : vector<32x512xf32>
    %166 = tpu.concatenate %137, %141, %145, %149, %132, %153, %157, %161, %165 in 0 : vector<32x512xf32>, vector<32x512xf32>, vector<32x512xf32>, vector<32x512xf32>, vector<32x512xf32>, vector<32x512xf32>, vector<32x512xf32>, vector<32x512xf32>, vector<32x512xf32> -> vector<288x512xf32>
    %cst_50 = arith.constant dense<0.000000e+00> : vector<32x512xf32>
    %167 = tpu.matmul %133, %166, %cst_50 {dimension_numbers = #tpu.dot_dimension_numbers<[1], [0], [0], [1], [0, 0, 1, 1], [], []>} : vector<32x288xf32>, vector<288x512xf32>, vector<32x512xf32> -> vector<32x512xf32>
    %168 = vector.broadcast %11 : vector<32x1xf32> to vector<32x512xf32>
    %169 = arith.addf %167, %168 : vector<32x512xf32>
    %cst_51 = arith.constant dense<0.000000e+00> : vector<32x2xf32>
    %170 = tpu.matmul %169, %2, %cst_51 {dimension_numbers = #tpu.dot_dimension_numbers<[1], [0], [0], [1], [0, 0, 1, 1], [], []>} : vector<32x512xf32>, vector<512x2xf32>, vector<32x2xf32> -> vector<32x2xf32>
    %171 = arith.mulf %169, %169 : vector<32x512xf32>
    %cst_52 = arith.constant dense<0.000000e+00> : vector<32x2xf32>
    %172 = tpu.matmul %171, %2, %cst_52 {dimension_numbers = #tpu.dot_dimension_numbers<[1], [0], [0], [1], [0, 0, 1, 1], [], []>} : vector<32x512xf32>, vector<512x2xf32>, vector<32x2xf32> -> vector<32x2xf32>
    %cst_53 = arith.constant dense<0.000000e+00> : vector<32x2xf32>
    %173 = tpu.matmul %1, %170, %cst_53 {dimension_numbers = #tpu.dot_dimension_numbers<[1], [0], [0], [1], [0, 0, 1, 1], [], []>} : vector<32x32xf32>, vector<32x2xf32>, vector<32x2xf32> -> vector<32x2xf32>
    %cst_54 = arith.constant dense<0.000000e+00> : vector<32x2xf32>
    %174 = tpu.matmul %1, %172, %cst_54 {dimension_numbers = #tpu.dot_dimension_numbers<[1], [0], [0], [1], [0, 0, 1, 1], [], []>} : vector<32x32xf32>, vector<32x2xf32>, vector<32x2xf32> -> vector<32x2xf32>
    %175 = arith.mulf %173, %173 : vector<32x2xf32>
    %176 = arith.subf %174, %175 : vector<32x2xf32>
    %cst_55 = arith.constant 9.99999974E-6 : f32
    %177 = vector.broadcast %cst_55 : f32 to vector<32x2xf32>
    %178 = arith.addf %176, %177 : vector<32x2xf32>
    %179 = math.rsqrt %178 : vector<32x2xf32>
    %180 = vector.broadcast %12 : vector<32x1xf32> to vector<32x2xf32>
    %181 = arith.mulf %180, %179 : vector<32x2xf32>
    %182 = arith.mulf %173, %181 : vector<32x2xf32>
    %183 = vector.broadcast %13 : vector<32x1xf32> to vector<32x2xf32>
    %184 = arith.subf %183, %182 : vector<32x2xf32>
    %cst_56 = arith.constant dense<0.000000e+00> : vector<32x512xf32>
    %185 = tpu.matmul %181, %3, %cst_56 {dimension_numbers = #tpu.dot_dimension_numbers<[1], [0], [0], [1], [0, 0, 1, 1], [], []>} : vector<32x2xf32>, vector<2x512xf32>, vector<32x512xf32> -> vector<32x512xf32>
    %cst_57 = arith.constant dense<0.000000e+00> : vector<32x512xf32>
    %186 = tpu.matmul %184, %3, %cst_57 {dimension_numbers = #tpu.dot_dimension_numbers<[1], [0], [0], [1], [0, 0, 1, 1], [], []>} : vector<32x2xf32>, vector<2x512xf32>, vector<32x512xf32> -> vector<32x512xf32>
    %187 = arith.mulf %169, %185 : vector<32x512xf32>
    %188 = arith.addf %187, %186 : vector<32x512xf32>
    %cst_58 = arith.constant 0.000000e+00 : f32
    %189 = vector.broadcast %cst_58 : f32 to vector<32x512xf32>
    %190 = arith.maximumf %188, %189 : vector<32x512xf32>
    %c0_59 = arith.constant 0 : index
    %c0_60 = arith.constant 0 : index
    %191 = vector.load %arg6[%c0_59, %c0_60] : memref<32x8xf32, #tpu.memory_space<vmem>>, vector<32x8xf32>
    %cst_61 = arith.constant dense<0.000000e+00> : vector<32x512xf32>
    %192 = tpu.matmul %191, %16, %cst_61 {dimension_numbers = #tpu.dot_dimension_numbers<[1], [0], [0], [1], [0, 0, 1, 1], [], []>} : vector<32x8xf32>, vector<8x512xf32>, vector<32x512xf32> -> vector<32x512xf32>
    %193 = arith.addf %190, %192 : vector<32x512xf32>
    %194 = vector.broadcast %14 : vector<32x1xf32> to vector<32x512xf32>
    %195 = arith.addf %193, %194 : vector<32x512xf32>
    %c0_62 = arith.constant 0 : index
    %c0_63 = arith.constant 0 : index
    %196 = vector.load %arg1[%c0_62, %c0_63] : memref<8x512xf32, #tpu.memory_space<vmem>>, vector<8x512xf32>
    %c0_64 = arith.constant 0 : index
    %c0_65 = arith.constant 0 : index
    %197 = vector.load %arg7[%c0_64, %c0_65] : memref<9x32xf32, #tpu.memory_space<vmem>>, vector<9x32xf32>
    %cst_66 = arith.constant dense<0.000000e+00> : vector<9x512xf32>
    %198 = tpu.matmul %197, %195, %cst_66 {dimension_numbers = #tpu.dot_dimension_numbers<[1], [0], [0], [1], [0, 0, 1, 1], [], []>} : vector<9x32xf32>, vector<32x512xf32>, vector<9x512xf32> -> vector<9x512xf32>
    %cst_67 = arith.constant 0.000000e+00 : f32
    %199 = vector.broadcast %cst_67 : f32 to vector<8x512xf32>
    %200 = vector.extract_strided_slice %198 {offsets = [0, 0], sizes = [1, 512], strides = [1, 1]} : vector<9x512xf32> to vector<1x512xf32>
    %c17_i32_68 = arith.constant 17 : i32
    %201 = tpu.dynamic_rotate %200 by %c17_i32_68 dim 1 : vector<1x512xf32>, i32 -> vector<1x512xf32>
    %202 = vector.extract_strided_slice %0 {offsets = [0, 0], sizes = [1, 512], strides = [1, 1]} : vector<9x512xf32> to vector<1x512xf32>
    %203 = arith.mulf %201, %202 : vector<1x512xf32>
    %c17_i32_69 = arith.constant 17 : i32
    %204 = tpu.dynamic_rotate %196 by %c17_i32_69 dim 1 : vector<8x512xf32>, i32 -> vector<8x512xf32>
    %205 = vector.broadcast %203 : vector<1x512xf32> to vector<8x512xf32>
    %206 = arith.mulf %204, %205 : vector<8x512xf32>
    %207 = arith.addf %199, %206 : vector<8x512xf32>
    %208 = vector.extract_strided_slice %198 {offsets = [1, 0], sizes = [1, 512], strides = [1, 1]} : vector<9x512xf32> to vector<1x512xf32>
    %c16_i32_70 = arith.constant 16 : i32
    %209 = tpu.dynamic_rotate %208 by %c16_i32_70 dim 1 : vector<1x512xf32>, i32 -> vector<1x512xf32>
    %210 = vector.extract_strided_slice %0 {offsets = [1, 0], sizes = [1, 512], strides = [1, 1]} : vector<9x512xf32> to vector<1x512xf32>
    %211 = arith.mulf %209, %210 : vector<1x512xf32>
    %c16_i32_71 = arith.constant 16 : i32
    %212 = tpu.dynamic_rotate %196 by %c16_i32_71 dim 1 : vector<8x512xf32>, i32 -> vector<8x512xf32>
    %213 = vector.broadcast %211 : vector<1x512xf32> to vector<8x512xf32>
    %214 = arith.mulf %212, %213 : vector<8x512xf32>
    %215 = arith.addf %207, %214 : vector<8x512xf32>
    %216 = vector.extract_strided_slice %198 {offsets = [2, 0], sizes = [1, 512], strides = [1, 1]} : vector<9x512xf32> to vector<1x512xf32>
    %c15_i32_72 = arith.constant 15 : i32
    %217 = tpu.dynamic_rotate %216 by %c15_i32_72 dim 1 : vector<1x512xf32>, i32 -> vector<1x512xf32>
    %218 = vector.extract_strided_slice %0 {offsets = [2, 0], sizes = [1, 512], strides = [1, 1]} : vector<9x512xf32> to vector<1x512xf32>
    %219 = arith.mulf %217, %218 : vector<1x512xf32>
    %c15_i32_73 = arith.constant 15 : i32
    %220 = tpu.dynamic_rotate %196 by %c15_i32_73 dim 1 : vector<8x512xf32>, i32 -> vector<8x512xf32>
    %221 = vector.broadcast %219 : vector<1x512xf32> to vector<8x512xf32>
    %222 = arith.mulf %220, %221 : vector<8x512xf32>
    %223 = arith.addf %215, %222 : vector<8x512xf32>
    %224 = vector.extract_strided_slice %198 {offsets = [3, 0], sizes = [1, 512], strides = [1, 1]} : vector<9x512xf32> to vector<1x512xf32>
    %c1_i32_74 = arith.constant 1 : i32
    %225 = tpu.dynamic_rotate %224 by %c1_i32_74 dim 1 : vector<1x512xf32>, i32 -> vector<1x512xf32>
    %226 = vector.extract_strided_slice %0 {offsets = [3, 0], sizes = [1, 512], strides = [1, 1]} : vector<9x512xf32> to vector<1x512xf32>
    %227 = arith.mulf %225, %226 : vector<1x512xf32>
    %c1_i32_75 = arith.constant 1 : i32
    %228 = tpu.dynamic_rotate %196 by %c1_i32_75 dim 1 : vector<8x512xf32>, i32 -> vector<8x512xf32>
    %229 = vector.broadcast %227 : vector<1x512xf32> to vector<8x512xf32>
    %230 = arith.mulf %228, %229 : vector<8x512xf32>
    %231 = arith.addf %223, %230 : vector<8x512xf32>
    %232 = vector.extract_strided_slice %198 {offsets = [4, 0], sizes = [1, 512], strides = [1, 1]} : vector<9x512xf32> to vector<1x512xf32>
    %233 = vector.broadcast %232 : vector<1x512xf32> to vector<8x512xf32>
    %234 = arith.mulf %196, %233 : vector<8x512xf32>
    %235 = arith.addf %231, %234 : vector<8x512xf32>
    %236 = vector.extract_strided_slice %198 {offsets = [5, 0], sizes = [1, 512], strides = [1, 1]} : vector<9x512xf32> to vector<1x512xf32>
    %c511_i32_76 = arith.constant 511 : i32
    %237 = tpu.dynamic_rotate %236 by %c511_i32_76 dim 1 : vector<1x512xf32>, i32 -> vector<1x512xf32>
    %238 = vector.extract_strided_slice %0 {offsets = [5, 0], sizes = [1, 512], strides = [1, 1]} : vector<9x512xf32> to vector<1x512xf32>
    %239 = arith.mulf %237, %238 : vector<1x512xf32>
    %c511_i32_77 = arith.constant 511 : i32
    %240 = tpu.dynamic_rotate %196 by %c511_i32_77 dim 1 : vector<8x512xf32>, i32 -> vector<8x512xf32>
    %241 = vector.broadcast %239 : vector<1x512xf32> to vector<8x512xf32>
    %242 = arith.mulf %240, %241 : vector<8x512xf32>
    %243 = arith.addf %235, %242 : vector<8x512xf32>
    %244 = vector.extract_strided_slice %198 {offsets = [6, 0], sizes = [1, 512], strides = [1, 1]} : vector<9x512xf32> to vector<1x512xf32>
    %c497_i32_78 = arith.constant 497 : i32
    %245 = tpu.dynamic_rotate %244 by %c497_i32_78 dim 1 : vector<1x512xf32>, i32 -> vector<1x512xf32>
    %246 = vector.extract_strided_slice %0 {offsets = [6, 0], sizes = [1, 512], strides = [1, 1]} : vector<9x512xf32> to vector<1x512xf32>
    %247 = arith.mulf %245, %246 : vector<1x512xf32>
    %c497_i32_79 = arith.constant 497 : i32
    %248 = tpu.dynamic_rotate %196 by %c497_i32_79 dim 1 : vector<8x512xf32>, i32 -> vector<8x512xf32>
    %249 = vector.broadcast %247 : vector<1x512xf32> to vector<8x512xf32>
    %250 = arith.mulf %248, %249 : vector<8x512xf32>
    %251 = arith.addf %243, %250 : vector<8x512xf32>
    %252 = vector.extract_strided_slice %198 {offsets = [7, 0], sizes = [1, 512], strides = [1, 1]} : vector<9x512xf32> to vector<1x512xf32>
    %c496_i32_80 = arith.constant 496 : i32
    %253 = tpu.dynamic_rotate %252 by %c496_i32_80 dim 1 : vector<1x512xf32>, i32 -> vector<1x512xf32>
    %254 = vector.extract_strided_slice %0 {offsets = [7, 0], sizes = [1, 512], strides = [1, 1]} : vector<9x512xf32> to vector<1x512xf32>
    %255 = arith.mulf %253, %254 : vector<1x512xf32>
    %c496_i32_81 = arith.constant 496 : i32
    %256 = tpu.dynamic_rotate %196 by %c496_i32_81 dim 1 : vector<8x512xf32>, i32 -> vector<8x512xf32>
    %257 = vector.broadcast %255 : vector<1x512xf32> to vector<8x512xf32>
    %258 = arith.mulf %256, %257 : vector<8x512xf32>
    %259 = arith.addf %251, %258 : vector<8x512xf32>
    %260 = vector.extract_strided_slice %198 {offsets = [8, 0], sizes = [1, 512], strides = [1, 1]} : vector<9x512xf32> to vector<1x512xf32>
    %c495_i32_82 = arith.constant 495 : i32
    %261 = tpu.dynamic_rotate %260 by %c495_i32_82 dim 1 : vector<1x512xf32>, i32 -> vector<1x512xf32>
    %262 = vector.extract_strided_slice %0 {offsets = [8, 0], sizes = [1, 512], strides = [1, 1]} : vector<9x512xf32> to vector<1x512xf32>
    %263 = arith.mulf %261, %262 : vector<1x512xf32>
    %c495_i32_83 = arith.constant 495 : i32
    %264 = tpu.dynamic_rotate %196 by %c495_i32_83 dim 1 : vector<8x512xf32>, i32 -> vector<8x512xf32>
    %265 = vector.broadcast %263 : vector<1x512xf32> to vector<8x512xf32>
    %266 = arith.mulf %264, %265 : vector<8x512xf32>
    %267 = arith.addf %259, %266 : vector<8x512xf32>
    %c0_84 = arith.constant 0 : index
    %c0_85 = arith.constant 0 : index
    %c0_86 = arith.constant 0 : index
    %268 = vector.load %arg2[%c0_84, %c0_85, %c0_86] : memref<2x8x32xf32, #tpu.memory_space<vmem>>, vector<1x8x32xf32>
    %269 = vector.shape_cast %268 : vector<1x8x32xf32> to vector<8x32xf32>
    %c0_87 = arith.constant 0 : index
    %c0_88 = arith.constant 0 : index
    %270 = vector.load %arg8[%c0_87, %c0_88] : memref<32x256xf32, #tpu.memory_space<vmem>>, vector<32x256xf32>
    %cst_89 = arith.constant dense<0.000000e+00> : vector<8x256xf32>
    %271 = tpu.matmul %269, %270, %cst_89 {dimension_numbers = #tpu.dot_dimension_numbers<[1], [0], [0], [1], [0, 0, 1, 1], [], []>} : vector<8x32xf32>, vector<32x256xf32>, vector<8x256xf32> -> vector<8x256xf32>
    %c1 = arith.constant 1 : index
    %c0_90 = arith.constant 0 : index
    %c0_91 = arith.constant 0 : index
    %272 = vector.load %arg2[%c1, %c0_90, %c0_91] : memref<2x8x32xf32, #tpu.memory_space<vmem>>, vector<1x8x32xf32>
    %273 = vector.shape_cast %272 : vector<1x8x32xf32> to vector<8x32xf32>
    %c0_92 = arith.constant 0 : index
    %c0_93 = arith.constant 0 : index
    %274 = vector.load %arg8[%c0_92, %c0_93] : memref<32x256xf32, #tpu.memory_space<vmem>>, vector<32x256xf32>
    %cst_94 = arith.constant dense<0.000000e+00> : vector<8x256xf32>
    %275 = tpu.matmul %273, %274, %cst_94 {dimension_numbers = #tpu.dot_dimension_numbers<[1], [0], [0], [1], [0, 0, 1, 1], [], []>} : vector<8x32xf32>, vector<32x256xf32>, vector<8x256xf32> -> vector<8x256xf32>
    %276 = tpu.concatenate %271, %275 in 1 : vector<8x256xf32>, vector<8x256xf32> -> vector<8x512xf32>
    %277 = arith.addf %267, %276 : vector<8x512xf32>
    %278 = vector.broadcast %15 : vector<1x1xf32> to vector<8x512xf32>
    %279 = arith.addf %277, %278 : vector<8x512xf32>
    %c0_95 = arith.constant 0 : index
    %c0_96 = arith.constant 0 : index
    %280 = vector.load %arg14[%c0_95, %c0_96] : memref<8x512xf32, #tpu.memory_space<vmem>>, vector<8x512xf32>
    tpu.vector_store %arg14[%c0_95, %c0_96], %279 {strides = array<i32>} : memref<8x512xf32, #tpu.memory_space<vmem>>, vector<8x512xf32>,
    return
  }
}

</mosaic_0001>

<bundles_post_ra>
// kernel: squeeze.1
= control target key start
LH: loop header
LB: loop body
LE: loop exit
PB: predicated region body
PF: predicated region fallthrough
CT: control target
= control target key end

     0   :  { %vm16_vm0 = vcmask 261120   ;;  %s61_s0 = inlined_call_operand.vmem [shape: f32[3,3,32], index: 0, kind: input, shape index: {}]   ;;  %s62_s1 = inlined_call_operand.vmem [shape: f32[9,32], index: 1, kind: output, shape index: {}]  }
   0x1   :  { %v29_v0 = vld [vmem:[%s61_s0 + $0x8] sm:$0xf]  ;;  %v30_v1 = vld [vmem:[%s61_s0 + $0x4] sm:$0xf]  ;;  %v13_v2 = vld [vmem:[%s61_s0] sm:$0xf] }
   0x2   :  { %8 = vst [vmem:[#allocation0 + $0x10] sm:$0xf] %v29_v0  ;;  %12 = vst [vmem:[#allocation0 + $0x8] sm:$0xf] %v30_v1 }
   0x3   :  { %14 = vst [vmem:[#allocation0] sm:$0xf] %v13_v2 }
   0x9   :  { %v19_v4 = vld [vmem:[#allocation0 + $0x8] sm:$0x7]   ;;  %v24_v5 = vld [vmem:[#allocation0 + $0x10] sm:$0x7]  }
   0xa   :  { %v15_v3 = vld [vmem:[#allocation0] sm:$0x7]   ;;  %31 = vst.msk [vmem:[%s62_s1 + $0x3] sm:$0x7] %vm16_vm0, %v19_v4   ;;  %32 = vst.msk [vmem:[%s62_s1 + $0x6] sm:$0x7] %vm16_vm0, %v24_v5  }
   0xb   :  { %17 = vst.msk [vmem:[%s62_s1] sm:$0x7] %vm16_vm0, %v15_v3  }

// kernel: mask_head_forward.1
= control target key start
LH: loop header
LB: loop body
LE: loop exit
PB: predicated region body
PF: predicated region fallthrough
CT: control target
= control target key end

     0   :  { %s8392_s17 = smov 17   ;;  %s8393_s22 = smov 16   ;;  %v13223_v4 = vmov 0.0   ;;  %v8401_v5 = vmov 0   ;;  %v144_v10 = vlaneseq  ;;  %vm422_vm8 = vcmask 588800   ;;  %s13204_s0 = inlined_call_operand.vmem [shape: f32[8,512], index: 0, kind: input, shape index: {}]   ;;  %s13205_s13 = inlined_call_operand.vmem [shape: f32[32,11], index: 13, kind: input, shape index: {}]   ;;  %s13206_s9 = inlined_call_operand.vmem [shape: f32[9,512], index: 9, kind: input, shape index: {}]   ;;  %s13207_s11 = inlined_call_operand.vmem [shape: f32[512,2], index: 11, kind: input, shape index: {}]   ;;  %s13208_s3 = inlined_call_operand.vmem [shape: f32[32,72], index: 3, kind: input, shape index: {}]   ;;  %s13209_s10 = inlined_call_operand.vmem [shape: f32[32,32], index: 10, kind: input, shape index: {}]   ;;  %s13210_s12 = inlined_call_operand.vmem [shape: f32[2,512], index: 12, kind: input, shape index: {}]   ;;  %s13211_s4 = inlined_call_operand.vmem [shape: f32[32,288], index: 4, kind: input, shape index: {}]   ;;  %s13212_s5 = inlined_call_operand.vmem [shape: f32[32,288], index: 5, kind: input, shape index: {}]   ;;  %s13213_s6 = inlined_call_operand.vmem [shape: f32[32,8], index: 6, kind: input, shape index: {}]   ;;  %s13214_s1 = inlined_call_operand.vmem [shape: f32[8,512], index: 1, kind: input, shape index: {}]   ;;  %s13215_s8 = inlined_call_operand.vmem [shape: f32[32,256], index: 8, kind: input, shape index: {}]   ;;  %s13216_s7 = inlined_call_operand.vmem [shape: f32[9,32], index: 7, kind: input, shape index: {}]   ;;  %s13217_s2 = inlined_call_operand.vmem [shape: f32[2,8,32], index: 2, kind: input, shape index: {}]   ;;  %s13218_s14 = inlined_call_operand.vmem [shape: f32[8,512], index: 14, kind: output, shape index: {}]  }
   0x1   :  { %v8491_v0 = vld [vmem:[%s13204_s0 + $0x10] sm:$0xff]  ;;  %v8496_v1 = vld [vmem:[%s13204_s0] sm:$0xff]  ;;  %v8505_v2 = vld [vmem:[%s13204_s0 + $0x18] sm:$0xff]  ;;  %s8394_s23 = smov 15   ;;  %s8395_s24 = smov 1   ;;  %499 = vmatprep.mubr.f32.mxu0 %v13223_v4  ;;  %588 = vmatprep.mubr.f32.mxu1 %v13223_v4  ;;  %vm969_vm9 = vcmask 261120  }
   0x2   :  { %140 = vrot.lane.b32.xlu1 %v8491_v0, %s8392_s17  ;;  %136 = vrot.lane.b32.xlu0 %v8496_v1, %s8392_s17  ;;  %v8510_v3 = vld [vmem:[%s13204_s0 + $0x8] sm:$0xff]  ;;  %s8396_s25 = smov 127   ;;  %s13241_s26 = smov 113   ;;  %v8577_v6 = vld [vmem:[%s13205_s13] sm:$0xff]  ;;  %v8598_v11 = vshrl.u32 %v144_v10, 7  ;;  %v8600_v14 = vand.u32 127, %v144_v10 }
   0x3   :  { %s13221_s27 = smov 112   ;;  %s13219_s28 = smov 111   ;;  %8311 = vset.pattern.permute.xlu0 %v8401_v5  ;;  %8312 = vset.pattern.permute.xlu1 %v8401_v5  ;;  %v8582_v7 = vld [vmem:[%s13205_s13 + $0x8] sm:$0xff]  ;;  %v8589_v8 = vld [vmem:[%s13205_s13 + $0x18] sm:$0xff]  ;;  %v8594_v9 = vld [vmem:[%s13205_s13 + $0x10] sm:$0xff]  ;;  %vm1243_vm10 = vcmask 1041408  }
   0x4   :  { %13535 = vst [vmem:[#allocation2_spill] sm:$0xff] %v8598_v11  ;;  %v8603_v15 = vsub.s32 0, %v8598_v11  ;;  %v186_v16 = vsub.s32 1, %v8598_v11  ;;  %v8609_v17 = vld [vmem:[%s13206_s9 + $0x8] sm:$0xff]  ;;  %vm146_vm0 = vcmp.lt.s32.totalorder %v8600_v14, 17  ;;  %v8615_v20 = vld [vmem:[%s13206_s9] sm:$0xff] }
   0x5   :  { %v8620_v21 = vld [vmem:[%s13206_s9 + $0x18] sm:$0xff]  ;;  %vm179_vm1 = vcmp.lt.s32.totalorder %v8600_v14, 16  ;;  %v8633_v24 = vld [vmem:[%s13206_s9 + $0x10] sm:$0xff]  ;;  %v219_v57 = vsub.s32 2, %v8598_v11  ;;  %v252_v58 = vsub.s32 3, %v8598_v11  ;;  %vm212_vm2 = vcmp.lt.s32.totalorder %v8600_v14, 15 }
   0x6   :  { %142 = vrot.lane.b32.xlu1 %v8505_v2, %s8392_s17  ;;  %138 = vrot.lane.b32.xlu0 %v8510_v3, %s8392_s17  ;;  %13536 = vst [vmem:[#allocation3_spill] sm:$0xff] %v8603_v15  ;;  %v8625_v22 = vrot.slane %v8609_v17, %v8603_v15  ;;  %v8628_v23 = vrot.slane %v8609_v17, %v186_v16  ;;  %vm245_vm3 = vcmp.lt.s32.totalorder %v8600_v14, 1  ;;  %vm278_vm4 = vcmp.lt.s32.totalorder %v8600_v14, 127  ;;  %s13603_s29 = smov 112   ;;  %s13604_s30 = smov 111  }
   0x7   :  { %v8639_v28 = vrot.slane %v8615_v20, %v8603_v15  ;;  %v8642_v29 = vrot.slane %v8615_v20, %v186_v16  ;;  %v8646_v30 = vrot.slane %v8620_v21, %v8603_v15  ;;  %v8653_v33 = vrot.slane %v8620_v21, %v186_v16  ;;  %s8412_s20 = smov 118  }
   0x8   :  { %13537 = vst [vmem:[#allocation4_spill] sm:$0xff] %v8625_v22  ;;  %v8657_v34 = vrot.slane %v8633_v24, %v8603_v15  ;;  %v8664_v38 = vrot.slane %v8633_v24, %v186_v16  ;;  %v8685_v61 = vrot.slane %v8609_v17, %v219_v57  ;;  %v8688_v62 = vrot.slane %v8609_v17, %v252_v58 }
   0x9   :  { %13538 = vst [vmem:[#allocation5_spill] sm:$0xff] %v8639_v28  ;;  %13539 = vst [vmem:[#allocation6_spill] sm:$0xff] %v8646_v30  ;;  %v8693_v5 = vrot.slane %v8615_v20, %v219_v57  ;;  %v8696_v10 = vrot.slane %v8633_v24, %v219_v57  ;;  %vm344_vm5 = vcmp.lt.s32.totalorder %v8600_v14, 112  ;;  %vm311_vm6 = vcmp.lt.s32.totalorder %v8600_v14, 113 }
   0xa   :  { %173 = vrot.lane.b32.xlu1 %v8510_v3, %s8393_s22  ;;  %171 = vrot.lane.b32.xlu0 %v8496_v1, %s8393_s22  ;;  %13540 = vst [vmem:[#allocation7_spill] sm:$0xff] %v8657_v34  ;;  %13541 = vst [vmem:[#allocation8_spill] sm:$0xff] %v8688_v62  ;;  %vm377_vm7 = vcmp.lt.s32.totalorder %v8600_v14, 111  ;;  %vm1230_vm11 = vcmask 15360   ;;  %vm5516_vm12 = vcmask 64512  }
   0xe   :  { %177 = vrot.lane.b32.xlu1 %v8505_v2, %s8393_s22  ;;  %175 = vrot.lane.b32.xlu0 %v8491_v0, %s8393_s22 }
  0x12   :  { %206 = vrot.lane.b32.xlu1 %v8510_v3, %s8394_s23  ;;  %204 = vrot.lane.b32.xlu0 %v8496_v1, %s8394_s23 }
  0x16   :  { %210 = vrot.lane.b32.xlu1 %v8505_v2, %s8394_s23  ;;  %208 = vrot.lane.b32.xlu0 %v8491_v0, %s8394_s23 }
  0x1a   :  { %239 = vrot.lane.b32.xlu1 %v8510_v3, %s8395_s24  ;;  %237 = vrot.lane.b32.xlu0 %v8496_v1, %s8395_s24 }
  0x1e   :  { %243 = vrot.lane.b32.xlu1 %v8505_v2, %s8395_s24  ;;  %241 = vrot.lane.b32.xlu0 %v8491_v0, %s8395_s24 }
  0x22   :  { %272 = vrot.lane.b32.xlu1 %v8510_v3, %s8396_s25  ;;  %270 = vrot.lane.b32.xlu0 %v8496_v1, %s8396_s25 }
  0x26   :  { %276 = vrot.lane.b32.xlu1 %v8505_v2, %s8396_s25  ;;  %274 = vrot.lane.b32.xlu0 %v8491_v0, %s8396_s25 }
  0x2a   :  { %305 = vrot.lane.b32.xlu1 %v8510_v3, %s13241_s26  ;;  %303 = vrot.lane.b32.xlu0 %v8496_v1, %s13241_s26 }
  0x2e   :  { %309 = vrot.lane.b32.xlu1 %v8505_v2, %s13241_s26  ;;  %307 = vrot.lane.b32.xlu0 %v8491_v0, %s13241_s26 }
  0x32   :  { %338 = vrot.lane.b32.xlu1 %v8510_v3, %s13221_s27  ;;  %336 = vrot.lane.b32.xlu0 %v8496_v1, %s13221_s27 }
  0x36   :  { %342 = vrot.lane.b32.xlu1 %v8505_v2, %s13221_s27  ;;  %340 = vrot.lane.b32.xlu0 %v8491_v0, %s13221_s27 }
  0x3a   :  { %371 = vrot.lane.b32.xlu1 %v8510_v3, %s13219_s28  ;;  %369 = vrot.lane.b32.xlu0 %v8496_v1, %s13219_s28 }
  0x3e   :  { %375 = vrot.lane.b32.xlu1 %v8505_v2, %s13219_s28  ;;  %373 = vrot.lane.b32.xlu0 %v8491_v0, %s13219_s28 }
  0x42   :  { %404 = vperm.xlu0 %8311, %v8577_v6   ;;  %409 = vperm.xlu1 %8312, %v8582_v7  }
  0x46   :  { %419 = vperm.xlu0 %8311, %v8589_v8   ;;  %414 = vperm.xlu1 %8312, %v8594_v9  }
  0x74   :  { %v141_v12 = vpop.permute.xlu1 %140  ;;  %v137_v13 = vpop.permute.xlu0 %136 }
  0x78   :  { %v143_v18 = vpop.permute.xlu1 %142  ;;  %v139_v19 = vpop.permute.xlu0 %138 }
  0x79   :  { %v149_v25 = vsel %vm146_vm0, %v137_v13, %v139_v19  ;;  %v150_v31 = vsel %vm146_vm0, %v143_v18, %v137_v13  ;;  %v147_v37 = vsel %vm146_vm0, %v141_v12, %v143_v18  ;;  %v148_v39 = vsel %vm146_vm0, %v139_v19, %v141_v12 }
  0x7a   :  { %v168_v35 = vmul.f32 %v8625_v22, %v149_v25  ;;  %v167_v43 = vmul.f32 %v8639_v28, %v150_v31  ;;  %v170_v46 = vmul.f32 %v8646_v30, %v147_v37  ;;  %v169_v50 = vmul.f32 %v8657_v34, %v148_v39 }
  0x7b   :  { %v8699_v12 = vrot.slane %v8620_v21, %v219_v57  ;;  %v8706_v25 = vrot.slane %v8615_v20, %v252_v58 }
  0x7c   :  { %v174_v26 = vpop.permute.xlu1 %173  ;;  %v172_v27 = vpop.permute.xlu0 %171 }
  0x7d   :  { %v182_v32 = vsel %vm179_vm1, %v172_v27, %v174_v26  ;;  %13542 = vst [vmem:[#allocation9_spill] sm:$0xff] %v8699_v12  ;;  %13543 = vst [vmem:[#allocation10_spill] sm:$0xff] %v8706_v25 }
  0x7e   :  { %v201_v36 = vmul.f32 %v8628_v23, %v182_v32 }
  0x80   :  { %v178_v40 = vpop.permute.xlu1 %177  ;;  %v176_v41 = vpop.permute.xlu0 %175  ;;  %v7440_v42 = vpack.c.bf16 %v201_v36, %v168_v35  ;;  %v8716_v35 = vrot.slane %v8620_v21, %v252_v58 }
  0x81   :  { %v183_v44 = vsel %vm179_vm1, %v178_v40, %v172_v27  ;;  %v181_v45 = vsel %vm179_vm1, %v174_v26, %v176_v41  ;;  %v180_v47 = vsel %vm179_vm1, %v176_v41, %v178_v40  ;;  %v8709_v26 = vrot.slane %v8633_v24, %v252_v58 }
  0x82   :  { %7441 = vmatprep.subr.bf16.mxu0 %v7440_v42  ;;  %v200_v48 = vmul.f32 %v8642_v29, %v183_v44  ;;  %v203_v49 = vmul.f32 %v8653_v33, %v180_v47  ;;  %v202_v51 = vmul.f32 %v8664_v38, %v181_v45  ;;  %13545 = vst [vmem:[#allocation12_spill] sm:$0xff] %v8716_v35  ;;  %v285_v42 = vsub.s32 5, %v8598_v11 }
  0x83   :  { %13544 = vst [vmem:[#allocation11_spill] sm:$0xff] %v8709_v26 }
  0x84   :  { %v207_v52 = vpop.permute.xlu1 %206  ;;  %v205_v53 = vpop.permute.xlu0 %204  ;;  %v7442_v54 = vpack.c.bf16 %v200_v48, %v167_v43  ;;  %v7456_v55 = vpack.c.bf16 %v203_v49, %v170_v46  ;;  %v7458_v56 = vpack.c.bf16 %v202_v51, %v169_v50  ;;  %v8738_v57 = vrot.slane %v8620_v21, %v285_v42 }
  0x85   :  { %v215_v63 = vsel %vm212_vm2, %v205_v53, %v207_v52 }
  0x86   :  { %7443 = vmatpush1.bf16.msra.mxu0 %v7442_v54  ;;  %7457 = vmatprep.subr.bf16.mxu1 %v7456_v55  ;;  %v234_v27 = vmul.f32 %v8685_v61, %v215_v63  ;;  %13547 = vst [vmem:[#allocation14_spill] sm:$0xff] %v8738_v57 }
  0x87   :  { %7459 = vmatpush1.bf16.msra.mxu1 %v7458_v56  ;;  %v8735_v56 = vrot.slane %v8615_v20, %v285_v42 }
  0x88   :  { %v211_v59 = vpop.permute.xlu1 %210  ;;  %v209_v60 = vpop.permute.xlu0 %208 }
  0x89   :  { %v216_v18 = vsel %vm212_vm2, %v211_v59, %v205_v53  ;;  %v214_v31 = vsel %vm212_vm2, %v207_v52, %v209_v60  ;;  %v213_v36 = vsel %vm212_vm2, %v209_v60, %v211_v59  ;;  %13546 = vst [vmem:[#allocation13_spill] sm:$0xff] %v8735_v56  ;;  %v8743_v59 = vrot.slane %v8609_v17, %v285_v42 }
  0x8a   :  { %v233_v37 = vmul.f32 %v8693_v5, %v216_v18  ;;  %v235_v43 = vmul.f32 %v8696_v10, %v214_v31  ;;  %v236_v47 = vmul.f32 %v8699_v12, %v213_v36  ;;  %v8746_v60 = vrot.slane %v8633_v24, %v285_v42 }
  0x8b   :  { %13548 = vst [vmem:[#allocation15_spill] sm:$0xff] %v8743_v59 }
  0x8c   :  { %v240_v13 = vpop.permute.xlu1 %239  ;;  %v238_v16 = vpop.permute.xlu0 %237  ;;  %13549 = vst [vmem:[#allocation16_spill] sm:$0xff] %v8746_v60 }
  0x8d   :  { %v248_v19 = vsel %vm245_vm3, %v238_v16, %v240_v13 }
  0x8e   :  { %v267_v32 = vmul.f32 %v8688_v62, %v248_v19 }
  0x90   :  { %v244_v39 = vpop.permute.xlu1 %243  ;;  %v242_v40 = vpop.permute.xlu0 %241  ;;  %v7444_v41 = vpack.c.bf16 %v267_v32, %v234_v27 }
  0x91   :  { %v249_v44 = vsel %vm245_vm3, %v244_v39, %v238_v16  ;;  %v246_v45 = vsel %vm245_vm3, %v242_v40, %v244_v39  ;;  %v247_v46 = vsel %vm245_vm3, %v240_v13, %v242_v40 }
  0x92   :  { %v266_v48 = vmul.f32 %v8706_v25, %v249_v44  ;;  %v268_v49 = vmul.f32 %v8709_v26, %v247_v46  ;;  %v269_v50 = vmul.f32 %v8716_v35, %v246_v45  ;;  %7445 = vmatprep.subr.bf16.mxu0 %v7444_v41  ;;  %v351_v46 = vsub.s32 7, %v8598_v11 }
  0x94   :  { %v273_v51 = vpop.permute.xlu1 %272  ;;  %v271_v52 = vpop.permute.xlu0 %270  ;;  %v7446_v53 = vpack.c.bf16 %v266_v48, %v233_v37  ;;  %v7460_v54 = vpack.c.bf16 %v269_v50, %v236_v47  ;;  %v7462_v55 = vpack.c.bf16 %v268_v49, %v235_v43  ;;  %v318_v47 = vsub.s32 6, %v8598_v11 }
  0x95   :  { %v281_v58 = vsel %vm278_vm4, %v271_v52, %v273_v51 }
  0x96   :  { %7447 = vmatpush1.bf16.msra.mxu0 %v7446_v53  ;;  %7461 = vmatprep.subr.bf16.mxu1 %v7460_v54  ;;  %v299_v16 = vmul.f32 %v8735_v56, %v281_v58  ;;  %v8775_v49 = vrot.slane %v8633_v24, %v318_v47  ;;  %v8785_v53 = vrot.slane %v8620_v21, %v351_v46 }
  0x97   :  { %7463 = vmatpush1.bf16.msra.mxu1 %v7462_v55  ;;  %v8788_v54 = vrot.slane %v8609_v17, %v351_v46  ;;  %v8791_v55 = vrot.slane %v8633_v24, %v351_v46  ;;  %v8794_v58 = vrot.slane %v8615_v20, %v318_v47 }
  0x98   :  { %v277_v63 = vpop.permute.xlu1 %276  ;;  %v275_v13 = vpop.permute.xlu0 %274  ;;  %v7450_v43 = vpack.c.bf16 %v299_v16, %v8496_v1  ;;  %13552 = vst [vmem:[#allocation19_spill] sm:$0xff] %v8775_v49  ;;  %13554 = vst [vmem:[#allocation21_spill] sm:$0xff] %v8785_v53 }
  0x99   :  { %v282_v18 = vsel %vm278_vm4, %v277_v63, %v271_v52  ;;  %v279_v19 = vsel %vm278_vm4, %v275_v13, %v277_v63  ;;  %v280_v27 = vsel %vm278_vm4, %v273_v51, %v275_v13  ;;  %v8780_v51 = vrot.slane %v8615_v20, %v351_v46  ;;  %13555 = vst [vmem:[#allocation22_spill] sm:$0xff] %v8788_v54 }
  0x9a   :  { %v302_v31 = vmul.f32 %v8738_v57, %v282_v18  ;;  %v300_v32 = vmul.f32 %v8743_v59, %v280_v27  ;;  %v301_v36 = vmul.f32 %v8746_v60, %v279_v19  ;;  %13556 = vst [vmem:[#allocation23_spill] sm:$0xff] %v8791_v55  ;;  %13557 = vst [vmem:[#allocation24_spill] sm:$0xff] %v8794_v58 }
  0x9b   :  { %13553 = vst [vmem:[#allocation20_spill] sm:$0xff] %v8780_v51 }
  0x9c   :  { %v306_v37 = vpop.permute.xlu1 %305  ;;  %v304_v39 = vpop.permute.xlu0 %303  ;;  %v7448_v40 = vpack.c.bf16 %v300_v32, %v8510_v3  ;;  %v7464_v41 = vpack.c.bf16 %v302_v31, %v8505_v2  ;;  %v7466_v42 = vpack.c.bf16 %v301_v36, %v8491_v0  ;;  %v8767_v2 = vrot.slane %v8620_v21, %v318_v47 }
  0x9d   :  { %v8770_v0 = vrot.slane %v8609_v17, %v318_v47  ;;  %v314_v13 = vsel %vm311_vm6, %v304_v39, %v306_v37 }
  0x9e   :  { %7449 = vmatprep.subr.bf16.mxu0 %v7448_v40  ;;  %7465 = vmatprep.subr.bf16.mxu1 %v7464_v41  ;;  %13550 = vst [vmem:[#allocation17_spill] sm:$0xff] %v8767_v2  ;;  %v8817_v40 = vld [vmem:[%s13206_s9 + $0x28] ss:$0 sm:$0xff]  ;;  %v8822_v41 = vld [vmem:[%s13206_s9 + $0x38] ss:$0 sm:$0xff] }
  0x9f   :  { %7451 = vmatpush1.bf16.msra.mxu0 %v7450_v43  ;;  %7467 = vmatpush1.bf16.msra.mxu1 %v7466_v42  ;;  %13551 = vst [vmem:[#allocation18_spill] sm:$0xff] %v8770_v0  ;;  %13558 = vst [vmem:[#allocation25_spill] sm:$0xff] %v8817_v40  ;;  %v8827_v42 = vld [vmem:[%s13206_s9 + $0x30] ss:$0 sm:$0xff] }
  0xa0   :  { %v310_v44 = vpop.permute.xlu1 %309  ;;  %v308_v45 = vpop.permute.xlu0 %307  ;;  %13559 = vst [vmem:[#allocation26_spill] sm:$0xff] %v8822_v41  ;;  %13560 = vst [vmem:[#allocation27_spill] sm:$0xff] %v8827_v42 }
  0xa1   :  { %v315_v48 = vsel %vm311_vm6, %v310_v44, %v304_v39  ;;  %v313_v50 = vsel %vm311_vm6, %v306_v37, %v308_v45  ;;  %v312_v63 = vsel %vm311_vm6, %v308_v45, %v310_v44  ;;  %v332_v39 = vmul.f32 %v8794_v58, %v314_v13  ;;  %v76_v13 = vld [vmem:[%s13207_s11 + $0x88] sm:$0xff] }
  0xa2   :  { %v335_v16 = vmul.f32 %v8767_v2, %v315_v48  ;;  %v333_v21 = vmul.f32 %v8770_v0, %v313_v50  ;;  %v334_v31 = vmul.f32 %v8775_v49, %v312_v63  ;;  %v75_v63 = vld [vmem:[%s13207_s11 + $0x80] sm:$0xff]  ;;  %v72_v0 = vld [vmem:[%s13207_s11 + $0x68] sm:$0xff] }
  0xa4   :  { %v339_v1 = vpop.permute.xlu1 %338  ;;  %v337_v3 = vpop.permute.xlu0 %336 }
  0xa5   :  { %v347_v52 = vsel %vm344_vm5, %v337_v3, %v339_v1 }
  0xa6   :  { %v365_v17 = vmul.f32 %v8780_v51, %v347_v52  ;;  %v71_v51 = vld [vmem:[%s13207_s11 + $0x60] sm:$0xff] }
  0xa8   :  { %v343_v18 = vpop.permute.xlu1 %342  ;;  %v341_v19 = vpop.permute.xlu0 %340 }
  0xa9   :  { %v348_v24 = vsel %vm344_vm5, %v343_v18, %v337_v3  ;;  %v345_v20 = vsel %vm344_vm5, %v341_v19, %v343_v18  ;;  %v346_v27 = vsel %vm344_vm5, %v339_v1, %v341_v19  ;;  %v8832_v1 = vld [vmem:[%s13206_s9 + $0x20] ss:$0 sm:$0xff]  ;;  %v7454_v3 = vpack.c.bf16 %v365_v17, %v332_v39  ;;  %v108_v17 = vld [vmem:[%s13207_s11 + $0x188] sm:$0xff] }
  0xaa   :  { %v368_v32 = vmul.f32 %v8785_v53, %v348_v24  ;;  %v366_v36 = vmul.f32 %v8788_v54, %v346_v27  ;;  %v367_v37 = vmul.f32 %v8791_v55, %v345_v20  ;;  %13561 = vst [vmem:[#allocation28_spill] sm:$0xff] %v8832_v1  ;;  %v107_v19 = vld [vmem:[%s13207_s11 + $0x180] sm:$0xff]  ;;  %v70_v53 = vld [vmem:[%s13207_s11 + $0x58] sm:$0xff] }
  0xab   :  { %v59_v24 = vld [vmem:[%s13207_s11] sm:$0xff] }
  0xac   :  { %v372_v43 = vpop.permute.xlu1 %371  ;;  %v370_v44 = vpop.permute.xlu0 %369  ;;  %v7452_v45 = vpack.c.bf16 %v366_v36, %v333_v21  ;;  %v7468_v46 = vpack.c.bf16 %v368_v32, %v335_v16  ;;  %v7470_v47 = vpack.c.bf16 %v367_v37, %v334_v31  ;;  %v60_v32 = vld [vmem:[%s13207_s11 + $0x8] sm:$0xff]  ;;  %v91_v36 = vld [vmem:[%s13207_s11 + $0x100] sm:$0xff] }
  0xad   :  { %v380_v48 = vsel %vm377_vm7, %v370_v44, %v372_v43  ;;  %v92_v37 = vld [vmem:[%s13207_s11 + $0x108] sm:$0xff] }
  0xae   :  { %7453 = vmatprep.subr.bf16.mxu0 %v7452_v45  ;;  %7469 = vmatprep.subr.bf16.mxu1 %v7468_v46  ;;  %v398_v39 = vmul.f32 %v8832_v1, %v380_v48  ;;  %v8876_v45 = vpack.c.bf16 %v108_v17, %v107_v19  ;;  %v77_v46 = vld [vmem:[%s13207_s11 + $0x90] sm:$0xff]  ;;  %v8886_v48 = vpack.c.bf16 %v92_v37, %v91_v36  ;;  %v112_v36 = vld [vmem:[%s13207_s11 + $0x1a8] sm:$0xff]  ;;  %v63_v37 = vld [vmem:[%s13207_s11 + $0x20] sm:$0xff] }
  0xaf   :  { %7455 = vmatpush1.bf16.msra.mxu0 %v7454_v3  ;;  %7471 = vmatpush1.bf16.msra.mxu1 %v7470_v47  ;;  %v78_v47 = vld [vmem:[%s13207_s11 + $0x98] sm:$0xff]  ;;  %v8884_v3 = vpack.c.bf16 %v60_v32, %v59_v24  ;;  %v79_v24 = vld [vmem:[%s13207_s11 + $0xa0] sm:$0xff]  ;;  %v116_v1 = vld [vmem:[%s13207_s11 + $0x1c8] sm:$0xff] }
  0xb0   :  { %v376_v50 = vpop.permute.xlu1 %375  ;;  %v374_v52 = vpop.permute.xlu0 %373  ;;  %13563 = vst [vmem:[#allocation30_spill] sm:$0xff] %v8876_v45  ;;  %13565 = vst [vmem:[#allocation32_spill] sm:$0xff] %v8886_v48  ;;  %v8915_v19 = vpack.c.bf16 %v78_v47, %v77_v46  ;;  %v111_v32 = vld [vmem:[%s13207_s11 + $0x1a0] sm:$0xff]  ;;  %v96_v46 = vld [vmem:[%s13207_s11 + $0x128] sm:$0xff] }
  0xb1   :  { %v381_v16 = vsel %vm377_vm7, %v376_v50, %v370_v44  ;;  %v378_v21 = vsel %vm377_vm7, %v374_v52, %v376_v50  ;;  %v379_v18 = vsel %vm377_vm7, %v372_v43, %v374_v52  ;;  %v132_v43 = vld [vmem:[%s13208_s3] sm:$0xff]  ;;  %v8874_v44 = vpack.c.bf16 %v76_v13, %v75_v63  ;;  %13564 = vst [vmem:[#allocation31_spill] sm:$0xff] %v8884_v3  ;;  %v109_v50 = vld [vmem:[%s13207_s11 + $0x190] sm:$0xff]  ;;  %v110_v52 = vld [vmem:[%s13207_s11 + $0x198] sm:$0xff] }
  0xb2   :  { %v399_v20 = vmul.f32 %v8817_v40, %v379_v18  ;;  %v401_v27 = vmul.f32 %v8822_v41, %v381_v16  ;;  %v400_v31 = vmul.f32 %v8827_v42, %v378_v21  ;;  %v61_v63 = vld [vmem:[%s13207_s11 + $0x10] sm:$0xff]  ;;  %v62_v13 = vld [vmem:[%s13207_s11 + $0x18] sm:$0xff]  ;;  %v133_v18 = vld [vmem:[%s13208_s3 + $0x8] sm:$0xff]  ;;  %13566 = vst [vmem:[#allocation33_spill] sm:$0xff] %v8915_v19  ;;  %v8917_v17 = vpack.c.bf16 %v110_v52, %v109_v50 }
  0xb3   :  { %13562 = vst [vmem:[#allocation29_spill] sm:$0xff] %v8874_v44  ;;  %v93_v16 = vld [vmem:[%s13207_s11 + $0x110] sm:$0xff]  ;;  %v94_v21 = vld [vmem:[%s13207_s11 + $0x118] sm:$0xff]  ;;  %v115_v42 = vld [vmem:[%s13207_s11 + $0x1c0] sm:$0xff] }
  0xb4   :  { %451 = vmatprep.subr.mxu0 %v399_v20  ;;  %540 = vmatprep.subr.mxu1 %v401_v27  ;;  %13567 = vst [vmem:[#allocation34_spill] sm:$0xff] %v8917_v17  ;;  %v80_v20 = vld [vmem:[%s13207_s11 + $0xa8] sm:$0xff]  ;;  %v8927_v27 = vpack.c.bf16 %v62_v13, %v61_v63  ;;  %v134_v47 = vld [vmem:[%s13208_s3 + $0x10] sm:$0xff]  ;;  %v8963_v63 = vpack.c.bf16 %v112_v36, %v111_v32  ;;  %v82_v13 = vld [vmem:[%s13207_s11 + $0xb8] sm:$0xff] }
  0xb5   :  { %452 = vmatpush1.msra.mxu0 %v398_v39  ;;  %541 = vmatpush1.msra.mxu1 %v400_v31  ;;  %v8929_v31 = vpack.c.bf16 %v94_v21, %v93_v16  ;;  %v64_v39 = vld [vmem:[%s13207_s11 + $0x28] sm:$0xff]  ;;  %v81_v50 = vld [vmem:[%s13207_s11 + $0xb0] sm:$0xff]  ;;  %v8961_v52 = vpack.c.bf16 %v80_v20, %v79_v24  ;;  %v114_v21 = vld [vmem:[%s13207_s11 + $0x1b8] sm:$0xff]  ;;  %v9033_v40 = vpack.c.bf16 %v116_v1, %v115_v42 }
  0xb6   :  { %6645 = vmatmul.mubr.msk.f32.vlgmr.msra.gmra.mrb[0].mxu0 %vm422_vm8, %v132_v43  ;;  %6649 = vmatmul.mubr.msk.f32.vlgmr.msra.gmra.mrb[0].mxu1 %vm422_vm8, %v132_v43  ;;  %13568 = vst [vmem:[#allocation35_spill] sm:$0xff] %v8927_v27  ;;  %v95_v43 = vld [vmem:[%s13207_s11 + $0x120] sm:$0xff]  ;;  %13571 = vst [vmem:[#allocation38_spill] sm:$0xff] %v8963_v63  ;;  %v113_v16 = vld [vmem:[%s13207_s11 + $0x1b0] sm:$0xff]  ;;  %v8979_v24 = vpack.c.bf16 %v64_v39, %v63_v37 }
  0xb7   :  { %505 = vmatprep.mubr.f32.mxu0 %v13223_v4  ;;  %594 = vmatprep.mubr.f32.mxu1 %v13223_v4  ;;  %13569 = vst [vmem:[#allocation36_spill] sm:$0xff] %v8929_v31  ;;  %13570 = vst [vmem:[#allocation37_spill] sm:$0xff] %v8961_v52  ;;  %v8981_v20 = vpack.c.bf16 %v96_v46, %v95_v43  ;;  %v65_v32 = vld [vmem:[%s13207_s11 + $0x30] sm:$0xff]  ;;  %v66_v36 = vld [vmem:[%s13207_s11 + $0x38] sm:$0xff]  ;;  %v13574_v43 = vmov 0.0   ;;  %v9002_v46 = vpack.c.bf16 %v82_v13, %v81_v50 }
  0xb8   :  { %7473 = vmatprep.subr.bf16.mxu0 %v8874_v44  ;;  %7505 = vmatprep.subr.bf16.mxu1 %v8876_v45  ;;  %13572 = vst [vmem:[#allocation39_spill] sm:$0xff] %v8979_v24  ;;  %v98_v37 = vld [vmem:[%s13207_s11 + $0x138] sm:$0xff]  ;;  %v83_v39 = vld [vmem:[%s13207_s11 + $0xc0] sm:$0xff]  ;;  %v9004_v15 = vpack.c.bf16 %v114_v21, %v113_v16  ;;  %v9019_v50 = vpack.c.bf16 %v66_v36, %v65_v32  ;;  %v68_v21 = vld [vmem:[%s13207_s11 + $0x48] sm:$0xff] }
  0xb9   :  { %7475 = vmatpush3.bf16.msra.mxu0 %v8884_v3  ;;  %7507 = vmatpush3.bf16.msra.mxu1 %v8886_v48  ;;  %13573 = vst [vmem:[#allocation40_spill] sm:$0xff] %v8981_v20  ;;  %13575 = vst [vmem:[#allocation41_spill] sm:$0xff] %v9002_v46  ;;  %v67_v16 = vld [vmem:[%s13207_s11 + $0x40] sm:$0xff]  ;;  %v100_v32 = vld [vmem:[%s13207_s11 + $0x148] sm:$0xff] }
  0xba   :  { %6646 = vmatmul.mubr.msk.f32.gmra.mrb[2].mxu0 %vm422_vm8, %v133_v18  ;;  %6650 = vmatmul.mubr.msk.f32.gmra.mrb[2].mxu1 %vm422_vm8, %v133_v18  ;;  %v135_v18 = vld [vmem:[%s13208_s3 + $0x18] sm:$0xff]  ;;  %13576 = vst [vmem:[#allocation42_spill] sm:$0xff] %v9004_v15  ;;  %13577 = vst [vmem:[#allocation43_spill] sm:$0xff] %v9019_v50  ;;  %v85_v36 = vld [vmem:[%s13207_s11 + $0xd0] sm:$0xff] }
  0xbb   :  { %511 = vmatprep.mubr.f32.mxu0 %v13223_v4  ;;  %600 = vmatprep.mubr.f32.mxu1 %v13223_v4  ;;  %v97_v4 = vld [vmem:[%s13207_s11 + $0x130] sm:$0xff]  ;;  %13580 = vst [vmem:[#allocation46_spill] sm:$0xff] %v9033_v40  ;;  %v86_v42 = vld [vmem:[%s13207_s11 + $0xd8] sm:$0xff] }
  0xbc   :  { %7477 = vmatprep.subr.bf16.mxu0 %v8915_v19  ;;  %7509 = vmatprep.subr.bf16.mxu1 %v8917_v17  ;;  %v9021_v13 = vpack.c.bf16 %v98_v37, %v97_v4  ;;  %v99_v4 = vld [vmem:[%s13207_s11 + $0x140] sm:$0xff]  ;;  %v117_v1 = vld [vmem:[%s13207_s11 + $0x1d0] sm:$0xff]  ;;  %v9057_v37 = vpack.c.bf16 %v68_v21, %v67_v16  ;;  %v9069_v55 = vpack.c.bf16 %v86_v42, %v85_v36  ;;  %v102_v21 = vld [vmem:[%s13207_s11 + $0x158] sm:$0xff] }
  0xbd   :  { %7479 = vmatpush3.bf16.msra.mxu0 %v8927_v27  ;;  %7511 = vmatpush3.bf16.msra.mxu1 %v8929_v31  ;;  %v101_v16 = vld [vmem:[%s13207_s11 + $0x150] sm:$0xff]  ;;  %v119_v36 = vld [vmem:[%s13207_s11 + $0x1e0] sm:$0xff]  ;;  %v120_v42 = vld [vmem:[%s13207_s11 + $0x1e8] sm:$0xff] }
  0xbe   :  { %6647 = vmatmul.mubr.msk.f32.gmra.mrb[4].mxu0 %vm422_vm8, %v134_v47  ;;  %6651 = vmatmul.mubr.msk.f32.gmra.mrb[4].mxu1 %vm422_vm8, %v134_v47  ;;  %v84_v47 = vld [vmem:[%s13207_s11 + $0xc8] sm:$0xff]  ;;  %13578 = vst [vmem:[#allocation44_spill] sm:$0xff] %v9021_v13  ;;  %13581 = vst [vmem:[#allocation47_spill] sm:$0xff] %v9057_v37  ;;  %v9104_v49 = vpack.c.bf16 %v120_v42, %v119_v36  ;;  %v122_v36 = vld [vmem:[%s13207_s11 + $0x1f8] sm:$0xff] }
  0xbf   :  { %517 = vmatprep.mubr.f32.mxu0 %v13574_v43  ;;  %606 = vmatprep.mubr.f32.mxu1 %v13574_v43  ;;  %v9031_v41 = vpack.c.bf16 %v84_v47, %v83_v39  ;;  %v9059_v39 = vpack.c.bf16 %v100_v32, %v99_v4  ;;  %v69_v47 = vld [vmem:[%s13207_s11 + $0x50] sm:$0xff]  ;;  %13583 = vst [vmem:[#allocation49_spill] sm:$0xff] %v9069_v55  ;;  %v87_v4 = vld [vmem:[%s13207_s11 + $0xe0] sm:$0xff]  ;;  %v88_v32 = vld [vmem:[%s13207_s11 + $0xe8] sm:$0xff] }
  0xc0   :  { %7481 = vmatprep.subr.bf16.mxu0 %v8961_v52  ;;  %7513 = vmatprep.subr.bf16.mxu1 %v8963_v63  ;;  %v9102_v2 = vpack.c.bf16 %v88_v32, %v87_v4  ;;  %13588 = vst [vmem:[#allocation54_spill] sm:$0xff] %v9104_v49  ;;  %v89_v4 = vld [vmem:[%s13207_s11 + $0xf0] sm:$0xff]  ;;  %v90_v32 = vld [vmem:[%s13207_s11 + $0xf8] sm:$0xff] }
  0xc1   :  { %7483 = vmatpush3.bf16.msra.mxu0 %v8979_v24  ;;  %7515 = vmatpush3.bf16.msra.mxu1 %v8981_v20  ;;  %13579 = vst [vmem:[#allocation45_spill] sm:$0xff] %v9031_v41  ;;  %13582 = vst [vmem:[#allocation48_spill] sm:$0xff] %v9059_v39  ;;  %v73_v42 = vld [vmem:[%s13207_s11 + $0x70] sm:$0xff] }
  0xc2   :  { %6648 = vmatmul.mubr.msk.f32.gmra.mrb[6].mxu0 %vm422_vm8, %v135_v18  ;;  %6652 = vmatmul.mubr.msk.f32.gmra.mrb[6].mxu1 %vm422_vm8, %v135_v18  ;;  %v118_v18 = vld [vmem:[%s13207_s11 + $0x1d8] sm:$0xff]  ;;  %13587 = vst [vmem:[#allocation53_spill] sm:$0xff] %v9102_v2 }
  0xc3   :  { %7485 = vmatprep.subr.bf16.mxu0 %v9002_v46  ;;  %7517 = vmatprep.subr.bf16.mxu1 %v9004_v15  ;;  %v9071_v54 = vpack.c.bf16 %v118_v18, %v117_v1  ;;  %v9093_v1 = vpack.c.bf16 %v70_v53, %v69_v47  ;;  %v9095_v18 = vpack.c.bf16 %v102_v21, %v101_v16  ;;  %v103_v53 = vld [vmem:[%s13207_s11 + $0x160] sm:$0xff]  ;;  %v104_v47 = vld [vmem:[%s13207_s11 + $0x168] sm:$0xff] }
  0xc4   :  { %v9117_v16 = vpack.c.bf16 %v72_v0, %v71_v51  ;;  %v9119_v21 = vpack.c.bf16 %v104_v47, %v103_v53  ;;  %v121_v0 = vld [vmem:[%s13207_s11 + $0x1f0] sm:$0xff]  ;;  %v9134_v51 = vpack.c.bf16 %v90_v32, %v89_v4  ;;  %v74_v53 = vld [vmem:[%s13207_s11 + $0x78] sm:$0xff] }
  0xc5   :  { %7487 = vmatpush3.bf16.msra.mxu0 %v9019_v50  ;;  %7519 = vmatpush3.bf16.msra.mxu1 %v9021_v13  ;;  %13584 = vst [vmem:[#allocation50_spill] sm:$0xff] %v9071_v54  ;;  %13585 = vst [vmem:[#allocation51_spill] sm:$0xff] %v9093_v1  ;;  %v9145_v47 = vpack.c.bf16 %v122_v36, %v121_v0  ;;  %v9147_v58 = vpack.c.bf16 %v74_v53, %v73_v42  ;;  %v105_v4 = vld [vmem:[%s13207_s11 + $0x170] sm:$0xff]  ;;  %v106_v32 = vld [vmem:[%s13207_s11 + $0x178] sm:$0xff]  ;;  %v405_v0 = vpop.permute.xlu0 %404  ;;  %v410_v36 = vpop.permute.xlu1 %409 }
  0xc6   :  { %7489 = vmatprep.subr.bf16.mxu0 %v9031_v41  ;;  %7521 = vmatprep.subr.bf16.mxu1 %v9033_v40  ;;  %13586 = vst [vmem:[#allocation52_spill] sm:$0xff] %v9095_v18  ;;  %13589 = vst [vmem:[#allocation55_spill] sm:$0xff] %v9117_v16  ;;  %v9156_v57 = vpack.c.bf16 %v106_v32, %v105_v4 }
  0xc7   :  { %13590 = vst [vmem:[#allocation56_spill] sm:$0xff] %v9119_v21  ;;  %13591 = vst [vmem:[#allocation57_spill] sm:$0xff] %v9134_v51 }
  0xc8   :  { %13592 = vst [vmem:[#allocation58_spill] sm:$0xff] %v9145_v47  ;;  %13593 = vst [vmem:[#allocation59_spill] sm:$0xff] %v9147_v58 }
  0xc9   :  { %7491 = vmatpush3.bf16.msra.mxu0 %v9057_v37  ;;  %7523 = vmatpush3.bf16.msra.mxu1 %v9059_v39  ;;  %13594 = vst [vmem:[#allocation60_spill] sm:$0xff] %v9156_v57 }
  0xca   :  { %7493 = vmatprep.subr.bf16.mxu0 %v9069_v55  ;;  %7525 = vmatprep.subr.bf16.mxu1 %v9071_v54 }
  0xcd   :  { %7495 = vmatpush3.bf16.msra.mxu0 %v9093_v1  ;;  %7527 = vmatpush3.bf16.msra.mxu1 %v9095_v18 }
  0xce   :  { %7497 = vmatprep.subr.bf16.mxu0 %v9102_v2  ;;  %7529 = vmatprep.subr.bf16.mxu1 %v9104_v49 }
  0xd1   :  { %7499 = vmatpush3.bf16.msra.mxu0 %v9117_v16  ;;  %7531 = vmatpush3.bf16.msra.mxu1 %v9119_v21 }
  0xd2   :  { %7501 = vmatprep.subr.bf16.mxu0 %v9134_v51  ;;  %7533 = vmatprep.subr.bf16.mxu1 %v9145_v47 }
  0xd5   :  { %7503 = vmatpush3.bf16.msra.mxu0 %v9147_v58  ;;  %7535 = vmatpush3.bf16.msra.mxu1 %v9156_v57 }
  0xd6   :  { %7537 = vmatprep.subr.bf16.mxu0 %v8874_v44  ;;  %7569 = vmatprep.subr.bf16.mxu1 %v8876_v45 }
 0x189   :  { %v501_v42 = vpop.f32.mrb[0].mxu0  ;;  %v590_v53 = vpop.f32.mrb[0].mxu1 }
 0x18a   :  { %v503_v60 = vpop.f32.mrb[1].mxu0  ;;  %v592_v59 = vpop.f32.mrb[1].mxu1  ;;  %v9167_v32 = vadd.f32 %v501_v42, %v405_v0  ;;  %v9169_v35 = vadd.f32 %v590_v53, %v405_v0 }
 0x18b   :  { %v9163_v56 = vadd.f32 %v503_v60, %v405_v0  ;;  %v9165_v4 = vadd.f32 %v592_v59, %v405_v0  ;;  %v415_v53 = vpop.permute.xlu1 %414 }
 0x18d   :  { %v507_v25 = vpop.f32.mrb[2].mxu0  ;;  %v596_v26 = vpop.f32.mrb[2].mxu1  ;;  %677 = vmatprep.mubr.f32.mxu0 %v9163_v56  ;;  %762 = vmatprep.mubr.f32.mxu1 %v9165_v4 }
 0x18e   :  { %v509_v45 = vpop.f32.mrb[3].mxu0  ;;  %v598_v44 = vpop.f32.mrb[3].mxu1  ;;  %678 = vmatmul.mubr.f32.vlgmr.msra.gmra.mrb[8].mxu0 %v9167_v32  ;;  %763 = vmatmul.mubr.f32.vlgmr.msra.gmra.mrb[8].mxu1 %v9169_v35  ;;  %v9175_v60 = vadd.f32 %v507_v25, %v410_v36  ;;  %v9177_v59 = vadd.f32 %v596_v26, %v410_v36 }
 0x18f   :  { %v9179_v42 = vadd.f32 %v509_v45, %v410_v36  ;;  %v9181_v0 = vadd.f32 %v598_v44, %v410_v36  ;;  %7539 = vmatpush3.bf16.msra.mxu0 %v8884_v3  ;;  %7571 = vmatpush3.bf16.msra.mxu1 %v8886_v48 }
 0x190   :  { %7541 = vmatprep.subr.bf16.mxu0 %v8915_v19  ;;  %7573 = vmatprep.subr.bf16.mxu1 %v8917_v17  ;;  %v420_v17 = vpop.permute.xlu0 %419 }
 0x191   :  { %v513_v62 = vpop.f32.mrb[4].mxu0  ;;  %v602_v12 = vpop.f32.mrb[4].mxu1  ;;  %682 = vmatprep.mubr.f32.mxu0 %v9179_v42  ;;  %767 = vmatprep.mubr.f32.mxu1 %v9181_v0 }
 0x192   :  { %v515_v25 = vpop.f32.mrb[5].mxu0  ;;  %v604_v26 = vpop.f32.mrb[5].mxu1  ;;  %683 = vmatmul.mubr.f32.gmra.mrb[10].mxu0 %v9175_v60  ;;  %768 = vmatmul.mubr.f32.gmra.mrb[10].mxu1 %v9177_v59  ;;  %v9191_v44 = vadd.f32 %v513_v62, %v415_v53  ;;  %v9193_v45 = vadd.f32 %v602_v12, %v415_v53 }
 0x193   :  { %v9195_v36 = vadd.f32 %v515_v25, %v415_v53  ;;  %v9197_v19 = vadd.f32 %v604_v26, %v415_v53  ;;  %7543 = vmatpush3.bf16.msra.mxu0 %v8927_v27  ;;  %7575 = vmatpush3.bf16.msra.mxu1 %v8929_v31 }
 0x194   :  { %7545 = vmatprep.subr.bf16.mxu0 %v8961_v52  ;;  %7577 = vmatprep.subr.bf16.mxu1 %v8963_v63 }
 0x195   :  { %v519_v48 = vpop.f32.mrb[6].mxu0  ;;  %v608_v3 = vpop.f32.mrb[6].mxu1  ;;  %687 = vmatprep.mubr.f32.mxu0 %v9195_v36  ;;  %772 = vmatprep.mubr.f32.mxu1 %v9197_v19 }
 0x196   :  { %v521_v62 = vpop.f32.mrb[7].mxu0  ;;  %v610_v12 = vpop.f32.mrb[7].mxu1  ;;  %688 = vmatmul.mubr.f32.gmra.mrb[12].mxu0 %v9191_v44  ;;  %773 = vmatmul.mubr.f32.gmra.mrb[12].mxu1 %v9193_v45  ;;  %v9213_v26 = vadd.f32 %v519_v48, %v420_v17  ;;  %v9215_v63 = vadd.f32 %v608_v3, %v420_v17  ;;  %v786_v48 = vmul.f32 %v9165_v4, %v9165_v4 }
 0x197   :  { %v9207_v53 = vadd.f32 %v521_v62, %v420_v17  ;;  %v9209_v25 = vadd.f32 %v610_v12, %v420_v17  ;;  %7547 = vmatpush3.bf16.msra.mxu0 %v8979_v24  ;;  %7579 = vmatpush3.bf16.msra.mxu1 %v8981_v20  ;;  %v784_v62 = vmul.f32 %v9163_v56, %v9163_v56 }
 0x198   :  { %7549 = vmatprep.subr.bf16.mxu0 %v9002_v46  ;;  %7581 = vmatprep.subr.bf16.mxu1 %v9004_v15  ;;  %v783_v3 = vmul.f32 %v9167_v32, %v9167_v32  ;;  %v785_v17 = vmul.f32 %v9169_v35, %v9169_v35  ;;  %v788_v12 = vmul.f32 %v9179_v42, %v9179_v42 }
 0x199   :  { %692 = vmatprep.mubr.f32.mxu0 %v9207_v53  ;;  %777 = vmatprep.mubr.f32.mxu1 %v9209_v25 }
 0x19a   :  { %693 = vmatmul.mubr.f32.gmra.mrb[14].mxu0 %v9213_v26  ;;  %778 = vmatmul.mubr.f32.gmra.mrb[14].mxu1 %v9215_v63 }
 0x19b   :  { %7551 = vmatpush3.bf16.msra.mxu0 %v9019_v50  ;;  %7583 = vmatpush3.bf16.msra.mxu1 %v9021_v13 }
 0x19c   :  { %863 = vmatprep.mubr.f32.mxu0 %v784_v62  ;;  %948 = vmatprep.mubr.f32.mxu1 %v786_v48  ;;  %v790_v62 = vmul.f32 %v9181_v0, %v9181_v0  ;;  %v787_v48 = vmul.f32 %v9175_v60, %v9175_v60 }
 0x19d   :  { %7553 = vmatprep.subr.bf16.mxu0 %v9031_v41  ;;  %7585 = vmatprep.subr.bf16.mxu1 %v9033_v40 }
 0x19f   :  { %7555 = vmatpush3.bf16.msra.mxu0 %v9057_v37  ;;  %7587 = vmatpush3.bf16.msra.mxu1 %v9059_v39 }
 0x1a0   :  { %7557 = vmatprep.subr.bf16.mxu0 %v9069_v55  ;;  %7589 = vmatprep.subr.bf16.mxu1 %v9071_v54 }
 0x1a3   :  { %7559 = vmatpush3.bf16.msra.mxu0 %v9093_v1  ;;  %7591 = vmatpush3.bf16.msra.mxu1 %v9095_v18 }
 0x1a4   :  { %7561 = vmatprep.subr.bf16.mxu0 %v9102_v2  ;;  %7593 = vmatprep.subr.bf16.mxu1 %v9104_v49 }
 0x1a7   :  { %7563 = vmatpush3.bf16.msra.mxu0 %v9117_v16  ;;  %7595 = vmatpush3.bf16.msra.mxu1 %v9119_v21 }
 0x1a8   :  { %7565 = vmatprep.subr.bf16.mxu0 %v9134_v51  ;;  %7597 = vmatprep.subr.bf16.mxu1 %v9145_v47  ;;  %v794_v47 = vmul.f32 %v9197_v19, %v9197_v19 }
 0x1ab   :  { %7567 = vmatpush3.bf16.msra.mxu0 %v9147_v58  ;;  %7599 = vmatpush3.bf16.msra.mxu1 %v9156_v57  ;;  %v789_v57 = vmul.f32 %v9177_v59, %v9177_v59  ;;  %v792_v58 = vmul.f32 %v9195_v36, %v9195_v36 }
 0x1ae   :  { %864 = vmatmul.mubr.f32.vlgmr.msra.gmra.mrb[16].mxu0 %v783_v3  ;;  %949 = vmatmul.mubr.f32.vlgmr.msra.gmra.mrb[16].mxu1 %v785_v17  ;;  %v791_v3 = vmul.f32 %v9191_v44, %v9191_v44  ;;  %v793_v17 = vmul.f32 %v9193_v45, %v9193_v45 }
 0x1af   :  { %868 = vmatprep.mubr.f32.mxu0 %v788_v12  ;;  %953 = vmatprep.mubr.f32.mxu1 %v790_v62  ;;  %v796_v12 = vmul.f32 %v9207_v53, %v9207_v53  ;;  %v798_v62 = vmul.f32 %v9209_v25, %v9209_v25 }
 0x1b2   :  { %869 = vmatmul.mubr.f32.gmra.mrb[18].mxu0 %v787_v48  ;;  %954 = vmatmul.mubr.f32.gmra.mrb[18].mxu1 %v789_v57  ;;  %v795_v57 = vmul.f32 %v9213_v26, %v9213_v26  ;;  %v8402_v48 = vmov 1  }
 0x1b3   :  { %873 = vmatprep.mubr.f32.mxu0 %v792_v58  ;;  %958 = vmatprep.mubr.f32.mxu1 %v794_v47  ;;  %v797_v58 = vmul.f32 %v9215_v63, %v9215_v63  ;;  %v55_v47 = vld [vmem:[%s13209_s10] sm:$0xff] }
 0x1b4   :  { %8313 = vset.pattern.permute.xlu1 %v8402_v48  ;;  %8314 = vset.pattern.permute.xlu0 %v8402_v48 }
 0x1b5   :  { %1169 = vperm.xlu1 %8313, %v8577_v6   ;;  %1173 = vperm.xlu0 %8314, %v8582_v7  }
 0x1b6   :  { %874 = vmatmul.mubr.f32.gmra.mrb[20].mxu0 %v791_v3  ;;  %959 = vmatmul.mubr.f32.gmra.mrb[20].mxu1 %v793_v17  ;;  %v8403_v3 = vmov 2  }
 0x1b7   :  { %878 = vmatprep.mubr.f32.mxu0 %v796_v12  ;;  %963 = vmatprep.mubr.f32.mxu1 %v798_v62 }
 0x1b9   :  { %1177 = vperm.xlu1 %8313, %v8594_v9   ;;  %8315 = vset.pattern.permute.xlu0 %v8403_v3 }
 0x1ba   :  { %879 = vmatmul.mubr.f32.gmra.mrb[22].mxu0 %v795_v57  ;;  %964 = vmatmul.mubr.f32.gmra.mrb[22].mxu1 %v797_v58 }
 0x1bb   :  { %7364 = vmatprep.mubr.msk.f32.mxu0 %vm969_vm9, %v55_v47  ;;  %7378 = vmatprep.mubr.msk.f32.mxu1 %vm969_vm9, %v55_v47 }
 0x1bc   :  { %1193 = vperm.xlu0 %8315, %v8577_v6  }
 0x1bd   :  { %1181 = vperm.xlu1 %8313, %v8589_v8  }
 0x1c0   :  { %1205 = vperm.xlu0 %8315, %v8589_v8  }
 0x1c1   :  { %8316 = vset.pattern.permute.xlu1 %v8403_v3 }
 0x1c2   :  { %1197 = vperm.xlu1 %8316, %v8582_v7  }
 0x1c6   :  { %1201 = vperm.xlu1 %8316, %v8594_v9  }
 0x261   :  { %v6812_v17 = vpop.f32.mrb[8].mxu0  ;;  %v6856_v12 = vpop.f32.mrb[8].mxu1 }
 0x262   :  { %v6813_v62 = vpop.f32.mrb[9].mxu0  ;;  %v6857_v57 = vpop.f32.mrb[9].mxu1 }
 0x263   :  { %v6814_v58 = vadd.f32 %v6813_v62, %v6812_v17  ;;  %v6858_v47 = vadd.f32 %v6857_v57, %v6856_v12 }
 0x265   :  { %v765_v48 = vadd.f32 %v6858_v47, %v6814_v58  ;;  %v6815_v51 = vpop.f32.mrb[10].mxu0  ;;  %v6859_v21 = vpop.f32.mrb[10].mxu1 }
 0x266   :  { %v6816_v16 = vpop.f32.mrb[11].mxu0  ;;  %v6860_v6 = vpop.f32.mrb[11].mxu1 }
 0x267   :  { %v6817_v49 = vadd.f32 %v6816_v16, %v6815_v51  ;;  %v6861_v2 = vadd.f32 %v6860_v6, %v6859_v21 }
 0x269   :  { %v770_v18 = vadd.f32 %v6861_v2, %v6817_v49  ;;  %v6818_v8 = vpop.f32.mrb[12].mxu0  ;;  %v6862_v3 = vpop.f32.mrb[12].mxu1  ;;  %v56_v2 = vld [vmem:[%s13209_s10 + $0x8] sm:$0xff]  ;;  %v57_v49 = vld [vmem:[%s13209_s10 + $0x10] sm:$0xff] }
 0x26a   :  { %v6819_v1 = vpop.f32.mrb[13].mxu0  ;;  %v6863_v7 = vpop.f32.mrb[13].mxu1 }
 0x26b   :  { %v6820_v54 = vadd.f32 %v6819_v1, %v6818_v8  ;;  %v6864_v9 = vadd.f32 %v6863_v7, %v6862_v3  ;;  %v7600_v55 = vpack.c.bf16 %v770_v18, %v765_v48 }
 0x26d   :  { %v775_v39 = vadd.f32 %v6864_v9, %v6820_v54  ;;  %v6821_v37 = vpop.f32.mrb[14].mxu0  ;;  %v6865_v40 = vpop.f32.mrb[14].mxu1  ;;  %7601 = vmatprep.subr.bf16.mxu0 %v7600_v55  ;;  %v58_v54 = vld [vmem:[%s13209_s10 + $0x18] sm:$0xff] }
 0x26e   :  { %v6822_v17 = vpop.f32.mrb[15].mxu0  ;;  %v6866_v12 = vpop.f32.mrb[15].mxu1  ;;  %7603 = vmatpush3.bf16.msra.mxu0 %v7600_v55 }
 0x26f   :  { %v6823_v62 = vadd.f32 %v6822_v17, %v6821_v37  ;;  %v6867_v57 = vadd.f32 %v6866_v12, %v6865_v40 }
 0x271   :  { %v780_v58 = vadd.f32 %v6867_v57, %v6823_v62 }
 0x273   :  { %v7604_v16 = vpack.c.bf16 %v780_v58, %v775_v39 }
 0x275   :  { %7605 = vmatprep.subr.bf16.mxu0 %v7604_v16 }
 0x276   :  { %7607 = vmatpush3.bf16.msra.mxu0 %v7604_v16 }
 0x279   :  { %7365 = vmatmul.mubr.msk.f32.vlgmr.msra.gmra.mrb[24].mxu0 %vm969_vm9, %v56_v2 }
 0x27a   :  { %7367 = vmatprep.mubr.msk.f32.mxu0 %vm969_vm9, %v57_v49 }
 0x27d   :  { %7368 = vmatmul.mubr.msk.f32.gmra.mrb[26].mxu0 %vm969_vm9, %v58_v54 }
 0x27e   :  { %1316 = vmatprep.mubr.f32.mxu0 %v13574_v43 }
 0x281   :  { %v6900_v55 = vpop.f32.mrb[16].mxu0  ;;  %v6944_v40 = vpop.f32.mrb[16].mxu1 }
 0x282   :  { %v6901_v37 = vpop.f32.mrb[17].mxu0  ;;  %v6945_v39 = vpop.f32.mrb[17].mxu1 }
 0x283   :  { %v6902_v1 = vadd.f32 %v6901_v37, %v6900_v55  ;;  %v6946_v18 = vadd.f32 %v6945_v39, %v6944_v40 }
 0x285   :  { %v951_v21 = vadd.f32 %v6946_v18, %v6902_v1  ;;  %v6903_v51 = vpop.f32.mrb[18].mxu0  ;;  %v6947_v47 = vpop.f32.mrb[18].mxu1 }
 0x286   :  { %v6904_v48 = vpop.f32.mrb[19].mxu0  ;;  %v6948_v6 = vpop.f32.mrb[19].mxu1 }
 0x287   :  { %v6905_v8 = vadd.f32 %v6904_v48, %v6903_v51  ;;  %v6949_v3 = vadd.f32 %v6948_v6, %v6947_v47 }
 0x289   :  { %v956_v7 = vadd.f32 %v6949_v3, %v6905_v8  ;;  %v6906_v9 = vpop.f32.mrb[20].mxu0  ;;  %v6950_v17 = vpop.f32.mrb[20].mxu1 }
 0x28a   :  { %v6907_v12 = vpop.f32.mrb[21].mxu0  ;;  %v6951_v62 = vpop.f32.mrb[21].mxu1 }
 0x28b   :  { %v6908_v57 = vadd.f32 %v6907_v12, %v6906_v9  ;;  %v6952_v58 = vadd.f32 %v6951_v62, %v6950_v17  ;;  %v7608_v16 = vpack.c.bf16 %v956_v7, %v951_v21  ;;  %v8404_v21 = vmov 1983009808  }
 0x28c   :  { %v1215_v51 = vunpack.c.l.s4 %v8404_v21 }
 0x28d   :  { %v961_v41 = vadd.f32 %v6952_v58, %v6908_v57  ;;  %v6909_v13 = vpop.f32.mrb[22].mxu0  ;;  %v6953_v50 = vpop.f32.mrb[22].mxu1  ;;  %7609 = vmatprep.subr.bf16.mxu1 %v7608_v16 }
 0x28e   :  { %v6910_v55 = vpop.f32.mrb[23].mxu0  ;;  %v6954_v40 = vpop.f32.mrb[23].mxu1  ;;  %7611 = vmatpush3.bf16.msra.mxu1 %v7608_v16  ;;  %v1216_v47 = vunpack.c.0.s8 %v1215_v51 }
 0x28f   :  { %v6911_v37 = vadd.f32 %v6910_v55, %v6909_v13  ;;  %v6955_v39 = vadd.f32 %v6954_v40, %v6953_v50  ;;  %v123_v13 = vld [vmem:[%s13210_s12] sm:$0xff]  ;;  %s13602_s12 = smov 113  }
 0x290   :  { %v1219_v50 = vsub.s32 %v1216_v47, %v8598_v11  ;;  %v1170_v47 = vpop.permute.xlu1 %1169 }
 0x291   :  { %v966_v1 = vadd.f32 %v6955_v39, %v6911_v37 }
 0x292   :  { %v9307_v48 = vrot.slane %v123_v13, %v1219_v50 }
 0x293   :  { %v7612_v18 = vpack.c.bf16 %v966_v1, %v961_v41  ;;  %v1213_v41 = vcombine.high %v123_v13, %v123_v13 }
 0x294   :  { %13595 = vst [vmem:[#allocation61_spill] sm:$0xff] %v9307_v48 }
 0x295   :  { %7613 = vmatprep.subr.bf16.mxu1 %v7612_v18  ;;  %v9309_v6 = vrot.slane %v1213_v41, %v1219_v50  ;;  %v1178_v50 = vpop.permute.xlu1 %1177  ;;  %v1174_v41 = vpop.permute.xlu0 %1173 }
 0x296   :  { %7615 = vmatpush3.bf16.msra.mxu1 %v7612_v18 }
 0x297   :  { %13596 = vst [vmem:[#allocation62_spill] sm:$0xff] %v9309_v6 }
 0x299   :  { %7379 = vmatmul.mubr.msk.f32.vlgmr.msra.gmra.mrb[24].mxu1 %vm969_vm9, %v56_v2  ;;  %v9313_v2 = vcombine.high %v9307_v48, %v9307_v48 }
 0x29a   :  { %7381 = vmatprep.mubr.msk.f32.mxu1 %vm969_vm9, %v57_v49  ;;  %v9317_v49 = vcombine.high %v9309_v6, %v9309_v6 }
 0x29b   :  { %13597 = vst [vmem:[#allocation63_spill] sm:$0xff] %v9313_v2  ;;  %6661 = vmatprep.subr.msk.mxu0 %vm1243_vm10, %v9313_v2 }
 0x29c   :  { %13598 = vst [vmem:[#allocation64_spill] sm:$0xff] %v9317_v49  ;;  %6667 = vmatprep.subr.msk.mxu1 %vm1243_vm10, %v9317_v49  ;;  %6662 = vmatpush1.msk.msra.mxu0 %vm1243_vm10, %v9307_v48 }
 0x29d   :  { %7382 = vmatmul.mubr.msk.f32.gmra.mrb[26].mxu1 %vm969_vm9, %v58_v54  ;;  %6673 = vmatprep.subr.msk.mxu0 %vm1243_vm10, %v9313_v2 }
 0x29e   :  { %1405 = vmatprep.mubr.f32.mxu1 %v13574_v43  ;;  %6668 = vmatpush1.msk.msra.mxu1 %vm1243_vm10, %v9309_v6 }
 0x29f   :  { %6679 = vmatprep.subr.msk.mxu1 %vm1243_vm10, %v9317_v49 }
 0x34c   :  { %v7366_v54 = vpop.f32.mrb[24].mxu0 }
 0x34d   :  { %v1048_v8 = vpop.f32.mrb[25].mxu0  ;;  %v1153_v9 = vmul.f32 %v7366_v54, %v7366_v54 }
 0x34e   :  { %v1152_v17 = vmul.f32 %v1048_v8, %v1048_v8 }
 0x350   :  { %v7369_v3 = vpop.f32.mrb[26].mxu0 }
 0x351   :  { %v1058_v7 = vpop.f32.mrb[27].mxu0  ;;  %v1155_v58 = vmul.f32 %v7369_v3, %v7369_v3 }
 0x352   :  { %v1154_v55 = vmul.f32 %v1058_v7, %v1058_v7 }
 0x36c   :  { %v7380_v12 = vpop.f32.mrb[24].mxu1 }
 0x36d   :  { %v1157_v62 = vsub.f32 %v7380_v12, %v1153_v9  ;;  %v1133_v57 = vpop.f32.mrb[25].mxu1 }
 0x36e   :  { %v1156_v16 = vsub.f32 %v1133_v57, %v1152_v17 }
 0x36f   :  { %v1161_v40 = vadd.f32 1e-05, %v1157_v62 }
 0x370   :  { %v1160_v37 = vadd.f32 1e-05, %v1156_v16  ;;  %v7383_v39 = vpop.f32.mrb[26].mxu1  ;;  %v1182_v16 = vpop.permute.xlu1 %1181 }
 0x371   :  { %8332 = vrsqrt.f32 %v1161_v40  ;;  %v1159_v1 = vsub.f32 %v7383_v39, %v1155_v58  ;;  %v1143_v18 = vpop.f32.mrb[27].mxu1 }
 0x372   :  { %8334 = vrsqrt.f32 %v1160_v37  ;;  %v1158_v21 = vsub.f32 %v1143_v18, %v1154_v55 }
 0x373   :  { %v1163_v51 = vadd.f32 1e-05, %v1159_v1 }
 0x374   :  { %v1162_v13 = vadd.f32 1e-05, %v1158_v21 }
 0x375   :  { %8336 = vrsqrt.f32 %v1163_v51 }
 0x376   :  { %8338 = vrsqrt.f32 %v1162_v13 }
 0x37b   :  { %v8333_v9 = vpop.eup %8332 }
 0x37c   :  { %v8335_v12 = vpop.eup %8334  ;;  %v1185_v11 = vmul.f32 %v8333_v9, %v1174_v41 }
 0x37d   :  { %v1184_v17 = vmul.f32 %v8335_v12, %v1170_v47 }
 0x37e   :  { %v1189_v62 = vmul.f32 %v7366_v54, %v1185_v11 }
 0x37f   :  { %v8337_v57 = vpop.eup %8336  ;;  %6663 = vmatmul.mubr.msk.f32.vlgmr.msra.gmra.mrb[28].mxu0 %vm1230_vm11, %v1184_v17  ;;  %6669 = vmatmul.mubr.msk.f32.vlgmr.msra.gmra.mrb[28].mxu1 %vm1230_vm11, %v1184_v17  ;;  %v1188_v58 = vmul.f32 %v1184_v17, %v1048_v8  ;;  %v1194_v8 = vpop.permute.xlu0 %1193 }
 0x380   :  { %v8339_v55 = vpop.eup %8338  ;;  %v1187_v40 = vmul.f32 %v8337_v57, %v1182_v16  ;;  %1322 = vmatprep.mubr.f32.mxu0 %v13574_v43  ;;  %1411 = vmatprep.mubr.f32.mxu1 %v13574_v43 }
 0x381   :  { %v1186_v37 = vmul.f32 %v8339_v55, %v1178_v50  ;;  %6674 = vmatpush1.msk.msra.mxu0 %vm1243_vm10, %v9307_v48  ;;  %6680 = vmatpush1.msk.msra.mxu1 %vm1243_vm10, %v9309_v6 }
 0x382   :  { %v1191_v54 = vmul.f32 %v7369_v3, %v1187_v40  ;;  %v1198_v3 = vpop.permute.xlu1 %1197 }
 0x383   :  { %6664 = vmatmul.mubr.msk.f32.gmra.mrb[30].mxu0 %vm1230_vm11, %v1185_v11  ;;  %6670 = vmatmul.mubr.msk.f32.gmra.mrb[30].mxu1 %vm1230_vm11, %v1185_v11  ;;  %v1190_v39 = vmul.f32 %v1186_v37, %v1058_v7  ;;  %v1208_v11 = vsub.f32 %v1194_v8, %v1188_v58  ;;  %v1209_v7 = vsub.f32 %v1198_v3, %v1189_v62  ;;  %v1206_v21 = vpop.permute.xlu0 %1205 }
 0x384   :  { %1328 = vmatprep.mubr.f32.mxu0 %v13574_v43  ;;  %1417 = vmatprep.mubr.f32.mxu1 %v13574_v43  ;;  %v1211_v51 = vsub.f32 %v1206_v21, %v1191_v54 }
 0x386   :  { %v1202_v1 = vpop.permute.xlu1 %1201 }
 0x387   :  { %6665 = vmatmul.mubr.msk.f32.gmra.mrb[32].mxu0 %vm1230_vm11, %v1186_v37  ;;  %6671 = vmatmul.mubr.msk.f32.gmra.mrb[32].mxu1 %vm1230_vm11, %v1186_v37  ;;  %v1210_v18 = vsub.f32 %v1202_v1, %v1190_v39 }
 0x388   :  { %1334 = vmatprep.mubr.f32.mxu0 %v13574_v43  ;;  %1423 = vmatprep.mubr.f32.mxu1 %v13574_v43 }
 0x38b   :  { %6666 = vmatmul.mubr.msk.f32.gmra.mrb[34].mxu0 %vm1230_vm11, %v1187_v40  ;;  %6672 = vmatmul.mubr.msk.f32.gmra.mrb[34].mxu1 %vm1230_vm11, %v1187_v40 }
 0x38c   :  { %1506 = vmatprep.mubr.f32.mxu0 %v13574_v43  ;;  %1595 = vmatprep.mubr.f32.mxu1 %v13574_v43 }
 0x38f   :  { %6675 = vmatmul.mubr.msk.f32.vlgmr.msra.gmra.mrb[36].mxu0 %vm1230_vm11, %v1208_v11  ;;  %6681 = vmatmul.mubr.msk.f32.vlgmr.msra.gmra.mrb[36].mxu1 %vm1230_vm11, %v1208_v11 }
 0x390   :  { %1512 = vmatprep.mubr.f32.mxu0 %v13574_v43  ;;  %1601 = vmatprep.mubr.f32.mxu1 %v13574_v43 }
 0x393   :  { %6676 = vmatmul.mubr.msk.f32.gmra.mrb[38].mxu0 %vm1230_vm11, %v1209_v7  ;;  %6682 = vmatmul.mubr.msk.f32.gmra.mrb[38].mxu1 %vm1230_vm11, %v1209_v7 }
 0x394   :  { %1518 = vmatprep.mubr.f32.mxu0 %v13574_v43  ;;  %1607 = vmatprep.mubr.f32.mxu1 %v13574_v43 }
 0x397   :  { %6677 = vmatmul.mubr.msk.f32.gmra.mrb[40].mxu0 %vm1230_vm11, %v1210_v18  ;;  %6683 = vmatmul.mubr.msk.f32.gmra.mrb[40].mxu1 %vm1230_vm11, %v1210_v18 }
 0x398   :  { %1524 = vmatprep.mubr.f32.mxu0 %v13574_v43  ;;  %1613 = vmatprep.mubr.f32.mxu1 %v13574_v43 }
 0x39b   :  { %6678 = vmatmul.mubr.msk.f32.gmra.mrb[42].mxu0 %vm1230_vm11, %v1211_v51  ;;  %6684 = vmatmul.mubr.msk.f32.gmra.mrb[42].mxu1 %vm1230_vm11, %v1211_v51 }
 0x452   :  { %v1318_v47 = vpop.f32.mrb[28].mxu0  ;;  %v1407_v13 = vpop.f32.mrb[28].mxu1 }
 0x453   :  { %v1320_v50 = vpop.f32.mrb[29].mxu0  ;;  %v1409_v41 = vpop.f32.mrb[29].mxu1  ;;  %v1620_v8 = vmul.f32 %v1318_v47, %v9167_v32  ;;  %v1622_v3 = vmul.f32 %v1407_v13, %v9169_v35 }
 0x454   :  { %v1621_v11 = vmul.f32 %v1320_v50, %v9163_v56  ;;  %v1623_v7 = vmul.f32 %v1409_v41, %v9165_v4 }
 0x456   :  { %v1324_v9 = vpop.f32.mrb[30].mxu0  ;;  %v1413_v12 = vpop.f32.mrb[30].mxu1 }
 0x457   :  { %v1326_v17 = vpop.f32.mrb[31].mxu0  ;;  %v1415_v62 = vpop.f32.mrb[31].mxu1  ;;  %v1624_v15 = vmul.f32 %v1324_v9, %v9175_v60  ;;  %v1626_v32 = vmul.f32 %v1413_v12, %v9177_v59 }
 0x458   :  { %v1625_v35 = vmul.f32 %v1326_v17, %v9179_v42  ;;  %v1627_v56 = vmul.f32 %v1415_v62, %v9181_v0 }
 0x45a   :  { %v1330_v57 = vpop.f32.mrb[32].mxu0  ;;  %v1419_v16 = vpop.f32.mrb[32].mxu1 }
 0x45b   :  { %v1332_v58 = vpop.f32.mrb[33].mxu0  ;;  %v1421_v55 = vpop.f32.mrb[33].mxu1  ;;  %v1628_v59 = vmul.f32 %v1330_v57, %v9191_v44  ;;  %v1630_v9 = vmul.f32 %v1419_v16, %v9193_v45 }
 0x45c   :  { %v1629_v0 = vmul.f32 %v1332_v58, %v9195_v36 }
 0x45e   :  { %v1336_v40 = vpop.f32.mrb[34].mxu0  ;;  %v1425_v37 = vpop.f32.mrb[34].mxu1 }
 0x45f   :  { %v1338_v39 = vpop.f32.mrb[35].mxu0  ;;  %v1427_v54 = vpop.f32.mrb[35].mxu1  ;;  %v1632_v57 = vmul.f32 %v1336_v40, %v9213_v26  ;;  %v1634_v16 = vmul.f32 %v1425_v37, %v9215_v63 }
 0x462   :  { %v1508_v1 = vpop.f32.mrb[36].mxu0  ;;  %v1597_v18 = vpop.f32.mrb[36].mxu1 }
 0x463   :  { %v1636_v21 = vadd.f32 %v1620_v8, %v1508_v1  ;;  %v1638_v51 = vadd.f32 %v1622_v3, %v1597_v18  ;;  %v1510_v6 = vpop.f32.mrb[37].mxu0  ;;  %v1599_v49 = vpop.f32.mrb[37].mxu1  ;;  %v1635_v1 = vmul.f32 %v1427_v54, %v9209_v25 }
 0x464   :  { %v9369_v48 = vadd.f32 %v1621_v11, %v1510_v6  ;;  %v9371_v2 = vadd.f32 %v1623_v7, %v1599_v49 }
 0x465   :  { %v9375_v47 = vmax.f32 %v1636_v21, 0.0  ;;  %v9385_v12 = vmax.f32 %v1638_v51, 0.0 }
 0x466   :  { %v1514_v4 = vpop.f32.mrb[38].mxu0  ;;  %v1603_v13 = vpop.f32.mrb[38].mxu1  ;;  %v9479_v25 = vmax.f32 %v9371_v2, 0.0 }
 0x467   :  { %13599 = vst [vmem:[#allocation65_spill] sm:$0xff] %v9375_v47  ;;  %v1640_v50 = vadd.f32 %v1624_v15, %v1514_v4  ;;  %v1642_v41 = vadd.f32 %v1626_v32, %v1603_v13  ;;  %v1605_v8 = vpop.f32.mrb[39].mxu1  ;;  %1680 = vrot.lane.b32.xlu1 %v9375_v47, %s8392_s17  ;;  %v1516_v6 = vpop.f32.mrb[39].mxu0  ;;  %13600 = vst [vmem:[#allocation66_spill] sm:$0xff] %v9385_v12  ;;  %v1631_v15 = vmul.f32 %v1421_v55, %v9197_v19 }
 0x468   :  { %v9381_v49 = vadd.f32 %v1627_v56, %v1605_v8  ;;  %v1641_v60 = vadd.f32 %v1625_v35, %v1516_v6  ;;  %v1633_v55 = vmul.f32 %v1338_v39, %v9207_v53  ;;  %v9472_v53 = vmax.f32 %v9369_v48, 0.0 }
 0x469   :  { %v9387_v42 = vmax.f32 %v1640_v50, 0.0  ;;  %v9407_v58 = vmax.f32 %v1642_v41, 0.0 }
 0x46a   :  { %v1520_v17 = vpop.f32.mrb[40].mxu0  ;;  %v1609_v62 = vpop.f32.mrb[40].mxu1  ;;  %v9481_v39 = vmax.f32 %v1641_v60, 0.0  ;;  %v9488_v48 = vmax.f32 %v9381_v49, 0.0 }
 0x46b   :  { %13601 = vst [vmem:[#allocation67_spill] sm:$0xff] %v9387_v42  ;;  %v9391_v3 = vadd.f32 %v1628_v59, %v1520_v17  ;;  %v9393_v11 = vadd.f32 %v1630_v9, %v1609_v62  ;;  %v1611_v7 = vpop.f32.mrb[41].mxu1  ;;  %1696 = vrot.lane.b32.xlu1 %v9385_v12, %s8392_s17  ;;  %1682 = vrot.lane.b32.xlu0 %v9387_v42, %s8392_s17  ;;  %v1522_v44 = vpop.f32.mrb[41].mxu0 }
 0x46c   :  { %v9401_v36 = vadd.f32 %v1631_v15, %v1611_v7  ;;  %v9403_v19 = vadd.f32 %v1629_v0, %v1522_v44 }
 0x46d   :  { %v9545_v54 = vmax.f32 %v9391_v3, 0.0  ;;  %v9556_v4 = vmax.f32 %v9393_v11, 0.0 }
 0x46e   :  { %v1526_v18 = vpop.f32.mrb[42].mxu0  ;;  %v1615_v21 = vpop.f32.mrb[42].mxu1  ;;  %v9669_v46 = vmax.f32 %v9403_v19, 0.0  ;;  %v9681_v31 = vmax.f32 %v9401_v36, 0.0 }
 0x46f   :  { %v9411_v51 = vadd.f32 %v1632_v57, %v1526_v18  ;;  %v9413_v32 = vadd.f32 %v1634_v16, %v1615_v21  ;;  %1744 = vrot.lane.b32.xlu1 %v9375_v47, %s8393_s22  ;;  %1698 = vrot.lane.b32.xlu0 %v9407_v58, %s8392_s17  ;;  %v1528_v26 = vpop.f32.mrb[43].mxu0  ;;  %v1617_v63 = vpop.f32.mrb[43].mxu1  ;;  %13605 = vst [vmem:[#allocation68_spill] sm:$0xff] %v9545_v54  ;;  %13606 = vst [vmem:[#allocation69_spill] sm:$0xff] %v9556_v4 }
 0x470   :  { %v9419_v40 = vadd.f32 %v1633_v55, %v1528_v26  ;;  %v9421_v37 = vadd.f32 %v1635_v1, %v1617_v63  ;;  %13623 = vst [vmem:[#allocation86_spill] sm:$0xff] %v9681_v31 }
 0x471   :  { %v9559_v13 = vmax.f32 %v9411_v51, 0.0  ;;  %v9570_v8 = vmax.f32 %v9413_v32, 0.0 }
 0x472   :  { %v9684_v19 = vmax.f32 %v9419_v40, 0.0 }
 0x473   :  { %1760 = vrot.lane.b32.xlu1 %v9385_v12, %s8393_s22  ;;  %1746 = vrot.lane.b32.xlu0 %v9387_v42, %s8393_s22  ;;  %13607 = vst [vmem:[#allocation70_spill] sm:$0xff] %v9559_v13  ;;  %13608 = vst [vmem:[#allocation71_spill] sm:$0xff] %v9570_v8 }
 0x477   :  { %1808 = vrot.lane.b32.xlu1 %v9375_v47, %s8394_s23  ;;  %1762 = vrot.lane.b32.xlu0 %v9407_v58, %s8393_s22 }
 0x47b   :  { %1824 = vrot.lane.b32.xlu1 %v9385_v12, %s8394_s23  ;;  %1810 = vrot.lane.b32.xlu0 %v9387_v42, %s8394_s23 }
 0x47f   :  { %1872 = vrot.lane.b32.xlu1 %v9375_v47, %s8395_s24  ;;  %1826 = vrot.lane.b32.xlu0 %v9407_v58, %s8394_s23 }
 0x483   :  { %1888 = vrot.lane.b32.xlu1 %v9385_v12, %s8395_s24  ;;  %1874 = vrot.lane.b32.xlu0 %v9387_v42, %s8395_s24 }
 0x487   :  { %1936 = vrot.lane.b32.xlu1 %v9375_v47, %s8396_s25  ;;  %1890 = vrot.lane.b32.xlu0 %v9407_v58, %s8395_s24 }
 0x48b   :  { %1952 = vrot.lane.b32.xlu1 %v9385_v12, %s8396_s25  ;;  %1938 = vrot.lane.b32.xlu0 %v9387_v42, %s8396_s25 }
 0x48f   :  { %2000 = vrot.lane.b32.xlu1 %v9375_v47, %s13602_s12  ;;  %1954 = vrot.lane.b32.xlu0 %v9407_v58, %s8396_s25 }
 0x493   :  { %2016 = vrot.lane.b32.xlu1 %v9385_v12, %s13602_s12  ;;  %2002 = vrot.lane.b32.xlu0 %v9387_v42, %s13602_s12 }
 0x497   :  { %2064 = vrot.lane.b32.xlu1 %v9375_v47, %s13603_s29  ;;  %2018 = vrot.lane.b32.xlu0 %v9407_v58, %s13602_s12 }
 0x49b   :  { %2080 = vrot.lane.b32.xlu1 %v9385_v12, %s13603_s29  ;;  %2066 = vrot.lane.b32.xlu0 %v9387_v42, %s13603_s29 }
 0x49f   :  { %2128 = vrot.lane.b32.xlu1 %v9375_v47, %s13604_s30  ;;  %2082 = vrot.lane.b32.xlu0 %v9407_v58, %s13603_s29 }
 0x4a3   :  { %1688 = vrot.lane.b32.xlu1 %v9472_v53, %s8392_s17  ;;  %2130 = vrot.lane.b32.xlu0 %v9387_v42, %s13604_s30  ;;  %v9707_v42 = vmax.f32 %v9421_v37, 0.0 }
 0x4a5   :  { %13624 = vst [vmem:[#allocation87_spill] sm:$0xff] %v9707_v42 }
 0x4a7   :  { %1704 = vrot.lane.b32.xlu1 %v9479_v25, %s8392_s17  ;;  %1690 = vrot.lane.b32.xlu0 %v9481_v39, %s8392_s17 }
 0x4ab   :  { %1752 = vrot.lane.b32.xlu1 %v9472_v53, %s8393_s22  ;;  %1706 = vrot.lane.b32.xlu0 %v9488_v48, %s8392_s17 }
 0x4af   :  { %1768 = vrot.lane.b32.xlu1 %v9479_v25, %s8393_s22  ;;  %1754 = vrot.lane.b32.xlu0 %v9481_v39, %s8393_s22 }
 0x4b3   :  { %1816 = vrot.lane.b32.xlu1 %v9472_v53, %s8394_s23  ;;  %1770 = vrot.lane.b32.xlu0 %v9488_v48, %s8393_s22 }
 0x4b7   :  { %1832 = vrot.lane.b32.xlu1 %v9479_v25, %s8394_s23  ;;  %1818 = vrot.lane.b32.xlu0 %v9481_v39, %s8394_s23 }
 0x4bb   :  { %1880 = vrot.lane.b32.xlu1 %v9472_v53, %s8395_s24  ;;  %1834 = vrot.lane.b32.xlu0 %v9488_v48, %s8394_s23 }
 0x4bf   :  { %1896 = vrot.lane.b32.xlu1 %v9479_v25, %s8395_s24  ;;  %1882 = vrot.lane.b32.xlu0 %v9481_v39, %s8395_s24 }
 0x4c3   :  { %1944 = vrot.lane.b32.xlu1 %v9472_v53, %s8396_s25  ;;  %1898 = vrot.lane.b32.xlu0 %v9488_v48, %s8395_s24 }
 0x4c7   :  { %1960 = vrot.lane.b32.xlu1 %v9479_v25, %s8396_s25  ;;  %1946 = vrot.lane.b32.xlu0 %v9481_v39, %s8396_s25 }
 0x4cb   :  { %2008 = vrot.lane.b32.xlu1 %v9472_v53, %s13602_s12  ;;  %1962 = vrot.lane.b32.xlu0 %v9488_v48, %s8396_s25 }
 0x4cf   :  { %2024 = vrot.lane.b32.xlu1 %v9479_v25, %s13602_s12  ;;  %2010 = vrot.lane.b32.xlu0 %v9481_v39, %s13602_s12 }
 0x4d3   :  { %2072 = vrot.lane.b32.xlu1 %v9472_v53, %s13603_s29  ;;  %2026 = vrot.lane.b32.xlu0 %v9488_v48, %s13602_s12 }
 0x4d7   :  { %2088 = vrot.lane.b32.xlu1 %v9479_v25, %s13603_s29  ;;  %2074 = vrot.lane.b32.xlu0 %v9481_v39, %s13603_s29 }
 0x4d9   :  { %v9538_v2 = vpop.permute.xlu1 %1680 }
 0x4db   :  { %2136 = vrot.lane.b32.xlu1 %v9472_v53, %s13604_s30  ;;  %2090 = vrot.lane.b32.xlu0 %v9488_v48, %s13603_s29 }
 0x4dd   :  { %v9547_v35 = vpop.permute.xlu1 %1696  ;;  %v9549_v56 = vpop.permute.xlu0 %1682 }
 0x4df   :  { %2138 = vrot.lane.b32.xlu0 %v9481_v39, %s13604_s30  ;;  %1684 = vrot.lane.b32.xlu1 %v9545_v54, %s8392_s17 }
 0x4e1   :  { %v9561_v50 = vpop.permute.xlu1 %1744  ;;  %v9563_v41 = vpop.permute.xlu0 %1698 }
 0x4e3   :  { %1700 = vrot.lane.b32.xlu1 %v9556_v4, %s8392_s17  ;;  %1686 = vrot.lane.b32.xlu0 %v9559_v13, %s8392_s17 }
 0x4e5   :  { %v9572_v6 = vpop.permute.xlu1 %1760  ;;  %v9574_v49 = vpop.permute.xlu0 %1746 }
 0x4e7   :  { %1748 = vrot.lane.b32.xlu1 %v9545_v54, %s8393_s22  ;;  %1702 = vrot.lane.b32.xlu0 %v9570_v8, %s8392_s17 }
 0x4e9   :  { %v9580_v60 = vpop.permute.xlu1 %1808  ;;  %v9582_v59 = vpop.permute.xlu0 %1762 }
 0x4eb   :  { %1764 = vrot.lane.b32.xlu1 %v9556_v4, %s8393_s22  ;;  %1750 = vrot.lane.b32.xlu0 %v9559_v13, %s8393_s22 }
 0x4ed   :  { %v9588_v9 = vpop.permute.xlu1 %1824  ;;  %v9590_v0 = vpop.permute.xlu0 %1810 }
 0x4ef   :  { %1812 = vrot.lane.b32.xlu1 %v9545_v54, %s8394_s23  ;;  %1766 = vrot.lane.b32.xlu0 %v9570_v8, %s8393_s22 }
 0x4f1   :  { %v9596_v15 = vpop.permute.xlu1 %1872  ;;  %v9598_v17 = vpop.permute.xlu0 %1826 }
 0x4f3   :  { %1828 = vrot.lane.b32.xlu1 %v9556_v4, %s8394_s23  ;;  %1814 = vrot.lane.b32.xlu0 %v9559_v13, %s8394_s23 }
 0x4f5   :  { %v9604_v62 = vpop.permute.xlu1 %1888  ;;  %v9606_v3 = vpop.permute.xlu0 %1874 }
 0x4f7   :  { %1876 = vrot.lane.b32.xlu1 %v9545_v54, %s8395_s24  ;;  %1830 = vrot.lane.b32.xlu0 %v9570_v8, %s8394_s23 }
 0x4f9   :  { %v9612_v11 = vpop.permute.xlu1 %1936  ;;  %v9614_v7 = vpop.permute.xlu0 %1890 }
 0x4fa   :  { %13609 = vst [vmem:[#allocation72_spill] sm:$0xff] %v9612_v11 }
 0x4fb   :  { %1892 = vrot.lane.b32.xlu1 %v9556_v4, %s8395_s24  ;;  %1878 = vrot.lane.b32.xlu0 %v9559_v13, %s8395_s24 }
 0x4fd   :  { %v9620_v44 = vpop.permute.xlu1 %1952  ;;  %v9622_v57 = vpop.permute.xlu0 %1938 }
 0x4fe   :  { %13610 = vst [vmem:[#allocation73_spill] sm:$0xff] %v9620_v44  ;;  %13611 = vst [vmem:[#allocation74_spill] sm:$0xff] %v9622_v57 }
 0x4ff   :  { %1940 = vrot.lane.b32.xlu1 %v9545_v54, %s8396_s25  ;;  %1894 = vrot.lane.b32.xlu0 %v9570_v8, %s8395_s24 }
 0x501   :  { %v9628_v16 = vpop.permute.xlu1 %2000  ;;  %v9630_v55 = vpop.permute.xlu0 %1954 }
 0x502   :  { %13612 = vst [vmem:[#allocation75_spill] sm:$0xff] %v9628_v16  ;;  %13613 = vst [vmem:[#allocation76_spill] sm:$0xff] %v9630_v55 }
 0x503   :  { %1956 = vrot.lane.b32.xlu1 %v9556_v4, %s8396_s25  ;;  %1942 = vrot.lane.b32.xlu0 %v9559_v13, %s8396_s25 }
 0x505   :  { %v9636_v1 = vpop.permute.xlu1 %2016  ;;  %v9638_v18 = vpop.permute.xlu0 %2002 }
 0x506   :  { %13614 = vst [vmem:[#allocation77_spill] sm:$0xff] %v9636_v1  ;;  %13615 = vst [vmem:[#allocation78_spill] sm:$0xff] %v9638_v18 }
 0x507   :  { %2004 = vrot.lane.b32.xlu1 %v9545_v54, %s13602_s12  ;;  %1958 = vrot.lane.b32.xlu0 %v9570_v8, %s8396_s25 }
 0x509   :  { %v9644_v21 = vpop.permute.xlu1 %2064  ;;  %v9646_v51 = vpop.permute.xlu0 %2018 }
 0x50a   :  { %13616 = vst [vmem:[#allocation79_spill] sm:$0xff] %v9644_v21  ;;  %13617 = vst [vmem:[#allocation80_spill] sm:$0xff] %v9646_v51 }
 0x50b   :  { %2020 = vrot.lane.b32.xlu1 %v9556_v4, %s13602_s12  ;;  %2006 = vrot.lane.b32.xlu0 %v9559_v13, %s13602_s12 }
 0x50d   :  { %v9652_v32 = vpop.permute.xlu1 %2080  ;;  %v9654_v26 = vpop.permute.xlu0 %2066 }
 0x50e   :  { %13618 = vst [vmem:[#allocation81_spill] sm:$0xff] %v9652_v32  ;;  %13619 = vst [vmem:[#allocation82_spill] sm:$0xff] %v9654_v26 }
 0x50f   :  { %2068 = vrot.lane.b32.xlu1 %v9545_v54, %s13603_s29  ;;  %2022 = vrot.lane.b32.xlu0 %v9570_v8, %s13602_s12 }
 0x511   :  { %v9660_v63 = vpop.permute.xlu1 %2128  ;;  %v9662_v45 = vpop.permute.xlu0 %2082 }
 0x512   :  { %13620 = vst [vmem:[#allocation83_spill] sm:$0xff] %v9660_v63  ;;  %13621 = vst [vmem:[#allocation84_spill] sm:$0xff] %v9662_v45 }
 0x513   :  { %2084 = vrot.lane.b32.xlu1 %v9556_v4, %s13603_s29  ;;  %2070 = vrot.lane.b32.xlu0 %v9559_v13, %s13603_s29 }
 0x515   :  { %v1689_v20 = vpop.permute.xlu1 %1688  ;;  %v9671_v24 = vpop.permute.xlu0 %2130 }
 0x516   :  { %13622 = vst [vmem:[#allocation85_spill] sm:$0xff] %v9671_v24  ;;  %v1720_v52 = vsel %vm146_vm0, %v9538_v2, %v1689_v20  ;;  %v1716_v21 = vsel %vm146_vm0, %v1689_v20, %v9547_v35 }
 0x517   :  { %1692 = vrot.lane.b32.xlu1 %v9669_v46, %s8392_s17  ;;  %2086 = vrot.lane.b32.xlu0 %v9570_v8, %s13603_s29  ;;  %v1729_v63 = vmul.f32 %v1720_v52, %v8625_v22 }
 0x519   :  { %v1705_v27 = vpop.permute.xlu1 %1704  ;;  %v1691_v43 = vpop.permute.xlu0 %1690 }
 0x51a   :  { %v1721_v24 = vsel %vm146_vm0, %v9549_v56, %v1691_v43  ;;  %v1712_v36 = vsel %vm146_vm0, %v9547_v35, %v1705_v27  ;;  %v1724_v40 = vsel %vm146_vm0, %v1705_v27, %v9538_v2  ;;  %v1717_v52 = vsel %vm146_vm0, %v1691_v43, %v9563_v41 }
 0x51b   :  { %v1733_v45 = vmul.f32 %v1721_v24, %v8625_v22  ;;  %1708 = vrot.lane.b32.xlu1 %v9681_v31, %s8392_s17  ;;  %1694 = vrot.lane.b32.xlu0 %v9684_v19, %s8392_s17  ;;  %v1728_v43 = vmul.f32 %v1724_v40, %v8639_v28  ;;  %v1731_v32 = vmul.f32 %v1712_v36, %v8646_v30 }
 0x51c   :  { %v1734_v20 = vmul.f32 %v1717_v52, %v8657_v34  ;;  %v1730_v36 = vmul.f32 %v1716_v21, %v8657_v34 }
 0x51d   :  { %v9704_v26 = vpop.permute.xlu1 %1752  ;;  %v1707_v24 = vpop.permute.xlu0 %1706  ;;  %v7616_v47 = vpack.c.bf16 %v1733_v45, %v1729_v63 }
 0x51e   :  { %v1713_v27 = vsel %vm146_vm0, %v9563_v41, %v1707_v24  ;;  %v1725_v2 = vsel %vm146_vm0, %v1707_v24, %v9549_v56  ;;  %v7690_v40 = vpack.c.bf16 %v1734_v20, %v1730_v36 }
 0x51f   :  { %v1732_v45 = vmul.f32 %v1725_v2, %v8639_v28  ;;  %v1735_v37 = vmul.f32 %v1713_v27, %v8646_v30  ;;  %1756 = vrot.lane.b32.xlu1 %v9669_v46, %s8393_s22  ;;  %1710 = vrot.lane.b32.xlu0 %v9707_v42, %s8392_s17 }
 0x520   :  { %7617 = vmatprep.subr.bf16.mxu0 %v7616_v47 }
 0x521   :  { %v7618_v35 = vpack.c.bf16 %v1732_v45, %v1728_v43  ;;  %v9727_v41 = vpop.permute.xlu1 %1768  ;;  %v9729_v56 = vpop.permute.xlu0 %1754  ;;  %v7688_v63 = vpack.c.bf16 %v1735_v37, %v1731_v32 }
 0x523   :  { %1772 = vrot.lane.b32.xlu1 %v9681_v31, %s8393_s22  ;;  %1758 = vrot.lane.b32.xlu0 %v9684_v19, %s8393_s22 }
 0x524   :  { %7619 = vmatpush1.bf16.msra.mxu0 %v7618_v35  ;;  %7689 = vmatprep.subr.bf16.mxu1 %v7688_v63 }
 0x525   :  { %v9736_v52 = vpop.permute.xlu1 %1816  ;;  %v9738_v47 = vpop.permute.xlu0 %1770  ;;  %7691 = vmatpush1.bf16.msra.mxu1 %v7690_v40 }
 0x527   :  { %1820 = vrot.lane.b32.xlu1 %v9669_v46, %s8394_s23  ;;  %1774 = vrot.lane.b32.xlu0 %v9707_v42, %s8393_s22 }
 0x529   :  { %v9744_v21 = vpop.permute.xlu1 %1832  ;;  %v9746_v32 = vpop.permute.xlu0 %1818 }
 0x52b   :  { %1836 = vrot.lane.b32.xlu1 %v9681_v31, %s8394_s23  ;;  %1822 = vrot.lane.b32.xlu0 %v9684_v19, %s8394_s23 }
 0x52d   :  { %v9752_v24 = vpop.permute.xlu1 %1880  ;;  %v9754_v27 = vpop.permute.xlu0 %1834 }
 0x52f   :  { %1884 = vrot.lane.b32.xlu1 %v9669_v46, %s8395_s24  ;;  %1838 = vrot.lane.b32.xlu0 %v9707_v42, %s8394_s23 }
 0x531   :  { %v9760_v2 = vpop.permute.xlu1 %1896  ;;  %v9762_v43 = vpop.permute.xlu0 %1882 }
 0x533   :  { %1900 = vrot.lane.b32.xlu1 %v9681_v31, %s8395_s24  ;;  %1886 = vrot.lane.b32.xlu0 %v9684_v19, %s8395_s24 }
 0x535   :  { %v9768_v45 = vpop.permute.xlu1 %1944  ;;  %v9770_v37 = vpop.permute.xlu0 %1898 }
 0x536   :  { %13625 = vst [vmem:[#allocation88_spill] sm:$0xff] %v9768_v45  ;;  %13626 = vst [vmem:[#allocation89_spill] sm:$0xff] %v9770_v37 }
 0x537   :  { %2144 = vrot.lane.b32.xlu1 %v9385_v12, %s13604_s30  ;;  %1902 = vrot.lane.b32.xlu0 %v9707_v42, %s8395_s24  ;;  %v1777_v12 = vsel %vm179_vm1, %v9582_v59, %v9738_v47 }
 0x539   :  { %v9776_v20 = vpop.permute.xlu1 %1960  ;;  %v9778_v35 = vpop.permute.xlu0 %1946 }
 0x53a   :  { %13627 = vst [vmem:[#allocation90_spill] sm:$0xff] %v9776_v20  ;;  %13628 = vst [vmem:[#allocation91_spill] sm:$0xff] %v9778_v35 }
 0x53b   :  { %1948 = vrot.lane.b32.xlu1 %v9669_v46, %s8396_s25  ;;  %2146 = vrot.lane.b32.xlu0 %v9407_v58, %s13604_s30 }
 0x53d   :  { %v9784_v63 = vpop.permute.xlu1 %2008  ;;  %v9786_v36 = vpop.permute.xlu0 %1962 }
 0x53e   :  { %13629 = vst [vmem:[#allocation92_spill] sm:$0xff] %v9784_v63  ;;  %13630 = vst [vmem:[#allocation93_spill] sm:$0xff] %v9786_v36 }
 0x53f   :  { %1964 = vrot.lane.b32.xlu1 %v9681_v31, %s8396_s25  ;;  %2154 = vrot.lane.b32.xlu0 %v9488_v48, %s13604_s30 }
 0x541   :  { %v9792_v40 = vpop.permute.xlu1 %2024  ;;  %v9794_v16 = vpop.permute.xlu0 %2010 }
 0x542   :  { %13631 = vst [vmem:[#allocation94_spill] sm:$0xff] %v9792_v40  ;;  %13632 = vst [vmem:[#allocation95_spill] sm:$0xff] %v9794_v16 }
 0x543   :  { %2012 = vrot.lane.b32.xlu1 %v9669_v46, %s13602_s12  ;;  %1950 = vrot.lane.b32.xlu0 %v9684_v19, %s8396_s25 }
 0x545   :  { %v9800_v18 = vpop.permute.xlu1 %2072  ;;  %v9802_v51 = vpop.permute.xlu0 %2026 }
 0x546   :  { %13633 = vst [vmem:[#allocation96_spill] sm:$0xff] %v9800_v18  ;;  %13634 = vst [vmem:[#allocation97_spill] sm:$0xff] %v9802_v51 }
 0x547   :  { %2028 = vrot.lane.b32.xlu1 %v9681_v31, %s13602_s12  ;;  %1966 = vrot.lane.b32.xlu0 %v9707_v42, %s8396_s25 }
 0x549   :  { %v9808_v36 = vpop.permute.xlu1 %2088  ;;  %v9810_v40 = vpop.permute.xlu0 %2074 }
 0x54a   :  { %13635 = vst [vmem:[#allocation98_spill] sm:$0xff] %v9808_v36  ;;  %13636 = vst [vmem:[#allocation99_spill] sm:$0xff] %v9810_v40  ;;  %v1669_v40 = vld [vmem:[%s13211_s4 + $0x8] sm:$0xff] }
 0x54b   :  { %2076 = vrot.lane.b32.xlu1 %v9669_v46, %s13603_s29  ;;  %2014 = vrot.lane.b32.xlu0 %v9684_v19, %s13602_s12 }
 0x54c   :  { %2284 = vmatprep.mubr.f32.mxu0 %v1669_v40  ;;  %2462 = vmatprep.mubr.f32.mxu1 %v1669_v40 }
 0x54d   :  { %v9816_v16 = vpop.permute.xlu1 %2136  ;;  %v9818_v18 = vpop.permute.xlu0 %2090 }
 0x54e   :  { %13637 = vst [vmem:[#allocation100_spill] sm:$0xff] %v9816_v16  ;;  %13638 = vst [vmem:[#allocation101_spill] sm:$0xff] %v9818_v18 }
 0x54f   :  { %2092 = vrot.lane.b32.xlu1 %v9681_v31, %s13603_s29  ;;  %2030 = vrot.lane.b32.xlu0 %v9707_v42, %s13602_s12 }
 0x551   :  { %v9824_v51 = vpop.permute.xlu1 %1684  ;;  %v9826_v36 = vpop.permute.xlu0 %2138 }
 0x552   :  { %13639 = vst [vmem:[#allocation102_spill] sm:$0xff] %v9826_v36 }
 0x553   :  { %2152 = vrot.lane.b32.xlu1 %v9479_v25, %s13604_s30  ;;  %2078 = vrot.lane.b32.xlu0 %v9684_v19, %s13603_s29 }
 0x555   :  { %v9835_v16 = vpop.permute.xlu1 %1700  ;;  %v9837_v18 = vpop.permute.xlu0 %1686 }
 0x557   :  { %2132 = vrot.lane.b32.xlu1 %v9545_v54, %s13604_s30  ;;  %2094 = vrot.lane.b32.xlu0 %v9707_v42, %s13603_s29 }
 0x559   :  { %v9843_v36 = vpop.permute.xlu1 %1748  ;;  %v9845_v63 = vpop.permute.xlu0 %1702 }
 0x55b   :  { %2140 = vrot.lane.b32.xlu1 %v9669_v46, %s13604_s30  ;;  %2134 = vrot.lane.b32.xlu0 %v9559_v13, %s13604_s30 }
 0x55d   :  { %v9851_v40 = vpop.permute.xlu1 %1764  ;;  %v9853_v1 = vpop.permute.xlu0 %1750 }
 0x55e   :  { %13640 = vst [vmem:[#allocation103_spill] sm:$0xff] %v9851_v40 }
 0x55f   :  { %2148 = vrot.lane.b32.xlu1 %v9556_v4, %s13604_s30  ;;  %2150 = vrot.lane.b32.xlu0 %v9570_v8, %s13604_s30 }
 0x561   :  { %v9859_v57 = vpop.permute.xlu1 %1812  ;;  %v9861_v35 = vpop.permute.xlu0 %1766 }
 0x562   :  { %13641 = vst [vmem:[#allocation104_spill] sm:$0xff] %v9859_v57  ;;  %13642 = vst [vmem:[#allocation105_spill] sm:$0xff] %v9861_v35  ;;  %v8405_v35 = vmov 3  }
 0x563   :  { %2156 = vrot.lane.b32.xlu1 %v9681_v31, %s13604_s30  ;;  %2142 = vrot.lane.b32.xlu0 %v9684_v19, %s13604_s30 }
 0x564   :  { %8317 = vset.pattern.permute.xlu1 %v8405_v35  ;;  %8318 = vset.pattern.permute.xlu0 %v8405_v35 }
 0x565   :  { %v9867_v55 = vpop.permute.xlu1 %1828  ;;  %v9869_v20 = vpop.permute.xlu0 %1814 }
 0x566   :  { %13643 = vst [vmem:[#allocation106_spill] sm:$0xff] %v9867_v55  ;;  %v8356_v55 = vld [vmem:[%s13205_s13] sm:$0xff] }
 0x567   :  { %2158 = vrot.lane.b32.xlu0 %v9707_v42, %s13604_s30  ;;  %2193 = vperm.xlu1 %8317, %v8356_v55   ;;  %v8359_v55 = vld [vmem:[%s13205_s13 + $0x18] sm:$0xff] }
 0x569   :  { %v9873_v44 = vpop.permute.xlu1 %1876  ;;  %v9875_v37 = vpop.permute.xlu0 %1830 }
 0x56a   :  { %13644 = vst [vmem:[#allocation107_spill] sm:$0xff] %v9873_v44  ;;  %13645 = vst [vmem:[#allocation108_spill] sm:$0xff] %v9875_v37  ;;  %v8357_v44 = vld [vmem:[%s13205_s13 + $0x8] sm:$0xff] }
 0x56b   :  { %2197 = vperm.xlu0 %8318, %v8357_v44  }
 0x56d   :  { %v9877_v57 = vpop.permute.xlu1 %1892  ;;  %v9879_v11 = vpop.permute.xlu0 %1878 }
 0x56e   :  { %13646 = vst [vmem:[#allocation109_spill] sm:$0xff] %v9877_v57  ;;  %13647 = vst [vmem:[#allocation110_spill] sm:$0xff] %v9879_v11 }
 0x571   :  { %v9881_v45 = vpop.permute.xlu1 %1940  ;;  %v9883_v40 = vpop.permute.xlu0 %1894 }
 0x572   :  { %13648 = vst [vmem:[#allocation111_spill] sm:$0xff] %v9881_v45  ;;  %13649 = vst [vmem:[#allocation112_spill] sm:$0xff] %v9883_v40  ;;  %v8358_v45 = vld [vmem:[%s13205_s13 + $0x10] sm:$0xff] }
 0x573   :  { %2201 = vperm.xlu1 %8317, %v8358_v45   ;;  %v1781_v45 = vsel %vm179_vm1, %v9729_v56, %v9582_v59  ;;  %v1788_v59 = vsel %vm179_vm1, %v9727_v41, %v9561_v50 }
 0x575   :  { %v9891_v57 = vpop.permute.xlu1 %1956  ;;  %v9893_v11 = vpop.permute.xlu0 %1942 }
 0x576   :  { %13650 = vst [vmem:[#allocation113_spill] sm:$0xff] %v9891_v57  ;;  %13651 = vst [vmem:[#allocation114_spill] sm:$0xff] %v9893_v11 }
 0x577   :  { %2205 = vperm.xlu1 %8317, %v8359_v55   ;;  %v1784_v55 = vsel %vm179_vm1, %v9561_v50, %v9704_v26  ;;  %v1844_v50 = vsel %vm212_vm2, %v9736_v52, %v9588_v9 }
 0x579   :  { %v9898_v35 = vpop.permute.xlu1 %2004  ;;  %v9900_v40 = vpop.permute.xlu0 %1958 }
 0x57a   :  { %13652 = vst [vmem:[#allocation115_spill] sm:$0xff] %v9898_v35  ;;  %13653 = vst [vmem:[#allocation116_spill] sm:$0xff] %v9900_v40  ;;  %v9940_v35 = vmul.f32 %v1781_v45, %v8664_v38  ;;  %v1776_v45 = vsel %vm179_vm1, %v9572_v6, %v9727_v41 }
 0x57b   :  { %v10003_v4 = vmul.f32 %v1776_v45, %v8653_v33 }
 0x57d   :  { %v9905_v37 = vpop.permute.xlu1 %2020  ;;  %v9907_v44 = vpop.permute.xlu0 %2006 }
 0x57e   :  { %13654 = vst [vmem:[#allocation117_spill] sm:$0xff] %v9905_v37  ;;  %13655 = vst [vmem:[#allocation118_spill] sm:$0xff] %v9907_v44  ;;  %v1785_v44 = vsel %vm179_vm1, %v9574_v49, %v9729_v56  ;;  %v1789_v56 = vsel %vm179_vm1, %v9738_v47, %v9574_v49 }
 0x57f   :  { %v9970_v40 = vmul.f32 %v1785_v44, %v8628_v23  ;;  %v9989_v41 = vmul.f32 %v1789_v56, %v8642_v29  ;;  %v9992_v44 = vmul.f32 %v1777_v12, %v8653_v33  ;;  %v1840_v12 = vsel %vm212_vm2, %v9588_v9, %v9744_v21 }
 0x580   :  { %v1912_v9 = vsel %vm245_vm3, %v9596_v15, %v9752_v24 }
 0x581   :  { %v9909_v57 = vpop.permute.xlu1 %2068  ;;  %v9911_v11 = vpop.permute.xlu0 %2022 }
 0x582   :  { %13656 = vst [vmem:[#allocation119_spill] sm:$0xff] %v9909_v57  ;;  %13657 = vst [vmem:[#allocation120_spill] sm:$0xff] %v9911_v11  ;;  %v1780_v57 = vsel %vm179_vm1, %v9704_v26, %v9572_v6  ;;  %v1845_v26 = vsel %vm212_vm2, %v9746_v32, %v9598_v17  ;;  %v1849_v6 = vsel %vm212_vm2, %v9590_v0, %v9746_v32 }
 0x583   :  { %v9967_v47 = vmul.f32 %v1780_v57, %v8664_v38  ;;  %v1848_v57 = vsel %vm212_vm2, %v9580_v60, %v9736_v52  ;;  %v9997_v32 = vmul.f32 %v1784_v55, %v8628_v23  ;;  %v1852_v55 = vsel %vm212_vm2, %v9744_v21, %v9580_v60 }
 0x584   :  { %v10016_v56 = vmul.f32 %v1849_v6, %v8685_v61  ;;  %v10022_v45 = vmul.f32 %v1848_v57, %v8685_v61  ;;  %v10025_v52 = vmul.f32 %v1844_v50, %v8696_v10  ;;  %v7696_v57 = vpack.c.bf16 %v9992_v44, %v10003_v4  ;;  %v13662_v44 = vld [vmem:[#allocation8_spill] sm:$0xff] }
 0x585   :  { %v9931_v11 = vpop.permute.xlu1 %2084  ;;  %v9933_v37 = vpop.permute.xlu0 %2070  ;;  %v7624_v60 = vpack.c.bf16 %v9970_v40, %v9997_v32  ;;  %v13661_v40 = vld [vmem:[#allocation9_spill] sm:$0xff]  ;;  %v1841_v21 = vsel %vm212_vm2, %v9598_v17, %v9754_v27  ;;  %v13663_v17 = vld [vmem:[#allocation11_spill] sm:$0xff] }
 0x586   :  { %13658 = vst [vmem:[#allocation121_spill] sm:$0xff] %v9931_v11  ;;  %13659 = vst [vmem:[#allocation122_spill] sm:$0xff] %v9933_v37  ;;  %v10000_v11 = vmul.f32 %v1788_v59, %v8642_v29  ;;  %v10019_v59 = vmul.f32 %v1845_v26, %v8696_v10  ;;  %v1908_v26 = vsel %vm245_vm3, %v9752_v24, %v9604_v62 }
 0x587   :  { %v10048_v32 = vmul.f32 %v1840_v12, %v13661_v40  ;;  %v1853_v24 = vsel %vm212_vm2, %v9754_v27, %v9590_v0  ;;  %v10069_v13 = vmul.f32 %v1908_v26, %v13663_v17  ;;  %v10080_v4 = vmul.f32 %v1841_v21, %v13661_v40 }
 0x588   :  { %v1916_v21 = vsel %vm245_vm3, %v9760_v2, %v9596_v15 }
 0x589   :  { %v1693_v49 = vpop.permute.xlu1 %1692  ;;  %v9994_v37 = vpop.permute.xlu0 %2086 }
 0x58a   :  { %13660 = vst [vmem:[#allocation123_spill] sm:$0xff] %v9994_v37  ;;  %v1722_v6 = vsel %vm146_vm0, %v9824_v51, %v1693_v49  ;;  %v10045_v37 = vmul.f32 %v1852_v55, %v8693_v5  ;;  %v10061_v55 = vmul.f32 %v1912_v9, %v13662_v44  ;;  %v10077_v9 = vmul.f32 %v1853_v24, %v8693_v5 }
 0x58b   :  { %v1737_v31 = vmul.f32 %v1722_v6, %v8625_v22  ;;  %v1718_v24 = vsel %vm146_vm0, %v1693_v49, %v9835_v16 }
 0x58d   :  { %v1709_v50 = vpop.permute.xlu1 %1708  ;;  %v1695_v8 = vpop.permute.xlu0 %1694 }
 0x58e   :  { %v1723_v12 = vsel %vm146_vm0, %v9837_v18, %v1695_v8  ;;  %v1719_v0 = vsel %vm146_vm0, %v1695_v8, %v9845_v63  ;;  %v1714_v54 = vsel %vm146_vm0, %v9835_v16, %v1709_v50  ;;  %v1726_v26 = vsel %vm146_vm0, %v1709_v50, %v9824_v51 }
 0x58f   :  { %v1741_v27 = vmul.f32 %v1723_v12, %v8625_v22  ;;  %v1904_v8 = vsel %vm245_vm3, %v9604_v62, %v9760_v2  ;;  %v1909_v51 = vsel %vm245_vm3, %v9762_v43, %v9614_v7  ;;  %v1742_v50 = vmul.f32 %v1719_v0, %v8657_v34  ;;  %v13665_v0 = vld [vmem:[#allocation12_spill] sm:$0xff] }
 0x590   :  { %v1736_v2 = vmul.f32 %v1726_v26, %v8639_v28  ;;  %v1739_v16 = vmul.f32 %v1714_v54, %v8646_v30  ;;  %v1913_v54 = vsel %vm245_vm3, %v9606_v3, %v9762_v43  ;;  %v13666_v43 = vld [vmem:[#allocation105_spill] sm:$0xff] }
 0x591   :  { %v1757_v6 = vpop.permute.xlu1 %1756  ;;  %v1711_v12 = vpop.permute.xlu0 %1710  ;;  %v7620_v22 = vpack.c.bf16 %v1741_v27, %v1737_v31  ;;  %v1738_v27 = vmul.f32 %v1718_v24, %v8657_v34  ;;  %v13664_v24 = vld [vmem:[#allocation10_spill] sm:$0xff]  ;;  %v10133_v34 = vmul.f32 %v1904_v8, %v13665_v0  ;;  %v13667_v8 = vld [vmem:[#allocation103_spill] sm:$0xff] }
 0x592   :  { %v1715_v62 = vsel %vm146_vm0, %v9845_v63, %v1711_v12  ;;  %v1727_v15 = vsel %vm146_vm0, %v1711_v12, %v9837_v18  ;;  %v1786_v63 = vsel %vm179_vm1, %v9843_v36, %v1757_v6 }
 0x593   :  { %v1740_v31 = vmul.f32 %v1727_v15, %v8639_v28  ;;  %v1743_v49 = vmul.f32 %v1715_v62, %v8646_v30  ;;  %7621 = vmatprep.subr.bf16.mxu0 %v7620_v22  ;;  %v10127_v22 = vmul.f32 %v1909_v51, %v13663_v17  ;;  %v10130_v15 = vmul.f32 %v1916_v21, %v13664_v24 }
 0x594   :  { %v7694_v30 = vpack.c.bf16 %v1742_v50, %v1738_v27  ;;  %v1801_v28 = vmul.f32 %v1786_v63, %v8628_v23  ;;  %v10144_v21 = vmul.f32 %v1913_v54, %v13662_v44  ;;  %v13668_v27 = vld [vmem:[#allocation88_spill] sm:$0xff]  ;;  %v1782_v54 = vsel %vm179_vm1, %v1757_v6, %v13667_v8 }
 0x595   :  { %v1773_v42 = vpop.permute.xlu1 %1772  ;;  %v7622_v26 = vpack.c.bf16 %v1740_v31, %v1736_v2  ;;  %v1759_v12 = vpop.permute.xlu0 %1758  ;;  %v7692_v62 = vpack.c.bf16 %v1743_v49, %v1739_v16  ;;  %v7714_v49 = vpack.c.bf16 %v10127_v22, %v10069_v13  ;;  %v13669_v63 = vld [vmem:[#allocation72_spill] sm:$0xff]  ;;  %v13700_v22 = vld [vmem:[#allocation97_spill] sm:$0xff] }
 0x596   :  { %v1787_v18 = vsel %vm179_vm1, %v9853_v1, %v1759_v12  ;;  %v1783_v51 = vsel %vm179_vm1, %v1759_v12, %v13666_v43  ;;  %v1778_v50 = vsel %vm179_vm1, %v13667_v8, %v1773_v42  ;;  %v1790_v16 = vsel %vm179_vm1, %v1773_v42, %v9843_v36  ;;  %v13670_v42 = vld [vmem:[#allocation89_spill] sm:$0xff]  ;;  %v13672_v8 = vld [vmem:[#allocation104_spill] sm:$0xff] }
 0x597   :  { %v1805_v2 = vmul.f32 %v1787_v18, %v8628_v23  ;;  %7623 = vmatpush1.bf16.msra.mxu0 %v7622_v26  ;;  %7693 = vmatprep.subr.bf16.mxu1 %v7692_v62  ;;  %v1976_v18 = vsel %vm278_vm4, %v13669_v63, %v13668_v27  ;;  %v1806_v36 = vmul.f32 %v1783_v51, %v8664_v38 }
 0x598   :  { %7625 = vmatprep.subr.bf16.mxu0 %v7624_v60  ;;  %7695 = vmatpush1.bf16.msra.mxu1 %v7694_v30  ;;  %v1917_v30 = vsel %vm245_vm3, %v13670_v42, %v9606_v3  ;;  %v1800_v6 = vmul.f32 %v1790_v16, %v8642_v29  ;;  %v13671_v3 = vpack.c.bf16 %v9989_v41, %v10000_v11 }
 0x599   :  { %v1821_v31 = vpop.permute.xlu1 %1820  ;;  %7697 = vmatprep.subr.bf16.mxu1 %v7696_v57  ;;  %v1775_v26 = vpop.permute.xlu0 %1774  ;;  %v7628_v12 = vpack.c.bf16 %v1805_v2, %v1801_v28  ;;  %v1803_v57 = vmul.f32 %v1778_v50, %v8653_v33  ;;  %v1802_v51 = vmul.f32 %v1782_v54, %v8664_v38  ;;  %v7640_v16 = vpack.c.bf16 %v10144_v21, %v10061_v55 }
 0x59a   :  { %v1779_v60 = vsel %vm179_vm1, %v13666_v43, %v1775_v26  ;;  %v1791_v62 = vsel %vm179_vm1, %v1775_v26, %v9853_v1  ;;  %v1850_v43 = vsel %vm212_vm2, %v13672_v8, %v1821_v31  ;;  %v13673_v1 = vpack.c.bf16 %v9940_v35, %v9967_v47  ;;  %v13675_v47 = vld [vmem:[#allocation13_spill] sm:$0xff] }
 0x59b   :  { %v1804_v28 = vmul.f32 %v1791_v62, %v8642_v29  ;;  %v1807_v2 = vmul.f32 %v1779_v60, %v8653_v33  ;;  %7627 = vmatpush1.bf16.msra.mxu0 %v13671_v3  ;;  %v1905_v11 = vsel %vm245_vm3, %v9614_v7, %v13670_v42  ;;  %v10193_v41 = vmul.f32 %v1917_v30, %v13664_v24  ;;  %v13676_v42 = vld [vmem:[#allocation108_spill] sm:$0xff]  ;;  %v13679_v3 = vld [vmem:[#allocation15_spill] sm:$0xff] }
 0x59c   :  { %7629 = vmatprep.subr.bf16.mxu0 %v7628_v12  ;;  %7699 = vmatpush1.bf16.msra.mxu1 %v13673_v1  ;;  %v13674_v12 = vld [vmem:[#allocation73_spill] sm:$0xff]  ;;  %v10200_v62 = vmul.f32 %v1976_v18, %v13675_v47  ;;  %v7702_v55 = vpack.c.bf16 %v1806_v36, %v1802_v51  ;;  %v1865_v7 = vmul.f32 %v1850_v43, %v8685_v61 }
 0x59d   :  { %v1837_v50 = vpop.permute.xlu1 %1836  ;;  %v7630_v54 = vpack.c.bf16 %v1804_v28, %v1800_v6  ;;  %v1823_v26 = vpop.permute.xlu0 %1822  ;;  %v7700_v60 = vpack.c.bf16 %v1807_v2, %v1803_v57  ;;  %v1972_v35 = vsel %vm278_vm4, %v13668_v27, %v13674_v12  ;;  %v1927_v27 = vmul.f32 %v1905_v11, %v13665_v0  ;;  %v13677_v57 = vld [vmem:[#allocation106_spill] sm:$0xff] }
 0x59e   :  { %v1851_v21 = vsel %vm212_vm2, %v9869_v20, %v1823_v26  ;;  %v1847_v30 = vsel %vm212_vm2, %v1823_v26, %v13676_v42  ;;  %v1842_v18 = vsel %vm212_vm2, %v13677_v57, %v1837_v50  ;;  %v1854_v36 = vsel %vm212_vm2, %v1837_v50, %v13672_v8 }
 0x59f   :  { %v1869_v6 = vmul.f32 %v1851_v21, %v8685_v61  ;;  %7631 = vmatpush1.bf16.msra.mxu0 %v7630_v54  ;;  %7701 = vmatprep.subr.bf16.mxu1 %v7700_v60  ;;  %v13678_v28 = vpack.c.bf16 %v10016_v56, %v10022_v45  ;;  %v10221_v51 = vmul.f32 %v1972_v35, %v13679_v3  ;;  %v13681_v56 = vld [vmem:[#allocation90_spill] sm:$0xff]  ;;  %v13683_v35 = vld [vmem:[#allocation107_spill] sm:$0xff] }
 0x5a0   :  { %7703 = vmatpush1.bf16.msra.mxu1 %v7702_v55  ;;  %v7642_v43 = vpack.c.bf16 %v10193_v41, %v10130_v15  ;;  %v1846_v1 = vsel %vm212_vm2, %v1821_v31, %v13677_v57  ;;  %v13680_v11 = vpack.c.bf16 %v10080_v4, %v10048_v32  ;;  %v1968_v45 = vsel %vm278_vm4, %v13674_v12, %v13681_v56 }
 0x5a1   :  { %7633 = vmatprep.subr.bf16.mxu0 %v13678_v28  ;;  %v1885_v2 = vpop.permute.xlu1 %1884  ;;  %v1839_v8 = vpop.permute.xlu0 %1838  ;;  %v7636_v50 = vpack.c.bf16 %v1869_v6, %v1865_v7  ;;  %v1870_v54 = vmul.f32 %v1847_v30, %v8696_v10  ;;  %v1864_v32 = vmul.f32 %v1854_v36, %v8693_v5  ;;  %v1867_v4 = vmul.f32 %v1842_v18, %v13661_v40  ;;  %v13687_v36 = vld [vmem:[#allocation16_spill] sm:$0xff] }
 0x5a2   :  { %7705 = vmatprep.subr.bf16.mxu1 %v13680_v11  ;;  %v1843_v15 = vsel %vm212_vm2, %v13676_v42, %v1839_v8  ;;  %v1855_v31 = vsel %vm212_vm2, %v1839_v8, %v9869_v20  ;;  %v13682_v60 = vpack.c.bf16 %v10077_v9, %v10045_v37  ;;  %v1866_v12 = vmul.f32 %v1846_v1, %v8696_v10  ;;  %v13685_v9 = vld [vmem:[#allocation76_spill] sm:$0xff]  ;;  %v13686_v42 = vld [vmem:[#allocation91_spill] sm:$0xff] }
 0x5a3   :  { %v1868_v41 = vmul.f32 %v1855_v31, %v8693_v5  ;;  %v1871_v26 = vmul.f32 %v1843_v15, %v13661_v40  ;;  %v1914_v55 = vsel %vm245_vm3, %v13683_v35, %v1885_v2  ;;  %v13684_v20 = vpack.c.bf16 %v10019_v59, %v10025_v52  ;;  %v13688_v52 = vld [vmem:[#allocation74_spill] sm:$0xff]  ;;  %v13690_v11 = vld [vmem:[#allocation112_spill] sm:$0xff]  ;;  %v13692_v15 = vld [vmem:[#allocation109_spill] sm:$0xff] }
 0x5a4   :  { %7635 = vmatpush1.bf16.msra.mxu0 %v13682_v60  ;;  %v7712_v7 = vpack.c.bf16 %v1927_v27, %v10133_v34  ;;  %v1980_v37 = vsel %vm278_vm4, %v13681_v56, %v13669_v63  ;;  %v1973_v30 = vsel %vm278_vm4, %v13686_v42, %v13685_v9  ;;  %v10266_v28 = vmul.f32 %v1968_v45, %v13687_v36  ;;  %v13689_v27 = vld [vmem:[#allocation110_spill] sm:$0xff] }
 0x5a5   :  { %7637 = vmatprep.subr.bf16.mxu0 %v7636_v50  ;;  %7707 = vmatpush1.bf16.msra.mxu1 %v13684_v20  ;;  %v1901_v21 = vpop.permute.xlu1 %1900  ;;  %v7638_v6 = vpack.c.bf16 %v1868_v41, %v1864_v32  ;;  %v1887_v57 = vpop.permute.xlu0 %1886  ;;  %v7708_v18 = vpack.c.bf16 %v1871_v26, %v1867_v4  ;;  %v1977_v34 = vsel %vm278_vm4, %v13688_v52, %v13686_v42  ;;  %v13691_v56 = vld [vmem:[#allocation14_spill] sm:$0xff]  ;;  %v13694_v20 = vld [vmem:[#allocation92_spill] sm:$0xff] }
 0x5a6   :  { %v7710_v59 = vpack.c.bf16 %v1870_v54, %v1866_v12  ;;  %v1915_v63 = vsel %vm245_vm3, %v13689_v27, %v1887_v57  ;;  %v1929_v1 = vmul.f32 %v1914_v55, %v13662_v44  ;;  %v1911_v8 = vsel %vm245_vm3, %v1887_v57, %v13690_v11  ;;  %v13693_v55 = vld [vmem:[#allocation77_spill] sm:$0xff] }
 0x5a7   :  { %v1933_v50 = vmul.f32 %v1915_v63, %v13662_v44  ;;  %7709 = vmatprep.subr.bf16.mxu1 %v7708_v18  ;;  %v10281_v45 = vmul.f32 %v1980_v37, %v13691_v56  ;;  %v1906_v54 = vsel %vm245_vm3, %v13692_v15, %v1901_v21  ;;  %v1918_v31 = vsel %vm245_vm3, %v1901_v21, %v13683_v35 }
 0x5a8   :  { %7639 = vmatpush1.bf16.msra.mxu0 %v7638_v6  ;;  %v10292_v4 = vmul.f32 %v1977_v34, %v13675_v47  ;;  %v10295_v41 = vmul.f32 %v1973_v30, %v13679_v3  ;;  %v1910_v26 = vsel %vm245_vm3, %v1885_v2, %v13692_v15  ;;  %v1934_v35 = vmul.f32 %v1911_v8, %v13663_v17  ;;  %v13695_v6 = vld [vmem:[#allocation93_spill] sm:$0xff] }
 0x5a9   :  { %7641 = vmatprep.subr.bf16.mxu0 %v7640_v16  ;;  %7711 = vmatpush1.bf16.msra.mxu1 %v7710_v59  ;;  %v10289_v32 = vpop.permute.xlu1 %2144  ;;  %v1903_v60 = vpop.permute.xlu0 %1902  ;;  %v7644_v12 = vpack.c.bf16 %v1933_v50, %v1929_v1  ;;  %v2036_v16 = vsel %vm311_vm6, %v13694_v20, %v13693_v55  ;;  %v1928_v2 = vmul.f32 %v1918_v31, %v13664_v24  ;;  %v13699_v50 = vld [vmem:[#allocation75_spill] sm:$0xff] }
 0x5aa   :  { %7713 = vmatprep.subr.bf16.mxu1 %v7712_v7  ;;  %v1907_v21 = vsel %vm245_vm3, %v13690_v11, %v1903_v60  ;;  %v1919_v37 = vsel %vm245_vm3, %v1903_v60, %v13689_v27  ;;  %v1931_v7 = vmul.f32 %v1906_v54, %v13665_v0  ;;  %v1969_v57 = vsel %vm278_vm4, %v13685_v9, %v13695_v6  ;;  %v13696_v27 = vld [vmem:[#allocation80_spill] sm:$0xff]  ;;  %v13698_v9 = vld [vmem:[#allocation78_spill] sm:$0xff] }
 0x5ab   :  { %v1932_v42 = vmul.f32 %v1919_v37, %v13664_v24  ;;  %v1935_v30 = vmul.f32 %v1907_v21, %v13665_v0  ;;  %v1981_v18 = vsel %vm278_vm4, %v13695_v6, %v13688_v52  ;;  %v1930_v34 = vmul.f32 %v1910_v26, %v13663_v17  ;;  %v13701_v60 = vld [vmem:[#allocation94_spill] sm:$0xff]  ;;  %v13702_v21 = vld [vmem:[#allocation24_spill] sm:$0xff] }
 0x5ac   :  { %7643 = vmatpush1.bf16.msra.mxu0 %v7642_v43  ;;  %v13697_v43 = vld [vmem:[#allocation95_spill] sm:$0xff]  ;;  %v2040_v13 = vsel %vm311_vm6, %v13699_v50, %v13694_v20  ;;  %v2045_v15 = vsel %vm311_vm6, %v13700_v22, %v13698_v9  ;;  %v10350_v31 = vmul.f32 %v1969_v57, %v13687_v36  ;;  %v1991_v26 = vmul.f32 %v1981_v18, %v13691_v56  ;;  %v13706_v57 = vld [vmem:[#allocation17_spill] sm:$0xff] }
 0x5ad   :  { %7645 = vmatprep.subr.bf16.mxu0 %v7644_v12  ;;  %7715 = vmatpush1.bf16.msra.mxu1 %v7714_v49  ;;  %v1949_v59 = vpop.permute.xlu1 %1948  ;;  %v2037_v63 = vsel %vm311_vm6, %v13697_v43, %v13696_v27  ;;  %v2041_v1 = vsel %vm311_vm6, %v13698_v9, %v13697_v43  ;;  %v7646_v11 = vpack.c.bf16 %v1932_v42, %v1928_v2  ;;  %v10335_v52 = vpop.permute.xlu0 %2146  ;;  %v13709_v43 = vld [vmem:[#allocation96_spill] sm:$0xff]  ;;  %v13710_v9 = vld [vmem:[#allocation79_spill] sm:$0xff] }
 0x5ae   :  { %v7716_v8 = vpack.c.bf16 %v1935_v30, %v1931_v7  ;;  %v2033_v49 = vsel %vm311_vm6, %v13696_v27, %v13700_v22  ;;  %v7718_v54 = vpack.c.bf16 %v1934_v35, %v1930_v34  ;;  %v2032_v12 = vsel %vm311_vm6, %v13693_v55, %v13701_v60  ;;  %v13703_v35 = vld [vmem:[#allocation18_spill] sm:$0xff]  ;;  %v13705_v30 = vld [vmem:[#allocation19_spill] sm:$0xff] }
 0x5af   :  { %v2044_v20 = vsel %vm311_vm6, %v13701_v60, %v13699_v50  ;;  %v10362_v37 = vmul.f32 %v2041_v1, %v13702_v21  ;;  %v10365_v2 = vmul.f32 %v2037_v63, %v13703_v35  ;;  %v13704_v7 = vpack.c.bf16 %v9481_v39, %v9472_v53  ;;  %v13712_v1 = vld [vmem:[#allocation65_spill] sm:$0xff]  ;;  %v13719_v60 = vld [vmem:[#allocation22_spill] sm:$0xff] }
 0x5b0   :  { %7647 = vmatpush1.bf16.msra.mxu0 %v7646_v11  ;;  %7717 = vmatprep.subr.bf16.mxu1 %v7716_v8  ;;  %v7658_v55 = vpack.c.bf16 %v10292_v4, %v10200_v62  ;;  %v10373_v6 = vmul.f32 %v2033_v49, %v13705_v30  ;;  %v10376_v18 = vmul.f32 %v2045_v15, %v13706_v57  ;;  %v13708_v4 = vld [vmem:[#allocation81_spill] sm:$0xff]  ;;  %v13716_v49 = vld [vmem:[#allocation66_spill] sm:$0xff] }
 0x5b1   :  { %7649 = vmatprep.subr.bf16.mxu0 %v13704_v7  ;;  %7719 = vmatpush1.bf16.msra.mxu1 %v7718_v54  ;;  %v1965_v42 = vpop.permute.xlu1 %1964  ;;  %v13707_v34 = vpack.c.bf16 %v9488_v48, %v9479_v25  ;;  %v10381_v27 = vpop.permute.xlu0 %2154  ;;  %v7656_v53 = vpack.c.bf16 %v10295_v41, %v10221_v51  ;;  %v10386_v39 = vmul.f32 %v2040_v13, %v13702_v21  ;;  %v13714_v13 = vld [vmem:[#allocation113_spill] sm:$0xff]  ;;  %v13720_v7 = vld [vmem:[#allocation87_spill] sm:$0xff] }
 0x5b2   :  { %v10389_v62 = vmul.f32 %v2036_v16, %v13703_v35  ;;  %v2100_v63 = vsel %vm344_vm5, %v13709_v43, %v13708_v4  ;;  %v2104_v25 = vsel %vm344_vm5, %v13710_v9, %v13709_v43  ;;  %v7730_v48 = vpack.c.bf16 %v10350_v31, %v10266_v28  ;;  %v13711_v16 = vld [vmem:[#allocation67_spill] sm:$0xff]  ;;  %v13723_v43 = vld [vmem:[#allocation98_spill] sm:$0xff]  ;;  %v13737_v50 = vld [vmem:[#allocation21_spill] sm:$0xff] }
 0x5b3   :  { %7721 = vmatprep.subr.bf16.mxu1 %v13707_v34  ;;  %v10402_v51 = vmul.f32 %v2032_v12, %v13705_v30  ;;  %v10405_v41 = vmul.f32 %v2044_v20, %v13706_v57  ;;  %v13713_v11 = vpack.c.bf16 %v13711_v16, %v13712_v1  ;;  %v7728_v8 = vpack.c.bf16 %v1991_v26, %v10281_v45  ;;  %v13718_v45 = vld [vmem:[#allocation20_spill] sm:$0xff]  ;;  %v13725_v16 = vld [vmem:[#allocation114_spill] sm:$0xff] }
 0x5b4   :  { %v1974_v22 = vsel %vm278_vm4, %v1949_v59, %v13714_v13  ;;  %v13715_v28 = vpack.c.bf16 %v9684_v19, %v9669_v46  ;;  %v13717_v15 = vpack.c.bf16 %v9407_v58, %v13716_v49  ;;  %v7664_v31 = vpack.c.bf16 %v10365_v2, %v10389_v62  ;;  %v13721_v46 = vld [vmem:[#allocation86_spill] sm:$0xff] }
 0x5b5   :  { %7651 = vmatpush1.bf16.msra.mxu0 %v13713_v11  ;;  %v2013_v54 = vpop.permute.xlu1 %2012  ;;  %v10425_v26 = vmul.f32 %v2104_v25, %v13718_v45  ;;  %v10428_v12 = vmul.f32 %v2100_v63, %v13719_v60  ;;  %v13722_v19 = vpack.c.bf16 %v13720_v7, %v13721_v46  ;;  %v1951_v34 = vpop.permute.xlu0 %1950  ;;  %v7736_v58 = vpack.c.bf16 %v10376_v18, %v10405_v41  ;;  %v13724_v63 = vld [vmem:[#allocation116_spill] sm:$0xff]  ;;  %v13726_v11 = vld [vmem:[#allocation99_spill] sm:$0xff]  ;;  %v13727_v18 = vld [vmem:[#allocation82_spill] sm:$0xff] }
 0x5b6   :  { %7653 = vmatprep.subr.bf16.mxu0 %v13715_v28  ;;  %7723 = vmatpush1.bf16.msra.mxu1 %v13717_v15  ;;  %v2096_v2 = vsel %vm344_vm5, %v13708_v4, %v13723_v43  ;;  %v2108_v62 = vsel %vm344_vm5, %v13723_v43, %v13710_v9  ;;  %v1975_v25 = vsel %vm278_vm4, %v1951_v34, %v13724_v63  ;;  %v13728_v28 = vld [vmem:[#allocation111_spill] sm:$0xff]  ;;  %v13729_v15 = vld [vmem:[#allocation70_spill] sm:$0xff]  ;;  %v13730_v7 = vld [vmem:[#allocation68_spill] sm:$0xff] }
 0x5b7   :  { %7725 = vmatprep.subr.bf16.mxu1 %v13722_v19  ;;  %v1979_v1 = vsel %vm278_vm4, %v13725_v16, %v1951_v34  ;;  %v2105_v41 = vsel %vm344_vm5, %v13727_v18, %v13726_v11  ;;  %v1978_v4 = vsel %vm278_vm4, %v13728_v28, %v1949_v59  ;;  %v1993_v49 = vmul.f32 %v1974_v22, %v13679_v3  ;;  %v13732_v19 = vld [vmem:[#allocation84_spill] sm:$0xff]  ;;  %v13733_v22 = vld [vmem:[#allocation71_spill] sm:$0xff] }
 0x5b8   :  { %v1997_v9 = vmul.f32 %v1975_v25, %v13679_v3  ;;  %v13731_v46 = vpack.c.bf16 %v13729_v15, %v13730_v7  ;;  %v2101_v34 = vsel %vm344_vm5, %v13726_v11, %v13732_v19  ;;  %v1970_v43 = vsel %vm278_vm4, %v13714_v13, %v1965_v42  ;;  %v13734_v25 = vld [vmem:[#allocation69_spill] sm:$0xff]  ;;  %v13736_v7 = vld [vmem:[#allocation23_spill] sm:$0xff] }
 0x5b9   :  { %v1982_v59 = vsel %vm278_vm4, %v1965_v42, %v13728_v28  ;;  %v13735_v20 = vpack.c.bf16 %v13733_v22, %v13734_v25  ;;  %v2029_v15 = vpop.permute.xlu1 %2028  ;;  %v10480_v3 = vmul.f32 %v2108_v62, %v13737_v50  ;;  %v1996_v11 = vmul.f32 %v1979_v1, %v13675_v47  ;;  %v1967_v13 = vpop.permute.xlu0 %1966  ;;  %v13738_v28 = vld [vmem:[#allocation101_spill] sm:$0xff] }
 0x5ba   :  { %7655 = vmatpush1.bf16.msra.mxu0 %v13731_v46  ;;  %v10477_v46 = vmul.f32 %v2096_v2, %v13736_v7  ;;  %v7660_v0 = vpack.c.bf16 %v1997_v9, %v1993_v49  ;;  %v10484_v24 = vmul.f32 %v2105_v41, %v13718_v45  ;;  %v1992_v42 = vmul.f32 %v1978_v4, %v13675_v47  ;;  %v13739_v4 = vld [vmem:[#allocation117_spill] sm:$0xff] }
 0x5bb   :  { %7657 = vmatprep.subr.bf16.mxu0 %v7656_v53  ;;  %7727 = vmatpush1.bf16.msra.mxu1 %v13735_v20  ;;  %v1971_v53 = vsel %vm278_vm4, %v13724_v63, %v1967_v13  ;;  %v1983_v20 = vsel %vm278_vm4, %v1967_v13, %v13725_v16  ;;  %v1994_v2 = vmul.f32 %v1970_v43, %v13687_v36  ;;  %v13741_v13 = vld [vmem:[#allocation120_spill] sm:$0xff] }
 0x5bc   :  { %7729 = vmatprep.subr.bf16.mxu1 %v7728_v8  ;;  %v1995_v62 = vmul.f32 %v1982_v59, %v13691_v56  ;;  %v1998_v8 = vmul.f32 %v1971_v53, %v13687_v36  ;;  %v1999_v1 = vmul.f32 %v1983_v20, %v13691_v56  ;;  %v10498_v41 = vmul.f32 %v2101_v34, %v13719_v60 }
 0x5bd   :  { %v2097_v63 = vsel %vm344_vm5, %v13732_v19, %v13738_v28  ;;  %v2038_v16 = vsel %vm311_vm6, %v2013_v54, %v13739_v4  ;;  %v2077_v49 = vpop.permute.xlu1 %2076  ;;  %v7662_v9 = vpack.c.bf16 %v1996_v11, %v1992_v42  ;;  %v2015_v43 = vpop.permute.xlu0 %2014  ;;  %v7674_v22 = vpack.c.bf16 %v10484_v24, %v10425_v26  ;;  %v13740_v19 = vld [vmem:[#allocation115_spill] sm:$0xff] }
 0x5be   :  { %7659 = vmatpush1.bf16.msra.mxu0 %v7658_v55  ;;  %v2109_v55 = vsel %vm344_vm5, %v13738_v28, %v13727_v18  ;;  %v7734_v34 = vpack.c.bf16 %v1998_v8, %v1994_v2  ;;  %v7732_v59 = vpack.c.bf16 %v1999_v1, %v1995_v62  ;;  %v2042_v25 = vsel %vm311_vm6, %v13740_v19, %v2013_v54  ;;  %v13743_v8 = vld [vmem:[#allocation100_spill] sm:$0xff]  ;;  %v13744_v1 = vld [vmem:[#allocation83_spill] sm:$0xff] }
 0x5bf   :  { %7661 = vmatprep.subr.bf16.mxu0 %v7660_v0  ;;  %7731 = vmatpush1.bf16.msra.mxu1 %v7730_v48  ;;  %v2039_v0 = vsel %vm311_vm6, %v2015_v43, %v13741_v13  ;;  %v13742_v48 = vld [vmem:[#allocation118_spill] sm:$0xff]  ;;  %v2057_v18 = vmul.f32 %v2038_v16, %v13703_v35  ;;  %v2034_v11 = vsel %vm311_vm6, %v13739_v4, %v2029_v15  ;;  %v13756_v24 = vld [vmem:[#allocation27_spill] sm:$0xff] }
 0x5c0   :  { %v2043_v53 = vsel %vm311_vm6, %v13742_v48, %v2015_v43  ;;  %v2061_v42 = vmul.f32 %v2039_v0, %v13703_v35  ;;  %7733 = vmatprep.subr.bf16.mxu1 %v7732_v59  ;;  %v10528_v54 = vmul.f32 %v2097_v63, %v13736_v7  ;;  %v2119_v20 = vmul.f32 %v2109_v55, %v13737_v50  ;;  %v13748_v0 = vld [vmem:[#allocation85_spill] sm:$0xff] }
 0x5c1   :  { %v2046_v2 = vsel %vm311_vm6, %v2029_v15, %v13740_v19  ;;  %v2093_v62 = vpop.permute.xlu1 %2092  ;;  %v10538_v28 = vsel %vm377_vm7, %v13744_v1, %v13743_v8  ;;  %v2060_v4 = vmul.f32 %v2043_v53, %v13702_v21  ;;  %v2031_v63 = vpop.permute.xlu0 %2030  ;;  %v7672_v55 = vpack.c.bf16 %v10498_v41, %v10428_v12 }
 0x5c2   :  { %7663 = vmatpush1.bf16.msra.mxu0 %v7662_v9  ;;  %v7668_v16 = vpack.c.bf16 %v2061_v42, %v2057_v18  ;;  %v2056_v9 = vmul.f32 %v2042_v25, %v13702_v21  ;;  %v2035_v15 = vsel %vm311_vm6, %v13741_v13, %v2031_v63  ;;  %v2059_v43 = vmul.f32 %v2046_v2, %v13706_v57  ;;  %v13747_v13 = vld [vmem:[#allocation102_spill] sm:$0xff]  ;;  %v13750_v2 = vld [vmem:[#allocation119_spill] sm:$0xff]  ;;  %v13819_v21 = vld [vmem:[#allocation4_spill] sm:$0xff] }
 0x5c3   :  { %7665 = vmatprep.subr.bf16.mxu0 %v7664_v31  ;;  %7735 = vmatpush1.bf16.msra.mxu1 %v7734_v34  ;;  %v2058_v31 = vmul.f32 %v2034_v11, %v13705_v30  ;;  %v2047_v34 = vsel %vm311_vm6, %v2031_v63, %v13742_v48  ;;  %v2062_v12 = vmul.f32 %v2035_v15, %v13705_v30  ;;  %v13753_v15 = vld [vmem:[#allocation25_spill] sm:$0xff] }
 0x5c4   :  { %7737 = vmatprep.subr.bf16.mxu1 %v7736_v58  ;;  %v13745_v58 = vld [vmem:[#allocation121_spill] sm:$0xff]  ;;  %v2063_v41 = vmul.f32 %v2047_v34, %v13706_v57  ;;  %v13746_v19 = vpack.c.bf16 %v10362_v37, %v10386_v39  ;;  %v7746_v25 = vpack.c.bf16 %v10528_v54, %v10477_v46  ;;  %v2169_v48 = vsel %vm377_vm7, %v13748_v0, %v13747_v13 }
 0x5c5   :  { %v2102_v59 = vsel %vm344_vm5, %v2077_v49, %v13745_v58  ;;  %v13749_v53 = vpack.c.bf16 %v10373_v6, %v10402_v51  ;;  %v2153_v18 = vpop.permute.xlu1 %2152  ;;  %v7744_v11 = vpack.c.bf16 %v2119_v20, %v10480_v3  ;;  %v2165_v37 = vsel %vm377_vm7, %v13747_v13, %v10335_v52  ;;  %v2079_v42 = vpop.permute.xlu0 %2078  ;;  %v13751_v6 = vld [vmem:[#allocation123_spill] sm:$0xff]  ;;  %v13752_v3 = vld [vmem:[#allocation122_spill] sm:$0xff] }
 0x5c6   :  { %7667 = vmatpush1.bf16.msra.mxu0 %v13746_v19  ;;  %v7670_v39 = vpack.c.bf16 %v2060_v4, %v2056_v9  ;;  %v7742_v46 = vpack.c.bf16 %v2062_v12, %v2058_v31  ;;  %v7740_v54 = vpack.c.bf16 %v2063_v41, %v2059_v43  ;;  %v2106_v63 = vsel %vm344_vm5, %v13750_v2, %v2077_v49 }
 0x5c7   :  { %7669 = vmatprep.subr.bf16.mxu0 %v7668_v16  ;;  %7739 = vmatpush1.bf16.msra.mxu1 %v13749_v53  ;;  %v2121_v16 = vmul.f32 %v2102_v59, %v13719_v60  ;;  %v2103_v51 = vsel %vm344_vm5, %v2079_v42, %v13751_v6  ;;  %v2107_v20 = vsel %vm344_vm5, %v13752_v3, %v2079_v42  ;;  %v13754_v53 = vld [vmem:[#allocation26_spill] sm:$0xff] }
 0x5c8   :  { %v2098_v4 = vsel %vm344_vm5, %v13745_v58, %v2093_v62  ;;  %v2110_v9 = vsel %vm344_vm5, %v2093_v62, %v13750_v2  ;;  %v2125_v49 = vmul.f32 %v2103_v51, %v13719_v60  ;;  %7741 = vmatprep.subr.bf16.mxu1 %v7740_v54  ;;  %v2164_v31 = vsel %vm377_vm7, %v13743_v8, %v10289_v32 }
 0x5c9   :  { %v2181_v34 = vmul.f32 %v13753_v15, %v2165_v37  ;;  %v2172_v43 = vsel %vm377_vm7, %v2153_v18, %v13744_v1  ;;  %v10599_v58 = vpop.permute.xlu1 %2132  ;;  %v2173_v62 = vsel %vm377_vm7, %v10381_v27, %v13748_v0  ;;  %v2120_v59 = vmul.f32 %v2106_v63, %v13718_v45  ;;  %v2095_v8 = vpop.permute.xlu0 %2094 }
 0x5ca   :  { %7671 = vmatpush1.bf16.msra.mxu0 %v7670_v39  ;;  %v2124_v12 = vmul.f32 %v2107_v20, %v13718_v45  ;;  %v7676_v41 = vpack.c.bf16 %v2125_v49, %v2121_v16  ;;  %v2122_v19 = vmul.f32 %v2098_v4, %v13736_v7  ;;  %v2123_v1 = vmul.f32 %v2110_v9, %v13737_v50  ;;  %v1672_v9 = vld [vmem:[%s13211_s4 + $0x20] sm:$0xff] }
 0x5cb   :  { %7673 = vmatprep.subr.bf16.mxu0 %v7672_v55  ;;  %7743 = vmatpush1.bf16.msra.mxu1 %v7742_v46  ;;  %v2099_v55 = vsel %vm344_vm5, %v13751_v6, %v2095_v8  ;;  %v2111_v13 = vsel %vm344_vm5, %v2095_v8, %v13752_v3  ;;  %v2160_v0 = vsel %vm377_vm7, %v10289_v32, %v2153_v18  ;;  %v13755_v46 = vld [vmem:[#allocation28_spill] sm:$0xff] }
 0x5cc   :  { %7745 = vmatprep.subr.bf16.mxu1 %v7744_v11  ;;  %v2179_v11 = vmul.f32 %v13754_v53, %v2172_v43  ;;  %v2126_v37 = vmul.f32 %v2099_v55, %v13736_v7  ;;  %v2127_v39 = vmul.f32 %v2111_v13, %v13737_v50  ;;  %v2180_v42 = vmul.f32 %v13755_v46, %v2169_v48 }
 0x5cd   :  { %v2177_v54 = vmul.f32 %v13753_v15, %v2164_v31  ;;  %v2161_v2 = vsel %vm377_vm7, %v10335_v52, %v10381_v27  ;;  %v2141_v32 = vpop.permute.xlu1 %2140  ;;  %v2183_v18 = vmul.f32 %v13754_v53, %v2173_v62  ;;  %v7678_v63 = vpack.c.bf16 %v2124_v12, %v2120_v59  ;;  %v2135_v6 = vpop.permute.xlu0 %2134  ;;  %v1668_v52 = vld [vmem:[%s13211_s4] sm:$0xff]  ;;  %v1675_v62 = vld [vmem:[%s13211_s4 + $0x38] sm:$0xff] }
 0x5ce   :  { %7675 = vmatpush1.bf16.msra.mxu0 %v7674_v22  ;;  %v7750_v16 = vpack.c.bf16 %v2126_v37, %v2122_v19  ;;  %v7748_v51 = vpack.c.bf16 %v2127_v39, %v2123_v1  ;;  %v2178_v26 = vmul.f32 %v13756_v24, %v2160_v0  ;;  %v2176_v48 = vmul.f32 %v13755_v46, %v10538_v28  ;;  %v1674_v0 = vld [vmem:[%s13211_s4 + $0x30] sm:$0xff] }
 0x5cf   :  { %7677 = vmatprep.subr.bf16.mxu0 %v7676_v41  ;;  %7747 = vmatpush1.bf16.msra.mxu1 %v7746_v25  ;;  %v7680_v22 = vpack.c.bf16 %v2181_v34, %v2177_v54  ;;  %v7752_v3 = vpack.c.bf16 %v2183_v18, %v2179_v11  ;;  %v2182_v27 = vmul.f32 %v13756_v24, %v2161_v2  ;;  %v1671_v34 = vld [vmem:[%s13211_s4 + $0x18] sm:$0xff]  ;;  %v1678_v54 = vld [vmem:[%s13211_s4 + $0x50] sm:$0xff] }
 0x5d0   :  { %7749 = vmatprep.subr.bf16.mxu1 %v7748_v51  ;;  %v7682_v20 = vpack.c.bf16 %v2180_v42, %v2176_v48  ;;  %v2170_v49 = vsel %vm377_vm7, %v10599_v58, %v2141_v32  ;;  %v1677_v51 = vld [vmem:[%s13211_s4 + $0x48] sm:$0xff]  ;;  %v13757_v48 = vld [vmem:[#allocation29_spill] sm:$0xff] }
 0x5d1   :  { %v2149_v25 = vpop.permute.xlu1 %2148  ;;  %v2151_v4 = vpop.permute.xlu0 %2150  ;;  %v7754_v28 = vpack.c.bf16 %v2182_v27, %v2178_v26  ;;  %v2184_v12 = vmul.f32 %v13755_v46, %v2170_v49  ;;  %v1673_v27 = vld [vmem:[%s13211_s4 + $0x28] sm:$0xff] }
 0x5d2   :  { %7679 = vmatpush1.bf16.msra.mxu0 %v7678_v63  ;;  %v2166_v31 = vsel %vm377_vm7, %v2141_v32, %v2149_v25  ;;  %v13764_v49 = vld [vmem:[#allocation35_spill] sm:$0xff] }
 0x5d3   :  { %7681 = vmatprep.subr.bf16.mxu0 %v7680_v22  ;;  %7751 = vmatpush1.bf16.msra.mxu1 %v7750_v16  ;;  %v2185_v8 = vmul.f32 %v13753_v15, %v2166_v31  ;;  %v13765_v31 = vld [vmem:[#allocation36_spill] sm:$0xff] }
 0x5d4   :  { %7753 = vmatprep.subr.bf16.mxu1 %v7752_v3  ;;  %v13758_v3 = vmov 0.0  }
 0x5d5   :  { %2285 = vmatmul.mubr.f32.vlgmr.msra.gmra.mrb[44].mxu0 %v1668_v52  ;;  %v2157_v43 = vpop.permute.xlu1 %2156  ;;  %v2143_v59 = vpop.permute.xlu0 %2142 }
 0x5d6   :  { %7683 = vmatpush1.bf16.msra.mxu0 %v7682_v20  ;;  %2463 = vmatmul.mubr.f32.vlgmr.msra.gmra.mrb[44].mxu1 %v1668_v52  ;;  %v2167_v41 = vsel %vm377_vm7, %v2143_v59, %v2151_v4  ;;  %v2171_v19 = vsel %vm377_vm7, %v2135_v6, %v2143_v59  ;;  %v2162_v1 = vsel %vm377_vm7, %v2149_v25, %v2157_v43  ;;  %v13759_v52 = vld [vmem:[#allocation30_spill] sm:$0xff]  ;;  %v13760_v25 = vld [vmem:[#allocation31_spill] sm:$0xff]  ;;  %v13761_v20 = vld [vmem:[#allocation32_spill] sm:$0xff] }
 0x5d7   :  { %7755 = vmatpush1.bf16.msra.mxu1 %v7754_v28  ;;  %2290 = vmatprep.mubr.f32.mxu0 %v1672_v9  ;;  %v2188_v55 = vmul.f32 %v13755_v46, %v2171_v19  ;;  %v2189_v13 = vmul.f32 %v13753_v15, %v2167_v41  ;;  %v2174_v11 = vsel %vm377_vm7, %v2157_v43, %v10599_v58  ;;  %v1676_v28 = vld [vmem:[%s13211_s4 + $0x40] sm:$0xff]  ;;  %v13768_v59 = vld [vmem:[#allocation39_spill] sm:$0xff] }
 0x5d8   :  { %2468 = vmatprep.mubr.f32.mxu1 %v1672_v9  ;;  %v2186_v2 = vmul.f32 %v13756_v24, %v2162_v1  ;;  %v2187_v63 = vmul.f32 %v13754_v53, %v2174_v11  ;;  %v13763_v9 = vld [vmem:[#allocation34_spill] sm:$0xff]  ;;  %v13772_v19 = vld [vmem:[#allocation43_spill] sm:$0xff]  ;;  %v13773_v1 = vld [vmem:[#allocation44_spill] sm:$0xff] }
 0x5d9   :  { %2291 = vmatmul.mubr.f32.gmra.mrb[46].mxu0 %v1671_v34  ;;  %v7686_v37 = vpack.c.bf16 %v2188_v55, %v2184_v12  ;;  %v2159_v39 = vpop.permute.xlu0 %2158  ;;  %v7684_v42 = vpack.c.bf16 %v2189_v13, %v2185_v8  ;;  %v13767_v43 = vld [vmem:[#allocation38_spill] sm:$0xff]  ;;  %v13769_v12 = vld [vmem:[#allocation40_spill] sm:$0xff]  ;;  %v13770_v8 = vld [vmem:[#allocation41_spill] sm:$0xff] }
 0x5da   :  { %2469 = vmatmul.mubr.f32.gmra.mrb[46].mxu1 %v1671_v34  ;;  %2296 = vmatprep.mubr.f32.mxu0 %v1675_v62  ;;  %v2163_v32 = vsel %vm377_vm7, %v2151_v4, %v2159_v39  ;;  %v2175_v18 = vsel %vm377_vm7, %v2159_v39, %v2135_v6  ;;  %v1670_v6 = vld [vmem:[%s13211_s4 + $0x10] sm:$0xff]  ;;  %v13762_v4 = vld [vmem:[#allocation33_spill] sm:$0xff]  ;;  %v13771_v41 = vld [vmem:[#allocation42_spill] sm:$0xff] }
 0x5db   :  { %2474 = vmatprep.mubr.f32.mxu1 %v1675_v62  ;;  %v2190_v58 = vmul.f32 %v13756_v24, %v2163_v32  ;;  %v2191_v16 = vmul.f32 %v13754_v53, %v2175_v18  ;;  %7685 = vmatprep.subr.bf16.mxu0 %v7684_v42  ;;  %v13766_v34 = vld [vmem:[#allocation37_spill] sm:$0xff]  ;;  %v13775_v13 = vld [vmem:[#allocation46_spill] sm:$0xff]  ;;  %v13777_v11 = vld [vmem:[#allocation48_spill] sm:$0xff] }
 0x5dc   :  { %7687 = vmatpush1.bf16.msra.mxu0 %v7686_v37  ;;  %v1679_v62 = vld [vmem:[%s13211_s4 + $0x58] sm:$0xff]  ;;  %v13779_v39 = vld [vmem:[#allocation50_spill] sm:$0xff]  ;;  %v13780_v42 = vld [vmem:[#allocation51_spill] sm:$0xff] }
 0x5dd   :  { %2297 = vmatmul.mubr.f32.gmra.mrb[48].mxu0 %v1674_v0  ;;  %v7758_v26 = vpack.c.bf16 %v2190_v58, %v2186_v2  ;;  %v7756_v22 = vpack.c.bf16 %v2191_v16, %v2187_v63  ;;  %7761 = vmatprep.subr.bf16.mxu0 %v13757_v48  ;;  %v13774_v55 = vld [vmem:[#allocation45_spill] sm:$0xff]  ;;  %v13783_v32 = vld [vmem:[#allocation54_spill] sm:$0xff]  ;;  %v13784_v18 = vld [vmem:[#allocation55_spill] sm:$0xff] }
 0x5de   :  { %2475 = vmatmul.mubr.f32.gmra.mrb[48].mxu1 %v1674_v0  ;;  %2302 = vmatprep.mubr.f32.mxu0 %v1678_v54  ;;  %v13776_v0 = vld [vmem:[#allocation47_spill] sm:$0xff]  ;;  %v13778_v37 = vld [vmem:[#allocation49_spill] sm:$0xff]  ;;  %v13785_v63 = vld [vmem:[#allocation56_spill] sm:$0xff] }
 0x5df   :  { %2480 = vmatprep.mubr.f32.mxu1 %v1678_v54  ;;  %7757 = vmatprep.subr.bf16.mxu1 %v7756_v22  ;;  %v13781_v54 = vld [vmem:[#allocation52_spill] sm:$0xff]  ;;  %v13782_v2 = vld [vmem:[#allocation53_spill] sm:$0xff]  ;;  %v13787_v16 = vld [vmem:[#allocation58_spill] sm:$0xff] }
 0x5e0   :  { %7759 = vmatpush1.bf16.msra.mxu1 %v7758_v26  ;;  %v13786_v58 = vld [vmem:[#allocation57_spill] sm:$0xff]  ;;  %v13789_v26 = vld [vmem:[#allocation60_spill] sm:$0xff] }
 0x5e1   :  { %2303 = vmatmul.mubr.f32.gmra.mrb[50].mxu0 %v1677_v51  ;;  %7793 = vmatprep.subr.bf16.mxu1 %v13759_v52 }
 0x5e2   :  { %2481 = vmatmul.mubr.f32.gmra.mrb[50].mxu1 %v1677_v51  ;;  %2373 = vmatprep.mubr.f32.mxu0 %v13758_v3  ;;  %v13788_v51 = vld [vmem:[#allocation59_spill] sm:$0xff] }
 0x5e3   :  { %2551 = vmatprep.mubr.f32.mxu1 %v13758_v3 }
 0x5e5   :  { %6685 = vmatmul.mubr.msk.f32.vlgmr.msra.gmra.mrb[44].mxu0 %vm969_vm9, %v1670_v6 }
 0x5e6   :  { %6689 = vmatmul.mubr.msk.f32.vlgmr.msra.gmra.mrb[44].mxu1 %vm969_vm9, %v1670_v6  ;;  %2379 = vmatprep.mubr.f32.mxu0 %v13758_v3  ;;  %v2194_v22 = vpop.permute.xlu1 %2193 }
 0x5e7   :  { %2557 = vmatprep.mubr.f32.mxu1 %v13758_v3  ;;  %7763 = vmatpush3.bf16.msra.mxu0 %v13760_v25 }
 0x5e8   :  { %7795 = vmatpush3.bf16.msra.mxu1 %v13761_v20  ;;  %7765 = vmatprep.subr.bf16.mxu0 %v13762_v4 }
 0x5e9   :  { %6686 = vmatmul.mubr.msk.f32.gmra.mrb[46].mxu0 %vm969_vm9, %v1673_v27  ;;  %7797 = vmatprep.subr.bf16.mxu1 %v13763_v9 }
 0x5ea   :  { %6690 = vmatmul.mubr.msk.f32.gmra.mrb[46].mxu1 %vm969_vm9, %v1673_v27  ;;  %2385 = vmatprep.mubr.f32.mxu0 %v13758_v3  ;;  %v2198_v15 = vpop.permute.xlu0 %2197 }
 0x5eb   :  { %2563 = vmatprep.mubr.f32.mxu1 %v13758_v3  ;;  %7767 = vmatpush3.bf16.msra.mxu0 %v13764_v49 }
 0x5ec   :  { %7799 = vmatpush3.bf16.msra.mxu1 %v13765_v31  ;;  %7769 = vmatprep.subr.bf16.mxu0 %v13766_v34 }
 0x5ed   :  { %6687 = vmatmul.mubr.msk.f32.gmra.mrb[48].mxu0 %vm969_vm9, %v1676_v28  ;;  %7801 = vmatprep.subr.bf16.mxu1 %v13767_v43 }
 0x5ee   :  { %6691 = vmatmul.mubr.msk.f32.gmra.mrb[48].mxu1 %vm969_vm9, %v1676_v28  ;;  %2391 = vmatprep.mubr.f32.mxu0 %v13758_v3 }
 0x5ef   :  { %2569 = vmatprep.mubr.f32.mxu1 %v13758_v3  ;;  %7771 = vmatpush3.bf16.msra.mxu0 %v13768_v59 }
 0x5f0   :  { %7803 = vmatpush3.bf16.msra.mxu1 %v13769_v12  ;;  %7773 = vmatprep.subr.bf16.mxu0 %v13770_v8 }
 0x5f1   :  { %6688 = vmatmul.mubr.msk.f32.gmra.mrb[50].mxu0 %vm969_vm9, %v1679_v62  ;;  %7805 = vmatprep.subr.bf16.mxu1 %v13771_v41 }
 0x5f2   :  { %6692 = vmatmul.mubr.msk.f32.gmra.mrb[50].mxu1 %vm969_vm9, %v1679_v62 }
 0x5f3   :  { %7775 = vmatpush3.bf16.msra.mxu0 %v13772_v19 }
 0x5f4   :  { %7807 = vmatpush3.bf16.msra.mxu1 %v13773_v1  ;;  %7777 = vmatprep.subr.bf16.mxu0 %v13774_v55 }
 0x5f5   :  { %7809 = vmatprep.subr.bf16.mxu1 %v13775_v13 }
 0x5f7   :  { %7779 = vmatpush3.bf16.msra.mxu0 %v13776_v0 }
 0x5f8   :  { %7811 = vmatpush3.bf16.msra.mxu1 %v13777_v11  ;;  %7781 = vmatprep.subr.bf16.mxu0 %v13778_v37 }
 0x5f9   :  { %7813 = vmatprep.subr.bf16.mxu1 %v13779_v39 }
 0x5fb   :  { %7783 = vmatpush3.bf16.msra.mxu0 %v13780_v42 }
 0x5fc   :  { %7815 = vmatpush3.bf16.msra.mxu1 %v13781_v54  ;;  %7785 = vmatprep.subr.bf16.mxu0 %v13782_v2 }
 0x5fd   :  { %7817 = vmatprep.subr.bf16.mxu1 %v13783_v32 }
 0x5ff   :  { %7787 = vmatpush3.bf16.msra.mxu0 %v13784_v18 }
 0x600   :  { %7819 = vmatpush3.bf16.msra.mxu1 %v13785_v63  ;;  %7789 = vmatprep.subr.bf16.mxu0 %v13786_v58 }
 0x601   :  { %7821 = vmatprep.subr.bf16.mxu1 %v13787_v16 }
 0x603   :  { %7791 = vmatpush3.bf16.msra.mxu0 %v13788_v51 }
 0x604   :  { %7823 = vmatpush3.bf16.msra.mxu1 %v13789_v26  ;;  %7825 = vmatprep.subr.bf16.mxu0 %v13757_v48 }
 0x605   :  { %7857 = vmatprep.subr.bf16.mxu1 %v13759_v52  ;;  %v2202_v52 = vpop.permute.xlu1 %2201 }
 0x6b8   :  { %v2375_v6 = vpop.f32.mrb[44].mxu0 }
 0x6b9   :  { %v2377_v27 = vpop.f32.mrb[45].mxu0  ;;  %v2553_v28 = vpop.f32.mrb[44].mxu1  ;;  %v10746_v46 = vadd.f32 %v2375_v6, %v2194_v22 }
 0x6ba   :  { %v10744_v62 = vadd.f32 %v2377_v27, %v2194_v22  ;;  %v2555_v24 = vpop.f32.mrb[45].mxu1  ;;  %v10750_v50 = vadd.f32 %v2553_v28, %v2194_v22 }
 0x6bb   :  { %v10748_v53 = vadd.f32 %v2555_v24, %v2194_v22 }
 0x6bc   :  { %v2381_v7 = vpop.f32.mrb[46].mxu0  ;;  %2640 = vmatprep.mubr.f32.mxu0 %v10744_v62 }
 0x6bd   :  { %v2383_v48 = vpop.f32.mrb[47].mxu0  ;;  %v2559_v60 = vpop.f32.mrb[46].mxu1  ;;  %2641 = vmatmul.mubr.f32.vlgmr.msra.gmra.mrb[52].mxu0 %v10746_v46  ;;  %2725 = vmatprep.mubr.f32.mxu1 %v10748_v53  ;;  %v10763_v22 = vadd.f32 %v2381_v7, %v2198_v15 }
 0x6be   :  { %v10755_v27 = vadd.f32 %v2383_v48, %v2198_v15  ;;  %7827 = vmatpush3.bf16.msra.mxu0 %v13760_v25  ;;  %v2561_v6 = vpop.f32.mrb[47].mxu1  ;;  %2726 = vmatmul.mubr.f32.vlgmr.msra.gmra.mrb[52].mxu1 %v10750_v50  ;;  %v10765_v28 = vadd.f32 %v2559_v60, %v2198_v15 }
 0x6bf   :  { %v10759_v24 = vadd.f32 %v2561_v6, %v2198_v15  ;;  %7859 = vmatpush3.bf16.msra.mxu1 %v13761_v20  ;;  %7829 = vmatprep.subr.bf16.mxu0 %v13762_v4  ;;  %v2206_v15 = vpop.permute.xlu1 %2205 }
 0x6c0   :  { %v2387_v45 = vpop.f32.mrb[48].mxu0  ;;  %2645 = vmatprep.mubr.f32.mxu0 %v10755_v27  ;;  %7861 = vmatprep.subr.bf16.mxu1 %v13763_v9 }
 0x6c1   :  { %v2389_v48 = vpop.f32.mrb[49].mxu0  ;;  %v2565_v25 = vpop.f32.mrb[48].mxu1  ;;  %2646 = vmatmul.mubr.f32.gmra.mrb[54].mxu0 %v10763_v22  ;;  %2730 = vmatprep.mubr.f32.mxu1 %v10759_v24  ;;  %v10775_v60 = vadd.f32 %v2387_v45, %v2202_v52 }
 0x6c2   :  { %v10771_v6 = vadd.f32 %v2389_v48, %v2202_v52  ;;  %7831 = vmatpush3.bf16.msra.mxu0 %v13764_v49  ;;  %v2567_v4 = vpop.f32.mrb[49].mxu1  ;;  %2731 = vmatmul.mubr.f32.gmra.mrb[54].mxu1 %v10765_v28  ;;  %v10781_v9 = vadd.f32 %v2565_v25, %v2202_v52 }
 0x6c3   :  { %v10777_v7 = vadd.f32 %v2567_v4, %v2202_v52  ;;  %7863 = vmatpush3.bf16.msra.mxu1 %v13765_v31  ;;  %7833 = vmatprep.subr.bf16.mxu0 %v13766_v34 }
 0x6c4   :  { %v2393_v20 = vpop.f32.mrb[50].mxu0  ;;  %2650 = vmatprep.mubr.f32.mxu0 %v10771_v6  ;;  %7865 = vmatprep.subr.bf16.mxu1 %v13767_v43 }
 0x6c5   :  { %v2395_v48 = vpop.f32.mrb[51].mxu0  ;;  %v2571_v49 = vpop.f32.mrb[50].mxu1  ;;  %2651 = vmatmul.mubr.f32.gmra.mrb[56].mxu0 %v10775_v60  ;;  %2735 = vmatprep.mubr.f32.mxu1 %v10777_v7  ;;  %v10791_v52 = vadd.f32 %v2393_v20, %v2206_v15  ;;  %v2747_v20 = vmul.f32 %v10744_v62, %v10744_v62 }
 0x6c6   :  { %v10787_v45 = vadd.f32 %v2395_v48, %v2206_v15  ;;  %7835 = vmatpush3.bf16.msra.mxu0 %v13768_v59  ;;  %v2573_v4 = vpop.f32.mrb[51].mxu1  ;;  %2736 = vmatmul.mubr.f32.gmra.mrb[56].mxu1 %v10781_v9  ;;  %v10797_v43 = vadd.f32 %v2571_v49, %v2206_v15  ;;  %v2749_v48 = vmul.f32 %v10748_v53, %v10748_v53 }
 0x6c7   :  { %v10793_v25 = vadd.f32 %v2573_v4, %v2206_v15  ;;  %7867 = vmatpush3.bf16.msra.mxu1 %v13769_v12  ;;  %7837 = vmatprep.subr.bf16.mxu0 %v13770_v8  ;;  %v2746_v49 = vmul.f32 %v10746_v46, %v10746_v46  ;;  %v2748_v15 = vmul.f32 %v10750_v50, %v10750_v50 }
 0x6c8   :  { %2655 = vmatprep.mubr.f32.mxu0 %v10787_v45  ;;  %7869 = vmatprep.subr.bf16.mxu1 %v13771_v41  ;;  %v2751_v4 = vmul.f32 %v10755_v27, %v10755_v27 }
 0x6c9   :  { %2656 = vmatmul.mubr.f32.gmra.mrb[58].mxu0 %v10791_v52  ;;  %2740 = vmatprep.mubr.f32.mxu1 %v10793_v25 }
 0x6ca   :  { %7839 = vmatpush3.bf16.msra.mxu0 %v13772_v19  ;;  %2741 = vmatmul.mubr.f32.gmra.mrb[58].mxu1 %v10797_v43 }
 0x6cb   :  { %2826 = vmatprep.mubr.f32.mxu0 %v2747_v20  ;;  %7871 = vmatpush3.bf16.msra.mxu1 %v13773_v1  ;;  %v2753_v20 = vmul.f32 %v10759_v24, %v10759_v24 }
 0x6cc   :  { %2911 = vmatprep.mubr.f32.mxu1 %v2749_v48  ;;  %7841 = vmatprep.subr.bf16.mxu0 %v13774_v55  ;;  %v2750_v48 = vmul.f32 %v10763_v22, %v10763_v22 }
 0x6cd   :  { %7873 = vmatprep.subr.bf16.mxu1 %v13775_v13 }
 0x6ce   :  { %7843 = vmatpush3.bf16.msra.mxu0 %v13776_v0 }
 0x6cf   :  { %7875 = vmatpush3.bf16.msra.mxu1 %v13777_v11  ;;  %7845 = vmatprep.subr.bf16.mxu0 %v13778_v37 }
 0x6d0   :  { %7877 = vmatprep.subr.bf16.mxu1 %v13779_v39 }
 0x6d2   :  { %7847 = vmatpush3.bf16.msra.mxu0 %v13780_v42 }
 0x6d3   :  { %7879 = vmatpush3.bf16.msra.mxu1 %v13781_v54  ;;  %7849 = vmatprep.subr.bf16.mxu0 %v13782_v2 }
 0x6d4   :  { %7881 = vmatprep.subr.bf16.mxu1 %v13783_v32 }
 0x6d6   :  { %7851 = vmatpush3.bf16.msra.mxu0 %v13784_v18 }
 0x6d7   :  { %7883 = vmatpush3.bf16.msra.mxu1 %v13785_v63  ;;  %7853 = vmatprep.subr.bf16.mxu0 %v13786_v58 }
 0x6d8   :  { %7885 = vmatprep.subr.bf16.mxu1 %v13787_v16  ;;  %v2757_v16 = vmul.f32 %v10777_v7, %v10777_v7 }
 0x6da   :  { %7855 = vmatpush3.bf16.msra.mxu0 %v13788_v51  ;;  %v2755_v51 = vmul.f32 %v10771_v6, %v10771_v6 }
 0x6db   :  { %7887 = vmatpush3.bf16.msra.mxu1 %v13789_v26  ;;  %v2752_v26 = vmul.f32 %v10765_v28, %v10765_v28 }
 0x6dd   :  { %2827 = vmatmul.mubr.f32.vlgmr.msra.gmra.mrb[60].mxu0 %v2746_v49  ;;  %v2754_v49 = vmul.f32 %v10775_v60, %v10775_v60 }
 0x6de   :  { %2831 = vmatprep.mubr.f32.mxu0 %v2751_v4  ;;  %2912 = vmatmul.mubr.f32.vlgmr.msra.gmra.mrb[60].mxu1 %v2748_v15  ;;  %v2759_v15 = vmul.f32 %v10787_v45, %v10787_v45  ;;  %v2756_v4 = vmul.f32 %v10781_v9, %v10781_v9 }
 0x6df   :  { %2916 = vmatprep.mubr.f32.mxu1 %v2753_v20  ;;  %v2761_v20 = vmul.f32 %v10793_v25, %v10793_v25 }
 0x6e1   :  { %2832 = vmatmul.mubr.f32.gmra.mrb[62].mxu0 %v2750_v48  ;;  %v8406_v48 = vmov 4  }
 0x6e2   :  { %2836 = vmatprep.mubr.f32.mxu0 %v2755_v51  ;;  %2917 = vmatmul.mubr.f32.gmra.mrb[62].mxu1 %v2752_v26  ;;  %v2758_v51 = vmul.f32 %v10791_v52, %v10791_v52  ;;  %v8360_v26 = vld [vmem:[%s13209_s10] sm:$0xff] }
 0x6e3   :  { %2921 = vmatprep.mubr.f32.mxu1 %v2757_v16  ;;  %v2760_v16 = vmul.f32 %v10797_v43, %v10797_v43  ;;  %8320 = vset.pattern.permute.xlu1 %v8406_v48 }
 0x6e4   :  { %8319 = vset.pattern.permute.xlu0 %v8406_v48 }
 0x6e5   :  { %2837 = vmatmul.mubr.f32.gmra.mrb[64].mxu0 %v2754_v49  ;;  %v10862_v49 = vld [vmem:[%s13205_s13 + $0x8] sm:$0xff] }
 0x6e6   :  { %2841 = vmatprep.mubr.f32.mxu0 %v2759_v15  ;;  %2922 = vmatmul.mubr.f32.gmra.mrb[64].mxu1 %v2756_v4  ;;  %v10868_v15 = vld [vmem:[%s13205_s13] sm:$0xff]  ;;  %v10874_v4 = vld [vmem:[%s13205_s13 + $0x10] sm:$0xff] }
 0x6e7   :  { %2926 = vmatprep.mubr.f32.mxu1 %v2761_v20  ;;  %3123 = vperm.xlu1 %8320, %v10862_v49   ;;  %v10880_v20 = vld [vmem:[%s13205_s13 + $0x18] sm:$0xff] }
 0x6e8   :  { %3119 = vperm.xlu0 %8319, %v10868_v15  }
 0x6e9   :  { %2842 = vmatmul.mubr.f32.gmra.mrb[66].mxu0 %v2758_v51  ;;  %v8407_v51 = vmov 5  }
 0x6ea   :  { %2927 = vmatmul.mubr.f32.gmra.mrb[66].mxu1 %v2760_v16  ;;  %7392 = vmatprep.mubr.msk.f32.mxu0 %vm969_vm9, %v8360_v26 }
 0x6eb   :  { %7406 = vmatprep.mubr.msk.f32.mxu1 %vm969_vm9, %v8360_v26  ;;  %3127 = vperm.xlu1 %8320, %v10874_v4  }
 0x6ec   :  { %3131 = vperm.xlu0 %8319, %v10880_v20  }
 0x6ef   :  { %8321 = vset.pattern.permute.xlu1 %v8407_v51 }
 0x6f0   :  { %8322 = vset.pattern.permute.xlu0 %v8407_v51  ;;  %3143 = vperm.xlu1 %8321, %v10868_v15  }
 0x6f1   :  { %3147 = vperm.xlu0 %8322, %v10862_v49  }
 0x6f4   :  { %3151 = vperm.xlu1 %8321, %v10874_v4  }
 0x6f8   :  { %3155 = vperm.xlu1 %8321, %v10880_v20  }
 0x790   :  { %v7004_v16 = vpop.f32.mrb[52].mxu0 }
 0x791   :  { %v7005_v26 = vpop.f32.mrb[53].mxu0  ;;  %v7048_v48 = vpop.f32.mrb[52].mxu1 }
 0x792   :  { %v7006_v58 = vadd.f32 %v7005_v26, %v7004_v16  ;;  %v7049_v63 = vpop.f32.mrb[53].mxu1 }
 0x793   :  { %v7050_v18 = vadd.f32 %v7049_v63, %v7048_v48 }
 0x794   :  { %v7007_v32 = vpop.f32.mrb[54].mxu0 }
 0x795   :  { %v2728_v2 = vadd.f32 %v7050_v18, %v7006_v58  ;;  %v7008_v54 = vpop.f32.mrb[55].mxu0  ;;  %v7051_v42 = vpop.f32.mrb[54].mxu1 }
 0x796   :  { %v7009_v39 = vadd.f32 %v7008_v54, %v7007_v32  ;;  %v7052_v51 = vpop.f32.mrb[55].mxu1 }
 0x797   :  { %v7053_v37 = vadd.f32 %v7052_v51, %v7051_v42 }
 0x798   :  { %v7010_v11 = vpop.f32.mrb[56].mxu0 }
 0x799   :  { %v2733_v0 = vadd.f32 %v7053_v37, %v7009_v39  ;;  %v7011_v13 = vpop.f32.mrb[57].mxu0  ;;  %v7054_v55 = vpop.f32.mrb[56].mxu1  ;;  %v13790_v37 = vld [vmem:[#allocation63_spill] sm:$0xff] }
 0x79a   :  { %v7012_v1 = vadd.f32 %v7011_v13, %v7010_v11  ;;  %v7055_v19 = vpop.f32.mrb[57].mxu1 }
 0x79b   :  { %v7056_v41 = vadd.f32 %v7055_v19, %v7054_v55  ;;  %v7888_v8 = vpack.c.bf16 %v2733_v0, %v2728_v2  ;;  %v8365_v19 = vld [vmem:[%s13209_s10 + $0x8] sm:$0xff] }
 0x79c   :  { %v7013_v12 = vpop.f32.mrb[58].mxu0 }
 0x79d   :  { %v2738_v59 = vadd.f32 %v7056_v41, %v7012_v1  ;;  %v7014_v16 = vpop.f32.mrb[59].mxu0  ;;  %v7057_v26 = vpop.f32.mrb[58].mxu1  ;;  %7889 = vmatprep.subr.bf16.mxu0 %v7888_v8 }
 0x79e   :  { %v7015_v63 = vadd.f32 %v7014_v16, %v7013_v12  ;;  %v7058_v18 = vpop.f32.mrb[59].mxu1  ;;  %7891 = vmatpush3.bf16.msra.mxu0 %v7888_v8  ;;  %v8366_v12 = vld [vmem:[%s13209_s10 + $0x10] sm:$0xff]  ;;  %v13791_v8 = vld [vmem:[#allocation61_spill] sm:$0xff] }
 0x79f   :  { %v7059_v58 = vadd.f32 %v7058_v18, %v7057_v26 }
 0x7a1   :  { %v2743_v54 = vadd.f32 %v7059_v58, %v7015_v63 }
 0x7a3   :  { %v7892_v32 = vpack.c.bf16 %v2743_v54, %v2738_v59  ;;  %v8367_v59 = vld [vmem:[%s13209_s10 + $0x18] sm:$0xff] }
 0x7a5   :  { %7893 = vmatprep.subr.bf16.mxu0 %v7892_v32 }
 0x7a6   :  { %7895 = vmatpush3.bf16.msra.mxu0 %v7892_v32 }
 0x7a7   :  { %6701 = vmatprep.subr.msk.mxu0 %vm1243_vm10, %v13790_v37 }
 0x7a9   :  { %7393 = vmatmul.mubr.msk.f32.vlgmr.msra.gmra.mrb[68].mxu0 %vm969_vm9, %v8365_v19 }
 0x7aa   :  { %7395 = vmatprep.mubr.msk.f32.mxu0 %vm969_vm9, %v8366_v12  ;;  %6702 = vmatpush1.msk.msra.mxu0 %vm1243_vm10, %v13791_v8 }
 0x7ab   :  { %6713 = vmatprep.subr.msk.mxu0 %vm1243_vm10, %v13790_v37 }
 0x7ad   :  { %7396 = vmatmul.mubr.msk.f32.gmra.mrb[70].mxu0 %vm969_vm9, %v8367_v59 }
 0x7ae   :  { %3238 = vmatprep.mubr.f32.mxu0 %v13758_v3 }
 0x7b0   :  { %v7092_v41 = vpop.f32.mrb[60].mxu0 }
 0x7b1   :  { %v7093_v1 = vpop.f32.mrb[61].mxu0  ;;  %v7136_v55 = vpop.f32.mrb[60].mxu1 }
 0x7b2   :  { %v7094_v13 = vadd.f32 %v7093_v1, %v7092_v41  ;;  %v7137_v0 = vpop.f32.mrb[61].mxu1 }
 0x7b3   :  { %v7138_v11 = vadd.f32 %v7137_v0, %v7136_v55 }
 0x7b4   :  { %v7095_v39 = vpop.f32.mrb[62].mxu0 }
 0x7b5   :  { %v2914_v42 = vadd.f32 %v7138_v11, %v7094_v13  ;;  %v7096_v2 = vpop.f32.mrb[63].mxu0  ;;  %v7139_v48 = vpop.f32.mrb[62].mxu1 }
 0x7b6   :  { %v7097_v51 = vadd.f32 %v7096_v2, %v7095_v39  ;;  %v7140_v16 = vpop.f32.mrb[63].mxu1  ;;  %v13792_v2 = vld [vmem:[#allocation64_spill] sm:$0xff] }
 0x7b7   :  { %v7141_v26 = vadd.f32 %v7140_v16, %v7139_v48 }
 0x7b8   :  { %v7098_v63 = vpop.f32.mrb[64].mxu0 }
 0x7b9   :  { %v2919_v18 = vadd.f32 %v7141_v26, %v7097_v51  ;;  %v7099_v58 = vpop.f32.mrb[65].mxu0  ;;  %v7142_v54 = vpop.f32.mrb[64].mxu1 }
 0x7ba   :  { %v7100_v32 = vadd.f32 %v7099_v58, %v7098_v63  ;;  %v7143_v37 = vpop.f32.mrb[65].mxu1 }
 0x7bb   :  { %v7144_v34 = vadd.f32 %v7143_v37, %v7142_v54  ;;  %v7896_v31 = vpack.c.bf16 %v2919_v18, %v2914_v42  ;;  %v13793_v37 = vld [vmem:[#allocation62_spill] sm:$0xff] }
 0x7bc   :  { %v7101_v57 = vpop.f32.mrb[66].mxu0 }
 0x7bd   :  { %v2924_v30 = vadd.f32 %v7144_v34, %v7100_v32  ;;  %v7102_v41 = vpop.f32.mrb[67].mxu0  ;;  %v7145_v1 = vpop.f32.mrb[66].mxu1  ;;  %7897 = vmatprep.subr.bf16.mxu1 %v7896_v31 }
 0x7be   :  { %v7103_v55 = vadd.f32 %v7102_v41, %v7101_v57  ;;  %v7146_v13 = vpop.f32.mrb[67].mxu1  ;;  %7899 = vmatpush3.bf16.msra.mxu1 %v7896_v31 }
 0x7bf   :  { %v7147_v0 = vadd.f32 %v7146_v13, %v7145_v1  ;;  %v3120_v13 = vpop.permute.xlu0 %3119 }
 0x7c1   :  { %v2929_v11 = vadd.f32 %v7147_v0, %v7103_v55  ;;  %v3124_v0 = vpop.permute.xlu1 %3123 }
 0x7c3   :  { %v7900_v39 = vpack.c.bf16 %v2929_v11, %v2924_v30 }
 0x7c5   :  { %7901 = vmatprep.subr.bf16.mxu1 %v7900_v39 }
 0x7c6   :  { %7903 = vmatpush3.bf16.msra.mxu1 %v7900_v39 }
 0x7c7   :  { %6707 = vmatprep.subr.msk.mxu1 %vm1243_vm10, %v13792_v2 }
 0x7c9   :  { %7407 = vmatmul.mubr.msk.f32.vlgmr.msra.gmra.mrb[68].mxu1 %vm969_vm9, %v8365_v19 }
 0x7ca   :  { %7409 = vmatprep.mubr.msk.f32.mxu1 %vm969_vm9, %v8366_v12  ;;  %6708 = vmatpush1.msk.msra.mxu1 %vm1243_vm10, %v13793_v37 }
 0x7cb   :  { %6719 = vmatprep.subr.msk.mxu1 %vm1243_vm10, %v13792_v2 }
 0x7cd   :  { %7410 = vmatmul.mubr.msk.f32.gmra.mrb[70].mxu1 %vm969_vm9, %v8367_v59 }
 0x7ce   :  { %3327 = vmatprep.mubr.f32.mxu1 %v13758_v3 }
 0x87c   :  { %v7394_v30 = vpop.f32.mrb[68].mxu0 }
 0x87d   :  { %v2998_v57 = vpop.f32.mrb[69].mxu0  ;;  %v3103_v42 = vmul.f32 %v7394_v30, %v7394_v30 }
 0x87e   :  { %v3102_v48 = vmul.f32 %v2998_v57, %v2998_v57 }
 0x880   :  { %v7397_v31 = vpop.f32.mrb[70].mxu0 }
 0x881   :  { %v3008_v34 = vpop.f32.mrb[71].mxu0  ;;  %v3105_v12 = vmul.f32 %v7397_v31, %v7397_v31 }
 0x882   :  { %v3104_v63 = vmul.f32 %v3008_v34, %v3008_v34 }
 0x89c   :  { %v7408_v51 = vpop.f32.mrb[68].mxu1 }
 0x89d   :  { %v3107_v19 = vsub.f32 %v7408_v51, %v3103_v42  ;;  %v3083_v16 = vpop.f32.mrb[69].mxu1 }
 0x89e   :  { %v3106_v26 = vsub.f32 %v3083_v16, %v3102_v48 }
 0x89f   :  { %v3111_v18 = vadd.f32 1e-05, %v3107_v19 }
 0x8a0   :  { %v3110_v58 = vadd.f32 1e-05, %v3106_v26  ;;  %v7411_v54 = vpop.f32.mrb[70].mxu1  ;;  %v3132_v26 = vpop.permute.xlu0 %3131 }
 0x8a1   :  { %8340 = vrsqrt.f32 %v3111_v18  ;;  %v3109_v32 = vsub.f32 %v7411_v54, %v3105_v12  ;;  %v3093_v59 = vpop.f32.mrb[71].mxu1 }
 0x8a2   :  { %8342 = vrsqrt.f32 %v3110_v58  ;;  %v3108_v41 = vsub.f32 %v3093_v59, %v3104_v63  ;;  %v3128_v63 = vpop.permute.xlu1 %3127 }
 0x8a3   :  { %v3113_v1 = vadd.f32 1e-05, %v3109_v32 }
 0x8a4   :  { %v3112_v55 = vadd.f32 1e-05, %v3108_v41 }
 0x8a5   :  { %8344 = vrsqrt.f32 %v3113_v1 }
 0x8a6   :  { %8346 = vrsqrt.f32 %v3112_v55  ;;  %v3144_v54 = vpop.permute.xlu1 %3143 }
 0x8aa   :  { %v3152_v32 = vpop.permute.xlu1 %3151 }
 0x8ab   :  { %v8341_v11 = vpop.eup %8340 }
 0x8ac   :  { %v8343_v39 = vpop.eup %8342  ;;  %v3135_v42 = vmul.f32 %v8341_v11, %v3124_v0 }
 0x8ad   :  { %v3134_v51 = vmul.f32 %v8343_v39, %v3120_v13 }
 0x8ae   :  { %v3139_v48 = vmul.f32 %v7394_v30, %v3135_v42  ;;  %v3156_v1 = vpop.permute.xlu1 %3155 }
 0x8af   :  { %v8345_v16 = vpop.eup %8344  ;;  %v3138_v19 = vmul.f32 %v3134_v51, %v2998_v57  ;;  %6703 = vmatmul.mubr.msk.f32.vlgmr.msra.gmra.mrb[72].mxu0 %vm1230_vm11, %v3134_v51  ;;  %6709 = vmatmul.mubr.msk.f32.vlgmr.msra.gmra.mrb[72].mxu1 %vm1230_vm11, %v3134_v51 }
 0x8b0   :  { %v8347_v12 = vpop.eup %8346  ;;  %v3137_v18 = vmul.f32 %v8345_v16, %v3132_v26  ;;  %3244 = vmatprep.mubr.f32.mxu0 %v13758_v3  ;;  %3333 = vmatprep.mubr.f32.mxu1 %v13758_v3 }
 0x8b1   :  { %v3136_v58 = vmul.f32 %v8347_v12, %v3128_v63  ;;  %6714 = vmatpush1.msk.msra.mxu0 %vm1243_vm10, %v13791_v8  ;;  %6720 = vmatpush1.msk.msra.mxu1 %vm1243_vm10, %v13793_v37 }
 0x8b2   :  { %v3141_v30 = vmul.f32 %v7397_v31, %v3137_v18  ;;  %v3158_v31 = vsub.f32 %v3144_v54, %v3138_v19 }
 0x8b3   :  { %v3140_v57 = vmul.f32 %v3136_v58, %v3008_v34  ;;  %6704 = vmatmul.mubr.msk.f32.gmra.mrb[74].mxu0 %vm1230_vm11, %v3135_v42  ;;  %6710 = vmatmul.mubr.msk.f32.gmra.mrb[74].mxu1 %vm1230_vm11, %v3135_v42  ;;  %v3148_v34 = vpop.permute.xlu0 %3147 }
 0x8b4   :  { %3250 = vmatprep.mubr.f32.mxu0 %v13758_v3  ;;  %3339 = vmatprep.mubr.f32.mxu1 %v13758_v3  ;;  %v3159_v59 = vsub.f32 %v3148_v34, %v3139_v48  ;;  %v3161_v55 = vsub.f32 %v3156_v1, %v3141_v30 }
 0x8b5   :  { %v3160_v41 = vsub.f32 %v3152_v32, %v3140_v57 }
 0x8b7   :  { %6705 = vmatmul.mubr.msk.f32.gmra.mrb[76].mxu0 %vm1230_vm11, %v3136_v58  ;;  %6711 = vmatmul.mubr.msk.f32.gmra.mrb[76].mxu1 %vm1230_vm11, %v3136_v58 }
 0x8b8   :  { %3256 = vmatprep.mubr.f32.mxu0 %v13758_v3  ;;  %3345 = vmatprep.mubr.f32.mxu1 %v13758_v3 }
 0x8bb   :  { %6706 = vmatmul.mubr.msk.f32.gmra.mrb[78].mxu0 %vm1230_vm11, %v3137_v18  ;;  %6712 = vmatmul.mubr.msk.f32.gmra.mrb[78].mxu1 %vm1230_vm11, %v3137_v18 }
 0x8bc   :  { %3428 = vmatprep.mubr.f32.mxu0 %v13758_v3  ;;  %3517 = vmatprep.mubr.f32.mxu1 %v13758_v3 }
 0x8bf   :  { %6715 = vmatmul.mubr.msk.f32.vlgmr.msra.gmra.mrb[80].mxu0 %vm1230_vm11, %v3158_v31  ;;  %6721 = vmatmul.mubr.msk.f32.vlgmr.msra.gmra.mrb[80].mxu1 %vm1230_vm11, %v3158_v31 }
 0x8c0   :  { %3434 = vmatprep.mubr.f32.mxu0 %v13758_v3  ;;  %3523 = vmatprep.mubr.f32.mxu1 %v13758_v3 }
 0x8c3   :  { %6716 = vmatmul.mubr.msk.f32.gmra.mrb[82].mxu0 %vm1230_vm11, %v3159_v59  ;;  %6722 = vmatmul.mubr.msk.f32.gmra.mrb[82].mxu1 %vm1230_vm11, %v3159_v59 }
 0x8c4   :  { %3440 = vmatprep.mubr.f32.mxu0 %v13758_v3  ;;  %3529 = vmatprep.mubr.f32.mxu1 %v13758_v3 }
 0x8c7   :  { %6717 = vmatmul.mubr.msk.f32.gmra.mrb[84].mxu0 %vm1230_vm11, %v3160_v41  ;;  %6723 = vmatmul.mubr.msk.f32.gmra.mrb[84].mxu1 %vm1230_vm11, %v3160_v41 }
 0x8c8   :  { %3446 = vmatprep.mubr.f32.mxu0 %v13758_v3  ;;  %3535 = vmatprep.mubr.f32.mxu1 %v13758_v3 }
 0x8cb   :  { %6718 = vmatmul.mubr.msk.f32.gmra.mrb[86].mxu0 %vm1230_vm11, %v3161_v55  ;;  %6724 = vmatmul.mubr.msk.f32.gmra.mrb[86].mxu1 %vm1230_vm11, %v3161_v55 }
 0x982   :  { %v3240_v13 = vpop.f32.mrb[72].mxu0  ;;  %v3329_v0 = vpop.f32.mrb[72].mxu1 }
 0x983   :  { %v3242_v11 = vpop.f32.mrb[73].mxu0  ;;  %v3331_v39 = vpop.f32.mrb[73].mxu1  ;;  %v3542_v54 = vmul.f32 %v10746_v46, %v3240_v13  ;;  %v3544_v31 = vmul.f32 %v10750_v50, %v3329_v0 }
 0x984   :  { %v3543_v34 = vmul.f32 %v10744_v62, %v3242_v11  ;;  %v3545_v32 = vmul.f32 %v10748_v53, %v3331_v39 }
 0x986   :  { %v3246_v42 = vpop.f32.mrb[74].mxu0  ;;  %v3335_v51 = vpop.f32.mrb[74].mxu1 }
 0x987   :  { %v3248_v48 = vpop.f32.mrb[75].mxu0  ;;  %v3337_v16 = vpop.f32.mrb[75].mxu1  ;;  %v3546_v35 = vmul.f32 %v10763_v22, %v3246_v42  ;;  %v3548_v46 = vmul.f32 %v10765_v28, %v3335_v51 }
 0x988   :  { %v3547_v50 = vmul.f32 %v10755_v27, %v3248_v48  ;;  %v3549_v53 = vmul.f32 %v10759_v24, %v3337_v16 }
 0x98a   :  { %v3252_v19 = vpop.f32.mrb[76].mxu0  ;;  %v3341_v26 = vpop.f32.mrb[76].mxu1 }
 0x98b   :  { %v3254_v12 = vpop.f32.mrb[77].mxu0  ;;  %v3343_v63 = vpop.f32.mrb[77].mxu1  ;;  %v3550_v22 = vmul.f32 %v10775_v60, %v3252_v19  ;;  %v3552_v28 = vmul.f32 %v10781_v9, %v3341_v26 }
 0x98c   :  { %v3551_v24 = vmul.f32 %v10771_v6, %v3254_v12 }
 0x98e   :  { %v3258_v18 = vpop.f32.mrb[78].mxu0  ;;  %v3347_v58 = vpop.f32.mrb[78].mxu1 }
 0x98f   :  { %v3260_v57 = vpop.f32.mrb[79].mxu0  ;;  %v3349_v30 = vpop.f32.mrb[79].mxu1  ;;  %v3554_v26 = vmul.f32 %v10791_v52, %v3258_v18  ;;  %v3556_v12 = vmul.f32 %v10797_v43, %v3347_v58 }
 0x992   :  { %v3430_v59 = vpop.f32.mrb[80].mxu0  ;;  %v3519_v41 = vpop.f32.mrb[80].mxu1 }
 0x993   :  { %v3558_v1 = vadd.f32 %v3542_v54, %v3430_v59  ;;  %v3560_v55 = vadd.f32 %v3544_v31, %v3519_v41  ;;  %v3432_v37 = vpop.f32.mrb[81].mxu0  ;;  %v3521_v2 = vpop.f32.mrb[81].mxu1  ;;  %v3557_v59 = vmul.f32 %v10793_v25, %v3349_v30 }
 0x994   :  { %v10954_v8 = vadd.f32 %v3543_v34, %v3432_v37  ;;  %v10956_v3 = vadd.f32 %v3545_v32, %v3521_v2  ;;  %v3555_v32 = vmul.f32 %v10787_v45, %v3260_v57 }
 0x995   :  { %v10960_v13 = vmax.f32 %v3558_v1, 0.0  ;;  %v10970_v42 = vmax.f32 %v3560_v55, 0.0 }
 0x996   :  { %v3436_v62 = vpop.f32.mrb[82].mxu0  ;;  %v3525_v0 = vpop.f32.mrb[82].mxu1  ;;  %v11057_v45 = vmax.f32 %v10954_v8, 0.0  ;;  %v11064_v25 = vmax.f32 %v10956_v3, 0.0 }
 0x997   :  { %13794 = vst [vmem:[#allocation9_spill] sm:$0xff] %v10960_v13  ;;  %v3562_v11 = vadd.f32 %v3546_v35, %v3436_v62  ;;  %v3564_v39 = vadd.f32 %v3548_v46, %v3525_v0  ;;  %3602 = vrot.lane.b32.xlu0 %v10960_v13, %s8392_s17  ;;  %v3438_v37 = vpop.f32.mrb[83].mxu0  ;;  %v3527_v2 = vpop.f32.mrb[83].mxu1  ;;  %13795 = vst [vmem:[#allocation8_spill] sm:$0xff] %v10970_v42  ;;  %v3553_v35 = vmul.f32 %v10777_v7, %v3343_v63 }
 0x998   :  { %v3563_v54 = vadd.f32 %v3547_v50, %v3438_v37  ;;  %v10966_v31 = vadd.f32 %v3549_v53, %v3527_v2 }
 0x999   :  { %v10972_v27 = vmax.f32 %v3562_v11, 0.0  ;;  %v10992_v63 = vmax.f32 %v3564_v39, 0.0 }
 0x99a   :  { %v3442_v51 = vpop.f32.mrb[84].mxu0  ;;  %v3531_v48 = vpop.f32.mrb[84].mxu1  ;;  %v11066_v58 = vmax.f32 %v3563_v54, 0.0  ;;  %v11073_v8 = vmax.f32 %v10966_v31, 0.0 }
 0x99b   :  { %13796 = vst [vmem:[#allocation11_spill] sm:$0xff] %v10972_v27  ;;  %v10976_v16 = vadd.f32 %v3550_v22, %v3442_v51  ;;  %v10978_v34 = vadd.f32 %v3552_v28, %v3531_v48  ;;  %3618 = vrot.lane.b32.xlu0 %v10970_v42, %s8392_s17  ;;  %v3533_v60 = vpop.f32.mrb[85].mxu1  ;;  %3604 = vrot.lane.b32.xlu1 %v10972_v27, %s8392_s17  ;;  %v3444_v9 = vpop.f32.mrb[85].mxu0  ;;  %13797 = vst [vmem:[#allocation105_spill] sm:$0xff] %v10992_v63 }
 0x99c   :  { %v10986_v6 = vadd.f32 %v3553_v35, %v3533_v60  ;;  %v10988_v7 = vadd.f32 %v3551_v24, %v3444_v9 }
 0x99d   :  { %v11130_v57 = vmax.f32 %v10976_v16, 0.0  ;;  %v11141_v62 = vmax.f32 %v10978_v34, 0.0 }
 0x99e   :  { %v3448_v41 = vpop.f32.mrb[86].mxu0  ;;  %v3537_v1 = vpop.f32.mrb[86].mxu1 }
 0x99f   :  { %v10996_v55 = vadd.f32 %v3554_v26, %v3448_v41  ;;  %v10998_v46 = vadd.f32 %v3556_v12, %v3537_v1  ;;  %3666 = vrot.lane.b32.xlu0 %v10960_v13, %s8393_s22  ;;  %v3539_v50 = vpop.f32.mrb[87].mxu1  ;;  %3620 = vrot.lane.b32.xlu1 %v10992_v63, %s8392_s17  ;;  %v3450_v43 = vpop.f32.mrb[87].mxu0  ;;  %13798 = vst [vmem:[#allocation103_spill] sm:$0xff] %v11130_v57  ;;  %13799 = vst [vmem:[#allocation88_spill] sm:$0xff] %v11141_v62 }
 0x9a0   :  { %v11004_v52 = vadd.f32 %v3557_v59, %v3539_v50  ;;  %v11006_v18 = vadd.f32 %v3555_v32, %v3450_v43 }
 0x9a1   :  { %v11144_v0 = vmax.f32 %v10996_v55, 0.0  ;;  %v11155_v37 = vmax.f32 %v10998_v46, 0.0 }
 0x9a2   :  { %v11292_v56 = vmax.f32 %v11004_v52, 0.0 }
 0x9a3   :  { %3682 = vrot.lane.b32.xlu0 %v10970_v42, %s8393_s22  ;;  %3668 = vrot.lane.b32.xlu1 %v10972_v27, %s8393_s22  ;;  %13800 = vst [vmem:[#allocation72_spill] sm:$0xff] %v11144_v0  ;;  %13801 = vst [vmem:[#allocation89_spill] sm:$0xff] %v11155_v37 }
 0x9a4   :  { %13820 = vst [vmem:[#allocation78_spill] sm:$0xff] %v11292_v56 }
 0x9a7   :  { %3730 = vrot.lane.b32.xlu0 %v10960_v13, %s8394_s23  ;;  %3684 = vrot.lane.b32.xlu1 %v10992_v63, %s8393_s22 }
 0x9ab   :  { %3746 = vrot.lane.b32.xlu0 %v10970_v42, %s8394_s23  ;;  %3732 = vrot.lane.b32.xlu1 %v10972_v27, %s8394_s23 }
 0x9af   :  { %3794 = vrot.lane.b32.xlu0 %v10960_v13, %s8395_s24  ;;  %3748 = vrot.lane.b32.xlu1 %v10992_v63, %s8394_s23 }
 0x9b3   :  { %3810 = vrot.lane.b32.xlu0 %v10970_v42, %s8395_s24  ;;  %3796 = vrot.lane.b32.xlu1 %v10972_v27, %s8395_s24 }
 0x9b7   :  { %3858 = vrot.lane.b32.xlu0 %v10960_v13, %s8396_s25  ;;  %3812 = vrot.lane.b32.xlu1 %v10992_v63, %s8395_s24 }
 0x9bb   :  { %3874 = vrot.lane.b32.xlu0 %v10970_v42, %s8396_s25  ;;  %3860 = vrot.lane.b32.xlu1 %v10972_v27, %s8396_s25 }
 0x9bf   :  { %3922 = vrot.lane.b32.xlu0 %v10960_v13, %s13602_s12  ;;  %3876 = vrot.lane.b32.xlu1 %v10992_v63, %s8396_s25 }
 0x9c3   :  { %3938 = vrot.lane.b32.xlu0 %v10970_v42, %s13602_s12  ;;  %3924 = vrot.lane.b32.xlu1 %v10972_v27, %s13602_s12 }
 0x9c7   :  { %3986 = vrot.lane.b32.xlu0 %v10960_v13, %s13603_s29  ;;  %3940 = vrot.lane.b32.xlu1 %v10992_v63, %s13602_s12 }
 0x9cb   :  { %4002 = vrot.lane.b32.xlu0 %v10970_v42, %s13603_s29  ;;  %3988 = vrot.lane.b32.xlu1 %v10972_v27, %s13603_s29 }
 0x9cf   :  { %4050 = vrot.lane.b32.xlu0 %v10960_v13, %s13604_s30  ;;  %4004 = vrot.lane.b32.xlu1 %v10992_v63, %s13603_s29 }
 0x9d3   :  { %3610 = vrot.lane.b32.xlu0 %v11057_v45, %s8392_s17  ;;  %4052 = vrot.lane.b32.xlu1 %v10972_v27, %s13604_s30 }
 0x9d7   :  { %3626 = vrot.lane.b32.xlu0 %v11064_v25, %s8392_s17  ;;  %3612 = vrot.lane.b32.xlu1 %v11066_v58, %s8392_s17 }
 0x9db   :  { %3674 = vrot.lane.b32.xlu0 %v11057_v45, %s8393_s22  ;;  %3628 = vrot.lane.b32.xlu1 %v11073_v8, %s8392_s17 }
 0x9df   :  { %3690 = vrot.lane.b32.xlu0 %v11064_v25, %s8393_s22  ;;  %3676 = vrot.lane.b32.xlu1 %v11066_v58, %s8393_s22 }
 0x9e3   :  { %3738 = vrot.lane.b32.xlu0 %v11057_v45, %s8394_s23  ;;  %3692 = vrot.lane.b32.xlu1 %v11073_v8, %s8393_s22 }
 0x9e7   :  { %3754 = vrot.lane.b32.xlu0 %v11064_v25, %s8394_s23  ;;  %3740 = vrot.lane.b32.xlu1 %v11066_v58, %s8394_s23 }
 0x9eb   :  { %3802 = vrot.lane.b32.xlu0 %v11057_v45, %s8395_s24  ;;  %3756 = vrot.lane.b32.xlu1 %v11073_v8, %s8394_s23 }
 0x9ef   :  { %3818 = vrot.lane.b32.xlu0 %v11064_v25, %s8395_s24  ;;  %3804 = vrot.lane.b32.xlu1 %v11066_v58, %s8395_s24 }
 0x9f3   :  { %3866 = vrot.lane.b32.xlu0 %v11057_v45, %s8396_s25  ;;  %3820 = vrot.lane.b32.xlu1 %v11073_v8, %s8395_s24 }
 0x9f7   :  { %3882 = vrot.lane.b32.xlu0 %v11064_v25, %s8396_s25  ;;  %3868 = vrot.lane.b32.xlu1 %v11066_v58, %s8396_s25 }
 0x9fb   :  { %3930 = vrot.lane.b32.xlu0 %v11057_v45, %s13602_s12  ;;  %3884 = vrot.lane.b32.xlu1 %v11073_v8, %s8396_s25 }
 0x9ff   :  { %3946 = vrot.lane.b32.xlu0 %v11064_v25, %s13602_s12  ;;  %3932 = vrot.lane.b32.xlu1 %v11066_v58, %s13602_s12 }
 0xa03   :  { %3994 = vrot.lane.b32.xlu0 %v11057_v45, %s13603_s29  ;;  %3948 = vrot.lane.b32.xlu1 %v11073_v8, %s13602_s12 }
 0xa07   :  { %4010 = vrot.lane.b32.xlu0 %v11064_v25, %s13603_s29  ;;  %3996 = vrot.lane.b32.xlu1 %v11066_v58, %s13603_s29 }
 0xa09   :  { %v11123_v3 = vpop.permute.xlu0 %3602 }
 0xa0b   :  { %4058 = vrot.lane.b32.xlu0 %v11057_v45, %s13604_s30  ;;  %4012 = vrot.lane.b32.xlu1 %v11073_v8, %s13603_s29 }
 0xa0d   :  { %v11132_v30 = vpop.permute.xlu1 %3604  ;;  %v11134_v53 = vpop.permute.xlu0 %3618 }
 0xa0f   :  { %4060 = vrot.lane.b32.xlu1 %v11066_v58, %s13604_s30  ;;  %3606 = vrot.lane.b32.xlu0 %v11130_v57, %s8392_s17 }
 0xa11   :  { %v11146_v11 = vpop.permute.xlu1 %3620  ;;  %v11148_v39 = vpop.permute.xlu0 %3666 }
 0xa13   :  { %3622 = vrot.lane.b32.xlu0 %v11141_v62, %s8392_s17  ;;  %3608 = vrot.lane.b32.xlu1 %v11144_v0, %s8392_s17 }
 0xa15   :  { %v11157_v2 = vpop.permute.xlu1 %3668  ;;  %v11159_v54 = vpop.permute.xlu0 %3682 }
 0xa17   :  { %3670 = vrot.lane.b32.xlu0 %v11130_v57, %s8393_s22  ;;  %3624 = vrot.lane.b32.xlu1 %v11155_v37, %s8392_s17 }
 0xa19   :  { %v11165_v31 = vpop.permute.xlu1 %3684  ;;  %v11167_v22 = vpop.permute.xlu0 %3730 }
 0xa1b   :  { %3686 = vrot.lane.b32.xlu0 %v11141_v62, %s8393_s22  ;;  %3672 = vrot.lane.b32.xlu1 %v11144_v0, %s8393_s22 }
 0xa1d   :  { %v11173_v28 = vpop.permute.xlu1 %3732  ;;  %v11175_v24 = vpop.permute.xlu0 %3746 }
 0xa1f   :  { %3734 = vrot.lane.b32.xlu0 %v11130_v57, %s8394_s23  ;;  %3688 = vrot.lane.b32.xlu1 %v11155_v37, %s8393_s22 }
 0xa21   :  { %v11181_v35 = vpop.permute.xlu1 %3748  ;;  %v11183_v51 = vpop.permute.xlu0 %3794 }
 0xa23   :  { %3750 = vrot.lane.b32.xlu0 %v11141_v62, %s8394_s23  ;;  %3736 = vrot.lane.b32.xlu1 %v11144_v0, %s8394_s23 }
 0xa25   :  { %v11189_v48 = vpop.permute.xlu1 %3796  ;;  %v11191_v16 = vpop.permute.xlu0 %3810 }
 0xa26   :  { %13802 = vst [vmem:[#allocation104_spill] sm:$0xff] %v11189_v48  ;;  %v8408_v48 = vmov 6  }
 0xa27   :  { %3798 = vrot.lane.b32.xlu0 %v11130_v57, %s8395_s24  ;;  %3752 = vrot.lane.b32.xlu1 %v11155_v37, %s8394_s23 }
 0xa28   :  { %8323 = vset.pattern.permute.xlu0 %v8408_v48  ;;  %8324 = vset.pattern.permute.xlu1 %v8408_v48 }
 0xa29   :  { %v11197_v34 = vpop.permute.xlu1 %3812  ;;  %v11199_v60 = vpop.permute.xlu0 %3858 }
 0xa2a   :  { %13803 = vst [vmem:[#allocation73_spill] sm:$0xff] %v11199_v60 }
 0xa2b   :  { %3814 = vrot.lane.b32.xlu0 %v11141_v62, %s8395_s24  ;;  %3800 = vrot.lane.b32.xlu1 %v11144_v0, %s8395_s24 }
 0xa2d   :  { %v11205_v9 = vpop.permute.xlu1 %3860  ;;  %v11207_v26 = vpop.permute.xlu0 %3874 }
 0xa2e   :  { %13804 = vst [vmem:[#allocation108_spill] sm:$0xff] %v11205_v9  ;;  %13805 = vst [vmem:[#allocation106_spill] sm:$0xff] %v11207_v26  ;;  %v13822_v9 = vld [vmem:[#allocation6_spill] sm:$0xff] }
 0xa2f   :  { %3862 = vrot.lane.b32.xlu0 %v11130_v57, %s8396_s25  ;;  %3816 = vrot.lane.b32.xlu1 %v11155_v37, %s8395_s24 }
 0xa31   :  { %v11213_v12 = vpop.permute.xlu1 %3876  ;;  %v11215_v32 = vpop.permute.xlu0 %3922 }
 0xa32   :  { %13806 = vst [vmem:[#allocation90_spill] sm:$0xff] %v11213_v12  ;;  %13807 = vst [vmem:[#allocation107_spill] sm:$0xff] %v11215_v32 }
 0xa33   :  { %3878 = vrot.lane.b32.xlu0 %v11141_v62, %s8396_s25  ;;  %3864 = vrot.lane.b32.xlu1 %v11144_v0, %s8396_s25 }
 0xa35   :  { %v11221_v59 = vpop.permute.xlu1 %3924  ;;  %v11223_v41 = vpop.permute.xlu0 %3938 }
 0xa36   :  { %13808 = vst [vmem:[#allocation76_spill] sm:$0xff] %v11221_v59  ;;  %13809 = vst [vmem:[#allocation91_spill] sm:$0xff] %v11223_v41 }
 0xa37   :  { %3926 = vrot.lane.b32.xlu0 %v11130_v57, %s13602_s12  ;;  %3880 = vrot.lane.b32.xlu1 %v11155_v37, %s8396_s25 }
 0xa39   :  { %v11229_v1 = vpop.permute.xlu1 %3940  ;;  %v11231_v55 = vpop.permute.xlu0 %3986 }
 0xa3a   :  { %13810 = vst [vmem:[#allocation74_spill] sm:$0xff] %v11229_v1  ;;  %13811 = vst [vmem:[#allocation110_spill] sm:$0xff] %v11231_v55 }
 0xa3b   :  { %3942 = vrot.lane.b32.xlu0 %v11141_v62, %s13602_s12  ;;  %3928 = vrot.lane.b32.xlu1 %v11144_v0, %s13602_s12 }
 0xa3d   :  { %v11237_v46 = vpop.permute.xlu1 %3988  ;;  %v11239_v50 = vpop.permute.xlu0 %4002 }
 0xa3e   :  { %13812 = vst [vmem:[#allocation112_spill] sm:$0xff] %v11237_v46  ;;  %13813 = vst [vmem:[#allocation109_spill] sm:$0xff] %v11239_v50  ;;  %v11254_v46 = vmax.f32 %v10988_v7, 0.0  ;;  %v11269_v7 = vmax.f32 %v11006_v18, 0.0 }
 0xa3f   :  { %3990 = vrot.lane.b32.xlu0 %v11130_v57, %s13603_s29  ;;  %3944 = vrot.lane.b32.xlu1 %v11155_v37, %s13602_s12 }
 0xa40   :  { %13816 = vst [vmem:[#allocation93_spill] sm:$0xff] %v11254_v46 }
 0xa41   :  { %v11245_v43 = vpop.permute.xlu1 %4004  ;;  %v11247_v19 = vpop.permute.xlu0 %4050 }
 0xa42   :  { %13814 = vst [vmem:[#allocation77_spill] sm:$0xff] %v11245_v43  ;;  %13815 = vst [vmem:[#allocation92_spill] sm:$0xff] %v11247_v19  ;;  %v11266_v43 = vmax.f32 %v10986_v6, 0.0 }
 0xa43   :  { %4006 = vrot.lane.b32.xlu0 %v11141_v62, %s13603_s29  ;;  %3992 = vrot.lane.b32.xlu1 %v11144_v0, %s13603_s29 }
 0xa44   :  { %13818 = vst [vmem:[#allocation95_spill] sm:$0xff] %v11266_v43 }
 0xa45   :  { %v11256_v13 = vpop.permute.xlu1 %4052  ;;  %v3611_v27 = vpop.permute.xlu0 %3610 }
 0xa46   :  { %13817 = vst [vmem:[#allocation80_spill] sm:$0xff] %v11256_v13  ;;  %v3642_v19 = vsel %vm146_vm0, %v11123_v3, %v3611_v27  ;;  %v3638_v36 = vsel %vm146_vm0, %v3611_v27, %v11134_v53  ;;  %v13823_v27 = vld [vmem:[#allocation7_spill] sm:$0xff] }
 0xa47   :  { %3614 = vrot.lane.b32.xlu0 %v11254_v46, %s8392_s17  ;;  %4008 = vrot.lane.b32.xlu1 %v11155_v37, %s13603_s29  ;;  %v3651_v32 = vmul.f32 %v3642_v19, %v13819_v21 }
 0xa49   :  { %v3613_v55 = vpop.permute.xlu1 %3612  ;;  %v3627_v50 = vpop.permute.xlu0 %3626 }
 0xa4a   :  { %v3643_v13 = vsel %vm146_vm0, %v11132_v30, %v3613_v55  ;;  %v3634_v6 = vsel %vm146_vm0, %v11134_v53, %v3627_v50  ;;  %v3646_v18 = vsel %vm146_vm0, %v3627_v50, %v11123_v3  ;;  %v3639_v19 = vsel %vm146_vm0, %v3613_v55, %v11146_v11  ;;  %v13821_v55 = vld [vmem:[#allocation5_spill] sm:$0xff] }
 0xa4b   :  { %v3655_v59 = vmul.f32 %v3643_v13, %v13819_v21  ;;  %3630 = vrot.lane.b32.xlu0 %v11266_v43, %s8392_s17  ;;  %3616 = vrot.lane.b32.xlu1 %v11269_v7, %s8392_s17  ;;  %v3650_v12 = vmul.f32 %v3646_v18, %v13821_v55  ;;  %v3653_v47 = vmul.f32 %v3634_v6, %v13822_v9 }
 0xa4c   :  { %v3656_v53 = vmul.f32 %v3639_v19, %v13823_v27  ;;  %v3652_v6 = vmul.f32 %v3638_v36, %v13823_v27 }
 0xa4d   :  { %v3629_v1 = vpop.permute.xlu1 %3628  ;;  %v11289_v13 = vpop.permute.xlu0 %3674  ;;  %v7904_v41 = vpack.c.bf16 %v3655_v59, %v3651_v32 }
 0xa4e   :  { %v3635_v3 = vsel %vm146_vm0, %v11146_v11, %v3629_v1  ;;  %v3647_v50 = vsel %vm146_vm0, %v3629_v1, %v11132_v30  ;;  %v7978_v18 = vpack.c.bf16 %v3656_v53, %v3652_v6 }
 0xa4f   :  { %v3654_v32 = vmul.f32 %v3647_v50, %v13821_v55  ;;  %v3657_v52 = vmul.f32 %v3635_v3, %v13822_v9  ;;  %3678 = vrot.lane.b32.xlu0 %v11254_v46, %s8393_s22  ;;  %3632 = vrot.lane.b32.xlu1 %v11292_v56, %s8392_s17 }
 0xa50   :  { %7905 = vmatprep.subr.bf16.mxu0 %v7904_v41 }
 0xa51   :  { %v7906_v11 = vpack.c.bf16 %v3654_v32, %v3650_v12  ;;  %v11312_v59 = vpop.permute.xlu1 %3676  ;;  %v11314_v30 = vpop.permute.xlu0 %3690  ;;  %v7976_v1 = vpack.c.bf16 %v3657_v52, %v3653_v47 }
 0xa53   :  { %3694 = vrot.lane.b32.xlu0 %v11266_v43, %s8393_s22  ;;  %3680 = vrot.lane.b32.xlu1 %v11269_v7, %s8393_s22 }
 0xa54   :  { %7907 = vmatpush1.bf16.msra.mxu0 %v7906_v11  ;;  %7977 = vmatprep.subr.bf16.mxu1 %v7976_v1 }
 0xa55   :  { %v11321_v19 = vpop.permute.xlu1 %3692  ;;  %v11323_v41 = vpop.permute.xlu0 %3738  ;;  %7979 = vmatpush1.bf16.msra.mxu1 %v7978_v18 }
 0xa57   :  { %3742 = vrot.lane.b32.xlu0 %v11254_v46, %s8394_s23  ;;  %3696 = vrot.lane.b32.xlu1 %v11292_v56, %s8393_s22 }
 0xa59   :  { %v11329_v47 = vpop.permute.xlu1 %3740  ;;  %v11331_v36 = vpop.permute.xlu0 %3754 }
 0xa5b   :  { %3758 = vrot.lane.b32.xlu0 %v11266_v43, %s8394_s23  ;;  %3744 = vrot.lane.b32.xlu1 %v11269_v7, %s8394_s23 }
 0xa5d   :  { %v11337_v12 = vpop.permute.xlu1 %3756  ;;  %v11339_v3 = vpop.permute.xlu0 %3802 }
 0xa5f   :  { %3806 = vrot.lane.b32.xlu0 %v11254_v46, %s8395_s24  ;;  %3760 = vrot.lane.b32.xlu1 %v11292_v56, %s8394_s23 }
 0xa61   :  { %v11345_v50 = vpop.permute.xlu1 %3804  ;;  %v11347_v32 = vpop.permute.xlu0 %3818 }
 0xa62   :  { %13824 = vst [vmem:[#allocation75_spill] sm:$0xff] %v11347_v32 }
 0xa63   :  { %3822 = vrot.lane.b32.xlu0 %v11266_v43, %s8395_s24  ;;  %3808 = vrot.lane.b32.xlu1 %v11269_v7, %s8395_s24 }
 0xa65   :  { %v11353_v52 = vpop.permute.xlu1 %3820  ;;  %v11355_v53 = vpop.permute.xlu0 %3866 }
 0xa66   :  { %13825 = vst [vmem:[#allocation97_spill] sm:$0xff] %v11353_v52  ;;  %13826 = vst [vmem:[#allocation94_spill] sm:$0xff] %v11355_v53 }
 0xa67   :  { %4066 = vrot.lane.b32.xlu0 %v10970_v42, %s13604_s30  ;;  %3824 = vrot.lane.b32.xlu1 %v11292_v56, %s8395_s24 }
 0xa69   :  { %v11361_v11 = vpop.permute.xlu1 %3868  ;;  %v11363_v1 = vpop.permute.xlu0 %3882 }
 0xa6a   :  { %13827 = vst [vmem:[#allocation81_spill] sm:$0xff] %v11361_v11  ;;  %13828 = vst [vmem:[#allocation96_spill] sm:$0xff] %v11363_v1 }
 0xa6b   :  { %3870 = vrot.lane.b32.xlu0 %v11254_v46, %s8396_s25  ;;  %4068 = vrot.lane.b32.xlu1 %v10992_v63, %s13604_s30 }
 0xa6d   :  { %v11369_v6 = vpop.permute.xlu1 %3884  ;;  %v11371_v18 = vpop.permute.xlu0 %3930 }
 0xa6e   :  { %13829 = vst [vmem:[#allocation79_spill] sm:$0xff] %v11369_v6  ;;  %13830 = vst [vmem:[#allocation67_spill] sm:$0xff] %v11371_v18 }
 0xa6f   :  { %3886 = vrot.lane.b32.xlu0 %v11266_v43, %s8396_s25  ;;  %4076 = vrot.lane.b32.xlu1 %v11073_v8, %s13604_s30 }
 0xa71   :  { %v11377_v26 = vpop.permute.xlu1 %3932  ;;  %v11379_v11 = vpop.permute.xlu0 %3946 }
 0xa72   :  { %13831 = vst [vmem:[#allocation65_spill] sm:$0xff] %v11377_v26  ;;  %13832 = vst [vmem:[#allocation113_spill] sm:$0xff] %v11379_v11 }
 0xa73   :  { %3934 = vrot.lane.b32.xlu0 %v11254_v46, %s13602_s12  ;;  %3872 = vrot.lane.b32.xlu1 %v11269_v7, %s8396_s25 }
 0xa75   :  { %v11385_v1 = vpop.permute.xlu1 %3948  ;;  %v11387_v6 = vpop.permute.xlu0 %3994 }
 0xa76   :  { %13833 = vst [vmem:[#allocation66_spill] sm:$0xff] %v11385_v1  ;;  %13834 = vst [vmem:[#allocation87_spill] sm:$0xff] %v11387_v6 }
 0xa77   :  { %3950 = vrot.lane.b32.xlu0 %v11266_v43, %s13602_s12  ;;  %3888 = vrot.lane.b32.xlu1 %v11292_v56, %s8396_s25 }
 0xa79   :  { %v11393_v18 = vpop.permute.xlu1 %3996  ;;  %v11395_v26 = vpop.permute.xlu0 %4010 }
 0xa7a   :  { %13835 = vst [vmem:[#allocation86_spill] sm:$0xff] %v11393_v18  ;;  %13836 = vst [vmem:[#allocation98_spill] sm:$0xff] %v11395_v26  ;;  %v3591_v26 = vld [vmem:[%s13212_s5 + $0x8] sm:$0xff] }
 0xa7b   :  { %3998 = vrot.lane.b32.xlu0 %v11254_v46, %s13603_s29  ;;  %3936 = vrot.lane.b32.xlu1 %v11269_v7, %s13602_s12 }
 0xa7c   :  { %4206 = vmatprep.mubr.f32.mxu0 %v3591_v26  ;;  %4384 = vmatprep.mubr.f32.mxu1 %v3591_v26 }
 0xa7d   :  { %v11401_v11 = vpop.permute.xlu1 %4012  ;;  %v11403_v1 = vpop.permute.xlu0 %4058 }
 0xa7e   :  { %13837 = vst [vmem:[#allocation116_spill] sm:$0xff] %v11401_v11  ;;  %13838 = vst [vmem:[#allocation114_spill] sm:$0xff] %v11403_v1 }
 0xa7f   :  { %4014 = vrot.lane.b32.xlu0 %v11266_v43, %s13603_s29  ;;  %3952 = vrot.lane.b32.xlu1 %v11292_v56, %s13602_s12 }
 0xa81   :  { %v11409_v6 = vpop.permute.xlu1 %4060  ;;  %v11411_v18 = vpop.permute.xlu0 %3606 }
 0xa82   :  { %13839 = vst [vmem:[#allocation99_spill] sm:$0xff] %v11409_v6 }
 0xa83   :  { %4074 = vrot.lane.b32.xlu0 %v11064_v25, %s13604_s30  ;;  %4000 = vrot.lane.b32.xlu1 %v11269_v7, %s13603_s29 }
 0xa85   :  { %v11420_v1 = vpop.permute.xlu1 %3608  ;;  %v11422_v11 = vpop.permute.xlu0 %3622 }
 0xa87   :  { %4054 = vrot.lane.b32.xlu0 %v11130_v57, %s13604_s30  ;;  %4016 = vrot.lane.b32.xlu1 %v11292_v56, %s13603_s29 }
 0xa89   :  { %v11428_v6 = vpop.permute.xlu1 %3624  ;;  %v11430_v60 = vpop.permute.xlu0 %3670 }
 0xa8a   :  { %13840 = vst [vmem:[#allocation82_spill] sm:$0xff] %v11430_v60 }
 0xa8b   :  { %4062 = vrot.lane.b32.xlu0 %v11254_v46, %s13604_s30  ;;  %4056 = vrot.lane.b32.xlu1 %v11144_v0, %s13604_s30  ;;  %v13862_v0 = vld [vmem:[#allocation75_spill] sm:$0xff] }
 0xa8d   :  { %v11436_v26 = vpop.permute.xlu1 %3672  ;;  %v11438_v53 = vpop.permute.xlu0 %3686 }
 0xa8e   :  { %13841 = vst [vmem:[#allocation111_spill] sm:$0xff] %v11436_v26  ;;  %13842 = vst [vmem:[#allocation70_spill] sm:$0xff] %v11438_v53 }
 0xa8f   :  { %4070 = vrot.lane.b32.xlu0 %v11141_v62, %s13604_s30  ;;  %4072 = vrot.lane.b32.xlu1 %v11155_v37, %s13604_s30 }
 0xa91   :  { %v11444_v52 = vpop.permute.xlu1 %3688  ;;  %v11446_v9 = vpop.permute.xlu0 %3734  ;;  %v13866_v63 = vld [vmem:[#allocation82_spill] sm:$0xff] }
 0xa92   :  { %13843 = vst [vmem:[#allocation68_spill] sm:$0xff] %v11444_v52  ;;  %13844 = vst [vmem:[#allocation84_spill] sm:$0xff] %v11446_v9 }
 0xa93   :  { %4078 = vrot.lane.b32.xlu0 %v11266_v43, %s13604_s30  ;;  %4064 = vrot.lane.b32.xlu1 %v11269_v7, %s13604_s30 }
 0xa95   :  { %v11452_v60 = vpop.permute.xlu1 %3736  ;;  %v11454_v26 = vpop.permute.xlu0 %3750 }
 0xa96   :  { %13845 = vst [vmem:[#allocation71_spill] sm:$0xff] %v11454_v26 }
 0xa97   :  { %4080 = vrot.lane.b32.xlu1 %v11292_v56, %s13604_s30  ;;  %4115 = vperm.xlu0 %8323, %v10868_v15   ;;  %v13864_v56 = vld [vmem:[#allocation5_spill] sm:$0xff] }
 0xa99   :  { %v11458_v53 = vpop.permute.xlu1 %3752  ;;  %v11460_v55 = vpop.permute.xlu0 %3798 }
 0xa9a   :  { %13846 = vst [vmem:[#allocation69_spill] sm:$0xff] %v11458_v53 }
 0xa9b   :  { %4119 = vperm.xlu1 %8324, %v10862_v49   ;;  %4127 = vperm.xlu0 %8323, %v10880_v20   ;;  %v3703_v49 = vsel %vm179_vm1, %v11312_v59, %v11165_v31 }
 0xa9d   :  { %v11462_v52 = vpop.permute.xlu1 %3800  ;;  %v11464_v9 = vpop.permute.xlu0 %3814 }
 0xa9e   :  { %13847 = vst [vmem:[#allocation101_spill] sm:$0xff] %v11462_v52  ;;  %13848 = vst [vmem:[#allocation117_spill] sm:$0xff] %v11464_v9 }
 0xa9f   :  { %4123 = vperm.xlu1 %8324, %v10874_v4   ;;  %v11517_v4 = vmul.f32 %v3703_v49, %v8664_v38  ;;  %v3698_v49 = vsel %vm179_vm1, %v11159_v54, %v11314_v30 }
 0xaa1   :  { %v11466_v27 = vpop.permute.xlu1 %3816  ;;  %v11468_v32 = vpop.permute.xlu0 %3862 }
 0xaa2   :  { %13849 = vst [vmem:[#allocation115_spill] sm:$0xff] %v11466_v27  ;;  %13850 = vst [vmem:[#allocation120_spill] sm:$0xff] %v11468_v32 }
 0xaa5   :  { %v11472_v26 = vpop.permute.xlu1 %3864  ;;  %v11474_v53 = vpop.permute.xlu0 %3878 }
 0xaa6   :  { %13851 = vst [vmem:[#allocation118_spill] sm:$0xff] %v11472_v26  ;;  %v3699_v26 = vsel %vm179_vm1, %v11165_v31, %v11321_v19  ;;  %v3710_v31 = vsel %vm179_vm1, %v11314_v30, %v11148_v39 }
 0xaa7   :  { %v11561_v30 = vmul.f32 %v3699_v26, %v8653_v33 }
 0xaa9   :  { %v11478_v9 = vpop.permute.xlu1 %3880  ;;  %v11480_v27 = vpop.permute.xlu0 %3926 }
 0xaaa   :  { %13852 = vst [vmem:[#allocation100_spill] sm:$0xff] %v11478_v9  ;;  %13853 = vst [vmem:[#allocation83_spill] sm:$0xff] %v11480_v27 }
 0xaad   :  { %v11482_v32 = vpop.permute.xlu1 %3928  ;;  %v11484_v52 = vpop.permute.xlu0 %3942 }
 0xaae   :  { %13854 = vst [vmem:[#allocation121_spill] sm:$0xff] %v11482_v32  ;;  %13855 = vst [vmem:[#allocation102_spill] sm:$0xff] %v11484_v52  ;;  %v3706_v32 = vsel %vm179_vm1, %v11148_v39, %v11289_v13 }
 0xab1   :  { %v11486_v48 = vpop.permute.xlu1 %3944  ;;  %v11488_v15 = vpop.permute.xlu0 %3990 }
 0xab2   :  { %13856 = vst [vmem:[#allocation85_spill] sm:$0xff] %v11486_v48  ;;  %13857 = vst [vmem:[#allocation119_spill] sm:$0xff] %v11488_v15  ;;  %v3702_v48 = vsel %vm179_vm1, %v11289_v13, %v11159_v54  ;;  %v3707_v15 = vsel %vm179_vm1, %v11157_v2, %v11312_v59  ;;  %v3711_v59 = vsel %vm179_vm1, %v11321_v19, %v11157_v2 }
 0xab3   :  { %v11544_v19 = vmul.f32 %v3702_v48, %v8664_v38  ;;  %v11547_v20 = vmul.f32 %v3707_v15, %v8628_v23  ;;  %v3767_v13 = vsel %vm212_vm2, %v11329_v47, %v11181_v35  ;;  %v3771_v54 = vsel %vm212_vm2, %v11173_v28, %v11329_v47 }
 0xab4   :  { %v11558_v39 = vmul.f32 %v3711_v59, %v8642_v29  ;;  %v3766_v48 = vsel %vm212_vm2, %v11323_v41, %v11175_v24  ;;  %v3770_v15 = vsel %vm212_vm2, %v11167_v22, %v11323_v41  ;;  %v11574_v47 = vmul.f32 %v3706_v32, %v8628_v23 }
 0xab5   :  { %v11508_v27 = vpop.permute.xlu1 %3992  ;;  %v11510_v52 = vpop.permute.xlu0 %4006  ;;  %v11579_v59 = vmul.f32 %v3710_v31, %v8642_v29  ;;  %v11585_v62 = vmul.f32 %v3771_v54, %v8685_v61  ;;  %v11588_v41 = vmul.f32 %v3767_v13, %v8696_v10  ;;  %v3762_v32 = vsel %vm212_vm2, %v11175_v24, %v11331_v36 }
 0xab6   :  { %13858 = vst [vmem:[#allocation123_spill] sm:$0xff] %v11508_v27  ;;  %13859 = vst [vmem:[#allocation122_spill] sm:$0xff] %v11510_v52  ;;  %v11582_v52 = vmul.f32 %v3698_v49, %v8653_v33  ;;  %v3774_v31 = vsel %vm212_vm2, %v11331_v36, %v11167_v22  ;;  %v11599_v26 = vmul.f32 %v3770_v15, %v8685_v61 }
 0xab7   :  { %v11602_v49 = vmul.f32 %v3766_v48, %v8696_v10  ;;  %v3775_v13 = vsel %vm212_vm2, %v11337_v12, %v11173_v28  ;;  %v7912_v54 = vpack.c.bf16 %v11547_v20, %v11574_v47  ;;  %v3763_v22 = vsel %vm212_vm2, %v11181_v35, %v11337_v12 }
 0xab8   :  { %v7984_v15 = vpack.c.bf16 %v11561_v30, %v11582_v52  ;;  %v11622_v28 = vmul.f32 %v3774_v31, %v8693_v5  ;;  %v11625_v20 = vmul.f32 %v3762_v32, %v13661_v40  ;;  %v3830_v47 = vsel %vm245_vm3, %v11339_v3, %v11191_v16 }
 0xab9   :  { %v11571_v2 = vpop.permute.xlu1 %4008  ;;  %v3615_v27 = vpop.permute.xlu0 %3614  ;;  %v3834_v35 = vsel %vm245_vm3, %v11183_v51, %v11339_v3  ;;  %v11638_v30 = vmul.f32 %v3775_v13, %v8693_v5  ;;  %v11646_v24 = vmul.f32 %v3763_v22, %v13661_v40  ;;  %v11657_v37 = vmul.f32 %v3830_v47, %v13663_v17 }
 0xaba   :  { %13860 = vst [vmem:[#allocation4_spill] sm:$0xff] %v11571_v2  ;;  %v3644_v36 = vsel %vm146_vm0, %v11411_v18, %v3615_v27  ;;  %v11654_v13 = vmul.f32 %v3834_v35, %v13662_v44  ;;  %v13861_v35 = vld [vmem:[#allocation104_spill] sm:$0xff] }
 0xabb   :  { %v3659_v2 = vmul.f32 %v3644_v36, %v13819_v21  ;;  %v3835_v47 = vsel %vm245_vm3, %v13861_v35, %v11345_v50 }
 0xabd   :  { %v3631_v48 = vpop.permute.xlu0 %3630  ;;  %v3617_v12 = vpop.permute.xlu1 %3616 }
 0xabe   :  { %v3645_v32 = vsel %vm146_vm0, %v11420_v1, %v3617_v12  ;;  %v3641_v3 = vsel %vm146_vm0, %v3617_v12, %v11428_v6  ;;  %v3636_v31 = vsel %vm146_vm0, %v11422_v11, %v3631_v48  ;;  %v3648_v22 = vsel %vm146_vm0, %v3631_v48, %v11411_v18  ;;  %v13863_v48 = vld [vmem:[#allocation7_spill] sm:$0xff] }
 0xabf   :  { %v3663_v52 = vmul.f32 %v3645_v32, %v13819_v21  ;;  %v3831_v21 = vsel %vm245_vm3, %v11345_v50, %v11197_v34  ;;  %v3640_v12 = vsel %vm146_vm0, %v3615_v27, %v11422_v11  ;;  %v3838_v18 = vsel %vm245_vm3, %v13862_v0, %v11183_v51  ;;  %v13865_v27 = vld [vmem:[#allocation6_spill] sm:$0xff] }
 0xac0   :  { %v3664_v9 = vmul.f32 %v3641_v3, %v13863_v48  ;;  %v3658_v42 = vmul.f32 %v3648_v22, %v13864_v56  ;;  %v3661_v11 = vmul.f32 %v3636_v31, %v13865_v27  ;;  %v3660_v3 = vmul.f32 %v3640_v12, %v13863_v48 }
 0xac1   :  { %v3679_v36 = vpop.permute.xlu0 %3678  ;;  %v3633_v32 = vpop.permute.xlu1 %3632  ;;  %v7908_v57 = vpack.c.bf16 %v3663_v52, %v3659_v2  ;;  %v11700_v31 = vmul.f32 %v3831_v21, %v13663_v17  ;;  %v11707_v12 = vmul.f32 %v3835_v47, %v13662_v44 }
 0xac2   :  { %v3637_v43 = vsel %vm146_vm0, %v11428_v6, %v3633_v32  ;;  %v3649_v50 = vsel %vm146_vm0, %v3633_v32, %v11420_v1  ;;  %v3708_v6 = vsel %vm179_vm1, %v13866_v63, %v3679_v36  ;;  %v13867_v32 = vld [vmem:[#allocation10_spill] sm:$0xff]  ;;  %v13869_v1 = vld [vmem:[#allocation68_spill] sm:$0xff] }
 0xac3   :  { %v3662_v2 = vmul.f32 %v3649_v50, %v13864_v56  ;;  %v3665_v52 = vmul.f32 %v3637_v43, %v13865_v27  ;;  %7909 = vmatprep.subr.bf16.mxu0 %v7908_v57  ;;  %v3826_v56 = vsel %vm245_vm3, %v11191_v16, %v13862_v0  ;;  %v11710_v48 = vmul.f32 %v3838_v18, %v13867_v32  ;;  %v13868_v27 = vld [vmem:[#allocation111_spill] sm:$0xff]  ;;  %v13870_v16 = vld [vmem:[#allocation12_spill] sm:$0xff]  ;;  %v13871_v18 = vld [vmem:[#allocation70_spill] sm:$0xff] }
 0xac4   :  { %v7982_v50 = vpack.c.bf16 %v3664_v9, %v3660_v3  ;;  %v3723_v51 = vmul.f32 %v3708_v6, %v8628_v23  ;;  %v11721_v47 = vmul.f32 %v3826_v56, %v13870_v16  ;;  %v3704_v6 = vsel %vm179_vm1, %v3679_v36, %v13871_v18 }
 0xac5   :  { %v3695_v46 = vpop.permute.xlu0 %3694  ;;  %v7910_v57 = vpack.c.bf16 %v3662_v2, %v3658_v42  ;;  %v3681_v43 = vpop.permute.xlu1 %3680  ;;  %v7980_v22 = vpack.c.bf16 %v3665_v52, %v3661_v11  ;;  %v8002_v52 = vpack.c.bf16 %v11700_v31, %v11657_v37  ;;  %v13903_v31 = vld [vmem:[#allocation66_spill] sm:$0xff] }
 0xac6   :  { %v3709_v21 = vsel %vm179_vm1, %v13868_v27, %v3681_v43  ;;  %v3705_v0 = vsel %vm179_vm1, %v3681_v43, %v13869_v1  ;;  %v3700_v9 = vsel %vm179_vm1, %v13871_v18, %v3695_v46  ;;  %v3712_v11 = vsel %vm179_vm1, %v3695_v46, %v13866_v63 }
 0xac7   :  { %v3727_v42 = vmul.f32 %v3709_v21, %v8628_v23  ;;  %7911 = vmatpush1.bf16.msra.mxu0 %v7910_v57  ;;  %7981 = vmatprep.subr.bf16.mxu1 %v7980_v22  ;;  %v13872_v23 = vld [vmem:[#allocation97_spill] sm:$0xff]  ;;  %v3728_v46 = vmul.f32 %v3705_v0, %v8664_v38  ;;  %v3722_v36 = vmul.f32 %v3712_v11, %v8642_v29  ;;  %v13878_v11 = vld [vmem:[#allocation106_spill] sm:$0xff] }
 0xac8   :  { %7913 = vmatprep.subr.bf16.mxu0 %v7912_v54  ;;  %7983 = vmatpush1.bf16.msra.mxu1 %v7982_v50  ;;  %v3827_v3 = vsel %vm245_vm3, %v11197_v34, %v13872_v23  ;;  %v3839_v63 = vsel %vm245_vm3, %v13872_v23, %v13861_v35  ;;  %v13873_v35 = vpack.c.bf16 %v11558_v39, %v11579_v59  ;;  %v13874_v50 = vld [vmem:[#allocation84_spill] sm:$0xff]  ;;  %v13876_v39 = vld [vmem:[#allocation94_spill] sm:$0xff]  ;;  %v13877_v59 = vld [vmem:[#allocation73_spill] sm:$0xff] }
 0xac9   :  { %v3743_v2 = vpop.permute.xlu0 %3742  ;;  %v3697_v56 = vpop.permute.xlu1 %3696  ;;  %7985 = vmatprep.subr.bf16.mxu1 %v7984_v15  ;;  %v7916_v57 = vpack.c.bf16 %v3727_v42, %v3723_v51  ;;  %v3725_v15 = vmul.f32 %v3700_v9, %v8653_v33  ;;  %v3724_v22 = vmul.f32 %v3704_v6, %v8664_v38  ;;  %v3898_v38 = vsel %vm278_vm4, %v13877_v59, %v13876_v39  ;;  %v13879_v23 = vld [vmem:[#allocation69_spill] sm:$0xff] }
 0xaca   :  { %v3701_v54 = vsel %vm179_vm1, %v13869_v1, %v3697_v56  ;;  %v3713_v34 = vsel %vm179_vm1, %v3697_v56, %v13868_v27  ;;  %v3772_v1 = vsel %vm212_vm2, %v13874_v50, %v3743_v2  ;;  %v13875_v27 = vpack.c.bf16 %v11517_v4, %v11544_v19 }
 0xacb   :  { %v3726_v51 = vmul.f32 %v3713_v34, %v8642_v29  ;;  %v3729_v43 = vmul.f32 %v3701_v54, %v8653_v33  ;;  %7915 = vmatpush1.bf16.msra.mxu0 %v13873_v35  ;;  %v7928_v29 = vpack.c.bf16 %v11707_v12, %v11654_v13  ;;  %v11766_v33 = vmul.f32 %v3839_v63, %v13867_v32  ;;  %v13881_v63 = vld [vmem:[#allocation71_spill] sm:$0xff] }
 0xacc   :  { %7917 = vmatprep.subr.bf16.mxu0 %v7916_v57  ;;  %7987 = vmatpush1.bf16.msra.mxu1 %v13875_v27  ;;  %v3849_v9 = vmul.f32 %v3827_v3, %v13870_v16  ;;  %v3894_v4 = vsel %vm278_vm4, %v13876_v39, %v13878_v11  ;;  %v7990_v19 = vpack.c.bf16 %v3728_v46, %v3724_v22  ;;  %v13880_v3 = vld [vmem:[#allocation13_spill] sm:$0xff] }
 0xacd   :  { %v3759_v21 = vpop.permute.xlu0 %3758  ;;  %v7918_v0 = vpack.c.bf16 %v3726_v51, %v3722_v36  ;;  %v3745_v42 = vpop.permute.xlu1 %3744  ;;  %v7988_v18 = vpack.c.bf16 %v3729_v43, %v3725_v15  ;;  %v3787_v12 = vmul.f32 %v3772_v1, %v8685_v61  ;;  %v11786_v57 = vmul.f32 %v3898_v38, %v13880_v3  ;;  %v13883_v15 = vld [vmem:[#allocation15_spill] sm:$0xff] }
 0xace   :  { %v3773_v13 = vsel %vm212_vm2, %v11452_v60, %v3745_v42  ;;  %v3769_v6 = vsel %vm212_vm2, %v3745_v42, %v13879_v23  ;;  %v3764_v46 = vsel %vm212_vm2, %v13881_v63, %v3759_v21  ;;  %v3776_v54 = vsel %vm212_vm2, %v3759_v21, %v13874_v50 }
 0xacf   :  { %v3791_v56 = vmul.f32 %v3773_v13, %v8685_v61  ;;  %7919 = vmatpush1.bf16.msra.mxu0 %v7918_v0  ;;  %7989 = vmatprep.subr.bf16.mxu1 %v7988_v18  ;;  %v13882_v34 = vpack.c.bf16 %v11585_v62, %v11599_v26  ;;  %v7930_v61 = vpack.c.bf16 %v11766_v33, %v11710_v48  ;;  %v13885_v62 = vld [vmem:[#allocation81_spill] sm:$0xff]  ;;  %v13886_v26 = vld [vmem:[#allocation108_spill] sm:$0xff]  ;;  %v13889_v18 = vld [vmem:[#allocation90_spill] sm:$0xff] }
 0xad0   :  { %7991 = vmatpush1.bf16.msra.mxu1 %v7990_v19  ;;  %v11800_v51 = vmul.f32 %v3894_v4, %v13883_v15  ;;  %v3768_v43 = vsel %vm212_vm2, %v3743_v2, %v13881_v63  ;;  %v13884_v22 = vpack.c.bf16 %v11646_v24, %v11625_v20  ;;  %v3899_v1 = vsel %vm278_vm4, %v13886_v26, %v13885_v62  ;;  %v13893_v63 = vld [vmem:[#allocation117_spill] sm:$0xff] }
 0xad1   :  { %7921 = vmatprep.subr.bf16.mxu0 %v13882_v34  ;;  %v3807_v36 = vpop.permute.xlu0 %3806  ;;  %v3761_v35 = vpop.permute.xlu1 %3760  ;;  %v7924_v50 = vpack.c.bf16 %v3791_v56, %v3787_v12  ;;  %v3792_v48 = vmul.f32 %v3769_v6, %v8696_v10  ;;  %v3786_v21 = vmul.f32 %v3776_v54, %v8693_v5  ;;  %v3789_v24 = vmul.f32 %v3764_v46, %v13661_v40  ;;  %v13894_v34 = vld [vmem:[#allocation16_spill] sm:$0xff] }
 0xad2   :  { %7993 = vmatprep.subr.bf16.mxu1 %v13884_v22  ;;  %v3765_v27 = vsel %vm212_vm2, %v13879_v23, %v3761_v35  ;;  %v3777_v2 = vsel %vm212_vm2, %v3761_v35, %v11452_v60  ;;  %v13887_v39 = vpack.c.bf16 %v11638_v30, %v11622_v28  ;;  %v3788_v38 = vmul.f32 %v3768_v43, %v8696_v10  ;;  %v13890_v28 = vld [vmem:[#allocation96_spill] sm:$0xff]  ;;  %v13892_v23 = vld [vmem:[#allocation115_spill] sm:$0xff] }
 0xad3   :  { %v3790_v20 = vmul.f32 %v3777_v2, %v8693_v5  ;;  %v3793_v33 = vmul.f32 %v3765_v27, %v13661_v40  ;;  %v3836_v0 = vsel %vm245_vm3, %v11460_v55, %v3807_v36  ;;  %v13888_v60 = vpack.c.bf16 %v11588_v41, %v11602_v49 }
 0xad4   :  { %7923 = vmatpush1.bf16.msra.mxu0 %v13887_v39  ;;  %v8000_v5 = vpack.c.bf16 %v3849_v9, %v11721_v47  ;;  %v3895_v40 = vsel %vm278_vm4, %v13885_v62, %v13889_v18  ;;  %v3890_v10 = vsel %vm278_vm4, %v13878_v11, %v13890_v28  ;;  %v11843_v13 = vmul.f32 %v3899_v1, %v13880_v3  ;;  %v13891_v47 = vld [vmem:[#allocation101_spill] sm:$0xff]  ;;  %v13896_v1 = vld [vmem:[#allocation79_spill] sm:$0xff] }
 0xad5   :  { %7925 = vmatprep.subr.bf16.mxu0 %v7924_v50  ;;  %7995 = vmatpush1.bf16.msra.mxu1 %v13888_v60  ;;  %v3823_v42 = vpop.permute.xlu0 %3822  ;;  %v7926_v30 = vpack.c.bf16 %v3790_v20, %v3786_v21  ;;  %v3809_v4 = vpop.permute.xlu1 %3808  ;;  %v7996_v19 = vpack.c.bf16 %v3793_v33, %v3789_v24  ;;  %v3902_v41 = vsel %vm278_vm4, %v13890_v28, %v13877_v59  ;;  %v13897_v33 = vld [vmem:[#allocation91_spill] sm:$0xff] }
 0xad6   :  { %v7998_v49 = vpack.c.bf16 %v3792_v48, %v3788_v38  ;;  %v3837_v9 = vsel %vm245_vm3, %v13891_v47, %v3809_v4  ;;  %v3851_v12 = vmul.f32 %v3836_v0, %v13662_v44  ;;  %v3833_v11 = vsel %vm245_vm3, %v3809_v4, %v13892_v23  ;;  %v13898_v39 = vld [vmem:[#allocation67_spill] sm:$0xff] }
 0xad7   :  { %v3855_v6 = vmul.f32 %v3837_v9, %v13662_v44  ;;  %7997 = vmatprep.subr.bf16.mxu1 %v7996_v19  ;;  %v11858_v56 = vmul.f32 %v3895_v40, %v13883_v15  ;;  %v3828_v59 = vsel %vm245_vm3, %v13893_v63, %v3823_v42  ;;  %v3840_v46 = vsel %vm245_vm3, %v3823_v42, %v11460_v55  ;;  %v13895_v44 = vld [vmem:[#allocation14_spill] sm:$0xff]  ;;  %v13902_v40 = vld [vmem:[#allocation107_spill] sm:$0xff]  ;;  %v13904_v19 = vld [vmem:[#allocation113_spill] sm:$0xff] }
 0xad8   :  { %7927 = vmatpush1.bf16.msra.mxu0 %v7926_v30  ;;  %v11869_v43 = vmul.f32 %v3890_v10, %v13894_v34  ;;  %v11872_v35 = vmul.f32 %v3902_v41, %v13895_v44  ;;  %v3832_v22 = vsel %vm245_vm3, %v3807_v36, %v13893_v63  ;;  %v3891_v55 = vsel %vm278_vm4, %v13889_v18, %v13896_v1  ;;  %v13906_v9 = vld [vmem:[#allocation18_spill] sm:$0xff] }
 0xad9   :  { %7929 = vmatprep.subr.bf16.mxu0 %v7928_v29  ;;  %7999 = vmatpush1.bf16.msra.mxu1 %v7998_v49  ;;  %v11866_v54 = vpop.permute.xlu0 %4066  ;;  %v3825_v50 = vpop.permute.xlu1 %3824  ;;  %v7932_v62 = vpack.c.bf16 %v3855_v6, %v3851_v12  ;;  %v3856_v29 = vmul.f32 %v3833_v11, %v13663_v17  ;;  %v3850_v36 = vmul.f32 %v3840_v46, %v13867_v32  ;;  %v13905_v49 = vld [vmem:[#allocation24_spill] sm:$0xff] }
 0xada   :  { %8001 = vmatprep.subr.bf16.mxu1 %v8000_v5  ;;  %v3829_v48 = vsel %vm245_vm3, %v13892_v23, %v3825_v50  ;;  %v3841_v27 = vsel %vm245_vm3, %v3825_v50, %v13891_v47  ;;  %v3853_v2 = vmul.f32 %v3828_v59, %v13870_v16  ;;  %v3903_v20 = vsel %vm278_vm4, %v13896_v1, %v13886_v26  ;;  %v13901_v26 = vld [vmem:[#allocation76_spill] sm:$0xff]  ;;  %v13908_v59 = vld [vmem:[#allocation19_spill] sm:$0xff] }
 0xadb   :  { %v3854_v21 = vmul.f32 %v3841_v27, %v13867_v32  ;;  %v3857_v24 = vmul.f32 %v3829_v48, %v13870_v16  ;;  %v3958_v38 = vsel %vm311_vm6, %v13898_v39, %v13897_v33  ;;  %v3852_v0 = vmul.f32 %v3832_v22, %v13663_v17  ;;  %v13899_v16 = vld [vmem:[#allocation74_spill] sm:$0xff]  ;;  %v13909_v22 = vld [vmem:[#allocation17_spill] sm:$0xff]  ;;  %v13914_v27 = vld [vmem:[#allocation11_spill] sm:$0xff] }
 0xadc   :  { %7931 = vmatpush1.bf16.msra.mxu0 %v7930_v61  ;;  %v13900_v61 = vld [vmem:[#allocation65_spill] sm:$0xff]  ;;  %v3962_v37 = vsel %vm311_vm6, %v13902_v40, %v13898_v39  ;;  %v3967_v28 = vsel %vm311_vm6, %v13903_v31, %v13901_v26  ;;  %v11927_v30 = vmul.f32 %v3891_v55, %v13894_v34  ;;  %v3913_v4 = vmul.f32 %v3903_v20, %v13895_v44  ;;  %v13912_v55 = vld [vmem:[#allocation87_spill] sm:$0xff]  ;;  %v13913_v48 = vld [vmem:[#allocation110_spill] sm:$0xff] }
 0xadd   :  { %7933 = vmatprep.subr.bf16.mxu0 %v7932_v62  ;;  %8003 = vmatpush1.bf16.msra.mxu1 %v8002_v52  ;;  %v3871_v32 = vpop.permute.xlu0 %3870  ;;  %v3959_v60 = vsel %vm311_vm6, %v13900_v61, %v13899_v16  ;;  %v3963_v42 = vsel %vm311_vm6, %v13901_v26, %v13900_v61  ;;  %v7934_v5 = vpack.c.bf16 %v3854_v21, %v3850_v36  ;;  %v11912_v18 = vpop.permute.xlu1 %4068  ;;  %v13915_v36 = vld [vmem:[#allocation9_spill] sm:$0xff] }
 0xade   :  { %v8004_v17 = vpack.c.bf16 %v3857_v24, %v3853_v2  ;;  %v3955_v52 = vsel %vm311_vm6, %v13899_v16, %v13903_v31  ;;  %v8006_v10 = vpack.c.bf16 %v3856_v29, %v3852_v0  ;;  %v3954_v41 = vsel %vm311_vm6, %v13897_v33, %v13904_v19  ;;  %v13919_v39 = vld [vmem:[#allocation105_spill] sm:$0xff] }
 0xadf   :  { %v11935_v47 = vmul.f32 %v3963_v42, %v13905_v49  ;;  %v11938_v12 = vmul.f32 %v3959_v60, %v13906_v9  ;;  %v3966_v23 = vsel %vm311_vm6, %v13904_v19, %v13902_v40  ;;  %v13907_v11 = vpack.c.bf16 %v11066_v58, %v11057_v45  ;;  %v13922_v60 = vld [vmem:[#allocation20_spill] sm:$0xff]  ;;  %v13923_v42 = vld [vmem:[#allocation22_spill] sm:$0xff]  ;;  %v13925_v40 = vld [vmem:[#allocation95_spill] sm:$0xff] }
 0xae0   :  { %7935 = vmatpush1.bf16.msra.mxu0 %v7934_v5  ;;  %8005 = vmatprep.subr.bf16.mxu1 %v8004_v17  ;;  %v7946_v63 = vpack.c.bf16 %v11843_v13, %v11786_v57  ;;  %v11950_v46 = vmul.f32 %v3955_v52, %v13908_v59  ;;  %v11953_v50 = vmul.f32 %v3967_v28, %v13909_v22  ;;  %v13911_v13 = vld [vmem:[#allocation109_spill] sm:$0xff]  ;;  %v13928_v28 = vld [vmem:[#allocation86_spill] sm:$0xff]  ;;  %v13930_v19 = vld [vmem:[#allocation100_spill] sm:$0xff] }
 0xae1   :  { %7937 = vmatprep.subr.bf16.mxu0 %v13907_v11  ;;  %8007 = vmatpush1.bf16.msra.mxu1 %v8006_v10  ;;  %v3887_v6 = vpop.permute.xlu0 %3886  ;;  %v11955_v62 = vpop.permute.xlu1 %4076  ;;  %v13910_v1 = vpack.c.bf16 %v11073_v8, %v11064_v25  ;;  %v7944_v45 = vpack.c.bf16 %v11858_v56, %v11800_v51  ;;  %v11963_v58 = vmul.f32 %v3962_v37, %v13905_v49  ;;  %v13927_v52 = vld [vmem:[#allocation77_spill] sm:$0xff]  ;;  %v13932_v11 = vld [vmem:[#allocation98_spill] sm:$0xff] }
 0xae2   :  { %v11966_v57 = vmul.f32 %v3958_v38, %v13906_v9  ;;  %v4022_v29 = vsel %vm344_vm5, %v13912_v55, %v13911_v13  ;;  %v4026_v25 = vsel %vm344_vm5, %v13913_v48, %v13912_v55  ;;  %v8018_v8 = vpack.c.bf16 %v11927_v30, %v11869_v43  ;;  %v13917_v43 = vld [vmem:[#allocation93_spill] sm:$0xff]  ;;  %v13920_v38 = vld [vmem:[#allocation8_spill] sm:$0xff] }
 0xae3   :  { %8009 = vmatprep.subr.bf16.mxu1 %v13910_v1  ;;  %v11979_v51 = vmul.f32 %v3954_v41, %v13908_v59  ;;  %v11982_v56 = vmul.f32 %v3966_v23, %v13909_v22  ;;  %v13916_v2 = vpack.c.bf16 %v13914_v27, %v13915_v36  ;;  %v8016_v21 = vpack.c.bf16 %v3913_v4, %v11872_v35  ;;  %v13929_v30 = vld [vmem:[#allocation112_spill] sm:$0xff] }
 0xae4   :  { %v7954_v24 = vpack.c.bf16 %v11935_v47, %v11963_v58  ;;  %v3896_v20 = vsel %vm278_vm4, %v3871_v32, %v11474_v53  ;;  %v13918_v33 = vpack.c.bf16 %v11269_v7, %v13917_v43  ;;  %v13921_v0 = vpack.c.bf16 %v13919_v39, %v13920_v38  ;;  %v13924_v7 = vld [vmem:[#allocation78_spill] sm:$0xff]  ;;  %v13933_v1 = vld [vmem:[#allocation120_spill] sm:$0xff] }
 0xae5   :  { %7939 = vmatpush1.bf16.msra.mxu0 %v13916_v2  ;;  %v3935_v16 = vpop.permute.xlu0 %3934  ;;  %v7952_v61 = vpack.c.bf16 %v11938_v12, %v11966_v57  ;;  %v8026_v35 = vpack.c.bf16 %v11950_v46, %v11979_v51  ;;  %v12004_v26 = vmul.f32 %v4026_v25, %v13922_v60  ;;  %v12007_v5 = vmul.f32 %v4022_v29, %v13923_v42  ;;  %v3873_v17 = vpop.permute.xlu1 %3872  ;;  %v13931_v12 = vld [vmem:[#allocation118_spill] sm:$0xff]  ;;  %v13934_v25 = vld [vmem:[#allocation72_spill] sm:$0xff]  ;;  %v13937_v2 = vld [vmem:[#allocation89_spill] sm:$0xff] }
 0xae6   :  { %7941 = vmatprep.subr.bf16.mxu0 %v13918_v33  ;;  %8011 = vmatpush1.bf16.msra.mxu1 %v13921_v0  ;;  %v13926_v37 = vpack.c.bf16 %v13924_v7, %v13925_v40  ;;  %v8024_v31 = vpack.c.bf16 %v11953_v50, %v11982_v56  ;;  %v4023_v10 = vsel %vm344_vm5, %v13928_v28, %v13927_v52  ;;  %v13935_v56 = vld [vmem:[#allocation103_spill] sm:$0xff]  ;;  %v13953_v46 = vld [vmem:[#allocation4_spill] sm:$0xff] }
 0xae7   :  { %v4027_v4 = vsel %vm344_vm5, %v13929_v30, %v13928_v28  ;;  %v3897_v41 = vsel %vm278_vm4, %v3873_v17, %v13930_v19  ;;  %v3901_v23 = vsel %vm278_vm4, %v13931_v12, %v3873_v17  ;;  %v4018_v50 = vsel %vm344_vm5, %v13911_v13, %v13932_v11  ;;  %v13940_v0 = vld [vmem:[#allocation23_spill] sm:$0xff] }
 0xae8   :  { %8013 = vmatprep.subr.bf16.mxu1 %v13926_v37  ;;  %v3900_v57 = vsel %vm278_vm4, %v13933_v1, %v3871_v32  ;;  %v3915_v55 = vmul.f32 %v3896_v20, %v13883_v15  ;;  %v3919_v29 = vmul.f32 %v3897_v41, %v13883_v15  ;;  %v13936_v27 = vpack.c.bf16 %v13934_v25, %v13935_v56  ;;  %v13938_v15 = vld [vmem:[#allocation88_spill] sm:$0xff]  ;;  %v13943_v41 = vld [vmem:[#allocation102_spill] sm:$0xff] }
 0xae9   :  { %v4030_v36 = vsel %vm344_vm5, %v13932_v11, %v13913_v48  ;;  %v3892_v13 = vsel %vm278_vm4, %v11474_v53, %v3887_v6  ;;  %v3904_v32 = vsel %vm278_vm4, %v3887_v6, %v13933_v1  ;;  %v13939_v20 = vpack.c.bf16 %v13937_v2, %v13938_v15  ;;  %v3951_v43 = vpop.permute.xlu0 %3950  ;;  %v3889_v38 = vpop.permute.xlu1 %3888  ;;  %v13947_v2 = vld [vmem:[#allocation114_spill] sm:$0xff]  ;;  %v13948_v15 = vld [vmem:[#allocation92_spill] sm:$0xff] }
 0xaea   :  { %7943 = vmatpush1.bf16.msra.mxu0 %v13936_v27  ;;  %v12054_v33 = vmul.f32 %v4027_v4, %v13922_v60  ;;  %v12057_v39 = vmul.f32 %v4023_v10, %v13923_v42  ;;  %v3918_v48 = vmul.f32 %v3901_v23, %v13880_v3  ;;  %v7948_v53 = vpack.c.bf16 %v3919_v29, %v3915_v55  ;;  %v13941_v10 = vld [vmem:[#allocation21_spill] sm:$0xff] }
 0xaeb   :  { %7945 = vmatprep.subr.bf16.mxu0 %v7944_v45  ;;  %8015 = vmatpush1.bf16.msra.mxu1 %v13939_v20  ;;  %v12061_v17 = vmul.f32 %v4018_v50, %v13940_v0  ;;  %v3914_v6 = vmul.f32 %v3900_v57, %v13880_v3  ;;  %v3893_v45 = vsel %vm278_vm4, %v13930_v19, %v3889_v38  ;;  %v13942_v3 = vld [vmem:[#allocation116_spill] sm:$0xff]  ;;  %v13945_v55 = vld [vmem:[#allocation85_spill] sm:$0xff] }
 0xaec   :  { %8017 = vmatprep.subr.bf16.mxu1 %v8016_v21  ;;  %v3905_v7 = vsel %vm278_vm4, %v3889_v38, %v13931_v12  ;;  %v3916_v40 = vmul.f32 %v3892_v13, %v13894_v34  ;;  %v3917_v37 = vmul.f32 %v3904_v32, %v13895_v44  ;;  %v3920_v21 = vmul.f32 %v3893_v45, %v13894_v34  ;;  %v13946_v29 = vld [vmem:[#allocation121_spill] sm:$0xff] }
 0xaed   :  { %v3921_v28 = vmul.f32 %v3905_v7, %v13895_v44  ;;  %v12075_v4 = vmul.f32 %v4030_v36, %v13941_v10  ;;  %v4019_v19 = vsel %vm344_vm5, %v13927_v52, %v13942_v3  ;;  %v3960_v12 = vsel %vm311_vm6, %v3935_v16, %v13943_v41  ;;  %v3999_v23 = vpop.permute.xlu0 %3998  ;;  %v3937_v11 = vpop.permute.xlu1 %3936  ;;  %v13944_v52 = vld [vmem:[#allocation83_spill] sm:$0xff] }
 0xaee   :  { %7947 = vmatpush1.bf16.msra.mxu0 %v7946_v63  ;;  %v4031_v34 = vsel %vm344_vm5, %v13942_v3, %v13929_v30  ;;  %v7950_v44 = vpack.c.bf16 %v3918_v48, %v3914_v6  ;;  %v8022_v63 = vpack.c.bf16 %v3920_v21, %v3916_v40  ;;  %v7962_v1 = vpack.c.bf16 %v12054_v33, %v12004_v26  ;;  %v13949_v40 = vld [vmem:[#allocation122_spill] sm:$0xff]  ;;  %v13951_v21 = vld [vmem:[#allocation80_spill] sm:$0xff]  ;;  %v13958_v26 = vld [vmem:[#allocation27_spill] sm:$0xff] }
 0xaef   :  { %7949 = vmatprep.subr.bf16.mxu0 %v7948_v53  ;;  %8019 = vmatpush1.bf16.msra.mxu1 %v8018_v8  ;;  %v8020_v50 = vpack.c.bf16 %v3921_v28, %v3917_v37  ;;  %v3964_v57 = vsel %vm311_vm6, %v13944_v52, %v3935_v16  ;;  %v3961_v8 = vsel %vm311_vm6, %v3937_v11, %v13945_v55  ;;  %v13950_v37 = vld [vmem:[#allocation99_spill] sm:$0xff] }
 0xaf0   :  { %v3965_v25 = vsel %vm311_vm6, %v13946_v29, %v3937_v11  ;;  %v3979_v30 = vmul.f32 %v3960_v12, %v13906_v9  ;;  %v3956_v56 = vsel %vm311_vm6, %v13943_v41, %v3951_v43  ;;  %v3983_v27 = vmul.f32 %v3961_v8, %v13906_v9  ;;  %v13955_v11 = vld [vmem:[#allocation25_spill] sm:$0xff] }
 0xaf1   :  { %8021 = vmatprep.subr.bf16.mxu1 %v8020_v50  ;;  %v12105_v16 = vmul.f32 %v4019_v19, %v13940_v0  ;;  %v4041_v36 = vmul.f32 %v4031_v34, %v13941_v10  ;;  %v3968_v13 = vsel %vm311_vm6, %v3951_v43, %v13944_v52  ;;  %v4015_v32 = vpop.permute.xlu0 %4014  ;;  %v12115_v20 = vsel %vm377_vm7, %v13948_v15, %v13947_v2  ;;  %v3953_v48 = vpop.permute.xlu1 %3952  ;;  %v13952_v19 = vld [vmem:[#allocation119_spill] sm:$0xff] }
 0xaf2   :  { %7951 = vmatpush1.bf16.msra.mxu0 %v7950_v44  ;;  %v3982_v9 = vmul.f32 %v3965_v25, %v13905_v49  ;;  %v7956_v38 = vpack.c.bf16 %v3983_v27, %v3979_v30  ;;  %v7960_v53 = vpack.c.bf16 %v12057_v39, %v12007_v5  ;;  %v3978_v6 = vmul.f32 %v3964_v57, %v13905_v49 }
 0xaf3   :  { %7953 = vmatprep.subr.bf16.mxu0 %v7952_v61  ;;  %8023 = vmatpush1.bf16.msra.mxu1 %v8022_v63  ;;  %v3980_v61 = vmul.f32 %v3956_v56, %v13908_v59  ;;  %v3957_v43 = vsel %vm311_vm6, %v13945_v55, %v3953_v48  ;;  %v3969_v45 = vsel %vm311_vm6, %v3953_v48, %v13946_v29 }
 0xaf4   :  { %8025 = vmatprep.subr.bf16.mxu1 %v8024_v31  ;;  %v3981_v7 = vmul.f32 %v3968_v13, %v13909_v22  ;;  %v4024_v31 = vsel %vm344_vm5, %v3999_v23, %v13949_v40  ;;  %v3984_v5 = vmul.f32 %v3957_v43, %v13908_v59  ;;  %v3985_v49 = vmul.f32 %v3969_v45, %v13909_v22 }
 0xaf5   :  { %v8034_v39 = vpack.c.bf16 %v12105_v16, %v12061_v17  ;;  %v4091_v28 = vsel %vm377_vm7, %v13951_v21, %v13950_v37  ;;  %v4075_v59 = vpop.permute.xlu0 %4074  ;;  %v8032_v22 = vpack.c.bf16 %v4041_v36, %v12075_v4  ;;  %v4087_v47 = vsel %vm377_vm7, %v13950_v37, %v11912_v18  ;;  %v4001_v17 = vpop.permute.xlu1 %4000  ;;  %v3593_v37 = vld [vmem:[%s13212_s5 + $0x18] sm:$0xff] }
 0xaf6   :  { %7955 = vmatpush1.bf16.msra.mxu0 %v7954_v24  ;;  %v7958_v58 = vpack.c.bf16 %v3982_v9, %v3978_v6  ;;  %v8030_v24 = vpack.c.bf16 %v3984_v5, %v3980_v61  ;;  %v8028_v3 = vpack.c.bf16 %v3985_v49, %v3981_v7  ;;  %v4028_v41 = vsel %vm344_vm5, %v13952_v19, %v3999_v23  ;;  %v3594_v5 = vld [vmem:[%s13212_s5 + $0x20] sm:$0xff] }
 0xaf7   :  { %7957 = vmatprep.subr.bf16.mxu0 %v7956_v38  ;;  %8027 = vmatpush1.bf16.msra.mxu1 %v8026_v35  ;;  %v4043_v12 = vmul.f32 %v4024_v31, %v13923_v42  ;;  %v4025_v51 = vsel %vm344_vm5, %v4001_v17, %v13953_v46  ;;  %v13954_v35 = vld [vmem:[#allocation123_spill] sm:$0xff]  ;;  %v4020_v34 = vsel %vm344_vm5, %v13949_v40, %v4015_v32 }
 0xaf8   :  { %v4029_v4 = vsel %vm344_vm5, %v13954_v35, %v4001_v17  ;;  %v4032_v44 = vsel %vm344_vm5, %v4015_v32, %v13952_v19  ;;  %v4047_v23 = vmul.f32 %v4025_v51, %v13923_v42  ;;  %8029 = vmatprep.subr.bf16.mxu1 %v8028_v3  ;;  %v4086_v63 = vsel %vm377_vm7, %v13947_v2, %v11866_v54 }
 0xaf9   :  { %v4103_v50 = vmul.f32 %v13955_v11, %v4087_v47  ;;  %v4094_v52 = vsel %vm377_vm7, %v4075_v59, %v13948_v15  ;;  %v12176_v57 = vpop.permute.xlu0 %4054  ;;  %v4095_v42 = vsel %vm377_vm7, %v11955_v62, %v13951_v21  ;;  %v4042_v55 = vmul.f32 %v4028_v41, %v13922_v60  ;;  %v4017_v29 = vpop.permute.xlu1 %4016  ;;  %v13957_v15 = vld [vmem:[#allocation28_spill] sm:$0xff] }
 0xafa   :  { %7959 = vmatpush1.bf16.msra.mxu0 %v7958_v58  ;;  %v4046_v8 = vmul.f32 %v4029_v4, %v13922_v60  ;;  %v7964_v25 = vpack.c.bf16 %v4047_v23, %v4043_v12  ;;  %v4044_v30 = vmul.f32 %v4020_v34, %v13940_v0  ;;  %v4045_v56 = vmul.f32 %v4032_v44, %v13941_v10  ;;  %v13956_v60 = vld [vmem:[#allocation26_spill] sm:$0xff]  ;;  %v3596_v41 = vld [vmem:[%s13212_s5 + $0x30] sm:$0xff] }
 0xafb   :  { %7961 = vmatprep.subr.bf16.mxu0 %v7960_v53  ;;  %8031 = vmatpush1.bf16.msra.mxu1 %v8030_v24  ;;  %v4021_v27 = vsel %vm344_vm5, %v13953_v46, %v4017_v29  ;;  %v4033_v16 = vsel %vm344_vm5, %v4017_v29, %v13954_v35  ;;  %v4082_v36 = vsel %vm377_vm7, %v11866_v54, %v4075_v59  ;;  %v3600_v4 = vld [vmem:[%s13212_s5 + $0x50] sm:$0xff]  ;;  %v13960_v29 = vmov 0.0  }
 0xafc   :  { %8033 = vmatprep.subr.bf16.mxu1 %v8032_v22  ;;  %v4101_v13 = vmul.f32 %v13956_v60, %v4094_v52  ;;  %v4048_v32 = vmul.f32 %v4021_v27, %v13940_v0  ;;  %v4049_v2 = vmul.f32 %v4033_v16, %v13941_v10  ;;  %v4102_v9 = vmul.f32 %v13957_v15, %v4091_v28  ;;  %v3597_v28 = vld [vmem:[%s13212_s5 + $0x38] sm:$0xff]  ;;  %v3599_v52 = vld [vmem:[%s13212_s5 + $0x48] sm:$0xff]  ;;  %v13963_v27 = vld [vmem:[#allocation32_spill] sm:$0xff] }
 0xafd   :  { %v4099_v48 = vmul.f32 %v13955_v11, %v4086_v63  ;;  %v4083_v38 = vsel %vm377_vm7, %v11912_v18, %v11955_v62  ;;  %v4063_v54 = vpop.permute.xlu0 %4062  ;;  %v4105_v0 = vmul.f32 %v13956_v60, %v4095_v42  ;;  %v7966_v53 = vpack.c.bf16 %v4046_v8, %v4042_v55  ;;  %v4057_v6 = vpop.permute.xlu1 %4056  ;;  %v3590_v18 = vld [vmem:[%s13212_s5] sm:$0xff]  ;;  %v13959_v55 = vld [vmem:[#allocation29_spill] sm:$0xff]  ;;  %v3592_v8 = vld [vmem:[%s13212_s5 + $0x10] sm:$0xff] }
 0xafe   :  { %7963 = vmatpush1.bf16.msra.mxu0 %v7962_v1  ;;  %v8038_v10 = vpack.c.bf16 %v4048_v32, %v4044_v30  ;;  %v8036_v61 = vpack.c.bf16 %v4049_v2, %v4045_v56  ;;  %v4100_v33 = vmul.f32 %v13958_v26, %v4082_v36  ;;  %v4098_v43 = vmul.f32 %v13957_v15, %v12115_v20  ;;  %v3595_v30 = vld [vmem:[%s13212_s5 + $0x28] sm:$0xff]  ;;  %v13964_v16 = vld [vmem:[#allocation33_spill] sm:$0xff]  ;;  %v13965_v36 = vld [vmem:[#allocation34_spill] sm:$0xff] }
 0xaff   :  { %7965 = vmatprep.subr.bf16.mxu0 %v7964_v25  ;;  %8035 = vmatpush1.bf16.msra.mxu1 %v8034_v39  ;;  %v7968_v1 = vpack.c.bf16 %v4103_v50, %v4099_v48  ;;  %v8040_v45 = vpack.c.bf16 %v4105_v0, %v4101_v13  ;;  %v4104_v62 = vmul.f32 %v13958_v26, %v4083_v38  ;;  %v13961_v25 = vld [vmem:[#allocation30_spill] sm:$0xff]  ;;  %v13962_v56 = vld [vmem:[#allocation31_spill] sm:$0xff]  ;;  %v13967_v32 = vld [vmem:[#allocation36_spill] sm:$0xff] }
 0xb00   :  { %8037 = vmatprep.subr.bf16.mxu1 %v8036_v61  ;;  %v7970_v40 = vpack.c.bf16 %v4102_v9, %v4098_v43  ;;  %v4092_v49 = vsel %vm377_vm7, %v12176_v57, %v4063_v54  ;;  %v13966_v13 = vld [vmem:[#allocation35_spill] sm:$0xff]  ;;  %v13968_v2 = vld [vmem:[#allocation37_spill] sm:$0xff]  ;;  %v13971_v38 = vld [vmem:[#allocation40_spill] sm:$0xff] }
 0xb01   :  { %v4071_v7 = vpop.permute.xlu0 %4070  ;;  %v4073_v31 = vpop.permute.xlu1 %4072  ;;  %v8042_v20 = vpack.c.bf16 %v4104_v62, %v4100_v33  ;;  %v4106_v22 = vmul.f32 %v13957_v15, %v4092_v49  ;;  %v3601_v9 = vld [vmem:[%s13212_s5 + $0x58] sm:$0xff]  ;;  %v13970_v48 = vld [vmem:[#allocation39_spill] sm:$0xff]  ;;  %v13973_v0 = vld [vmem:[#allocation42_spill] sm:$0xff] }
 0xb02   :  { %7967 = vmatpush1.bf16.msra.mxu0 %v7966_v53  ;;  %v4088_v39 = vsel %vm377_vm7, %v4063_v54, %v4071_v7  ;;  %v13972_v54 = vld [vmem:[#allocation41_spill] sm:$0xff]  ;;  %v13974_v53 = vld [vmem:[#allocation43_spill] sm:$0xff]  ;;  %v13977_v61 = vld [vmem:[#allocation46_spill] sm:$0xff] }
 0xb03   :  { %7969 = vmatprep.subr.bf16.mxu0 %v7968_v1  ;;  %8039 = vmatpush1.bf16.msra.mxu1 %v8038_v10  ;;  %v4107_v47 = vmul.f32 %v13955_v11, %v4088_v39  ;;  %v13975_v10 = vld [vmem:[#allocation44_spill] sm:$0xff]  ;;  %v13980_v1 = vld [vmem:[#allocation49_spill] sm:$0xff]  ;;  %v13981_v43 = vld [vmem:[#allocation50_spill] sm:$0xff] }
 0xb04   :  { %8041 = vmatprep.subr.bf16.mxu1 %v8040_v45  ;;  %v13979_v33 = vld [vmem:[#allocation48_spill] sm:$0xff]  ;;  %v13982_v45 = vld [vmem:[#allocation51_spill] sm:$0xff]  ;;  %v13984_v62 = vld [vmem:[#allocation53_spill] sm:$0xff] }
 0xb05   :  { %4207 = vmatmul.mubr.f32.vlgmr.msra.gmra.mrb[88].mxu0 %v3590_v18  ;;  %v4079_v21 = vpop.permute.xlu0 %4078  ;;  %v4065_v59 = vpop.permute.xlu1 %4064  ;;  %v13990_v49 = vld [vmem:[#allocation59_spill] sm:$0xff]  ;;  %v13991_v39 = vld [vmem:[#allocation60_spill] sm:$0xff] }
 0xb06   :  { %7971 = vmatpush1.bf16.msra.mxu0 %v7970_v40  ;;  %4385 = vmatmul.mubr.f32.vlgmr.msra.gmra.mrb[88].mxu1 %v3590_v18  ;;  %v4089_v58 = vsel %vm377_vm7, %v4065_v59, %v4073_v31  ;;  %v4093_v24 = vsel %vm377_vm7, %v4057_v6, %v4065_v59  ;;  %v4084_v19 = vsel %vm377_vm7, %v4071_v7, %v4079_v21  ;;  %v13983_v18 = vld [vmem:[#allocation52_spill] sm:$0xff]  ;;  %v13985_v7 = vld [vmem:[#allocation54_spill] sm:$0xff]  ;;  %v13986_v40 = vld [vmem:[#allocation55_spill] sm:$0xff] }
 0xb07   :  { %8043 = vmatpush1.bf16.msra.mxu1 %v8042_v20  ;;  %4212 = vmatprep.mubr.f32.mxu0 %v3594_v5  ;;  %v4110_v17 = vmul.f32 %v13957_v15, %v4093_v24  ;;  %v4111_v3 = vmul.f32 %v13955_v11, %v4089_v58  ;;  %v4096_v12 = vsel %vm377_vm7, %v4079_v21, %v12176_v57  ;;  %v13969_v15 = vld [vmem:[#allocation38_spill] sm:$0xff] }
 0xb08   :  { %4390 = vmatprep.mubr.f32.mxu1 %v3594_v5  ;;  %v4108_v34 = vmul.f32 %v13958_v26, %v4084_v19  ;;  %v4109_v63 = vmul.f32 %v13956_v60, %v4096_v12  ;;  %v13988_v5 = vld [vmem:[#allocation57_spill] sm:$0xff]  ;;  %v13989_v20 = vld [vmem:[#allocation58_spill] sm:$0xff] }
 0xb09   :  { %4213 = vmatmul.mubr.f32.gmra.mrb[90].mxu0 %v3593_v37  ;;  %v7974_v46 = vpack.c.bf16 %v4110_v17, %v4106_v22  ;;  %v4081_v51 = vpop.permute.xlu1 %4080  ;;  %v7972_v35 = vpack.c.bf16 %v4111_v3, %v4107_v47 }
 0xb0a   :  { %4391 = vmatmul.mubr.f32.gmra.mrb[90].mxu1 %v3593_v37  ;;  %4218 = vmatprep.mubr.f32.mxu0 %v3597_v28  ;;  %v4085_v44 = vsel %vm377_vm7, %v4073_v31, %v4081_v51  ;;  %v4097_v23 = vsel %vm377_vm7, %v4081_v51, %v4057_v6  ;;  %v13976_v6 = vld [vmem:[#allocation45_spill] sm:$0xff]  ;;  %v13987_v31 = vld [vmem:[#allocation56_spill] sm:$0xff] }
 0xb0b   :  { %4396 = vmatprep.mubr.f32.mxu1 %v3597_v28  ;;  %v4112_v11 = vmul.f32 %v13958_v26, %v4085_v44  ;;  %v4113_v50 = vmul.f32 %v13956_v60, %v4097_v23  ;;  %7973 = vmatprep.subr.bf16.mxu0 %v7972_v35  ;;  %v3598_v60 = vld [vmem:[%s13212_s5 + $0x40] sm:$0xff]  ;;  %v13978_v26 = vld [vmem:[#allocation47_spill] sm:$0xff] }
 0xb0c   :  { %7975 = vmatpush1.bf16.msra.mxu0 %v7974_v46 }
 0xb0d   :  { %4219 = vmatmul.mubr.f32.gmra.mrb[92].mxu0 %v3596_v41  ;;  %v8046_v57 = vpack.c.bf16 %v4112_v11, %v4108_v34  ;;  %v8044_v42 = vpack.c.bf16 %v4113_v50, %v4109_v63  ;;  %8049 = vmatprep.subr.bf16.mxu0 %v13959_v55 }
 0xb0e   :  { %4397 = vmatmul.mubr.f32.gmra.mrb[92].mxu1 %v3596_v41  ;;  %4224 = vmatprep.mubr.f32.mxu0 %v3600_v4 }
 0xb0f   :  { %4402 = vmatprep.mubr.f32.mxu1 %v3600_v4  ;;  %8045 = vmatprep.subr.bf16.mxu1 %v8044_v42 }
 0xb10   :  { %8047 = vmatpush1.bf16.msra.mxu1 %v8046_v57 }
 0xb11   :  { %4225 = vmatmul.mubr.f32.gmra.mrb[94].mxu0 %v3599_v52  ;;  %8081 = vmatprep.subr.bf16.mxu1 %v13961_v25 }
 0xb12   :  { %4403 = vmatmul.mubr.f32.gmra.mrb[94].mxu1 %v3599_v52  ;;  %4295 = vmatprep.mubr.f32.mxu0 %v13960_v29 }
 0xb13   :  { %4473 = vmatprep.mubr.f32.mxu1 %v13960_v29 }
 0xb15   :  { %6725 = vmatmul.mubr.msk.f32.vlgmr.msra.gmra.mrb[88].mxu0 %vm969_vm9, %v3592_v8 }
 0xb16   :  { %6729 = vmatmul.mubr.msk.f32.vlgmr.msra.gmra.mrb[88].mxu1 %vm969_vm9, %v3592_v8  ;;  %4301 = vmatprep.mubr.f32.mxu0 %v13960_v29  ;;  %v4116_v37 = vpop.permute.xlu0 %4115 }
 0xb17   :  { %4479 = vmatprep.mubr.f32.mxu1 %v13960_v29  ;;  %8051 = vmatpush3.bf16.msra.mxu0 %v13962_v56 }
 0xb18   :  { %8083 = vmatpush3.bf16.msra.mxu1 %v13963_v27  ;;  %8053 = vmatprep.subr.bf16.mxu0 %v13964_v16 }
 0xb19   :  { %6726 = vmatmul.mubr.msk.f32.gmra.mrb[90].mxu0 %vm969_vm9, %v3595_v30  ;;  %8085 = vmatprep.subr.bf16.mxu1 %v13965_v36 }
 0xb1a   :  { %6730 = vmatmul.mubr.msk.f32.gmra.mrb[90].mxu1 %vm969_vm9, %v3595_v30  ;;  %4307 = vmatprep.mubr.f32.mxu0 %v13960_v29  ;;  %v4120_v28 = vpop.permute.xlu1 %4119 }
 0xb1b   :  { %4485 = vmatprep.mubr.f32.mxu1 %v13960_v29  ;;  %8055 = vmatpush3.bf16.msra.mxu0 %v13966_v13 }
 0xb1c   :  { %8087 = vmatpush3.bf16.msra.mxu1 %v13967_v32  ;;  %8057 = vmatprep.subr.bf16.mxu0 %v13968_v2 }
 0xb1d   :  { %6727 = vmatmul.mubr.msk.f32.gmra.mrb[92].mxu0 %vm969_vm9, %v3598_v60  ;;  %8089 = vmatprep.subr.bf16.mxu1 %v13969_v15 }
 0xb1e   :  { %6731 = vmatmul.mubr.msk.f32.gmra.mrb[92].mxu1 %vm969_vm9, %v3598_v60  ;;  %4313 = vmatprep.mubr.f32.mxu0 %v13960_v29  ;;  %v4124_v34 = vpop.permute.xlu1 %4123 }
 0xb1f   :  { %4491 = vmatprep.mubr.f32.mxu1 %v13960_v29  ;;  %8059 = vmatpush3.bf16.msra.mxu0 %v13970_v48 }
 0xb20   :  { %8091 = vmatpush3.bf16.msra.mxu1 %v13971_v38  ;;  %8061 = vmatprep.subr.bf16.mxu0 %v13972_v54 }
 0xb21   :  { %6728 = vmatmul.mubr.msk.f32.gmra.mrb[94].mxu0 %vm969_vm9, %v3601_v9  ;;  %8093 = vmatprep.subr.bf16.mxu1 %v13973_v0 }
 0xb22   :  { %6732 = vmatmul.mubr.msk.f32.gmra.mrb[94].mxu1 %vm969_vm9, %v3601_v9 }
 0xb23   :  { %8063 = vmatpush3.bf16.msra.mxu0 %v13974_v53 }
 0xb24   :  { %8095 = vmatpush3.bf16.msra.mxu1 %v13975_v10  ;;  %8065 = vmatprep.subr.bf16.mxu0 %v13976_v6 }
 0xb25   :  { %8097 = vmatprep.subr.bf16.mxu1 %v13977_v61 }
 0xb27   :  { %8067 = vmatpush3.bf16.msra.mxu0 %v13978_v26 }
 0xb28   :  { %8099 = vmatpush3.bf16.msra.mxu1 %v13979_v33  ;;  %8069 = vmatprep.subr.bf16.mxu0 %v13980_v1 }
 0xb29   :  { %8101 = vmatprep.subr.bf16.mxu1 %v13981_v43 }
 0xb2b   :  { %8071 = vmatpush3.bf16.msra.mxu0 %v13982_v45 }
 0xb2c   :  { %8103 = vmatpush3.bf16.msra.mxu1 %v13983_v18  ;;  %8073 = vmatprep.subr.bf16.mxu0 %v13984_v62 }
 0xb2d   :  { %8105 = vmatprep.subr.bf16.mxu1 %v13985_v7 }
 0xb2f   :  { %8075 = vmatpush3.bf16.msra.mxu0 %v13986_v40 }
 0xb30   :  { %8107 = vmatpush3.bf16.msra.mxu1 %v13987_v31  ;;  %8077 = vmatprep.subr.bf16.mxu0 %v13988_v5 }
 0xb31   :  { %8109 = vmatprep.subr.bf16.mxu1 %v13989_v20 }
 0xb33   :  { %8079 = vmatpush3.bf16.msra.mxu0 %v13990_v49 }
 0xb34   :  { %8111 = vmatpush3.bf16.msra.mxu1 %v13991_v39  ;;  %8113 = vmatprep.subr.bf16.mxu0 %v13959_v55  ;;  %v4128_v55 = vpop.permute.xlu0 %4127 }
 0xb35   :  { %8145 = vmatprep.subr.bf16.mxu1 %v13961_v25 }
 0xbe8   :  { %v4297_v21 = vpop.f32.mrb[88].mxu0 }
 0xbe9   :  { %v4299_v59 = vpop.f32.mrb[89].mxu0  ;;  %v4475_v22 = vpop.f32.mrb[88].mxu1  ;;  %v12323_v24 = vadd.f32 %v4297_v21, %v4116_v37 }
 0xbea   :  { %v12321_v47 = vadd.f32 %v4299_v59, %v4116_v37  ;;  %v4477_v58 = vpop.f32.mrb[89].mxu1  ;;  %v12327_v3 = vadd.f32 %v4475_v22, %v4116_v37 }
 0xbeb   :  { %v12325_v17 = vadd.f32 %v4477_v58, %v4116_v37 }
 0xbec   :  { %v4303_v19 = vpop.f32.mrb[90].mxu0  ;;  %4562 = vmatprep.mubr.f32.mxu0 %v12321_v47  ;;  %v4670_v9 = vmul.f32 %v12327_v3, %v12327_v3 }
 0xbed   :  { %v4305_v41 = vpop.f32.mrb[91].mxu0  ;;  %v4481_v12 = vpop.f32.mrb[90].mxu1  ;;  %4563 = vmatmul.mubr.f32.vlgmr.msra.gmra.mrb[96].mxu0 %v12323_v24  ;;  %4647 = vmatprep.mubr.f32.mxu1 %v12325_v17  ;;  %v12336_v35 = vadd.f32 %v4303_v19, %v4120_v28 }
 0xbee   :  { %v12332_v46 = vadd.f32 %v4305_v41, %v4120_v28  ;;  %8115 = vmatpush3.bf16.msra.mxu0 %v13962_v56  ;;  %v4483_v51 = vpop.f32.mrb[91].mxu1  ;;  %4648 = vmatmul.mubr.f32.vlgmr.msra.gmra.mrb[96].mxu1 %v12327_v3  ;;  %v12342_v44 = vadd.f32 %v4481_v12, %v4120_v28 }
 0xbef   :  { %v12338_v4 = vadd.f32 %v4483_v51, %v4120_v28  ;;  %8147 = vmatpush3.bf16.msra.mxu1 %v13963_v27  ;;  %8117 = vmatprep.subr.bf16.mxu0 %v13964_v16 }
 0xbf0   :  { %v4309_v23 = vpop.f32.mrb[92].mxu0  ;;  %4567 = vmatprep.mubr.f32.mxu0 %v12332_v46  ;;  %8149 = vmatprep.subr.bf16.mxu1 %v13965_v36 }
 0xbf1   :  { %v4311_v63 = vpop.f32.mrb[93].mxu0  ;;  %v4487_v11 = vpop.f32.mrb[92].mxu1  ;;  %4568 = vmatmul.mubr.f32.gmra.mrb[98].mxu0 %v12336_v35  ;;  %4652 = vmatprep.mubr.f32.mxu1 %v12338_v4  ;;  %v12352_v57 = vadd.f32 %v4309_v23, %v4124_v34 }
 0xbf2   :  { %v12348_v50 = vadd.f32 %v4311_v63, %v4124_v34  ;;  %8119 = vmatpush3.bf16.msra.mxu0 %v13966_v13  ;;  %v4489_v52 = vpop.f32.mrb[93].mxu1  ;;  %4653 = vmatmul.mubr.f32.gmra.mrb[98].mxu1 %v12342_v44  ;;  %v12358_v8 = vadd.f32 %v4487_v11, %v4124_v34 }
 0xbf3   :  { %v12354_v42 = vadd.f32 %v4489_v52, %v4124_v34  ;;  %8151 = vmatpush3.bf16.msra.mxu1 %v13967_v32  ;;  %8121 = vmatprep.subr.bf16.mxu0 %v13968_v2  ;;  %v4669_v32 = vmul.f32 %v12321_v47, %v12321_v47  ;;  %v4671_v2 = vmul.f32 %v12325_v17, %v12325_v17 }
 0xbf4   :  { %v4315_v25 = vpop.f32.mrb[94].mxu0  ;;  %4572 = vmatprep.mubr.f32.mxu0 %v12348_v50  ;;  %8153 = vmatprep.subr.bf16.mxu1 %v13969_v15  ;;  %v4668_v15 = vmul.f32 %v12323_v24, %v12323_v24 }
 0xbf5   :  { %v4317_v30 = vpop.f32.mrb[95].mxu0  ;;  %v4493_v56 = vpop.f32.mrb[94].mxu1  ;;  %4573 = vmatmul.mubr.f32.gmra.mrb[100].mxu0 %v12352_v57  ;;  %4657 = vmatprep.mubr.f32.mxu1 %v12354_v42  ;;  %v12368_v36 = vadd.f32 %v4315_v25, %v4128_v55 }
 0xbf6   :  { %v12364_v27 = vadd.f32 %v4317_v30, %v4128_v55  ;;  %8123 = vmatpush3.bf16.msra.mxu0 %v13970_v48  ;;  %v4495_v16 = vpop.f32.mrb[95].mxu1  ;;  %4658 = vmatmul.mubr.f32.gmra.mrb[100].mxu1 %v12358_v8  ;;  %v12374_v13 = vadd.f32 %v4493_v56, %v4128_v55  ;;  %v4673_v48 = vmul.f32 %v12332_v46, %v12332_v46 }
 0xbf7   :  { %v12370_v60 = vadd.f32 %v4495_v16, %v4128_v55  ;;  %8155 = vmatpush3.bf16.msra.mxu1 %v13971_v38  ;;  %8125 = vmatprep.subr.bf16.mxu0 %v13972_v54  ;;  %v4675_v38 = vmul.f32 %v12338_v4, %v12338_v4  ;;  %v4672_v54 = vmul.f32 %v12336_v35, %v12336_v35 }
 0xbf8   :  { %4577 = vmatprep.mubr.f32.mxu0 %v12364_v27  ;;  %8157 = vmatprep.subr.bf16.mxu1 %v13973_v0  ;;  %v4677_v0 = vmul.f32 %v12348_v50, %v12348_v50 }
 0xbf9   :  { %4578 = vmatmul.mubr.f32.gmra.mrb[102].mxu0 %v12368_v36  ;;  %4662 = vmatprep.mubr.f32.mxu1 %v12370_v60 }
 0xbfa   :  { %8127 = vmatpush3.bf16.msra.mxu0 %v13974_v53  ;;  %4663 = vmatmul.mubr.f32.gmra.mrb[102].mxu1 %v12374_v13  ;;  %v4674_v53 = vmul.f32 %v12342_v44, %v12342_v44 }
 0xbfb   :  { %4748 = vmatprep.mubr.f32.mxu0 %v4669_v32  ;;  %8159 = vmatpush3.bf16.msra.mxu1 %v13975_v10  ;;  %v4679_v10 = vmul.f32 %v12354_v42, %v12354_v42 }
 0xbfc   :  { %4833 = vmatprep.mubr.f32.mxu1 %v4671_v2  ;;  %8129 = vmatprep.subr.bf16.mxu0 %v13976_v6  ;;  %v4676_v6 = vmul.f32 %v12352_v57, %v12352_v57 }
 0xbfd   :  { %8161 = vmatprep.subr.bf16.mxu1 %v13977_v61  ;;  %v4681_v61 = vmul.f32 %v12364_v27, %v12364_v27 }
 0xbfe   :  { %8131 = vmatpush3.bf16.msra.mxu0 %v13978_v26  ;;  %v4678_v26 = vmul.f32 %v12358_v8, %v12358_v8 }
 0xbff   :  { %8163 = vmatpush3.bf16.msra.mxu1 %v13979_v33  ;;  %8133 = vmatprep.subr.bf16.mxu0 %v13980_v1  ;;  %v4683_v33 = vmul.f32 %v12370_v60, %v12370_v60  ;;  %v4680_v1 = vmul.f32 %v12368_v36, %v12368_v36 }
 0xc00   :  { %8165 = vmatprep.subr.bf16.mxu1 %v13981_v43  ;;  %v4682_v43 = vmul.f32 %v12374_v13, %v12374_v13 }
 0xc02   :  { %8135 = vmatpush3.bf16.msra.mxu0 %v13982_v45  ;;  %v8368_v45 = vld [vmem:[%s13209_s10] sm:$0xff] }
 0xc03   :  { %8167 = vmatpush3.bf16.msra.mxu1 %v13983_v18  ;;  %8137 = vmatprep.subr.bf16.mxu0 %v13984_v62  ;;  %v8409_v18 = vmov 7   ;;  %v12439_v62 = vld [vmem:[%s13205_s13] sm:$0xff] }
 0xc04   :  { %8169 = vmatprep.subr.bf16.mxu1 %v13985_v7  ;;  %8325 = vset.pattern.permute.xlu1 %v8409_v18  ;;  %v12445_v7 = vld [vmem:[%s13205_s13 + $0x8] sm:$0xff] }
 0xc05   :  { %8326 = vset.pattern.permute.xlu0 %v8409_v18  ;;  %5041 = vperm.xlu1 %8325, %v12439_v62  }
 0xc06   :  { %8139 = vmatpush3.bf16.msra.mxu0 %v13986_v40  ;;  %5045 = vperm.xlu0 %8326, %v12445_v7   ;;  %v12451_v40 = vld [vmem:[%s13205_s13 + $0x10] sm:$0xff] }
 0xc07   :  { %8171 = vmatpush3.bf16.msra.mxu1 %v13987_v31  ;;  %8141 = vmatprep.subr.bf16.mxu0 %v13988_v5  ;;  %v8410_v31 = vmov 8   ;;  %v12458_v5 = vld [vmem:[%s13205_s13 + $0x18] sm:$0xff] }
 0xc08   :  { %8173 = vmatprep.subr.bf16.mxu1 %v13989_v20 }
 0xc09   :  { %5049 = vperm.xlu1 %8325, %v12451_v40  }
 0xc0a   :  { %8143 = vmatpush3.bf16.msra.mxu0 %v13990_v49  ;;  %8327 = vset.pattern.permute.xlu0 %v8410_v31 }
 0xc0b   :  { %8175 = vmatpush3.bf16.msra.mxu1 %v13991_v39  ;;  %5065 = vperm.xlu0 %8327, %v12439_v62  }
 0xc0d   :  { %4749 = vmatmul.mubr.f32.vlgmr.msra.gmra.mrb[104].mxu0 %v4668_v15  ;;  %5053 = vperm.xlu1 %8325, %v12458_v5  }
 0xc0e   :  { %4753 = vmatprep.mubr.f32.mxu0 %v4673_v48  ;;  %4834 = vmatmul.mubr.f32.vlgmr.msra.gmra.mrb[104].mxu1 %v4670_v9 }
 0xc0f   :  { %4838 = vmatprep.mubr.f32.mxu1 %v4675_v38  ;;  %5077 = vperm.xlu0 %8327, %v12458_v5  }
 0xc11   :  { %4754 = vmatmul.mubr.f32.gmra.mrb[106].mxu0 %v4672_v54  ;;  %8328 = vset.pattern.permute.xlu1 %v8410_v31 }
 0xc12   :  { %4758 = vmatprep.mubr.f32.mxu0 %v4677_v0  ;;  %4839 = vmatmul.mubr.f32.gmra.mrb[106].mxu1 %v4674_v53  ;;  %v13992_v0 = vld [vmem:[#allocation63_spill] sm:$0xff] }
 0xc13   :  { %4843 = vmatprep.mubr.f32.mxu1 %v4679_v10  ;;  %5069 = vperm.xlu1 %8328, %v12445_v7   ;;  %v8373_v53 = vld [vmem:[%s13209_s10 + $0x8] sm:$0xff]  ;;  %v8374_v10 = vld [vmem:[%s13209_s10 + $0x10] sm:$0xff] }
 0xc15   :  { %4759 = vmatmul.mubr.f32.gmra.mrb[108].mxu0 %v4676_v6  ;;  %v13993_v6 = vld [vmem:[#allocation61_spill] sm:$0xff] }
 0xc16   :  { %4763 = vmatprep.mubr.f32.mxu0 %v4681_v61  ;;  %4844 = vmatmul.mubr.f32.gmra.mrb[108].mxu1 %v4678_v26  ;;  %v8375_v61 = vld [vmem:[%s13209_s10 + $0x18] sm:$0xff] }
 0xc17   :  { %4848 = vmatprep.mubr.f32.mxu1 %v4683_v33  ;;  %5073 = vperm.xlu1 %8328, %v12451_v40  }
 0xc19   :  { %4764 = vmatmul.mubr.f32.gmra.mrb[110].mxu0 %v4680_v1 }
 0xc1a   :  { %4849 = vmatmul.mubr.f32.gmra.mrb[110].mxu1 %v4682_v43  ;;  %7420 = vmatprep.mubr.msk.f32.mxu0 %vm969_vm9, %v8368_v45 }
 0xc1b   :  { %7434 = vmatprep.mubr.msk.f32.mxu1 %vm969_vm9, %v8368_v45 }
 0xcc0   :  { %v7196_v20 = vpop.f32.mrb[96].mxu0 }
 0xcc1   :  { %v7197_v49 = vpop.f32.mrb[97].mxu0  ;;  %v7240_v39 = vpop.f32.mrb[96].mxu1 }
 0xcc2   :  { %v7198_v37 = vadd.f32 %v7197_v49, %v7196_v20  ;;  %v7241_v21 = vpop.f32.mrb[97].mxu1 }
 0xcc3   :  { %v7242_v28 = vadd.f32 %v7241_v21, %v7240_v39 }
 0xcc4   :  { %v7199_v59 = vpop.f32.mrb[98].mxu0 }
 0xcc5   :  { %v4650_v22 = vadd.f32 %v7242_v28, %v7198_v37  ;;  %v7200_v58 = vpop.f32.mrb[99].mxu0  ;;  %v7243_v19 = vpop.f32.mrb[98].mxu1 }
 0xcc6   :  { %v7201_v41 = vadd.f32 %v7200_v58, %v7199_v59  ;;  %v7244_v12 = vpop.f32.mrb[99].mxu1 }
 0xcc7   :  { %v7245_v51 = vadd.f32 %v7244_v12, %v7243_v19 }
 0xcc8   :  { %v7202_v34 = vpop.f32.mrb[100].mxu0 }
 0xcc9   :  { %v4655_v23 = vadd.f32 %v7245_v51, %v7201_v41  ;;  %v7203_v63 = vpop.f32.mrb[101].mxu0  ;;  %v7246_v11 = vpop.f32.mrb[100].mxu1 }
 0xcca   :  { %v7204_v52 = vadd.f32 %v7203_v63, %v7202_v34  ;;  %v7247_v55 = vpop.f32.mrb[101].mxu1 }
 0xccb   :  { %v7248_v25 = vadd.f32 %v7247_v55, %v7246_v11  ;;  %v8176_v30 = vpack.c.bf16 %v4655_v23, %v4650_v22 }
 0xccc   :  { %v7205_v56 = vpop.f32.mrb[102].mxu0 }
 0xccd   :  { %v4660_v16 = vadd.f32 %v7248_v25, %v7204_v52  ;;  %v7206_v32 = vpop.f32.mrb[103].mxu0  ;;  %v7249_v2 = vpop.f32.mrb[102].mxu1  ;;  %8177 = vmatprep.subr.bf16.mxu0 %v8176_v30 }
 0xcce   :  { %v7207_v15 = vadd.f32 %v7206_v32, %v7205_v56  ;;  %v7250_v9 = vpop.f32.mrb[103].mxu1  ;;  %8179 = vmatpush3.bf16.msra.mxu0 %v8176_v30  ;;  %v13994_v32 = vld [vmem:[#allocation64_spill] sm:$0xff] }
 0xccf   :  { %v7251_v48 = vadd.f32 %v7250_v9, %v7249_v2  ;;  %v13995_v2 = vld [vmem:[#allocation62_spill] sm:$0xff] }
 0xcd1   :  { %v4665_v38 = vadd.f32 %v7251_v48, %v7207_v15  ;;  %v8411_v15 = vmov 9  }
 0xcd2   :  { %8329 = vset.pattern.permute.xlu1 %v8411_v15  ;;  %8330 = vset.pattern.permute.xlu0 %v8411_v15 }
 0xcd3   :  { %v8180_v54 = vpack.c.bf16 %v4665_v38, %v4660_v16  ;;  %5724 = vperm.xlu1 %8329, %v12439_v62   ;;  %5728 = vperm.xlu0 %8330, %v12445_v7  }
 0xcd5   :  { %8181 = vmatprep.subr.bf16.mxu0 %v8180_v54 }
 0xcd6   :  { %8183 = vmatpush3.bf16.msra.mxu0 %v8180_v54 }
 0xcd7   :  { %6741 = vmatprep.subr.msk.mxu0 %vm1243_vm10, %v13992_v0  ;;  %5732 = vperm.xlu1 %8329, %v12451_v40  }
 0xcd9   :  { %7421 = vmatmul.mubr.msk.f32.vlgmr.msra.gmra.mrb[112].mxu0 %vm969_vm9, %v8373_v53 }
 0xcda   :  { %7423 = vmatprep.mubr.msk.f32.mxu0 %vm969_vm9, %v8374_v10  ;;  %6742 = vmatpush1.msk.msra.mxu0 %vm1243_vm10, %v13993_v6 }
 0xcdb   :  { %6753 = vmatprep.subr.msk.mxu0 %vm1243_vm10, %v13992_v0  ;;  %5736 = vperm.xlu1 %8329, %v12458_v5  }
 0xcdd   :  { %7424 = vmatmul.mubr.msk.f32.gmra.mrb[114].mxu0 %vm969_vm9, %v8375_v61 }
 0xcde   :  { %5160 = vmatprep.mubr.f32.mxu0 %v13960_v29 }
 0xce0   :  { %v7284_v26 = vpop.f32.mrb[104].mxu0 }
 0xce1   :  { %v7285_v33 = vpop.f32.mrb[105].mxu0  ;;  %v7328_v1 = vpop.f32.mrb[104].mxu1 }
 0xce2   :  { %v7286_v43 = vadd.f32 %v7285_v33, %v7284_v26  ;;  %v7329_v45 = vpop.f32.mrb[105].mxu1 }
 0xce3   :  { %v7330_v18 = vadd.f32 %v7329_v45, %v7328_v1 }
 0xce4   :  { %v7287_v31 = vpop.f32.mrb[106].mxu0 }
 0xce5   :  { %v4836_v20 = vadd.f32 %v7330_v18, %v7286_v43  ;;  %v7288_v49 = vpop.f32.mrb[107].mxu0  ;;  %v7331_v39 = vpop.f32.mrb[106].mxu1 }
 0xce6   :  { %v7289_v37 = vadd.f32 %v7288_v49, %v7287_v31  ;;  %v7332_v21 = vpop.f32.mrb[107].mxu1  ;;  %v5042_v49 = vpop.permute.xlu1 %5041 }
 0xce7   :  { %v7333_v28 = vadd.f32 %v7332_v21, %v7331_v39  ;;  %v5046_v21 = vpop.permute.xlu0 %5045 }
 0xce8   :  { %v7290_v59 = vpop.f32.mrb[108].mxu0 }
 0xce9   :  { %v4841_v22 = vadd.f32 %v7333_v28, %v7289_v37  ;;  %v7291_v58 = vpop.f32.mrb[109].mxu0  ;;  %v7334_v19 = vpop.f32.mrb[108].mxu1 }
 0xcea   :  { %v7292_v41 = vadd.f32 %v7291_v58, %v7290_v59  ;;  %v7335_v12 = vpop.f32.mrb[109].mxu1  ;;  %v5050_v37 = vpop.permute.xlu1 %5049 }
 0xceb   :  { %v7336_v51 = vadd.f32 %v7335_v12, %v7334_v19  ;;  %v8184_v34 = vpack.c.bf16 %v4841_v22, %v4836_v20 }
 0xcec   :  { %v7293_v23 = vpop.f32.mrb[110].mxu0 }
 0xced   :  { %v4846_v63 = vadd.f32 %v7336_v51, %v7292_v41  ;;  %v7294_v11 = vpop.f32.mrb[111].mxu0  ;;  %v7337_v52 = vpop.f32.mrb[110].mxu1  ;;  %8185 = vmatprep.subr.bf16.mxu1 %v8184_v34 }
 0xcee   :  { %v7295_v55 = vadd.f32 %v7294_v11, %v7293_v23  ;;  %v7338_v25 = vpop.f32.mrb[111].mxu1  ;;  %8187 = vmatpush3.bf16.msra.mxu1 %v8184_v34  ;;  %v5054_v12 = vpop.permute.xlu1 %5053 }
 0xcef   :  { %v7339_v30 = vadd.f32 %v7338_v25, %v7337_v52  ;;  %v8376_v52 = vld [vmem:[%s13204_s0 + $0x8] sm:$0xff] }
 0xcf1   :  { %v4851_v56 = vadd.f32 %v7339_v30, %v7295_v55  ;;  %v8377_v55 = vld [vmem:[%s13204_s0 + $0x18] sm:$0xff] }
 0xcf2   :  { %v5070_v30 = vpop.permute.xlu1 %5069 }
 0xcf3   :  { %v8188_v16 = vpack.c.bf16 %v4851_v56, %v4846_v63 }
 0xcf5   :  { %8189 = vmatprep.subr.bf16.mxu1 %v8188_v16 }
 0xcf6   :  { %8191 = vmatpush3.bf16.msra.mxu1 %v8188_v16  ;;  %v5074_v15 = vpop.permute.xlu1 %5073 }
 0xcf7   :  { %6747 = vmatprep.subr.msk.mxu1 %vm1243_vm10, %v13994_v32 }
 0xcf9   :  { %7435 = vmatmul.mubr.msk.f32.vlgmr.msra.gmra.mrb[112].mxu1 %vm969_vm9, %v8373_v53 }
 0xcfa   :  { %7437 = vmatprep.mubr.msk.f32.mxu1 %vm969_vm9, %v8374_v10  ;;  %6748 = vmatpush1.msk.msra.mxu1 %vm1243_vm10, %v13995_v2 }
 0xcfb   :  { %6759 = vmatprep.subr.msk.mxu1 %vm1243_vm10, %v13994_v32  ;;  %v8378_v32 = vld [vmem:[%s13204_s0] sm:$0xff] }
 0xcfd   :  { %7438 = vmatmul.mubr.msk.f32.gmra.mrb[114].mxu1 %vm969_vm9, %v8375_v61 }
 0xcfe   :  { %5249 = vmatprep.mubr.f32.mxu1 %v13960_v29 }
 0xdac   :  { %v7422_v9 = vpop.f32.mrb[112].mxu0 }
 0xdad   :  { %v4920_v48 = vpop.f32.mrb[113].mxu0  ;;  %v5025_v0 = vmul.f32 %v7422_v9, %v7422_v9 }
 0xdae   :  { %v5024_v53 = vmul.f32 %v4920_v48, %v4920_v48 }
 0xdb0   :  { %v7425_v38 = vpop.f32.mrb[114].mxu0 }
 0xdb1   :  { %v4930_v54 = vpop.f32.mrb[115].mxu0  ;;  %v5027_v33 = vmul.f32 %v7425_v38, %v7425_v38 }
 0xdb2   :  { %v5026_v43 = vmul.f32 %v4930_v54, %v4930_v54 }
 0xdcc   :  { %v7436_v10 = vpop.f32.mrb[112].mxu1 }
 0xdcd   :  { %v5029_v61 = vsub.f32 %v7436_v10, %v5025_v0  ;;  %v5005_v26 = vpop.f32.mrb[113].mxu1  ;;  %v5513_v0 = vld [vmem:[%s13213_s6 + $0x8] sm:$0xff]  ;;  %v5515_v10 = vld [vmem:[%s13213_s6 + $0x18] sm:$0xff] }
 0xdce   :  { %v5028_v1 = vsub.f32 %v5005_v26, %v5024_v53  ;;  %v5514_v53 = vld [vmem:[%s13213_s6 + $0x10] sm:$0xff]  ;;  %v12581_v26 = vld [vmem:[%s13214_s1 + $0x8] sm:$0xff] }
 0xdcf   :  { %v5033_v45 = vadd.f32 1e-05, %v5029_v61  ;;  %v12576_v61 = vld [vmem:[%s13214_s1] sm:$0xff]  ;;  %5939 = vrot.lane.b32.xlu1 %v12581_v26, %s8392_s17 }
 0xdd0   :  { %v5032_v18 = vadd.f32 1e-05, %v5028_v1  ;;  %v7439_v31 = vpop.f32.mrb[114].mxu1  ;;  %5937 = vrot.lane.b32.xlu0 %v12576_v61, %s8392_s17  ;;  %v12595_v1 = vld [vmem:[%s13214_s1 + $0x18] sm:$0xff] }
 0xdd1   :  { %8348 = vrsqrt.f32 %v5033_v45  ;;  %v5031_v7 = vsub.f32 %v7439_v31, %v5027_v33  ;;  %v5015_v40 = vpop.f32.mrb[115].mxu1  ;;  %v12590_v33 = vld [vmem:[%s13214_s1 + $0x10] sm:$0xff] }
 0xdd2   :  { %8350 = vrsqrt.f32 %v5032_v18  ;;  %v5030_v5 = vsub.f32 %v5015_v40, %v5026_v43 }
 0xdd3   :  { %v5035_v20 = vadd.f32 1e-05, %v5031_v7  ;;  %5943 = vrot.lane.b32.xlu1 %v12595_v1, %s8392_s17 }
 0xdd4   :  { %v5034_v39 = vadd.f32 1e-05, %v5030_v5  ;;  %5941 = vrot.lane.b32.xlu0 %v12590_v33, %s8392_s17 }
 0xdd5   :  { %8352 = vrsqrt.f32 %v5035_v20 }
 0xdd6   :  { %8354 = vrsqrt.f32 %v5034_v39 }
 0xdd7   :  { %6013 = vrot.lane.b32.xlu1 %v12576_v61, %s8393_s22 }
 0xdd8   :  { %6628 = vrot.lane.b32.xlu0 %v12439_v62, %s8412_s20 }
 0xddb   :  { %v8349_v28 = vpop.eup %8348  ;;  %6017 = vrot.lane.b32.xlu1 %v12590_v33, %s8393_s22 }
 0xddc   :  { %v8351_v59 = vpop.eup %8350  ;;  %v5057_v22 = vmul.f32 %v8349_v28, %v5046_v21  ;;  %6015 = vrot.lane.b32.xlu0 %v12581_v26, %s8393_s22 }
 0xddd   :  { %v5056_v58 = vmul.f32 %v8351_v59, %v5042_v49 }
 0xdde   :  { %v5061_v19 = vmul.f32 %v7422_v9, %v5057_v22 }
 0xddf   :  { %v8353_v41 = vpop.eup %8352  ;;  %6743 = vmatmul.mubr.msk.f32.vlgmr.msra.gmra.mrb[116].mxu0 %vm1230_vm11, %v5056_v58  ;;  %6749 = vmatmul.mubr.msk.f32.vlgmr.msra.gmra.mrb[116].mxu1 %vm1230_vm11, %v5056_v58  ;;  %v5060_v51 = vmul.f32 %v5056_v58, %v4920_v48 }
 0xde0   :  { %v8355_v34 = vpop.eup %8354  ;;  %v5059_v23 = vmul.f32 %v8353_v41, %v5054_v12  ;;  %5166 = vmatprep.mubr.f32.mxu0 %v13960_v29  ;;  %5255 = vmatprep.mubr.f32.mxu1 %v13960_v29  ;;  %v5081_v16 = vsub.f32 %v5070_v30, %v5061_v19 }
 0xde1   :  { %v5058_v63 = vmul.f32 %v8355_v34, %v5050_v37  ;;  %6754 = vmatpush1.msk.msra.mxu0 %vm1243_vm10, %v13993_v6  ;;  %6760 = vmatpush1.msk.msra.mxu1 %vm1243_vm10, %v13995_v2  ;;  %v5066_v6 = vpop.permute.xlu0 %5065  ;;  %v8379_v2 = vld [vmem:[%s13204_s0 + $0x10] sm:$0xff] }
 0xde2   :  { %v5063_v11 = vmul.f32 %v7425_v38, %v5059_v23  ;;  %5529 = vmatprep.subr.mxu0 %v8376_v52  ;;  %5618 = vmatprep.subr.mxu1 %v8377_v55  ;;  %v5080_v56 = vsub.f32 %v5066_v6, %v5060_v51 }
 0xde3   :  { %6744 = vmatmul.mubr.msk.f32.gmra.mrb[118].mxu0 %vm1230_vm11, %v5057_v22  ;;  %6750 = vmatmul.mubr.msk.f32.gmra.mrb[118].mxu1 %vm1230_vm11, %v5057_v22  ;;  %v5062_v25 = vmul.f32 %v5058_v63, %v4930_v54  ;;  %v5512_v54 = vld [vmem:[%s13213_s6] sm:$0xff] }
 0xde4   :  { %5172 = vmatprep.mubr.f32.mxu0 %v13960_v29  ;;  %5261 = vmatprep.mubr.f32.mxu1 %v13960_v29 }
 0xde5   :  { %v5082_v9 = vsub.f32 %v5074_v15, %v5062_v25  ;;  %v5078_v48 = vpop.permute.xlu0 %5077  ;;  %6019 = vrot.lane.b32.xlu0 %v12595_v1, %s8393_s22  ;;  %6081 = vrot.lane.b32.xlu1 %v12576_v61, %s8394_s23 }
 0xde6   :  { %v5083_v38 = vsub.f32 %v5078_v48, %v5063_v11 }
 0xde7   :  { %6745 = vmatmul.mubr.msk.f32.gmra.mrb[120].mxu0 %vm1230_vm11, %v5058_v63  ;;  %6751 = vmatmul.mubr.msk.f32.gmra.mrb[120].mxu1 %vm1230_vm11, %v5058_v63 }
 0xde8   :  { %5178 = vmatprep.mubr.f32.mxu0 %v13960_v29  ;;  %5267 = vmatprep.mubr.f32.mxu1 %v13960_v29 }
 0xde9   :  { %6083 = vrot.lane.b32.xlu0 %v12581_v26, %s8394_s23  ;;  %6085 = vrot.lane.b32.xlu1 %v12590_v33, %s8394_s23 }
 0xdeb   :  { %6746 = vmatmul.mubr.msk.f32.gmra.mrb[122].mxu0 %vm1230_vm11, %v5059_v23  ;;  %6752 = vmatmul.mubr.msk.f32.gmra.mrb[122].mxu1 %vm1230_vm11, %v5059_v23 }
 0xdec   :  { %5350 = vmatprep.mubr.f32.mxu0 %v13960_v29  ;;  %5439 = vmatprep.mubr.f32.mxu1 %v13960_v29 }
 0xded   :  { %6087 = vrot.lane.b32.xlu0 %v12595_v1, %s8394_s23  ;;  %6149 = vrot.lane.b32.xlu1 %v12576_v61, %s8395_s24 }
 0xdef   :  { %6755 = vmatmul.mubr.msk.f32.vlgmr.msra.gmra.mrb[124].mxu0 %vm1230_vm11, %v5080_v56  ;;  %6761 = vmatmul.mubr.msk.f32.vlgmr.msra.gmra.mrb[124].mxu1 %vm1230_vm11, %v5080_v56 }
 0xdf0   :  { %5356 = vmatprep.mubr.f32.mxu0 %v13960_v29  ;;  %5445 = vmatprep.mubr.f32.mxu1 %v13960_v29 }
 0xdf1   :  { %5530 = vmatpush1.msra.mxu0 %v8378_v32  ;;  %5619 = vmatpush1.msra.mxu1 %v8379_v2 }
 0xdf2   :  { %6151 = vrot.lane.b32.xlu0 %v12581_v26, %s8395_s24  ;;  %6153 = vrot.lane.b32.xlu1 %v12590_v33, %s8395_s24 }
 0xdf3   :  { %6756 = vmatmul.mubr.msk.f32.gmra.mrb[126].mxu0 %vm1230_vm11, %v5081_v16  ;;  %6762 = vmatmul.mubr.msk.f32.gmra.mrb[126].mxu1 %vm1230_vm11, %v5081_v16 }
 0xdf4   :  { %5362 = vmatprep.mubr.f32.mxu0 %v13960_v29  ;;  %5451 = vmatprep.mubr.f32.mxu1 %v13960_v29 }
 0xdf6   :  { %6155 = vrot.lane.b32.xlu0 %v12595_v1, %s8395_s24  ;;  %6241 = vrot.lane.b32.xlu1 %v12576_v61, %s8396_s25 }
 0xdf7   :  { %6757 = vmatmul.mubr.msk.f32.gmra.mrb[128].mxu0 %vm1230_vm11, %v5082_v9  ;;  %6763 = vmatmul.mubr.msk.f32.gmra.mrb[128].mxu1 %vm1230_vm11, %v5082_v9 }
 0xdf8   :  { %5368 = vmatprep.mubr.f32.mxu0 %v13960_v29  ;;  %5457 = vmatprep.mubr.f32.mxu1 %v13960_v29 }
 0xdfa   :  { %6243 = vrot.lane.b32.xlu0 %v12581_v26, %s8396_s25  ;;  %6245 = vrot.lane.b32.xlu1 %v12590_v33, %s8396_s25 }
 0xdfb   :  { %6758 = vmatmul.mubr.msk.f32.gmra.mrb[130].mxu0 %vm1230_vm11, %v5083_v38  ;;  %6764 = vmatmul.mubr.msk.f32.gmra.mrb[130].mxu1 %vm1230_vm11, %v5083_v38 }
 0xdfc   :  { %5593 = vmatprep.mubr.f32.mxu0 %v13960_v29  ;;  %5682 = vmatprep.mubr.f32.mxu1 %v13960_v29 }
 0xdfe   :  { %6247 = vrot.lane.b32.xlu0 %v12595_v1, %s8396_s25  ;;  %6309 = vrot.lane.b32.xlu1 %v12576_v61, %s13602_s12 }
 0xdff   :  { %6765 = vmatmul.mubr.msk.f32.vlgmr.msra.gmra.mrb[132].mxu0 %vm5516_vm12, %v5512_v54  ;;  %6769 = vmatmul.mubr.msk.f32.vlgmr.msra.gmra.mrb[132].mxu1 %vm5516_vm12, %v5512_v54 }
 0xe00   :  { %5599 = vmatprep.mubr.f32.mxu0 %v13960_v29  ;;  %5688 = vmatprep.mubr.f32.mxu1 %v13960_v29 }
 0xe02   :  { %6311 = vrot.lane.b32.xlu0 %v12581_v26, %s13602_s12  ;;  %6313 = vrot.lane.b32.xlu1 %v12590_v33, %s13602_s12 }
 0xe03   :  { %6766 = vmatmul.mubr.msk.f32.gmra.mrb[134].mxu0 %vm5516_vm12, %v5513_v0  ;;  %6770 = vmatmul.mubr.msk.f32.gmra.mrb[134].mxu1 %vm5516_vm12, %v5513_v0 }
 0xe04   :  { %5605 = vmatprep.mubr.f32.mxu0 %v13960_v29  ;;  %5694 = vmatprep.mubr.f32.mxu1 %v13960_v29 }
 0xe06   :  { %6315 = vrot.lane.b32.xlu0 %v12595_v1, %s13602_s12  ;;  %6377 = vrot.lane.b32.xlu1 %v12576_v61, %s13603_s29 }
 0xe07   :  { %6767 = vmatmul.mubr.msk.f32.gmra.mrb[136].mxu0 %vm5516_vm12, %v5514_v53  ;;  %6771 = vmatmul.mubr.msk.f32.gmra.mrb[136].mxu1 %vm5516_vm12, %v5514_v53 }
 0xe08   :  { %5611 = vmatprep.mubr.f32.mxu0 %v13960_v29  ;;  %5700 = vmatprep.mubr.f32.mxu1 %v13960_v29 }
 0xe0a   :  { %6379 = vrot.lane.b32.xlu0 %v12581_v26, %s13603_s29 }
 0xe0b   :  { %6768 = vmatmul.mubr.msk.f32.gmra.mrb[138].mxu0 %vm5516_vm12, %v5515_v10  ;;  %6772 = vmatmul.mubr.msk.f32.gmra.mrb[138].mxu1 %vm5516_vm12, %v5515_v10 }
 0xe0c   :  { %5831 = vmatprep.mubr.f32.mxu0 %v13960_v29  ;;  %5908 = vmatprep.mubr.f32.mxu1 %v13960_v29 }
 0xeb2   :  { %v5162_v62 = vpop.f32.mrb[116].mxu0  ;;  %v5251_v43 = vpop.f32.mrb[116].mxu1 }
 0xeb3   :  { %v5164_v45 = vpop.f32.mrb[117].mxu0  ;;  %v5253_v18 = vpop.f32.mrb[117].mxu1  ;;  %v5464_v58 = vmul.f32 %v12323_v24, %v5162_v62  ;;  %v5466_v19 = vmul.f32 %v12327_v3, %v5251_v43 }
 0xeb4   :  { %v5465_v41 = vmul.f32 %v12321_v47, %v5164_v45  ;;  %v5467_v12 = vmul.f32 %v12325_v17, %v5253_v18 }
 0xeb6   :  { %v5168_v31 = vpop.f32.mrb[118].mxu0  ;;  %v5257_v7 = vpop.f32.mrb[118].mxu1 }
 0xeb7   :  { %v5170_v40 = vpop.f32.mrb[119].mxu0  ;;  %v5259_v5 = vpop.f32.mrb[119].mxu1  ;;  %v5468_v6 = vmul.f32 %v12336_v35, %v5168_v31  ;;  %v5470_v30 = vmul.f32 %v12342_v44, %v5257_v7 }
 0xeb8   :  { %v5469_v24 = vmul.f32 %v12332_v46, %v5170_v40  ;;  %v5471_v3 = vmul.f32 %v12338_v4, %v5259_v5 }
 0xeba   :  { %v5174_v20 = vpop.f32.mrb[120].mxu0  ;;  %v5263_v49 = vpop.f32.mrb[120].mxu1 }
 0xebb   :  { %v5176_v39 = vpop.f32.mrb[121].mxu0  ;;  %v5265_v37 = vpop.f32.mrb[121].mxu1  ;;  %v5472_v48 = vmul.f32 %v12352_v57, %v5174_v20  ;;  %v5474_v38 = vmul.f32 %v12358_v8, %v5263_v49 }
 0xebc   :  { %v5473_v35 = vmul.f32 %v12348_v50, %v5176_v39  ;;  %v5475_v44 = vmul.f32 %v12354_v42, %v5265_v37  ;;  %v5725_v37 = vpop.permute.xlu1 %5724 }
 0xebe   :  { %v5180_v21 = vpop.f32.mrb[122].mxu0  ;;  %v5269_v28 = vpop.f32.mrb[122].mxu1 }
 0xebf   :  { %v5182_v59 = vpop.f32.mrb[123].mxu0  ;;  %v5271_v22 = vpop.f32.mrb[123].mxu1  ;;  %v5476_v45 = vmul.f32 %v12368_v36, %v5180_v21  ;;  %v5478_v18 = vmul.f32 %v12374_v13, %v5269_v28 }
 0xec0   :  { %v5477_v57 = vmul.f32 %v12364_v27, %v5182_v59  ;;  %v5479_v8 = vmul.f32 %v12370_v60, %v5271_v22 }
 0xec2   :  { %v5352_v51 = vpop.f32.mrb[124].mxu0  ;;  %v5441_v34 = vpop.f32.mrb[124].mxu1 }
 0xec3   :  { %v5480_v23 = vadd.f32 %v5464_v58, %v5352_v51  ;;  %v5482_v63 = vadd.f32 %v5466_v19, %v5441_v34  ;;  %v5354_v11 = vpop.f32.mrb[125].mxu0  ;;  %v5443_v52 = vpop.f32.mrb[125].mxu1 }
 0xec4   :  { %v5481_v55 = vadd.f32 %v5465_v41, %v5354_v11  ;;  %v5483_v25 = vadd.f32 %v5467_v12, %v5443_v52  ;;  %v5729_v34 = vpop.permute.xlu0 %5728 }
 0xec5   :  { %v5496_v39 = vmax.f32 %v5480_v23, 0.0  ;;  %v5498_v36 = vmax.f32 %v5482_v63, 0.0 }
 0xec6   :  { %v5358_v56 = vpop.f32.mrb[126].mxu0  ;;  %v5447_v47 = vpop.f32.mrb[126].mxu1  ;;  %v5497_v13 = vmax.f32 %v5481_v55, 0.0  ;;  %v5499_v21 = vmax.f32 %v5483_v25, 0.0 }
 0xec7   :  { %v5484_v16 = vadd.f32 %v5468_v6, %v5358_v56  ;;  %v5486_v17 = vadd.f32 %v5470_v30, %v5447_v47  ;;  %v5360_v32 = vpop.f32.mrb[127].mxu0  ;;  %v5449_v2 = vpop.f32.mrb[127].mxu1 }
 0xec8   :  { %v5485_v15 = vadd.f32 %v5469_v24, %v5360_v32  ;;  %v5487_v9 = vadd.f32 %v5471_v3, %v5449_v2 }
 0xec9   :  { %v5500_v12 = vmax.f32 %v5484_v16, 0.0  ;;  %v5502_v51 = vmax.f32 %v5486_v17, 0.0 }
 0xeca   :  { %v5364_v54 = vpop.f32.mrb[128].mxu0  ;;  %v5453_v46 = vpop.f32.mrb[128].mxu1  ;;  %v5501_v11 = vmax.f32 %v5485_v15, 0.0  ;;  %v5503_v52 = vmax.f32 %v5487_v9, 0.0 }
 0xecb   :  { %v5488_v0 = vadd.f32 %v5472_v48, %v5364_v54  ;;  %v5490_v4 = vadd.f32 %v5474_v38, %v5453_v46  ;;  %v5366_v53 = vpop.f32.mrb[129].mxu0  ;;  %v5455_v10 = vpop.f32.mrb[129].mxu1 }
 0xecc   :  { %v5489_v62 = vadd.f32 %v5473_v35, %v5366_v53  ;;  %v5491_v43 = vadd.f32 %v5475_v44, %v5455_v10  ;;  %v5733_v35 = vpop.permute.xlu1 %5732 }
 0xecd   :  { %v5504_v23 = vmax.f32 %v5488_v0, 0.0  ;;  %v5506_v63 = vmax.f32 %v5490_v4, 0.0 }
 0xece   :  { %v5370_v31 = vpop.f32.mrb[130].mxu0  ;;  %v5459_v50 = vpop.f32.mrb[130].mxu1  ;;  %v5505_v56 = vmax.f32 %v5489_v62, 0.0  ;;  %v5507_v47 = vmax.f32 %v5491_v43, 0.0 }
 0xecf   :  { %v12662_v7 = vadd.f32 %v5476_v45, %v5370_v31  ;;  %v12664_v42 = vadd.f32 %v5478_v18, %v5459_v50  ;;  %v5372_v40 = vpop.f32.mrb[131].mxu0  ;;  %v5461_v5 = vpop.f32.mrb[131].mxu1 }
 0xed0   :  { %v12666_v20 = vadd.f32 %v5477_v57, %v5372_v40  ;;  %v12668_v49 = vadd.f32 %v5479_v8, %v5461_v5 }
 0xed1   :  { %v5508_v50 = vmax.f32 %v12662_v7, 0.0  ;;  %v5510_v40 = vmax.f32 %v12664_v42, 0.0 }
 0xed2   :  { %v5595_v27 = vpop.f32.mrb[132].mxu0  ;;  %v5684_v28 = vpop.f32.mrb[132].mxu1  ;;  %v5509_v5 = vmax.f32 %v12666_v20, 0.0  ;;  %v6467_v20 = vld [vmem:[%s13215_s8 + $0x8] sm:$0xff] }
 0xed3   :  { %v5707_v60 = vadd.f32 %v5595_v27, %v5496_v39  ;;  %v5709_v59 = vadd.f32 %v5684_v28, %v5498_v36  ;;  %v5597_v22 = vpop.f32.mrb[133].mxu0  ;;  %v5686_v58 = vpop.f32.mrb[133].mxu1  ;;  %v5511_v39 = vmax.f32 %v12668_v49, 0.0  ;;  %v6469_v49 = vld [vmem:[%s13215_s8 + $0x18] sm:$0xff] }
 0xed4   :  { %v5708_v19 = vadd.f32 %v5597_v22, %v5497_v13  ;;  %v5710_v41 = vadd.f32 %v5686_v58, %v5499_v21 }
 0xed5   :  { %v5739_v48 = vadd.f32 %v5725_v37, %v5707_v60  ;;  %v5741_v38 = vadd.f32 %v5725_v37, %v5709_v59  ;;  %v5737_v60 = vpop.permute.xlu1 %5736 }
 0xed6   :  { %v5601_v6 = vpop.f32.mrb[134].mxu0  ;;  %v5690_v30 = vpop.f32.mrb[134].mxu1  ;;  %v5740_v44 = vadd.f32 %v5725_v37, %v5708_v19  ;;  %v5742_v15 = vadd.f32 %v5725_v37, %v5710_v41 }
 0xed7   :  { %v5711_v24 = vadd.f32 %v5601_v6, %v5500_v12  ;;  %v5713_v55 = vadd.f32 %v5690_v30, %v5502_v51  ;;  %v5603_v25 = vpop.f32.mrb[135].mxu0  ;;  %v5692_v3 = vpop.f32.mrb[135].mxu1 }
 0xed8   :  { %v5712_v32 = vadd.f32 %v5603_v25, %v5501_v11  ;;  %v5714_v2 = vadd.f32 %v5692_v3, %v5503_v52  ;;  %v6473_v25 = vld [vmem:[%s13215_s8 + $0x38] sm:$0xff]  ;;  %v5759_v3 = vld [vmem:[%s13216_s7] sm:$0xff] }
 0xed9   :  { %v5743_v16 = vadd.f32 %v5729_v34, %v5711_v24  ;;  %v5745_v17 = vadd.f32 %v5729_v34, %v5713_v55  ;;  %v6468_v24 = vld [vmem:[%s13215_s8 + $0x10] sm:$0xff]  ;;  %v6471_v55 = vld [vmem:[%s13215_s8 + $0x28] sm:$0xff] }
 0xeda   :  { %v5744_v9 = vadd.f32 %v5729_v34, %v5712_v32  ;;  %v5746_v54 = vadd.f32 %v5729_v34, %v5714_v2  ;;  %v5607_v46 = vpop.f32.mrb[136].mxu0  ;;  %v5696_v0 = vpop.f32.mrb[136].mxu1  ;;  %v6470_v32 = vld [vmem:[%s13215_s8 + $0x20] sm:$0xff]  ;;  %v6472_v2 = vld [vmem:[%s13215_s8 + $0x30] sm:$0xff] }
 0xedb   :  { %v5715_v4 = vadd.f32 %v5607_v46, %v5504_v23  ;;  %v5717_v53 = vadd.f32 %v5696_v0, %v5506_v63  ;;  %v5609_v10 = vpop.f32.mrb[137].mxu0  ;;  %v5698_v45 = vpop.f32.mrb[137].mxu1  ;;  %v8194_v18 = vpack.c.bf16 %v5743_v16, %v5739_v48  ;;  %v8202_v62 = vpack.c.bf16 %v5745_v17, %v5741_v38  ;;  %v6466_v63 = vld [vmem:[%s13215_s8] sm:$0xff]  ;;  %v5760_v48 = vld [vmem:[%s13216_s7 + $0x8] sm:$0x1] }
 0xedc   :  { %v5716_v43 = vadd.f32 %v5609_v10, %v5505_v56  ;;  %v5718_v57 = vadd.f32 %v5698_v45, %v5507_v47  ;;  %v8192_v8 = vpack.c.bf16 %v5744_v9, %v5740_v44  ;;  %v8200_v31 = vpack.c.bf16 %v5746_v54, %v5742_v15  ;;  %v6778_v16 = vld [vmem:[%s13217_s2 + $0x8] sm:$0xff]  ;;  %v5938_v17 = vpop.permute.xlu0 %5937  ;;  %v5940_v44 = vpop.permute.xlu1 %5939 }
 0xedd   :  { %v5747_v7 = vadd.f32 %v5733_v35, %v5715_v4  ;;  %v5749_v58 = vadd.f32 %v5733_v35, %v5717_v53  ;;  %v8208_v23 = vpack.c.bf16 %v6469_v49, %v6467_v20  ;;  %v8210_v56 = vpack.c.bf16 %v6468_v24, %v6466_v63 }
 0xede   :  { %v5613_v36 = vpop.f32.mrb[138].mxu0  ;;  %v5702_v37 = vpop.f32.mrb[138].mxu1  ;;  %8193 = vmatprep.subr.bf16.mxu0 %v8192_v8  ;;  %8201 = vmatprep.subr.bf16.mxu1 %v8200_v31  ;;  %v5748_v41 = vadd.f32 %v5733_v35, %v5716_v43  ;;  %v5750_v12 = vadd.f32 %v5733_v35, %v5718_v57  ;;  %v8212_v47 = vpack.c.bf16 %v6473_v25, %v6471_v55  ;;  %v6465_v35 = vld [vmem:[%s13217_s2] sm:$0xff] }
 0xedf   :  { %v5719_v13 = vadd.f32 %v5613_v36, %v5508_v50  ;;  %v5721_v21 = vadd.f32 %v5702_v37, %v5510_v40  ;;  %v5615_v27 = vpop.f32.mrb[139].mxu0  ;;  %v5704_v28 = vpop.f32.mrb[139].mxu1  ;;  %8195 = vmatpush1.bf16.msra.mxu0 %v8194_v18  ;;  %8203 = vmatpush1.bf16.msra.mxu1 %v8202_v62  ;;  %v8214_v38 = vpack.c.bf16 %v6472_v2, %v6470_v32 }
 0xee0   :  { %v5720_v59 = vadd.f32 %v5615_v27, %v5509_v5  ;;  %v5722_v22 = vadd.f32 %v5704_v28, %v5511_v39  ;;  %v12722_v15 = vsel %vm146_vm0, %v5938_v17, %v5940_v44  ;;  %v5944_v9 = vpop.permute.xlu1 %5943 }
 0xee1   :  { %v5751_v42 = vadd.f32 %v5737_v60, %v5719_v13  ;;  %v5753_v19 = vadd.f32 %v5737_v60, %v5721_v21  ;;  %v12734_v0 = vsel %vm146_vm0, %v5944_v9, %v5938_v17 }
 0xee2   :  { %v5752_v51 = vadd.f32 %v5737_v60, %v5720_v59  ;;  %v5754_v34 = vadd.f32 %v5737_v60, %v5722_v22 }
 0xee3   :  { %v8198_v11 = vpack.c.bf16 %v5751_v42, %v5747_v7  ;;  %v8206_v52 = vpack.c.bf16 %v5753_v19, %v5749_v58 }
 0xee4   :  { %v8196_v6 = vpack.c.bf16 %v5752_v51, %v5748_v41  ;;  %v8204_v30 = vpack.c.bf16 %v5754_v34, %v5750_v12  ;;  %v6014_v10 = vpop.permute.xlu1 %6013 }
 0xee6   :  { %8197 = vmatprep.subr.bf16.mxu0 %v8196_v6  ;;  %8205 = vmatprep.subr.bf16.mxu1 %v8204_v30 }
 0xee7   :  { %8199 = vmatpush1.bf16.msra.mxu0 %v8198_v11  ;;  %8207 = vmatpush1.bf16.msra.mxu1 %v8206_v52 }
 0xee8   :  { %8209 = vmatprep.subr.bf16.mxu0 %v8208_v23  ;;  %8217 = vmatprep.subr.bf16.mxu1 %v8208_v23  ;;  %v6018_v62 = vpop.permute.xlu1 %6017 }
 0xeea   :  { %6773 = vmatmul.mubr.msk.f32.vlgmr.msra.gmra.mrb[140].mxu0 %vm969_vm9, %v5759_v3  ;;  %6775 = vmatmul.mubr.msk.f32.vlgmr.msra.gmra.mrb[140].mxu1 %vm969_vm9, %v5759_v3 }
 0xeeb   :  { %5837 = vmatprep.mubr.f32.mxu0 %v13960_v29  ;;  %5914 = vmatprep.mubr.f32.mxu1 %v13960_v29 }
 0xeec   :  { %8211 = vmatpush1.bf16.msra.mxu0 %v8210_v56  ;;  %8219 = vmatpush1.bf16.msra.mxu1 %v8210_v56  ;;  %v6082_v50 = vpop.permute.xlu1 %6081 }
 0xeed   :  { %8213 = vmatprep.subr.bf16.mxu0 %v8212_v47  ;;  %8221 = vmatprep.subr.bf16.mxu1 %v8212_v47 }
 0xeee   :  { %6774 = vmatmul.mubr.msk.f32.gmra.mrb[142].mxu0 %vm969_vm9, %v5760_v48  ;;  %6776 = vmatmul.mubr.msk.f32.gmra.mrb[142].mxu1 %vm969_vm9, %v5760_v48 }
 0xeef   :  { %6541 = vmatprep.mubr.f32.mxu0 %v13960_v29  ;;  %6617 = vmatprep.mubr.f32.mxu1 %v13960_v29  ;;  %v5942_v29 = vpop.permute.xlu0 %5941 }
 0xef0   :  { %8215 = vmatpush1.bf16.msra.mxu0 %v8214_v38  ;;  %8223 = vmatpush1.bf16.msra.mxu1 %v8214_v38  ;;  %v12726_v54 = vsel %vm146_vm0, %v5940_v44, %v5942_v29  ;;  %v12730_v46 = vsel %vm146_vm0, %v5942_v29, %v5944_v9  ;;  %v6086_v39 = vpop.permute.xlu1 %6085 }
 0xef3   :  { %6777 = vmatmul.mubr.msk.f32.vlgmr.msra.gmra.mrb[144].mxu0 %vm969_vm9, %v6465_v35  ;;  %6779 = vmatmul.mubr.msk.f32.vlgmr.msra.gmra.mrb[144].mxu1 %vm969_vm9, %v6778_v16  ;;  %v6629_v4 = vpop.permute.xlu0 %6628 }
 0xef4   :  { %8288 = vpush %v6629_v4  ;;  %v6150_v27 = vpop.permute.xlu1 %6149 }
 0xef7   :  { %v6016_v53 = vpop.permute.xlu0 %6015 }
 0xef8   :  { %v12738_v45 = vsel %vm179_vm1, %v6014_v10, %v6016_v53  ;;  %v12750_v8 = vsel %vm179_vm1, %v6016_v53, %v6018_v62  ;;  %v6154_v59 = vpop.permute.xlu1 %6153 }
 0xefb   :  { %v6020_v18 = vpop.permute.xlu0 %6019 }
 0xefc   :  { %v12742_v43 = vsel %vm179_vm1, %v6020_v18, %v6014_v10  ;;  %v12746_v57 = vsel %vm179_vm1, %v6018_v62, %v6020_v18  ;;  %v6242_v19 = vpop.permute.xlu1 %6241 }
 0xeff   :  { %v6084_v31 = vpop.permute.xlu0 %6083 }
 0xf00   :  { %v12754_v40 = vsel %vm212_vm2, %v6082_v50, %v6084_v31  ;;  %v12766_v13 = vsel %vm212_vm2, %v6084_v31, %v6086_v39  ;;  %v6246_v41 = vpop.permute.xlu1 %6245 }
 0xf03   :  { %v6088_v5 = vpop.permute.xlu0 %6087 }
 0xf04   :  { %v12758_v36 = vsel %vm212_vm2, %v6088_v5, %v6082_v50  ;;  %v12762_v37 = vsel %vm212_vm2, %v6086_v39, %v6088_v5  ;;  %v6310_v52 = vpop.permute.xlu1 %6309 }
 0xf07   :  { %v6152_v21 = vpop.permute.xlu0 %6151 }
 0xf08   :  { %v12770_v28 = vsel %vm245_vm3, %v6150_v27, %v6152_v21  ;;  %v12782_v58 = vsel %vm245_vm3, %v6152_v21, %v6154_v59  ;;  %v6314_v23 = vpop.permute.xlu1 %6313 }
 0xf0b   :  { %v6156_v60 = vpop.permute.xlu0 %6155 }
 0xf0c   :  { %v12774_v22 = vsel %vm245_vm3, %v6156_v60, %v6150_v27  ;;  %v12778_v7 = vsel %vm245_vm3, %v6154_v59, %v6156_v60 }
 0xf0f   :  { %v6244_v42 = vpop.permute.xlu0 %6243 }
 0xf10   :  { %v12786_v20 = vsel %vm278_vm4, %v6242_v19, %v6244_v42  ;;  %v12798_v34 = vsel %vm278_vm4, %v6244_v42, %v6246_v41 }
 0xf13   :  { %v6248_v49 = vpop.permute.xlu0 %6247 }
 0xf14   :  { %v12790_v12 = vsel %vm278_vm4, %v6248_v49, %v6242_v19  ;;  %v12794_v51 = vsel %vm278_vm4, %v6246_v41, %v6248_v49 }
 0xf15   :  { %13996 = vst [vmem:[#allocation104_spill] sm:$0xff] %v12794_v51 }
 0xf17   :  { %v6312_v11 = vpop.permute.xlu0 %6311 }
 0xf18   :  { %v12802_v6 = vsel %vm311_vm6, %v6310_v52, %v6312_v11  ;;  %v12814_v55 = vsel %vm311_vm6, %v6312_v11, %v6314_v23 }
 0xf19   :  { %13998 = vst [vmem:[#allocation7_spill] sm:$0xff] %v12814_v55 }
 0xf1b   :  { %v6316_v30 = vpop.permute.xlu0 %6315 }
 0xf1c   :  { %v12806_v63 = vsel %vm311_vm6, %v6316_v30, %v6310_v52  ;;  %v12810_v24 = vsel %vm311_vm6, %v6314_v23, %v6316_v30 }
 0xf1d   :  { %13997 = vst [vmem:[#allocation75_spill] sm:$0xff] %v12810_v24 }
 0xf25   :  { %s8289_s26 = spop %8288 }
 0xfbd   :  { %v12816_v25 = vpop.f32.mrb[140].mxu0  ;;  %v12818_v3 = vpop.f32.mrb[140].mxu1 }
 0xfbe   :  { %5921 = vrot.lane.b32.xlu0 %v12816_v25, %s8392_s17  ;;  %v12822_v56 = vpop.f32.mrb[141].mxu0  ;;  %v12824_v47 = vpop.f32.mrb[141].mxu1  ;;  %v5977_v35 = vrot.slane %v12816_v25, 1  ;;  %v5979_v16 = vrot.slane %v12818_v3, 1  ;;  %v6049_v17 = vrot.slane %v12816_v25, 2  ;;  %v6051_v44 = vrot.slane %v12818_v3, 2 }
 0xfbf   :  { %5923 = vrot.lane.b32.xlu1 %v12822_v56, %s8392_s17  ;;  %v5980_v29 = vrot.slane %v12824_v47, 1  ;;  %v6117_v9 = vrot.slane %v12816_v25, 3  ;;  %v6050_v4 = vrot.slane %v12822_v56, 2  ;;  %v6119_v53 = vrot.slane %v12818_v3, 3 }
 0xfc0   :  { %v6052_v10 = vrot.slane %v12824_v47, 2  ;;  %v6209_v18 = vrot.slane %v12816_v25, 5  ;;  %v6118_v62 = vrot.slane %v12822_v56, 3  ;;  %v6211_v31 = vrot.slane %v12818_v3, 5 }
 0xfc1   :  { %v5839_v32 = vpop.f32.mrb[142].mxu0  ;;  %v5916_v2 = vpop.f32.mrb[142].mxu1  ;;  %v6120_v50 = vrot.slane %v12824_v47, 3  ;;  %v6277_v5 = vrot.slane %v12816_v25, 6  ;;  %v6210_v39 = vrot.slane %v12822_v56, 5  ;;  %v6279_v21 = vrot.slane %v12818_v3, 6 }
 0xfc2   :  { %5925 = vrot.lane.b32.xlu0 %v12818_v3, %s8392_s17  ;;  %v5841_v48 = vpop.f32.mrb[143].mxu0  ;;  %v5918_v38 = vpop.f32.mrb[143].mxu1  ;;  %v6212_v27 = vrot.slane %v12824_v47, 5  ;;  %v6345_v60 = vrot.slane %v12816_v25, 7  ;;  %v6278_v59 = vrot.slane %v12822_v56, 6  ;;  %v6347_v42 = vrot.slane %v12818_v3, 7 }
 0xfc3   :  { %5927 = vrot.lane.b32.xlu1 %v12824_v47, %s8392_s17  ;;  %v6280_v19 = vrot.slane %v12824_v47, 6  ;;  %v5978_v49 = vrot.slane %v12822_v56, 1  ;;  %v6346_v41 = vrot.slane %v12822_v56, 7  ;;  %v6348_v11 = vrot.slane %v12824_v47, 7 }
 0xfc6   :  { %5985 = vrot.lane.b32.xlu0 %v5977_v35, %s8393_s22  ;;  %v12888_v52 = vpop.f32.mrb[144].mxu0  ;;  %v12892_v30 = vpop.f32.mrb[144].mxu1 }
 0xfc7   :  { %5989 = vrot.lane.b32.xlu1 %v5979_v16, %s8393_s22  ;;  %13999 = vst [vmem:[#allocation5_spill] sm:$0xff] %v12888_v52  ;;  %14000 = vst [vmem:[#allocation6_spill] sm:$0xff] %v12892_v30  ;;  %v12896_v23 = vpop.f32.mrb[145].mxu1  ;;  %v12898_v35 = vpop.f32.mrb[145].mxu0 }
 0xfc8   :  { %14001 = vst [vmem:[#allocation82_spill] sm:$0xff] %v12896_v23  ;;  %14002 = vst [vmem:[#allocation10_spill] sm:$0xff] %v12898_v35  ;;  %v12904_v16 = vpop.permute.xlu0 %6379 }
 0xfc9   :  { %14003 = vst [vmem:[#allocation111_spill] sm:$0xff] %v12904_v16 }
 0xfca   :  { %6383 = vrot.lane.b32.xlu0 %v12595_v1, %s13603_s29 }
 0xfcb   :  { %6057 = vrot.lane.b32.xlu1 %v6049_v17, %s8394_s23 }
 0xfce   :  { %6431 = vrot.lane.b32.xlu0 %v12581_v26, %s13604_s30 }
 0xfcf   :  { %6061 = vrot.lane.b32.xlu1 %v6051_v44, %s8394_s23 }
 0xfd2   :  { %5991 = vrot.lane.b32.xlu0 %v5980_v29, %s8393_s22 }
 0xfd3   :  { %6125 = vrot.lane.b32.xlu1 %v6117_v9, %s8395_s24 }
 0xfd6   :  { %6059 = vrot.lane.b32.xlu0 %v6050_v4, %s8394_s23 }
 0xfd7   :  { %6129 = vrot.lane.b32.xlu1 %v6119_v53, %s8395_s24 }
 0xfda   :  { %6063 = vrot.lane.b32.xlu0 %v6052_v10, %s8394_s23 }
 0xfdb   :  { %6217 = vrot.lane.b32.xlu1 %v6209_v18, %s8396_s25 }
 0xfde   :  { %6127 = vrot.lane.b32.xlu0 %v6118_v62, %s8395_s24 }
 0xfdf   :  { %6221 = vrot.lane.b32.xlu1 %v6211_v31, %s8396_s25  ;;  %v12935_v31 = vld [vmem:[%s13206_s9] sm:$0xff] }
 0xfe0   :  { %v6069_v52 = vrot.slane %v12935_v31, 2 }
 0xfe2   :  { %6131 = vrot.lane.b32.xlu0 %v6120_v50, %s8395_s24 }
 0xfe3   :  { %6285 = vrot.lane.b32.xlu1 %v6277_v5, %s13602_s12  ;;  %v12941_v5 = vld [vmem:[%s13206_s9 + $0x18] sm:$0xff] }
 0xfe6   :  { %6219 = vrot.lane.b32.xlu0 %v6210_v39, %s8396_s25 }
 0xfe7   :  { %6289 = vrot.lane.b32.xlu1 %v6279_v21, %s13602_s12  ;;  %v6001_v21 = vrot.slane %v12935_v31, 1 }
 0xfea   :  { %6223 = vrot.lane.b32.xlu0 %v6212_v27, %s8396_s25  ;;  %v6004_v27 = vrot.slane %v12941_v5, 1 }
 0xfeb   :  { %6353 = vrot.lane.b32.xlu1 %v6345_v60, %s13603_s29 }
 0xfee   :  { %6287 = vrot.lane.b32.xlu0 %v6278_v59, %s13602_s12 }
 0xfef   :  { %6357 = vrot.lane.b32.xlu1 %v6347_v42, %s13603_s29 }
 0xff2   :  { %6291 = vrot.lane.b32.xlu0 %v6280_v19, %s13602_s12 }
 0xff3   :  { %5987 = vrot.lane.b32.xlu1 %v5978_v49, %s8393_s22  ;;  %v14005_v49 = vld [vmem:[#allocation3_spill] sm:$0xff] }
 0xff6   :  { %6355 = vrot.lane.b32.xlu0 %v6346_v41, %s13603_s29 }
 0xff7   :  { %6381 = vrot.lane.b32.xlu1 %v12590_v33, %s13603_s29 }
 0xffa   :  { %6359 = vrot.lane.b32.xlu0 %v6348_v11, %s13603_s29 }
 0xffb   :  { %6429 = vrot.lane.b32.xlu1 %v12576_v61, %s13604_s30 }
 0xffe   :  { %6415 = vrot.lane.b32.xlu0 %v5841_v48, %s13604_s30  ;;  %v12906_v48 = vpop.permute.xlu1 %6377 }
 0xfff   :  { %6413 = vrot.lane.b32.xlu1 %v5839_v32, %s13604_s30 }
0x1002   :  { %6419 = vrot.lane.b32.xlu0 %v5918_v38, %s13604_s30 }
0x1003   :  { %6417 = vrot.lane.b32.xlu1 %v5916_v2, %s13604_s30 }
0x1006   :  { %6435 = vrot.lane.b32.xlu0 %v12595_v1, %s13604_s30 }
0x1007   :  { %6433 = vrot.lane.b32.xlu1 %v12590_v33, %s13604_s30 }
0x1030   :  { %v12908_v32 = vpop.permute.xlu0 %5921 }
0x1031   :  { %v12910_v17 = vpop.permute.xlu1 %5923 }
0x1034   :  { %v12912_v38 = vpop.permute.xlu0 %5925 }
0x1035   :  { %v5928_v2 = vpop.permute.xlu1 %5927 }
0x1036   :  { %v5929_v53 = vsel %vm146_vm0, %v12912_v38, %v5928_v2  ;;  %v5932_v10 = vsel %vm146_vm0, %v5928_v2, %v12908_v32 }
0x1037   :  { %v5933_v50 = vmul.f32 %v12935_v31, %v5932_v10  ;;  %v5936_v39 = vmul.f32 %v12941_v5, %v5929_v53 }
0x1038   :  { %v12914_v44 = vpop.permute.xlu0 %5985 }
0x1039   :  { %v12916_v29 = vpop.permute.xlu1 %5989  ;;  %v5952_v41 = vrot.slane %v5933_v50, %v14005_v49  ;;  %v5964_v11 = vrot.slane %v5936_v39, %v14005_v49 }
0x103b   :  { %v5968_v24 = vmul.f32 %v5964_v11, %v12730_v46 }
0x103c   :  { %v12918_v9 = vpop.permute.xlu0 %6383 }
0x103d   :  { %v12920_v4 = vpop.permute.xlu1 %6057 }
0x1040   :  { %v12928_v18 = vpop.permute.xlu0 %6431 }
0x1041   :  { %14004 = vst [vmem:[#allocation68_spill] sm:$0xff] %v12928_v18  ;;  %v12930_v62 = vpop.permute.xlu1 %6061  ;;  %v6072_v18 = vrot.slane %v12941_v5, 2 }
0x1044   :  { %v5992_v60 = vpop.permute.xlu0 %5991 }
0x1045   :  { %v5993_v59 = vsel %vm179_vm1, %v12916_v29, %v5992_v60  ;;  %v5996_v42 = vsel %vm179_vm1, %v5992_v60, %v12914_v44  ;;  %v12952_v19 = vpop.permute.xlu1 %6125  ;;  %v5965_v60 = vmul.f32 %v5952_v41, %v12734_v0 }
0x1046   :  { %v6009_v2 = vmul.f32 %v6001_v21, %v5996_v42  ;;  %v6012_v53 = vmul.f32 %v6004_v27, %v5993_v59  ;;  %v14006_v42 = vld [vmem:[#allocation2_spill] sm:$0xff] }
0x1048   :  { %v6028_v10 = vrot.slane %v6009_v2, %v14005_v49  ;;  %v6040_v35 = vrot.slane %v6012_v53, %v14005_v49  ;;  %v6060_v30 = vpop.permute.xlu0 %6059  ;;  %v6187_v2 = vsub.s32 4, %v14006_v42 }
0x1049   :  { %v12958_v23 = vpop.permute.xlu1 %6129 }
0x104a   :  { %v6041_v50 = vmul.f32 %v6028_v10, %v12742_v43  ;;  %v6044_v39 = vmul.f32 %v6040_v35, %v12746_v57  ;;  %v6196_v11 = vrot.slane %v12818_v3, %v6187_v2 }
0x104c   :  { %v6045_v21 = vadd.f32 %v6041_v50, %v5965_v60  ;;  %v6048_v27 = vadd.f32 %v6044_v39, %v5968_v24  ;;  %v6064_v59 = vpop.permute.xlu0 %6063  ;;  %v6188_v24 = vrot.slane %v12816_v25, %v6187_v2  ;;  %v6200_v60 = vrot.slane %v12824_v47, %v6187_v2 }
0x104d   :  { %v6065_v53 = vsel %vm212_vm2, %v12930_v62, %v6064_v59  ;;  %v6068_v55 = vsel %vm212_vm2, %v6064_v59, %v12920_v4  ;;  %v6218_v0 = vpop.permute.xlu1 %6217  ;;  %v6192_v50 = vrot.slane %v12822_v56, %v6187_v2  ;;  %v12991_v25 = vsel %vm344_vm5, %v12906_v48, %v12904_v16 }
0x104e   :  { %v6077_v41 = vmul.f32 %v6069_v52, %v6068_v55  ;;  %v6080_v46 = vmul.f32 %v6072_v18, %v6065_v53  ;;  %v6137_v52 = vrot.slane %v12935_v31, 3  ;;  %v6140_v18 = vrot.slane %v12941_v5, 3  ;;  %14007 = vst [vmem:[#allocation12_spill] sm:$0xff] %v12991_v25 }
0x104f   :  { %v6201_v47 = vmul.f32 %v6188_v24, %v12576_v61  ;;  %v12995_v56 = vmul.f32 %v6196_v11, %v12590_v33  ;;  %v6204_v53 = vmul.f32 %v6200_v60, %v12595_v1  ;;  %v5931_v61 = vsel %vm146_vm0, %v12908_v32, %v12910_v17 }
0x1050   :  { %v6096_v43 = vrot.slane %v6077_v41, %v14005_v49  ;;  %v6108_v57 = vrot.slane %v6080_v46, %v14005_v49  ;;  %v12975_v35 = vpop.permute.xlu0 %6127  ;;  %v6229_v41 = vrot.slane %v12935_v31, 5  ;;  %v13017_v46 = vld [vmem:[%s13206_s9 + $0x8] sm:$0xff]  ;;  %v5930_v24 = vsel %vm146_vm0, %v12910_v17, %v12912_v38 }
0x1051   :  { %v12979_v10 = vpop.permute.xlu1 %6221  ;;  %14008 = vst [vmem:[#allocation70_spill] sm:$0xff] %v12995_v56  ;;  %v6138_v32 = vrot.slane %v13017_v46, 3  ;;  %v6066_v17 = vsel %vm212_vm2, %v6060_v30, %v12930_v62 }
0x1052   :  { %v6109_v39 = vmul.f32 %v6096_v43, %v12758_v36  ;;  %v6112_v55 = vmul.f32 %v6108_v57, %v12762_v37  ;;  %v6070_v43 = vrot.slane %v13017_v46, 2 }
0x1054   :  { %v6113_v3 = vadd.f32 %v6109_v39, %v6045_v21  ;;  %v6116_v59 = vadd.f32 %v6112_v55, %v6048_v27  ;;  %v6132_v42 = vpop.permute.xlu0 %6131  ;;  %v13007_v21 = vmul.f32 %v6192_v50, %v12581_v26  ;;  %v13023_v26 = vld [vmem:[%s13206_s9 + $0x10] sm:$0xff]  ;;  %v5934_v55 = vmul.f32 %v13017_v46, %v5931_v61 }
0x1055   :  { %v6133_v36 = vsel %vm245_vm3, %v12958_v23, %v6132_v42  ;;  %v6136_v37 = vsel %vm245_vm3, %v6132_v42, %v12952_v19  ;;  %v13003_v2 = vpop.permute.xlu1 %6285  ;;  %v6071_v1 = vrot.slane %v13023_v26, 2  ;;  %v6139_v57 = vrot.slane %v13023_v26, 3 }
0x1056   :  { %14009 = vst [vmem:[#allocation97_spill] sm:$0xff] %v13007_v21  ;;  %v6145_v33 = vmul.f32 %v6137_v52, %v6136_v37  ;;  %v6148_v27 = vmul.f32 %v6140_v18, %v6133_v36  ;;  %v6067_v52 = vsel %vm212_vm2, %v12920_v4, %v6060_v30  ;;  %v6232_v36 = vrot.slane %v12941_v5, 5 }
0x1057   :  { %v5935_v61 = vmul.f32 %v13023_v26, %v5930_v24  ;;  %v6297_v4 = vrot.slane %v12935_v31, 6  ;;  %v6298_v50 = vrot.slane %v13017_v46, 6  ;;  %v6078_v21 = vmul.f32 %v6070_v43, %v6067_v52 }
0x1058   :  { %v6164_v11 = vrot.slane %v6145_v33, %v14005_v49  ;;  %v6176_v60 = vrot.slane %v6148_v27, %v14005_v49  ;;  %v6220_v39 = vpop.permute.xlu0 %6219  ;;  %v6231_v27 = vrot.slane %v13023_v26, 5  ;;  %v6079_v30 = vmul.f32 %v6071_v1, %v6066_v17 }
0x1059   :  { %v6227_v18 = vsel %vm278_vm4, %v6218_v0, %v6220_v39  ;;  %v6290_v42 = vpop.permute.xlu1 %6289  ;;  %v6299_v62 = vrot.slane %v13023_v26, 6  ;;  %v5956_v24 = vrot.slane %v5934_v55, %v14005_v49  ;;  %v6100_v52 = vrot.slane %v6078_v21, %v14005_v49 }
0x105a   :  { %v6177_v38 = vmul.f32 %v6164_v11, %v12774_v22  ;;  %v6180_v37 = vmul.f32 %v6176_v60, %v12778_v7  ;;  %v6237_v33 = vmul.f32 %v6229_v41, %v6227_v18  ;;  %v6300_v41 = vrot.slane %v12941_v5, 6 }
0x105b   :  { %v6003_v55 = vrot.slane %v13023_v26, 1 }
0x105c   :  { %v6181_v56 = vadd.f32 %v6177_v38, %v6113_v3  ;;  %v6184_v16 = vadd.f32 %v6180_v37, %v6116_v59  ;;  %v6256_v25 = vrot.slane %v6237_v33, %v14005_v49  ;;  %v6224_v51 = vpop.permute.xlu0 %6223  ;;  %v6002_v3 = vrot.slane %v13017_v46, 1 }
0x105d   :  { %v6228_v22 = vsel %vm278_vm4, %v6224_v51, %v6218_v0  ;;  %v13054_v7 = vpop.permute.xlu1 %6353  ;;  %v5960_v59 = vrot.slane %v5935_v61, %v14005_v49  ;;  %v6135_v0 = vsel %vm245_vm3, %v12952_v19, %v12975_v35  ;;  %v6366_v19 = vrot.slane %v13017_v46, 7 }
0x105e   :  { %v6269_v11 = vmul.f32 %v6256_v25, %v12786_v20  ;;  %v6240_v43 = vmul.f32 %v6232_v36, %v6228_v22  ;;  %v6205_v1 = vadd.f32 %v6201_v47, %v6181_v56  ;;  %v6208_v60 = vadd.f32 %v6204_v53, %v6184_v16 }
0x105f   :  { %v6365_v20 = vrot.slane %v12935_v31, 7  ;;  %v6104_v25 = vrot.slane %v6079_v30, %v14005_v49  ;;  %v6134_v16 = vsel %vm245_vm3, %v12975_v35, %v12958_v23  ;;  %v6146_v56 = vmul.f32 %v6138_v32, %v6135_v0 }
0x1060   :  { %v6268_v18 = vrot.slane %v6240_v43, %v14005_v49  ;;  %v6288_v17 = vpop.permute.xlu0 %6287  ;;  %v6273_v47 = vadd.f32 %v6269_v11, %v6205_v1  ;;  %v5966_v31 = vmul.f32 %v5956_v24, %v12722_v15  ;;  %v5967_v37 = vmul.f32 %v5960_v59, %v12726_v54 }
0x1061   :  { %v6295_v36 = vsel %vm311_vm6, %v13003_v2, %v6288_v17  ;;  %v6358_v38 = vpop.permute.xlu1 %6357  ;;  %v6367_v33 = vrot.slane %v13023_v26, 7  ;;  %v6368_v61 = vrot.slane %v12941_v5, 7  ;;  %v6110_v30 = vmul.f32 %v6100_v52, %v12754_v40 }
0x1062   :  { %v6272_v53 = vmul.f32 %v6268_v18, %v12790_v12  ;;  %v6305_v21 = vmul.f32 %v6297_v4, %v6295_v36  ;;  %v6226_v22 = vsel %vm278_vm4, %v6220_v39, %v12979_v10  ;;  %v6111_v12 = vmul.f32 %v6104_v25, %v12766_v13 }
0x1063   :  { %v6147_v4 = vmul.f32 %v6139_v57, %v6134_v16  ;;  %v6225_v15 = vsel %vm278_vm4, %v12979_v10, %v6224_v51  ;;  %v6168_v5 = vrot.slane %v6146_v56, %v14005_v49  ;;  %v6294_v26 = vsel %vm311_vm6, %v6288_v17, %v6290_v42 }
0x1064   :  { %v6324_v23 = vrot.slane %v6305_v21, %v14005_v49  ;;  %v6292_v35 = vpop.permute.xlu0 %6291  ;;  %v6276_v32 = vadd.f32 %v6272_v53, %v6208_v60  ;;  %v14010_v13 = vrot.slane %v13017_v46, 5  ;;  %v6306_v0 = vmul.f32 %v6298_v50, %v6294_v26 }
0x1065   :  { %v6296_v54 = vsel %vm311_vm6, %v6292_v35, %v13003_v2  ;;  %v5988_v40 = vpop.permute.xlu1 %5987  ;;  %v6293_v11 = vsel %vm311_vm6, %v6290_v42, %v6292_v35  ;;  %v6239_v2 = vmul.f32 %v6231_v27, %v6225_v15 }
0x1066   :  { %v6337_v39 = vmul.f32 %v6324_v23, %v12802_v6  ;;  %v6308_v24 = vmul.f32 %v6300_v41, %v6296_v54  ;;  %v6238_v57 = vmul.f32 %v14010_v13, %v6226_v22  ;;  %v5994_v51 = vsel %vm179_vm1, %v5988_v40, %v12916_v29 }
0x1067   :  { %v5995_v10 = vsel %vm179_vm1, %v12914_v44, %v5988_v40  ;;  %v6011_v6 = vmul.f32 %v6003_v55, %v5994_v51  ;;  %v6307_v60 = vmul.f32 %v6299_v62, %v6293_v11  ;;  %v6264_v55 = vrot.slane %v6239_v2, %v14005_v49  ;;  %v14012_v40 = vld [vmem:[#allocation7_spill] sm:$0xff]  ;;  %v14016_v2 = vld [vmem:[#allocation68_spill] sm:$0xff] }
0x1068   :  { %v6336_v43 = vrot.slane %v6308_v24, %v14005_v49  ;;  %v6010_v59 = vmul.f32 %v6002_v3, %v5995_v10  ;;  %v6356_v41 = vpop.permute.xlu0 %6355  ;;  %v6341_v29 = vadd.f32 %v6337_v39, %v6273_v47  ;;  %v6172_v3 = vrot.slane %v6147_v4, %v14005_v49 }
0x1069   :  { %v6362_v46 = vsel %vm344_vm5, %v6356_v41, %v6358_v38  ;;  %v6363_v42 = vsel %vm344_vm5, %v13054_v7, %v6356_v41  ;;  %v6382_v1 = vpop.permute.xlu1 %6381  ;;  %v6036_v27 = vrot.slane %v6011_v6, %v14005_v49  ;;  %v6260_v50 = vrot.slane %v6238_v57, %v14005_v49  ;;  %v8384_v57 = vld [vmem:[%s13206_s9 + $0x20] sm:$0x1] }
0x106a   :  { %v6340_v52 = vmul.f32 %v6336_v43, %v12806_v63  ;;  %v6032_v44 = vrot.slane %v6010_v59, %v14005_v49  ;;  %v6373_v18 = vmul.f32 %v6365_v20, %v6363_v42  ;;  %v6374_v17 = vmul.f32 %v6366_v19, %v6362_v46  ;;  %v14017_v6 = vld [vmem:[#allocation70_spill] sm:$0xff] }
0x106b   :  { %v6043_v36 = vmul.f32 %v6036_v27, %v12750_v8  ;;  %v6328_v63 = vrot.slane %v6306_v0, %v14005_v49  ;;  %v6332_v53 = vrot.slane %v6307_v60, %v14005_v49  ;;  %v6388_v8 = vsel %vm344_vm5, %v12918_v9, %v12906_v48  ;;  %v14013_v48 = vld [vmem:[#allocation12_spill] sm:$0xff]  ;;  %v14018_v60 = vld [vmem:[#allocation97_spill] sm:$0xff] }
0x106c   :  { %v6042_v25 = vmul.f32 %v6032_v44, %v12738_v45  ;;  %v6360_v47 = vpop.permute.xlu0 %6359  ;;  %v6344_v62 = vadd.f32 %v6340_v52, %v6276_v32  ;;  %v6392_v16 = vrot.slane %v6373_v18, %v14005_v49  ;;  %v6178_v23 = vmul.f32 %v6168_v5, %v12770_v28  ;;  %v14014_v28 = vld [vmem:[#allocation75_spill] sm:$0xff]  ;;  %v8385_v44 = vld [vmem:[%s13206_s9 + $0x38] sm:$0x1] }
0x106d   :  { %v6361_v56 = vsel %vm344_vm5, %v6358_v38, %v6360_v47  ;;  %v6364_v20 = vsel %vm344_vm5, %v6360_v47, %v13054_v7  ;;  %v6430_v19 = vpop.permute.xlu1 %6429  ;;  %v6047_v45 = vadd.f32 %v6043_v36, %v5967_v37  ;;  %v6179_v35 = vmul.f32 %v6172_v3, %v12782_v58  ;;  %v14011_v37 = vld [vmem:[#allocation104_spill] sm:$0xff]  ;;  %v14015_v58 = vld [vmem:[#allocation111_spill] sm:$0xff] }
0x106e   :  { %v6046_v21 = vadd.f32 %v6042_v25, %v5966_v31  ;;  %v6376_v22 = vmul.f32 %v6368_v61, %v6364_v20  ;;  %v6396_v38 = vrot.slane %v6374_v17, %v14005_v49  ;;  %v6375_v7 = vmul.f32 %v6367_v33, %v6361_v56  ;;  %v8386_v17 = vld [vmem:[%s13206_s9 + $0x28] sm:$0x1] }
0x106f   :  { %v6115_v4 = vadd.f32 %v6111_v12, %v6047_v45  ;;  %v6270_v31 = vmul.f32 %v6260_v50, %v12798_v34  ;;  %v6271_v61 = vmul.f32 %v6264_v55, %v14011_v37  ;;  %v6338_v26 = vmul.f32 %v6328_v63, %v14012_v40 }
0x1070   :  { %v6114_v32 = vadd.f32 %v6110_v30, %v6046_v21  ;;  %v6404_v15 = vrot.slane %v6376_v22, %v14005_v49  ;;  %v6416_v54 = vpop.permute.xlu0 %6415  ;;  %v6405_v24 = vmul.f32 %v6392_v16, %v14013_v48  ;;  %v6339_v5 = vmul.f32 %v6332_v53, %v14014_v28 }
0x1071   :  { %v6414_v39 = vpop.permute.xlu1 %6413  ;;  %v6386_v30 = vsel %vm344_vm5, %v14015_v58, %v6382_v1  ;;  %v6183_v12 = vadd.f32 %v6179_v35, %v6115_v4  ;;  %v6385_v34 = vsel %vm344_vm5, %v6382_v1, %v12918_v9  ;;  %v6400_v10 = vrot.slane %v6375_v7, %v14005_v49 }
0x1072   :  { %v6423_v33 = vsel %vm377_vm7, %v6414_v39, %v6416_v54  ;;  %v6406_v13 = vmul.f32 %v6396_v38, %v6386_v30  ;;  %v6182_v51 = vadd.f32 %v6178_v23, %v6114_v32  ;;  %v6439_v43 = vsel %vm377_vm7, %v6430_v19, %v14016_v2  ;;  %v14022_v30 = vld [vmem:[#allocation10_spill] sm:$0xff] }
0x1073   :  { %v6425_v11 = vmul.f32 %v8384_v57, %v6423_v33  ;;  %v6207_v41 = vadd.f32 %v14017_v6, %v6183_v12  ;;  %v6408_v0 = vmul.f32 %v6404_v15, %v6388_v8  ;;  %v6409_v1 = vadd.f32 %v6405_v24, %v6341_v29  ;;  %v8387_v29 = vld [vmem:[%s13206_s9 + $0x30] sm:$0x1]  ;;  %v14019_v15 = vld [vmem:[#allocation5_spill] sm:$0xff]  ;;  %v14021_v24 = vld [vmem:[#allocation6_spill] sm:$0xff] }
0x1074   :  { %v6420_v59 = vpop.permute.xlu0 %6419  ;;  %v6206_v52 = vadd.f32 %v14018_v60, %v6182_v51  ;;  %v6407_v20 = vmul.f32 %v6400_v10, %v6385_v34 }
0x1075   :  { %v6444_v46 = vrot.slane %v6425_v11, %v14005_v49  ;;  %v6424_v9 = vsel %vm377_vm7, %v6420_v59, %v6414_v39  ;;  %v6418_v42 = vpop.permute.xlu1 %6417  ;;  %v6275_v18 = vadd.f32 %v6271_v61, %v6207_v41  ;;  %v6412_v53 = vadd.f32 %v6408_v0, %v6344_v62  ;;  %v14020_v39 = vld [vmem:[#allocation82_spill] sm:$0xff] }
0x1076   :  { %v6428_v27 = vmul.f32 %v8385_v44, %v6424_v9  ;;  %v6421_v3 = vsel %vm377_vm7, %v6418_v42, %v6420_v59  ;;  %v6422_v50 = vsel %vm377_vm7, %v6416_v54, %v6418_v42  ;;  %v6274_v47 = vadd.f32 %v6270_v31, %v6206_v52 }
0x1077   :  { %v6426_v55 = vmul.f32 %v8386_v17, %v6422_v50  ;;  %v6427_v25 = vmul.f32 %v8387_v29, %v6421_v3  ;;  %v6457_v36 = vmul.f32 %v6444_v46, %v6439_v43  ;;  %v6343_v56 = vadd.f32 %v6339_v5, %v6275_v18 }
0x1078   :  { %v6456_v63 = vrot.slane %v6428_v27, %v14005_v49  ;;  %v6436_v16 = vpop.permute.xlu0 %6435  ;;  %v6631_v31 = vstv %s8289_s26 }
0x1079   :  { %v6440_v21 = vsel %vm377_vm7, %v6436_v16, %v6430_v19  ;;  %v6434_v45 = vpop.permute.xlu1 %6433  ;;  %v6448_v22 = vrot.slane %v6426_v55, %v14005_v49  ;;  %v6452_v8 = vrot.slane %v6427_v25, %v14005_v49  ;;  %v6461_v23 = vadd.f32 %v6457_v36, %v6409_v1 }
0x107a   :  { %v6460_v35 = vmul.f32 %v6456_v63, %v6440_v21  ;;  %v6437_v38 = vsel %vm377_vm7, %v6434_v45, %v6436_v16  ;;  %v6438_v32 = vsel %vm377_vm7, %v14016_v2, %v6434_v45  ;;  %v6411_v4 = vadd.f32 %v6407_v20, %v6343_v56 }
0x107b   :  { %v6458_v62 = vmul.f32 %v6448_v22, %v6438_v32  ;;  %v6459_v7 = vmul.f32 %v6452_v8, %v6437_v38  ;;  %v6624_v54 = vadd.f32 %v14019_v15, %v6461_v23  ;;  %v6342_v19 = vadd.f32 %v6338_v26, %v6274_v47 }
0x107c   :  { %v6464_v37 = vadd.f32 %v6460_v35, %v6412_v53 }
0x107d   :  { %v6633_v61 = vadd.f32 %v6631_v31, %v6624_v54  ;;  %v6463_v40 = vadd.f32 %v6459_v7, %v6411_v4  ;;  %v6410_v49 = vadd.f32 %v6406_v13, %v6342_v19 }
0x107e   :  { %v6627_v48 = vadd.f32 %v14020_v39, %v6464_v37 }
0x107f   :  { %6637 = vst [vmem:[%s13218_s14] sm:$0xff] %v6633_v61  ;;  %v6626_v14 = vadd.f32 %v14021_v24, %v6463_v40  ;;  %v6462_v28 = vadd.f32 %v6458_v62, %v6410_v49 }
0x1080   :  { %v6636_v5 = vadd.f32 %v6631_v31, %v6627_v48 }
0x1081   :  { %v6635_v58 = vadd.f32 %v6631_v31, %v6626_v14  ;;  %v6625_v33 = vadd.f32 %v14022_v30, %v6462_v28 }
0x1082   :  { %6640 = vst [vmem:[%s13218_s14 + $0x18] sm:$0xff] %v6636_v5 }
0x1083   :  { %6639 = vst [vmem:[%s13218_s14 + $0x10] sm:$0xff] %v6635_v58  ;;  %v6634_v26 = vadd.f32 %v6631_v31, %v6625_v33 }
0x1085   :  { %6638 = vst [vmem:[%s13218_s14 + $0x8] sm:$0xff] %v6634_v26 }

</bundles_post_ra>
